<compile_context>
chip_gen: v7x
topology: tpu7x:2x2x1
jax: 0.10.0
libtpu: 0.0.40
codegen_flags: <defaults>
</compile_context>

<pallas_src>
import jax
import jax.numpy as jnp
from jax import lax
from jax.experimental import pallas as pl
from jax.experimental.pallas import tpu as pltpu


def _unet_up_kernel(x_ref, w1_ref, b1_ref, w2_ref, b2_ref, wt_ref, bt_ref, out_ref):
    # x_ref:   (H+4, W+4, Cin)   bf16  input, spatially padded by 2
    # w1_ref:  (9*Cin,  Cmid)    bf16  conv1 weights, (dh, dw, cin)-major
    # b1_ref:  (1, Cmid)         f32
    # w2_ref:  (9*Cmid, Cmid)    bf16  conv2 weights
    # b2_ref:  (1, Cmid)         f32
    # wt_ref:  (Cmid, C4p)       bf16  fused ConvTranspose2d weights, lane-padded to C4p
    # bt_ref:  (1, C4p)          f32
    # out_ref: (H*W, C4p)        f32   lane-dense output
    Hp4, Wp4, Cin = x_ref.shape
    Hp2, Wp2 = Hp4 - 2, Wp4 - 2
    H, W = Hp4 - 4, Wp4 - 4
    Cmid = b1_ref.shape[1]

    x = x_ref[...].astype(jnp.float32)                       # (H+4, W+4, Cin)

    # ---- conv1 + ReLU: one matmul over the extended (H+2)x(W+2) domain ----
    taps1 = [x[dh:dh + Hp2, dw:dw + Wp2, :] for dh in range(3) for dw in range(3)]
    p1 = jnp.concatenate(taps1, axis=-1).reshape(Hp2 * Wp2, 9 * Cin).astype(jnp.bfloat16)
    h1 = jnp.dot(p1, w1_ref[...], preferred_element_type=jnp.float32) + b1_ref[...]
    h1 = jnp.maximum(h1, 0.0).reshape(Hp2, Wp2, Cmid)

    # Zero the 1-pixel ring: conv2's SAME padding must see zeros outside the HxW frame.
    row = lax.broadcasted_iota(jnp.int32, (Hp2, Wp2, 1), 0)
    col = lax.broadcasted_iota(jnp.int32, (Hp2, Wp2, 1), 1)
    interior = (row >= 1) & (row <= Hp2 - 2) & (col >= 1) & (col <= Wp2 - 2)
    h1p = jnp.where(interior, h1, 0.0)                        # (H+2, W+2, Cmid) f32

    # ---- conv2: one matmul (no activation, matching forward()) ----
    taps2 = [h1p[dh:dh + H, dw:dw + W, :] for dh in range(3) for dw in range(3)]
    p2 = jnp.concatenate(taps2, axis=-1).reshape(H * W, 9 * Cmid).astype(jnp.bfloat16)
    h2 = jnp.dot(p2, w2_ref[...], preferred_element_type=jnp.float32) + b2_ref[...]

    # ---- ConvTranspose2d(k=2, s=2): single fused matmul, lane-dense store ----
    y = jnp.dot(h2.astype(jnp.bfloat16), wt_ref[...],
                preferred_element_type=jnp.float32) + bt_ref[...]
    out_ref[...] = y


def unet_up_block(x_nchw, params):
    """UnetUpBlock forward pass. Input NCHW float32, output NCHW float32."""
    N, Cin, H, W = x_nchw.shape
    w1_oihw, b1 = params["w1"], params["b1"]          # (Cmid, Cin, 3, 3), (Cmid,)
    w2_oihw, b2 = params["w2"], params["b2"]          # (Cmid, Cmid, 3, 3), (Cmid,)
    wt_iokk, bt = params["wt"], params["bt"]          # (Cmid, Cout, 2, 2), (Cout,)
    Cmid = w1_oihw.shape[0]
    Cout = wt_iokk.shape[1]
    C4 = 4 * Cout
    C4p = ((C4 + 127) // 128) * 128                   # lane-dense output width

    # NCHW -> NHWC (bf16); pad by 2: 1 for conv1 SAME + 1 extra ring = conv2 halo.
    x = jnp.transpose(x_nchw, (0, 2, 3, 1)).astype(jnp.bfloat16)
    xpad = jnp.pad(x, ((0, 0), (2, 2), (2, 2), (0, 0)))

    # im2col-flattened conv weights (tap-major, matching the kernel's concat order).
    w1 = jnp.transpose(w1_oihw, (2, 3, 1, 0)).reshape(9 * Cin, Cmid).astype(jnp.bfloat16)
    w2 = jnp.transpose(w2_oihw, (2, 3, 1, 0)).reshape(9 * Cmid, Cmid).astype(jnp.bfloat16)
    # Fused transposed-conv weight: (Cmid, Cout, kh, kw) -> (Cmid, (kh, kw, Cout)) -> pad lanes.
    wt = jnp.transpose(wt_iokk, (0, 2, 3, 1)).reshape(Cmid, C4)
    wt = jnp.pad(wt, ((0, 0), (0, C4p - C4))).astype(jnp.bfloat16)
    b1_2d = b1.reshape(1, Cmid).astype(jnp.float32)
    b2_2d = b2.reshape(1, Cmid).astype(jnp.float32)
    bt_2d = jnp.pad(jnp.tile(bt.reshape(1, Cout), (1, 4)),
                    ((0, 0), (0, C4p - C4))).astype(jnp.float32)

    out = pl.pallas_call(
        _unet_up_kernel,
        out_shape=jax.ShapeDtypeStruct((N, H * W, C4p), jnp.float32),
        grid=(N,),
        in_specs=[
            pl.BlockSpec((None, H + 4, W + 4, Cin), lambda n: (n, 0, 0, 0)),  # per-image block
            pl.BlockSpec((9 * Cin, Cmid), lambda n: (0, 0)),                  # w1 (loaded once)
            pl.BlockSpec((1, Cmid), lambda n: (0, 0)),                        # b1
            pl.BlockSpec((9 * Cmid, Cmid), lambda n: (0, 0)),                 # w2
            pl.BlockSpec((1, Cmid), lambda n: (0, 0)),                        # b2
            pl.BlockSpec((Cmid, C4p), lambda n: (0, 0)),                      # wt (fused)
            pl.BlockSpec((1, C4p), lambda n: (0, 0)),                         # bt (fused)
        ],
        out_specs=pl.BlockSpec((None, H * W, C4p), lambda n: (n, 0, 0)),
        compiler_params=pltpu.CompilerParams(
            dimension_semantics=("parallel",),          # shards batch across TCs on v7x
            vmem_limit_bytes=64 * 1024 * 1024,
        ),
    )(xpad, w1, b1_2d, w2, b2_2d, wt, bt_2d)

    # Drop pad lanes, interleave the 2x2 upsampling taps, back to NCHW.
    y = out[:, :, :C4].reshape(N, H, W, 2, 2, Cout)
    y = y.transpose(0, 1, 3, 2, 4, 5).reshape(N, 2 * H, 2 * W, Cout)
    return jnp.transpose(y, (0, 3, 1, 2))


def _reference(x_nchw, params):
    """Pure-JAX f32 reference (lax.conv) for correctness check."""
    x = jnp.transpose(x_nchw, (0, 2, 3, 1)).astype(jnp.float32)
    w1 = jnp.transpose(params["w1"], (2, 3, 1, 0))
    w2 = jnp.transpose(params["w2"], (2, 3, 1, 0))
    dn = ("NHWC", "HWIO", "NHWC")
    h1 = lax.conv_general_dilated(x, w1, (1, 1), "SAME", dimension_numbers=dn)
    h1 = jnp.maximum(h1 + params["b1"], 0.0)
    h2 = lax.conv_general_dilated(h1, w2, (1, 1), "SAME", dimension_numbers=dn)
    h2 = h2 + params["b2"]
    N, H, W, Cmid = h2.shape
    wt = params["wt"]                                  # (Cmid, Cout, 2, 2)
    Cout = wt.shape[1]
    y = jnp.einsum("nhwc,cfkl->nhkwlf", h2, wt) + params["bt"]
    y = y.reshape(N, 2 * H, 2 * W, Cout)
    return jnp.transpose(y, (0, 3, 1, 2))


if __name__ == "__main__":
    # Module config: inplanes=4, planes=8 -> postupsample out channels = planes // 2 = 4.
    inplanes, planes = 4, 8
    N, H, W = 2, 16, 16

    key = jax.random.PRNGKey(0)
    k = jax.random.split(key, 7)
    params = {
        "w1": 0.1 * jax.random.normal(k[0], (planes, inplanes, 3, 3), jnp.float32),
        "b1": 0.1 * jax.random.normal(k[1], (planes,), jnp.float32),
        "w2": 0.1 * jax.random.normal(k[2], (planes, planes, 3, 3), jnp.float32),
        "b2": 0.1 * jax.random.normal(k[3], (planes,), jnp.float32),
        "wt": 0.1 * jax.random.normal(k[4], (planes, planes // 2, 2, 2), jnp.float32),
        "bt": 0.1 * jax.random.normal(k[5], (planes // 2,), jnp.float32),
    }
    x = jax.random.normal(k[6], (N, inplanes, H, W), jnp.float32)

    out = jax.block_until_ready(unet_up_block(x, params))
    ref = jax.block_until_ready(_reference(x, params))

    assert out.shape == (N, planes // 2, 2 * H, 2 * W), out.shape
    # bf16 matmul operands (f32 accumulation) -> looser tolerance than a pure-f32 kernel.
    max_err = float(jnp.abs(out - ref).max())
    assert jnp.allclose(out, ref, rtol=5e-2, atol=5e-2), max_err

    print("KERNEL_OK")
</pallas_src>

<mosaic_0001>
module attributes {stable_mosaic.version = 11 : i64} {
  func.func @_unet_up_kernel(%arg0: i32, %arg1: memref<1x20x20x4xbf16, #tpu.memory_space<vmem>>, %arg2: memref<36x8xbf16, #tpu.memory_space<vmem>>, %arg3: memref<1x8xf32, #tpu.memory_space<vmem>>, %arg4: memref<72x8xbf16, #tpu.memory_space<vmem>>, %arg5: memref<1x8xf32, #tpu.memory_space<vmem>>, %arg6: memref<8x128xbf16, #tpu.memory_space<vmem>>, %arg7: memref<1x128xf32, #tpu.memory_space<vmem>>, %arg8: memref<1x256x128xf32, #tpu.memory_space<vmem>>) attributes {dimension_semantics = [#tpu.dimension_semantics<parallel>], iteration_bounds = array<i64: 2>, scalar_prefetch = 0 : i64, scratch_operands = 0 : i64, tpu.core_type = #tpu.core_type<tc>, window_params = [{transform_indices = @transform_0, window_bounds = array<i64: 1, 20, 20, 4>}, {pipeline_mode = #tpu.pipeline_mode<synchronous>, transform_indices = @transform_1, window_bounds = array<i64: 36, 8>}, {pipeline_mode = #tpu.pipeline_mode<synchronous>, transform_indices = @transform_2, window_bounds = array<i64: 1, 8>}, {pipeline_mode = #tpu.pipeline_mode<synchronous>, transform_indices = @transform_3, window_bounds = array<i64: 72, 8>}, {pipeline_mode = #tpu.pipeline_mode<synchronous>, transform_indices = @transform_4, window_bounds = array<i64: 1, 8>}, {pipeline_mode = #tpu.pipeline_mode<synchronous>, transform_indices = @transform_5, window_bounds = array<i64: 8, 128>}, {pipeline_mode = #tpu.pipeline_mode<synchronous>, transform_indices = @transform_6, window_bounds = array<i64: 1, 128>}, {transform_indices = @transform_7, window_bounds = array<i64: 1, 256, 128>}]} {
    %c0 = arith.constant 0 : index
    %c0_0 = arith.constant 0 : index
    %c0_1 = arith.constant 0 : index
    %c0_2 = arith.constant 0 : index
    %0 = vector.load %arg1[%c0, %c0_0, %c0_1, %c0_2] : memref<1x20x20x4xbf16, #tpu.memory_space<vmem>>, vector<1x20x20x4xbf16>
    %1 = vector.shape_cast %0 : vector<1x20x20x4xbf16> to vector<20x20x4xbf16>
    %2 = arith.extf %1 : vector<20x20x4xbf16> to vector<20x20x4xf32>
    %3 = vector.extract_strided_slice %2 {offsets = [0, 0, 0], sizes = [18, 18, 4], strides = [1, 1, 1]} : vector<20x20x4xf32> to vector<18x18x4xf32>
    %4 = vector.extract_strided_slice %2 {offsets = [0, 1, 0], sizes = [18, 18, 4], strides = [1, 1, 1]} : vector<20x20x4xf32> to vector<18x18x4xf32>
    %5 = vector.extract_strided_slice %2 {offsets = [0, 2, 0], sizes = [18, 18, 4], strides = [1, 1, 1]} : vector<20x20x4xf32> to vector<18x18x4xf32>
    %6 = vector.extract_strided_slice %2 {offsets = [1, 0, 0], sizes = [18, 18, 4], strides = [1, 1, 1]} : vector<20x20x4xf32> to vector<18x18x4xf32>
    %7 = vector.extract_strided_slice %2 {offsets = [1, 1, 0], sizes = [18, 18, 4], strides = [1, 1, 1]} : vector<20x20x4xf32> to vector<18x18x4xf32>
    %8 = vector.extract_strided_slice %2 {offsets = [1, 2, 0], sizes = [18, 18, 4], strides = [1, 1, 1]} : vector<20x20x4xf32> to vector<18x18x4xf32>
    %9 = vector.extract_strided_slice %2 {offsets = [2, 0, 0], sizes = [18, 18, 4], strides = [1, 1, 1]} : vector<20x20x4xf32> to vector<18x18x4xf32>
    %10 = vector.extract_strided_slice %2 {offsets = [2, 1, 0], sizes = [18, 18, 4], strides = [1, 1, 1]} : vector<20x20x4xf32> to vector<18x18x4xf32>
    %11 = vector.extract_strided_slice %2 {offsets = [2, 2, 0], sizes = [18, 18, 4], strides = [1, 1, 1]} : vector<20x20x4xf32> to vector<18x18x4xf32>
    %12 = tpu.concatenate %3, %4, %5, %6, %7, %8, %9, %10, %11 in 2 : vector<18x18x4xf32>, vector<18x18x4xf32>, vector<18x18x4xf32>, vector<18x18x4xf32>, vector<18x18x4xf32>, vector<18x18x4xf32>, vector<18x18x4xf32>, vector<18x18x4xf32>, vector<18x18x4xf32> -> vector<18x18x36xf32>
    %13 = vector.shape_cast %12 : vector<18x18x36xf32> to vector<324x36xf32>
    %14 = arith.truncf %13 : vector<324x36xf32> to vector<324x36xbf16>
    %c0_3 = arith.constant 0 : index
    %c0_4 = arith.constant 0 : index
    %15 = vector.load %arg2[%c0_3, %c0_4] : memref<36x8xbf16, #tpu.memory_space<vmem>>, vector<36x8xbf16>
    %cst = arith.constant dense<0.000000e+00> : vector<324x8xf32>
    %16 = tpu.matmul %14, %15, %cst {dimension_numbers = #tpu.dot_dimension_numbers<[1], [0], [0], [1], [0, 0, 1, 1], [], []>} : vector<324x36xbf16>, vector<36x8xbf16>, vector<324x8xf32> -> vector<324x8xf32>
    %c0_5 = arith.constant 0 : index
    %c0_6 = arith.constant 0 : index
    %17 = vector.load %arg3[%c0_5, %c0_6] : memref<1x8xf32, #tpu.memory_space<vmem>>, vector<1x8xf32>
    %18 = vector.broadcast %17 : vector<1x8xf32> to vector<324x8xf32>
    %19 = arith.addf %16, %18 : vector<324x8xf32>
    %cst_7 = arith.constant 0.000000e+00 : f32
    %20 = vector.broadcast %cst_7 : f32 to vector<324x8xf32>
    %21 = arith.maximumf %19, %20 : vector<324x8xf32>
    %22 = vector.shape_cast %21 : vector<324x8xf32> to vector<18x18x8xf32>
    %23 = tpu.iota {dimensions = array<i32: 0>} : vector<18x18x1xi32>
    %24 = tpu.iota {dimensions = array<i32: 1>} : vector<18x18x1xi32>
    %c1_i32 = arith.constant 1 : i32
    %25 = vector.broadcast %c1_i32 : i32 to vector<18x18x1xi32>
    %26 = arith.cmpi sge, %23, %25 : vector<18x18x1xi32>
    %c16_i32 = arith.constant 16 : i32
    %27 = vector.broadcast %c16_i32 : i32 to vector<18x18x1xi32>
    %28 = arith.cmpi sle, %23, %27 : vector<18x18x1xi32>
    %29 = arith.andi %26, %28 : vector<18x18x1xi1>
    %c1_i32_8 = arith.constant 1 : i32
    %30 = vector.broadcast %c1_i32_8 : i32 to vector<18x18x1xi32>
    %31 = arith.cmpi sge, %24, %30 : vector<18x18x1xi32>
    %32 = arith.andi %29, %31 : vector<18x18x1xi1>
    %c16_i32_9 = arith.constant 16 : i32
    %33 = vector.broadcast %c16_i32_9 : i32 to vector<18x18x1xi32>
    %34 = arith.cmpi sle, %24, %33 : vector<18x18x1xi32>
    %35 = arith.andi %32, %34 : vector<18x18x1xi1>
    %cst_10 = arith.constant 0.000000e+00 : f32
    %36 = vector.shape_cast %35 : vector<18x18x1xi1> to vector<18x18x1xi1>
    %37 = vector.broadcast %36 : vector<18x18x1xi1> to vector<18x18x8xi1>
    %38 = vector.broadcast %cst_10 : f32 to vector<18x18x8xf32>
    %39 = arith.select %37, %22, %38 : vector<18x18x8xi1>, vector<18x18x8xf32>
    %40 = vector.extract_strided_slice %39 {offsets = [0, 0, 0], sizes = [16, 16, 8], strides = [1, 1, 1]} : vector<18x18x8xf32> to vector<16x16x8xf32>
    %41 = vector.extract_strided_slice %39 {offsets = [0, 1, 0], sizes = [16, 16, 8], strides = [1, 1, 1]} : vector<18x18x8xf32> to vector<16x16x8xf32>
    %42 = vector.extract_strided_slice %39 {offsets = [0, 2, 0], sizes = [16, 16, 8], strides = [1, 1, 1]} : vector<18x18x8xf32> to vector<16x16x8xf32>
    %43 = vector.extract_strided_slice %39 {offsets = [1, 0, 0], sizes = [16, 16, 8], strides = [1, 1, 1]} : vector<18x18x8xf32> to vector<16x16x8xf32>
    %44 = vector.extract_strided_slice %39 {offsets = [1, 1, 0], sizes = [16, 16, 8], strides = [1, 1, 1]} : vector<18x18x8xf32> to vector<16x16x8xf32>
    %45 = vector.extract_strided_slice %39 {offsets = [1, 2, 0], sizes = [16, 16, 8], strides = [1, 1, 1]} : vector<18x18x8xf32> to vector<16x16x8xf32>
    %46 = vector.extract_strided_slice %39 {offsets = [2, 0, 0], sizes = [16, 16, 8], strides = [1, 1, 1]} : vector<18x18x8xf32> to vector<16x16x8xf32>
    %47 = vector.extract_strided_slice %39 {offsets = [2, 1, 0], sizes = [16, 16, 8], strides = [1, 1, 1]} : vector<18x18x8xf32> to vector<16x16x8xf32>
    %48 = vector.extract_strided_slice %39 {offsets = [2, 2, 0], sizes = [16, 16, 8], strides = [1, 1, 1]} : vector<18x18x8xf32> to vector<16x16x8xf32>
    %49 = tpu.concatenate %40, %41, %42, %43, %44, %45, %46, %47, %48 in 2 : vector<16x16x8xf32>, vector<16x16x8xf32>, vector<16x16x8xf32>, vector<16x16x8xf32>, vector<16x16x8xf32>, vector<16x16x8xf32>, vector<16x16x8xf32>, vector<16x16x8xf32>, vector<16x16x8xf32> -> vector<16x16x72xf32>
    %50 = vector.shape_cast %49 : vector<16x16x72xf32> to vector<256x72xf32>
    %51 = arith.truncf %50 : vector<256x72xf32> to vector<256x72xbf16>
    %c0_11 = arith.constant 0 : index
    %c0_12 = arith.constant 0 : index
    %52 = vector.load %arg4[%c0_11, %c0_12] : memref<72x8xbf16, #tpu.memory_space<vmem>>, vector<72x8xbf16>
    %cst_13 = arith.constant dense<0.000000e+00> : vector<256x8xf32>
    %53 = tpu.matmul %51, %52, %cst_13 {dimension_numbers = #tpu.dot_dimension_numbers<[1], [0], [0], [1], [0, 0, 1, 1], [], []>} : vector<256x72xbf16>, vector<72x8xbf16>, vector<256x8xf32> -> vector<256x8xf32>
    %c0_14 = arith.constant 0 : index
    %c0_15 = arith.constant 0 : index
    %54 = vector.load %arg5[%c0_14, %c0_15] : memref<1x8xf32, #tpu.memory_space<vmem>>, vector<1x8xf32>
    %55 = vector.broadcast %54 : vector<1x8xf32> to vector<256x8xf32>
    %56 = arith.addf %53, %55 : vector<256x8xf32>
    %57 = arith.truncf %56 : vector<256x8xf32> to vector<256x8xbf16>
    %c0_16 = arith.constant 0 : index
    %c0_17 = arith.constant 0 : index
    %58 = vector.load %arg6[%c0_16, %c0_17] : memref<8x128xbf16, #tpu.memory_space<vmem>>, vector<8x128xbf16>
    %cst_18 = arith.constant dense<0.000000e+00> : vector<256x128xf32>
    %59 = tpu.matmul %57, %58, %cst_18 {dimension_numbers = #tpu.dot_dimension_numbers<[1], [0], [0], [1], [0, 0, 1, 1], [], []>} : vector<256x8xbf16>, vector<8x128xbf16>, vector<256x128xf32> -> vector<256x128xf32>
    %c0_19 = arith.constant 0 : index
    %c0_20 = arith.constant 0 : index
    %60 = vector.load %arg7[%c0_19, %c0_20] : memref<1x128xf32, #tpu.memory_space<vmem>>, vector<1x128xf32>
    %61 = vector.broadcast %60 : vector<1x128xf32> to vector<256x128xf32>
    %62 = arith.addf %59, %61 : vector<256x128xf32>
    %c0_21 = arith.constant 0 : index
    %c0_22 = arith.constant 0 : index
    %c0_23 = arith.constant 0 : index
    %63 = vector.load %arg8[%c0_21, %c0_22, %c0_23] : memref<1x256x128xf32, #tpu.memory_space<vmem>>, vector<1x256x128xf32>
    %64 = vector.shape_cast %63 : vector<1x256x128xf32> to vector<256x128xf32>
    %65 = vector.shape_cast %62 : vector<256x128xf32> to vector<1x256x128xf32>
    tpu.vector_store %arg8[%c0_21, %c0_22, %c0_23], %65 {strides = array<i32>} : memref<1x256x128xf32, #tpu.memory_space<vmem>>, vector<1x256x128xf32>,
    return
  }
  func.func @transform_0(%arg0: i32) -> (i32, i32, i32, i32) {
    %c0_i32 = arith.constant 0 : i32
    %c0_i32_0 = arith.constant 0 : i32
    %c0_i32_1 = arith.constant 0 : i32
    %c0_i32_2 = arith.constant 0 : i32
    return %arg0, %c0_i32, %c0_i32_0, %c0_i32_1 : i32, i32, i32, i32
  }
  func.func @transform_1(%arg0: i32) -> (i32, i32) {
    %c0_i32 = arith.constant 0 : i32
    %c0_i32_0 = arith.constant 0 : i32
    %c0_i32_1 = arith.constant 0 : i32
    return %c0_i32, %c0_i32_0 : i32, i32
  }
  func.func @transform_2(%arg0: i32) -> (i32, i32) {
    %c0_i32 = arith.constant 0 : i32
    %c0_i32_0 = arith.constant 0 : i32
    %c0_i32_1 = arith.constant 0 : i32
    return %c0_i32, %c0_i32_0 : i32, i32
  }
  func.func @transform_3(%arg0: i32) -> (i32, i32) {
    %c0_i32 = arith.constant 0 : i32
    %c0_i32_0 = arith.constant 0 : i32
    %c0_i32_1 = arith.constant 0 : i32
    return %c0_i32, %c0_i32_0 : i32, i32
  }
  func.func @transform_4(%arg0: i32) -> (i32, i32) {
    %c0_i32 = arith.constant 0 : i32
    %c0_i32_0 = arith.constant 0 : i32
    %c0_i32_1 = arith.constant 0 : i32
    return %c0_i32, %c0_i32_0 : i32, i32
  }
  func.func @transform_5(%arg0: i32) -> (i32, i32) {
    %c0_i32 = arith.constant 0 : i32
    %c0_i32_0 = arith.constant 0 : i32
    %c0_i32_1 = arith.constant 0 : i32
    return %c0_i32, %c0_i32_0 : i32, i32
  }
  func.func @transform_6(%arg0: i32) -> (i32, i32) {
    %c0_i32 = arith.constant 0 : i32
    %c0_i32_0 = arith.constant 0 : i32
    %c0_i32_1 = arith.constant 0 : i32
    return %c0_i32, %c0_i32_0 : i32, i32
  }
  func.func @transform_7(%arg0: i32) -> (i32, i32, i32) {
    %c0_i32 = arith.constant 0 : i32
    %c0_i32_0 = arith.constant 0 : i32
    %c0_i32_1 = arith.constant 0 : i32
    return %arg0, %c0_i32, %c0_i32_0 : i32, i32, i32
  }
}

</mosaic_0001>

<bundles_post_ra>
// kernel: tpu_custom_call.1
= control target key start
LH: loop header
LB: loop body
LE: loop exit
PB: predicated region body
PF: predicated region fallthrough
CT: control target
= control target key end

     0   :  { %s15587_s0 = inlined_call_operand.hbm [shape: bf16[2,20,20,4], index: 0, kind: input, shape index: {}]   ;;  %s15588_s1 = inlined_call_operand.hbm [shape: bf16[36,8], index: 1, kind: input, shape index: {}]   ;;  %s15589_s2 = inlined_call_operand.hbm [shape: f32[1,8], index: 2, kind: input, shape index: {}]   ;;  %s15590_s3 = inlined_call_operand.hbm [shape: bf16[72,8], index: 3, kind: input, shape index: {}]   ;;  %s15591_s4 = inlined_call_operand.hbm [shape: f32[1,8], index: 4, kind: input, shape index: {}]   ;;  %s15592_s5 = inlined_call_operand.hbm [shape: bf16[8,128], index: 5, kind: input, shape index: {}]   ;;  %s15593_s6 = inlined_call_operand.hbm [shape: f32[1,128], index: 6, kind: input, shape index: {}]   ;;  %s15594_s7 = inlined_call_operand.hbm [shape: f32[2,256,128], index: 7, kind: output, shape index: {}]  }
   0x1   :  { %15991 = sst [smem:[#allocation195_spill]] %s15588_s1 }
   0x2   :  { %12 = vsyncpa [#allocation3], 0 }
   0x3   :  { %14 = vsyncpa [#allocation3 + $0x1], 0 }
   0x4   :  { %15 = vsyncpa [#allocation6], 0 }
   0x5   :  { %16 = vsyncpa [#allocation9], 0 }
   0x6   :  { %17 = vsyncpa [#allocation12], 0 }
   0x7   :  { %18 = vsyncpa [#allocation4], 0 }
   0x8   :  { %20 = vsyncpa [#allocation4 + $0x1], 0  ;;  %s10504_s24 = smov 0   ;;  %s10506_s25 = smov 0  }
   0x9   :  { %s10508_s26 = smov 0   ;;  %s10510_s27 = smov 0  }
   0xa LB: > { %s10438_s28 = smov [#allocation5]   ;;  %s10525_s30 = sadd.s32 4294967295, %s10436_s27   ;;  %s10436_s27 = sphi %s10510_s27, %s16859_s27   ;;  %s10432_s26 = sphi %s10508_s26, %s16858_s26   ;;  %s10428_s25 = sphi %s10506_s25, %s16857_s25   ;;  %s10424_s24 = sphi %s10504_s24, %s16856_s24  }
   0xb   : > { %s221_s29 = sshll.u32 %s10438_s28, 4  ;;  %p7930_p0 = scmp.ge.s32.totalorder %s10436_s27, 1  ;;  %s10530_s29 = int_to_ptr.vmem [resolvable:$true] %s221_s29 }
   0xc   : > { %p15595_p1 = scmp.eq.s32.totalorder %s10525_s30, 0  ;;  %p209_p2 = scmp.lt.s32.totalorder %s10436_s27, 3 }
   0xd   : > { %s10439_s9 = smov [#allocation8]   ;;  %s10440_s12 = smov [#allocation11]  }
   0xe   : > { %p10532_p3 = pnand %p7930_p0, %p209_p2  ;;  %s245_s10 = sshll.u32 %s10439_s9, 4  ;;  %s10545_s10 = int_to_ptr.vmem [resolvable:$true] %s245_s10 }
   0xf   : > { %s270_s13 = sshll.u32 %s10440_s12, 4  ;;  %s15994_s1 = sld [smem:[#allocation195_spill]]  ;;  %s10547_s13 = int_to_ptr.vmem [resolvable:$true] %s270_s13 }
  0x10   : > { %s15992_s8 = scalar_select %p10532_p3, 1, 0 }
  0x11   : > { %p8333_p5 = pneg %p10532_p3 }
  0x13   : > { %p10541_p6 = pnand %p8333_p5, %p15595_p1 }
  0x15   : > { %s10160_s16 = scalar_lea.hbm %s15994_s1, 320  ;;  %p10557_p8 = pneg %p10541_p6 }
  0x16   : > { %p10161_p7 = scmp.ne.s32.totalorder %s15994_s1, %s10160_s16  ;;  %p10167_p11 = scmp.lt.u32.totalorder %s10160_s16, %s15994_s1 }
  0x18   : > { %p10163_p9 = pnand %p10557_p8, %p10161_p7 }
  0x1a   : > { %p10164_p10 = pneg %p10163_p9 }
  0x1c   : > { %p10169_p12 = pnand %p10167_p11, %p10164_p10 }
  0x1e   : > { %10172 = shalt.err (!%p10169_p12)
}
  0x1f   : > { %s10173_s22 = scalar_lea.vmem %s10530_s29, 320  ;;  %p10181_p5 = scmp.lt.s32.totalorder %s10530_s29, %s10530_s29 }
  0x20   : > { %p10174_p13 = scmp.ne.s32.totalorder %s10530_s29, %s10173_s22  ;;  %p10182_p4 = scmp.lt.s32.totalorder %s10173_s22, %s10173_s22 }
  0x22   : > { %p10176_p0 = pnand %p10174_p13, %p10557_p8  ;;  %p10183_p7 = por %p10182_p4, %p10181_p5 }
  0x24   : > { %p10177_p2 = pneg %p10176_p0 }
  0x26   : > { %p10184_p9 = pnand %p10183_p7, %p10177_p2 }
  0x28   : > { %10187 = shalt.err (!%p10184_p9)
}
  0x29   : > { %s15597_s23 = smov 64   ;;  %s15598_s28 = smov 4  }
  0x2a   : > { %8336 = dma.hbm_to_vmem [thread:$0]  (!%p10541_p6), %s15994_s1, 320, %s10530_s29, [#allocation6], %s15597_s23, %s15597_s23, %s15598_s28  }
  0x2b   : > { %s10188_s16 = scalar_lea.hbm %s15590_s3, 576 }
  0x2c   : > { %p10189_p4 = scmp.ne.s32.totalorder %s15590_s3, %s10188_s16  ;;  %p10195_p12 = scmp.lt.u32.totalorder %s10188_s16, %s15590_s3 }
  0x2e   : > { %p10191_p10 = pnand %p10189_p4, %p10557_p8 }
  0x30   : > { %p10192_p11 = pneg %p10191_p10 }
  0x32   : > { %p10197_p13 = pnand %p10195_p12, %p10192_p11 }
  0x34   : > { %10200 = shalt.err (!%p10197_p13)
}
  0x35   : > { %s10201_s29 = scalar_lea.vmem %s10545_s10, 576  ;;  %p10209_p7 = scmp.lt.s32.totalorder %s10545_s10, %s10545_s10 }
  0x36   : > { %p10202_p0 = scmp.ne.s32.totalorder %s10545_s10, %s10201_s29  ;;  %p10210_p9 = scmp.lt.s32.totalorder %s10201_s29, %s10201_s29 }
  0x38   : > { %p10204_p2 = pnand %p10202_p0, %p10557_p8  ;;  %p10211_p4 = por %p10210_p9, %p10209_p7 }
  0x3a   : > { %p10205_p5 = pneg %p10204_p2 }
  0x3c   : > { %p10212_p10 = pnand %p10211_p4, %p10205_p5 }
  0x3e   : > { %10215 = shalt.err (!%p10212_p10)
}
  0x3f   : > { %8342 = dma.hbm_to_vmem [thread:$0]  (!%p10541_p6), %s15590_s3, 576, %s10545_s10, [#allocation9], %s15597_s23, %s15597_s23, %s15598_s28  }
  0x40   : > { %s10216_s15 = scalar_lea.hbm %s15592_s5, 64 }
  0x41   : > { %p10217_p11 = scmp.ne.s32.totalorder %s15592_s5, %s10216_s15  ;;  %p10223_p0 = scmp.lt.u32.totalorder %s10216_s15, %s15592_s5 }
  0x43   : > { %p10219_p12 = pnand %p10217_p11, %p10557_p8 }
  0x45   : > { %p10220_p13 = pneg %p10219_p12 }
  0x47   : > { %p10225_p2 = pnand %p10223_p0, %p10220_p13 }
  0x49   : > { %10228 = shalt.err (!%p10225_p2)
}
  0x4a   : > { %s10229_s10 = scalar_lea.vmem %s10547_s13, 64  ;;  %p10237_p4 = scmp.lt.s32.totalorder %s10547_s13, %s10547_s13 }
  0x4b   : > { %p10230_p5 = scmp.ne.s32.totalorder %s10547_s13, %s10229_s10  ;;  %p10238_p10 = scmp.lt.s32.totalorder %s10229_s10, %s10229_s10 }
  0x4d   : > { %p10232_p7 = pnand %p10230_p5, %p10557_p8  ;;  %p10239_p11 = por %p10238_p10, %p10237_p4 }
  0x4f   : > { %p10233_p9 = pneg %p10232_p7 }
  0x51   : > { %p10240_p12 = pnand %p10239_p11, %p10233_p9 }
  0x53   : > { %10243 = shalt.err (!%p10240_p12)
}
  0x54   : > { %8348 = dma.hbm_to_vmem [thread:$0]  (!%p10541_p6), %s15592_s5, 64, %s10547_s13, [#allocation12]  }
  0x55   : > { %s10443_s22 = smov [#allocation7]   ;;  %s10444_s12 = smov [#allocation10]  }
  0x56   : > { %s235_s9 = sshll.u32 %s10443_s22, 4  ;;  %s259_s14 = sshll.u32 %s10444_s12, 4  ;;  %s236_s9 = int_to_ptr.vmem [resolvable:$true] %s235_s9  ;;  %s260_s14 = int_to_ptr.vmem [resolvable:$true] %s259_s14 }
  0x57   : > { %s10244_s17 = scalar_lea.hbm %s15589_s2, 16 }
  0x58   : > { %p10245_p13 = scmp.ne.s32.totalorder %s15589_s2, %s10244_s17  ;;  %p10251_p5 = scmp.lt.u32.totalorder %s10244_s17, %s15589_s2 }
  0x5a   : > { %p10247_p0 = pnand %p10245_p13, %p10557_p8 }
  0x5c   : > { %p10248_p2 = pneg %p10247_p0 }
  0x5e   : > { %p10253_p7 = pnand %p10251_p5, %p10248_p2 }
  0x60   : > { %10256 = shalt.err (!%p10253_p7)
}
  0x61   : > { %s10257_s13 = scalar_lea.vmem %s236_s9, 16  ;;  %s10264_s29 = scalar_lea.vmem %s236_s9, 32 }
  0x62   : > { %p10258_p9 = scmp.ne.s32.totalorder %s236_s9, %s10257_s13  ;;  %p10265_p11 = scmp.lt.s32.totalorder %s236_s9, %s236_s9 }
  0x63   : > { %p10266_p12 = scmp.lt.s32.totalorder %s10264_s29, %s10257_s13 }
  0x64   : > { %p10260_p4 = pnand %p10258_p9, %p10557_p8 }
  0x65   : > { %p10267_p1 = por %p10266_p12, %p10265_p11 }
  0x66   : > { %p10261_p10 = pneg %p10260_p4 }
  0x68   : > { %p10268_p3 = pnand %p10267_p1, %p10261_p10 }
  0x6a   : > { %10271 = shalt.err (!%p10268_p3)
}
  0x6b   : > { %8339 = dma.hbm_to_vmem [thread:$0]  (!%p10541_p6), %s15589_s2, 16, %s236_s9, [#allocation6]  }
  0x6c   : > { %s10272_s17 = scalar_lea.hbm %s15591_s4, 16 }
  0x6d   : > { %p10273_p13 = scmp.ne.s32.totalorder %s15591_s4, %s10272_s17  ;;  %p10279_p3 = scmp.lt.u32.totalorder %s10272_s17, %s15591_s4 }
  0x6f   : > { %p10275_p0 = pnand %p10273_p13, %p10557_p8 }
  0x71   : > { %p10276_p1 = pneg %p10275_p0 }
  0x73   : > { %p10281_p2 = pnand %p10279_p3, %p10276_p1 }
  0x75   : > { %10284 = shalt.err (!%p10281_p2)
}
  0x76   : > { %s10285_s13 = scalar_lea.vmem %s260_s14, 16  ;;  %s10292_s9 = scalar_lea.vmem %s260_s14, 32 }
  0x77   : > { %p10286_p5 = scmp.ne.s32.totalorder %s260_s14, %s10285_s13  ;;  %p10293_p4 = scmp.lt.s32.totalorder %s260_s14, %s260_s14 }
  0x78   : > { %p10294_p10 = scmp.lt.s32.totalorder %s10292_s9, %s10285_s13 }
  0x79   : > { %p10288_p7 = pnand %p10286_p5, %p10557_p8 }
  0x7a   : > { %p10295_p11 = por %p10294_p10, %p10293_p4 }
  0x7b   : > { %p10289_p9 = pneg %p10288_p7 }
  0x7d   : > { %p10296_p12 = pnand %p10295_p11, %p10289_p9 }
  0x7f   : > { %10299 = shalt.err (!%p10296_p12)
}
  0x80   : > { %8345 = dma.hbm_to_vmem [thread:$0]  (!%p10541_p6), %s15591_s4, 16, %s260_s14, [#allocation9]  }
  0x81   : > { %s10445_s12 = smov [#allocation13]   ;;  %s10300_s18 = scalar_lea.hbm %s15593_s6, 16 }
  0x82   : > { %s281_s15 = sshll.u32 %s10445_s12, 4  ;;  %p10301_p13 = scmp.ne.s32.totalorder %s15593_s6, %s10300_s18  ;;  %s282_s15 = int_to_ptr.vmem [resolvable:$true] %s281_s15 }
  0x83   : > { %p10307_p3 = scmp.lt.u32.totalorder %s10300_s18, %s15593_s6 }
  0x84   : > { %p10303_p0 = pnand %p10301_p13, %p10557_p8 }
  0x86   : > { %p10304_p1 = pneg %p10303_p0 }
  0x88   : > { %p10309_p2 = pnand %p10307_p3, %p10304_p1 }
  0x8a   : > { %10312 = shalt.err (!%p10309_p2)
}
  0x8b   : > { %s10313_s14 = scalar_lea.vmem %s282_s15, 16  ;;  %s10320_s9 = scalar_lea.vmem %s282_s15, 32 }
  0x8c   : > { %p10314_p5 = scmp.ne.s32.totalorder %s282_s15, %s10313_s14  ;;  %p10321_p4 = scmp.lt.s32.totalorder %s282_s15, %s282_s15 }
  0x8d   : > { %p10322_p10 = scmp.lt.s32.totalorder %s10320_s9, %s10313_s14 }
  0x8e   : > { %p10316_p7 = pnand %p10314_p5, %p10557_p8 }
  0x8f   : > { %p10323_p11 = por %p10322_p10, %p10321_p4 }
  0x90   : > { %p10317_p9 = pneg %p10316_p7 }
  0x92   : > { %p10324_p12 = pnand %p10323_p11, %p10317_p9 }
  0x94   : > { %10327 = shalt.err (!%p10324_p12)
}
  0x95   : > { %8351 = dma.hbm_to_vmem [thread:$0]  (!%p10541_p6), %s15593_s6, 16, %s282_s15, [#allocation12]  }
  0x96   : > { %s7929_s19 = sadd.s32 4294967294, %s10436_s27   ;;  %s10686_s11 = sadd.s32 1, %s10436_s27  }
  0x97   : > { %s30_s12 = ssub.s32 %s10436_s27, %s10686_s11  ;;  %s33_s16 = sadd.s32 1, %s10432_s26 }
  0x98   : > { %p31_p8 = scmp.eq.s32.totalorder %s30_s12, 0  ;;  %p40_p13 = scmp.ne.s32.totalorder %s10432_s26, %s10428_s25 }
  0x99   : > { %p41_p0 = scmp.eq.s32.totalorder %s10436_s27, 0  ;;  %p46_p1 = scmp.ne.s32.totalorder %s10428_s25, %s10424_s24 }
  0x9a   : > { %s10697_s17 = scalar_select %p31_p8, %s10432_s26, %s33_s16  }
  0x9b   : > { %p42_p3 = por %p41_p0, %p40_p13  ;;  %p15996_p2 = scmp.eq.s32.totalorder %s10525_s30, 0 }
  0x9c   : > { %p196_p6 = scmp.eq.s32.totalorder %s10525_s30, 1  ;;  %p202_p7 = scmp.eq.s32.totalorder %s7929_s19, 1 }
  0x9d   : > { %p10701_p5 = por %p15996_p2, %p46_p1  ;;  %p8366_p9 = scmp.lt.s32.totalorder %s10436_s27, 2 }
  0x9e   : > { %s292_s15 = sand.u32 1, %s10432_s26   ;;  %p10708_p4 = por %p196_p6, %p40_p13 }
  0x9f   : > { %p10712_p10 = por %p202_p7, %p46_p1  ;;  %s8302_s21 = smul.u32 240, %s292_s15 }
  0xa0   : > { %s15998_s20 = scalar_select %p10708_p4, 1, 0 }
  0xa1   : > { %s15999_s10 = scalar_select %p10712_p10, 1, 0 }
  0xa2   : > { %s8303_s13 = smul.u32 3840, %s10436_s27  ;;  %p10717_p11 = pnand %p8366_p9, %p42_p3 }
  0xa3   : > { %s296_s19 = scalar_lea.vmem [#allocation2], %s8302_s21  ;;  %s10728_s16 = scalar_lea.sflag [#allocation3], %s292_s15 }
  0xa4   : > { %s10724_s22 = scalar_lea.hbm %s15587_s0, %s8303_s13  ;;  %s303_s12 = sshll.u32 %s296_s19, 4  ;;  %s10726_s12 = int_to_ptr.vmem [resolvable:$true] %s303_s12 }
  0xa5   : > { %s10328_s23 = scalar_lea.hbm %s10724_s22, 3840  ;;  %p10330_p8 = pneg %p10717_p11 }
  0xa6   : > { %p10329_p12 = scmp.ne.s32.totalorder %s10724_s22, %s10328_s23  ;;  %s10333_s29 = scalar_lea.hbm %s15587_s0, 7680 }
  0xa7   : > { %p10334_p1 = scmp.lt.u32.totalorder %s10724_s22, %s15587_s0  ;;  %p10335_p3 = scmp.lt.u32.totalorder %s10333_s29, %s10328_s23 }
  0xa8   : > { %p10331_p13 = pnand %p10330_p8, %p10329_p12  ;;  %p10337_p6 = scmp.lt.u32.totalorder %s10328_s23, %s10724_s22 }
  0xa9   : > { %p10336_p2 = por %p10335_p3, %p10334_p1 }
  0xaa   : > { %p10332_p0 = pneg %p10331_p13 }
  0xab   : > { %p10338_p7 = por %p10337_p6, %p10336_p2 }
  0xad   : > { %p10339_p9 = pnand %p10338_p7, %p10332_p0 }
  0xaf   : > { %10342 = shalt.err (!%p10339_p9)
}
  0xb0   : > { %s10343_s15 = scalar_lea.vmem %s10726_s12, 3840  ;;  %s10446_s21 = smov [#allocation2]  }
  0xb1   : > { %p10344_p12 = scmp.ne.s32.totalorder %s10726_s12, %s10343_s15  ;;  %s10348_s19 = sshll.u32 %s10446_s21, 4  ;;  %s10349_s19 = int_to_ptr.vmem [resolvable:$false] %s10348_s19 }
  0xb2   : > { %s10350_s1 = scalar_lea.vmem %s10349_s19, 7680  ;;  %p10351_p4 = scmp.lt.s32.totalorder %s10726_s12, %s10349_s19 }
  0xb3   : > { %p10346_p13 = pnand %p10344_p12, %p10330_p8  ;;  %p10352_p1 = scmp.lt.s32.totalorder %s10350_s1, %s10343_s15 }
  0xb5   : > { %p10347_p10 = pneg %p10346_p13  ;;  %p10353_p3 = por %p10352_p1, %p10351_p4 }
  0xb7   : > { %p10354_p2 = pnand %p10353_p3, %p10347_p10 }
  0xb9   : > { %10357 = shalt.err (!%p10354_p2)
}
  0xba   : > { %s16001_s23 = smov 4   ;;  %s16002_s28 = smov 64  }
  0xbb   : > { %8355 = dma.hbm_to_vmem [thread:$0]  (!%p10717_p11), %s10724_s22, 3840, %s10726_s12, %s10728_s16, %s16002_s28, %s16002_s28, %s16001_s23  }
  0xbc   : > { %p16003_p8 = scmp.ne.s32.totalorder %s15992_s8, 0 }
  0xbe   : > { %315 = sbr.rel (%p16003_p8) target bundleno = 1687 (0x697), region = 48 }
  0xc5   : > { %s10762_s13 = sand.u32 1, %s10428_s25  }
  0xc6   : > { %s8304_s9 = smul.u32 240, %s10762_s13  ;;  %s318_s29 = scalar_lea.sflag [#allocation3], %s10762_s13 }
  0xc8   : > { %s10766_s15 = scalar_lea.vmem [#allocation2], %s8304_s9 }
  0xc9   : > { %10403 = dma.done.wait (%p10701_p5), %s318_s29, 3840  }
  0xca   : > { %10405 = vsyncadd (%p10701_p5), %s318_s29, 4294963456  ;;  %p16004_p4 = scmp.eq.s32.totalorder %s10525_s30, 0 }
  0xcc   : > { %10407 = dma.done.wait (%p16004_p4), [#allocation6], 336   ;;  %p16005_p10 = pmov %p16004_p4 }
  0xcd   : > { %p16006_p11 = pmov %p16004_p4 }
  0xce   : > { %10409 = vsyncadd (%p16005_p10), [#allocation6], 4294966960 }
  0xcf   : > { %10411 = dma.done.wait (%p16006_p11), [#allocation9], 592   ;;  %p16007_p0 = pmov %p16004_p4 }
  0xd1   : > { %10413 = vsyncadd (%p16007_p0), [#allocation9], 4294966704  ;;  %p16008_p6 = pmov %p16007_p0 }
  0xd2   : > { %p16009_p7 = pmov %p16007_p0 }
  0xd3   : > { %10415 = dma.done.wait (%p16008_p6), [#allocation12], 80  }
  0xd4   : > { %10417 = vsyncadd (%p16009_p7), [#allocation12], 4294967216  ;;  %v381_v0 = vld [vmem:[%s10766_s15 + $0xc] sm:$0xff]   ;;  %v382_v1 = vld [vmem:[%s10766_s15 + $0x14] sm:$0x3]  ;;  %vm551_vm0 = vcmask 1046528  }
  0xd5   : > { %v8018_v2 = vld [vmem:[%s10766_s15] sm:$0xff]   ;;  %v10787_v3 = vunpack.c.h.bf16 %v381_v0  ;;  %v10789_v4 = vunpack.c.l.bf16 %v382_v1  ;;  %v10791_v5 = vunpack.c.l.bf16 %v381_v0  ;;  %v379_v7 = vld [vmem:[%s10766_s15 + $0x8] sm:$0x3]  ;;  %v8057_v8 = vld [vmem:[%s10766_s15 + $0x18] sm:$0xff]   ;;  %s10447_s8 = smov 4   ;;  %vm804_vm1 = vcmask 1045504  }
  0xd6   : > { %v10793_v6 = vunpack.c.l.bf16 %v8018_v2  ;;  %v385_v9 = vld [vmem:[%s10766_s15 + $0x20] sm:$0x3]  ;;  %v10798_v10 = vunpack.c.h.bf16 %v8018_v2  ;;  %v10800_v11 = vunpack.c.l.bf16 %v379_v7  ;;  %v10802_v12 = vunpack.c.l.bf16 %v8057_v8  ;;  %v387_v14 = vld [vmem:[%s10766_s15 + $0x24] sm:$0xff]   ;;  %v388_v26 = vld [vmem:[%s10766_s15 + $0x2c] sm:$0x3]  ;;  %s10448_s18 = smov 8  }
  0xd7   : > { %16010 = vst [vmem:[#allocation20_spill] sm:$0xff] %v10787_v3  ;;  %16011 = vst [vmem:[#allocation21_spill] sm:$0xff] %v10789_v4  ;;  %v10804_v13 = vunpack.c.h.bf16 %v8057_v8  ;;  %v558_v15 = vrot.slane %v10787_v3, 1  ;;  %v10809_v16 = vrot.slane %v10789_v4, 1  ;;  %v557_v17 = vrot.slane %v10791_v5, 1  ;;  %v392_v33 = vld [vmem:[%s10766_s15 + $0x3c] sm:$0xff]  }
  0xd8   : > { %16012 = vst [vmem:[#allocation22_spill] sm:$0xff] %v10791_v5  ;;  %16013 = vst [vmem:[#allocation23_spill] sm:$0xff] %v10793_v6  ;;  %v552_v18 = vrot.slane %v10793_v6, 1  ;;  %v553_v19 = vrot.slane %v10798_v10, 1  ;;  %v555_v20 = vrot.slane %v10800_v11, 1  ;;  %v10815_v21 = vunpack.c.l.bf16 %v385_v9  ;;  %v8058_v34 = vld [vmem:[%s10766_s15 + $0x30] sm:$0xff]  }
  0xd9   : > { %16014 = vst [vmem:[#allocation24_spill] sm:$0xff] %v10798_v10  ;;  %16015 = vst [vmem:[#allocation25_spill] sm:$0xff] %v10800_v11  ;;  %v562_v22 = vrot.slane %v10802_v12, 1  ;;  %v10820_v23 = vsel %vm551_vm0, %v558_v15, %v10809_v16  ;;  %v10823_v24 = vsel %vm551_vm0, %v557_v17, %v558_v15  ;;  %v563_v25 = vrot.slane %v10804_v13, 1  ;;  %v391_v28 = vld [vmem:[%s10766_s15 + $0x38] sm:$0x3] }
  0xda   : > { %16016 = vst [vmem:[#allocation26_spill] sm:$0xff] %v10809_v16  ;;  %16017 = vst [vmem:[#allocation27_spill] sm:$0xff] %v10820_v23  ;;  %v10827_v27 = vunpack.c.h.bf16 %v387_v14  ;;  %v8440_v29 = vpack.i.bf16 %v10809_v16, %v10820_v23  ;;  %v554_v31 = vsel %vm551_vm0, %v552_v18, %v553_v19  ;;  %v556_v32 = vsel %vm551_vm0, %v553_v19, %v555_v20  ;;  %v8059_v47 = vld [vmem:[%s10766_s15 + $0x48] sm:$0xff]   ;;  %v397_v56 = vld [vmem:[%s10766_s15 + $0x50] sm:$0x3]  ;;  %s10449_s14 = smov 12  }
  0xdb   : > { %16018 = vst [vmem:[#allocation28_spill] sm:$0xff] %v10823_v24  ;;  %v8430_v35 = vpack.i.bf16 %v556_v32, %v554_v31  ;;  %v10839_v36 = vsel %vm551_vm0, %v562_v22, %v563_v25  ;;  %v10842_v37 = vrot.slane %v10815_v21, 1  ;;  %v8435_v38 = vpack.i.bf16 %v10823_v24, %v555_v20  ;;  %v394_v61 = vld [vmem:[%s10766_s15 + $0x44] sm:$0x3]  ;;  %v399_v62 = vld [vmem:[%s10766_s15 + $0x54] sm:$0xff]   ;;  %v404_v9 = vld [vmem:[%s10766_s15 + $0x6c] sm:$0xff]  }
  0xdc   : > { %16019 = vst [vmem:[#allocation29_spill] sm:$0xff] %v10839_v36  ;;  %8441 = vrot.lane.b32.xlu1 %v8440_v29, %s10447_s8  ;;  %v10846_v39 = vunpack.c.l.bf16 %v388_v26  ;;  %v568_v40 = vrot.slane %v10827_v27, 1  ;;  %v10849_v41 = vunpack.c.l.bf16 %v387_v14  ;;  %v10851_v42 = vunpack.c.l.bf16 %v391_v28  ;;  %v400_v63 = vld [vmem:[%s10766_s15 + $0x5c] sm:$0x3]  ;;  %v403_v8 = vld [vmem:[%s10766_s15 + $0x68] sm:$0x3] }
  0xdd   : > { %16020 = vst [vmem:[#allocation30_spill] sm:$0xff] %v10842_v37  ;;  %8431 = vrot.lane.b32.xlu0 %v8430_v35, %s10447_s8  ;;  %v10856_v43 = vsel %vm551_vm0, %v563_v25, %v10842_v37  ;;  %v10858_v44 = vunpack.c.l.bf16 %v392_v33  ;;  %v10860_v45 = vunpack.c.h.bf16 %v392_v33  ;;  %v10862_v46 = vunpack.c.l.bf16 %v8058_v34  ;;  %v418_v16 = vld [vmem:[%s10766_s15 + $0xa4] sm:$0x3]  ;;  %s10450_s22 = smov 16   ;;  %s10451_s12 = smov 20  }
  0xde   : > { %16021 = vst [vmem:[#allocation31_spill] sm:$0xff] %v10856_v43  ;;  %v10867_v48 = vpack.i.bf16 %v10856_v43, %v10839_v36  ;;  %v10870_v49 = vrot.slane %v10846_v39, 1  ;;  %v567_v50 = vrot.slane %v10849_v41, 1  ;;  %v10874_v51 = vrot.slane %v10851_v42, 1  ;;  %s10453_s16 = smov 28   ;;  %s10454_s21 = smov 24  }
  0xdf   : > { %16022 = vst [vmem:[#allocation32_spill] sm:$0xff] %v10860_v45  ;;  %v577_v52 = vrot.slane %v10858_v44, 1  ;;  %v578_v53 = vrot.slane %v10860_v45, 1  ;;  %v10878_v54 = vunpack.c.h.bf16 %v8058_v34  ;;  %v572_v55 = vrot.slane %v10862_v46, 1  ;;  %s10455_s19 = smov 32   ;;  %s10458_s1 = smov 40  }
  0xe0   : > { %16023 = vst [vmem:[#allocation33_spill] sm:$0xff] %v10867_v48  ;;  %16024 = vst [vmem:[#allocation34_spill] sm:$0xff] %v10870_v49  ;;  %8446 = vrot.lane.b32.xlu1 %v10867_v48, %s10447_s8  ;;  %v10886_v57 = vsel %vm551_vm0, %v568_v40, %v10870_v49  ;;  %v10889_v58 = vsel %vm551_vm0, %v567_v50, %v568_v40  ;;  %v10891_v59 = vunpack.c.l.bf16 %v8059_v47  ;;  %v10893_v60 = vunpack.c.h.bf16 %v8059_v47  ;;  %s10459_s23 = smov 48   ;;  %s10460_s28 = smov 56  }
  0xe1   : > { %16025 = vst [vmem:[#allocation35_spill] sm:$0xff] %v10874_v51  ;;  %16026 = vst [vmem:[#allocation36_spill] sm:$0xff] %v10886_v57  ;;  %8436 = vrot.lane.b32.xlu0 %v8435_v38, %s10447_s8  ;;  %v8455_v0 = vpack.i.bf16 %v10870_v49, %v10886_v57  ;;  %v8450_v1 = vpack.i.bf16 %v10889_v58, %v10842_v37  ;;  %v10904_v2 = vsel %vm551_vm0, %v577_v52, %v578_v53  ;;  %v8060_v52 = vld [vmem:[%s10766_s15 + $0x60] sm:$0xff]   ;;  %v8062_v57 = vld [vmem:[%s10766_s15 + $0x90] sm:$0xff]   ;;  %vm2055_vm2 = vcmask 31744   ;;  %s10461_s9 = smov 64  }
  0xe2   : > { %16027 = vst [vmem:[#allocation37_spill] sm:$0xff] %v10889_v58  ;;  %16028 = vst [vmem:[#allocation38_spill] sm:$0xff] %v10891_v59  ;;  %v573_v7 = vrot.slane %v10878_v54, 1  ;;  %v8465_v14 = vpack.i.bf16 %v10904_v2, %v10874_v51  ;;  %v10911_v15 = vunpack.c.l.bf16 %v397_v56  ;;  %v582_v17 = vrot.slane %v10891_v59, 1  ;;  %v8063_v49 = vld [vmem:[%s10766_s15 + $0xa8] sm:$0xff]   ;;  %s7946_s29 = sshll.u32 %s10762_s13, 8 }
  0xe3   : > { %16029 = vst [vmem:[#allocation39_spill] sm:$0xff] %v10893_v60  ;;  %16030 = vst [vmem:[#allocation40_spill] sm:$0xff] %v10904_v2  ;;  %v583_v18 = vrot.slane %v10893_v60, 1  ;;  %v10922_v22 = vunpack.c.l.bf16 %v394_v61  ;;  %v10924_v25 = vunpack.c.h.bf16 %v399_v62  ;;  %v10935_v31 = vunpack.c.l.bf16 %v400_v63  ;;  %v8061_v61 = vld [vmem:[%s10766_s15 + $0x78] sm:$0xff]   ;;  %p16853_p9 = scmp.ne.s32.totalorder %s15998_s20, 0 }
  0xe4   : > { %16031 = vst [vmem:[#allocation41_spill] sm:$0xff] %v10911_v15  ;;  %v10916_v19 = vsel %vm551_vm0, %v572_v55, %v573_v7  ;;  %v10920_v20 = vsel %vm551_vm0, %v573_v7, %v10874_v51  ;;  %8456 = vrot.lane.b32.xlu1 %v8455_v0, %s10447_s8  ;;  %v10933_v29 = vrot.slane %v10911_v15, 1  ;;  %v10942_v34 = vunpack.c.l.bf16 %v399_v62  ;;  %v409_v7 = vld [vmem:[%s10766_s15 + $0x80] sm:$0x3] }
  0xe5   : > { %16032 = vst [vmem:[#allocation42_spill] sm:$0xff] %v10916_v19  ;;  %16033 = vst [vmem:[#allocation43_spill] sm:$0xff] %v10920_v20  ;;  %v8460_v26 = vpack.i.bf16 %v10920_v20, %v10916_v19  ;;  %v10930_v28 = vsel %vm551_vm0, %v582_v17, %v583_v18  ;;  %8451 = vrot.lane.b32.xlu0 %v8450_v1, %s10447_s8  ;;  %v10939_v32 = vrot.slane %v10922_v22, 1  ;;  %v588_v33 = vrot.slane %v10924_v25, 1  ;;  %v406_v17 = vld [vmem:[%s10766_s15 + $0x74] sm:$0x3] }
  0xe6   : > { %16034 = vst [vmem:[#allocation44_spill] sm:$0xff] %v10922_v22  ;;  %16035 = vst [vmem:[#allocation45_spill] sm:$0xff] %v10924_v25  ;;  %v10944_v35 = vunpack.c.l.bf16 %v403_v8  ;;  %v10948_v38 = vsel %vm551_vm0, %v583_v18, %v10933_v29  ;;  %v10951_v40 = vrot.slane %v10935_v31, 1  ;;  %v10953_v47 = vunpack.c.l.bf16 %v404_v9  ;;  %v411_v18 = vld [vmem:[%s10766_s15 + $0x84] sm:$0xff]  }
  0xe7   : > { %16036 = vst [vmem:[#allocation46_spill] sm:$0xff] %v10930_v28  ;;  %16037 = vst [vmem:[#allocation47_spill] sm:$0xff] %v10933_v29  ;;  %v10955_v50 = vunpack.c.h.bf16 %v404_v9  ;;  %v10960_v55 = vsel %vm551_vm0, %v578_v53, %v10939_v32  ;;  %v587_v56 = vrot.slane %v10942_v34, 1  ;;  %v8475_v62 = vpack.i.bf16 %v10948_v38, %v10930_v28 }
  0xe8   : > { %16038 = vst [vmem:[#allocation48_spill] sm:$0xff] %v10935_v31  ;;  %16039 = vst [vmem:[#allocation49_spill] sm:$0xff] %v10939_v32  ;;  %8466 = vrot.lane.b32.xlu1 %v8465_v14, %s10447_s8  ;;  %v10969_v63 = vsel %vm551_vm0, %v588_v33, %v10951_v40  ;;  %v597_v0 = vrot.slane %v10953_v47, 1  ;;  %v8470_v53 = vpack.i.bf16 %v10939_v32, %v10960_v55  ;;  %v10980_v9 = vunpack.c.l.bf16 %v8060_v52 }
  0xe9   : > { %16040 = vst [vmem:[#allocation50_spill] sm:$0xff] %v10942_v34  ;;  %16041 = vst [vmem:[#allocation51_spill] sm:$0xff] %v10944_v35  ;;  %v598_v1 = vrot.slane %v10955_v50, 1  ;;  %8461 = vrot.lane.b32.xlu0 %v8460_v26, %s10447_s8  ;;  %v10978_v8 = vsel %vm551_vm0, %v587_v56, %v588_v33  ;;  %v10982_v14 = vunpack.c.h.bf16 %v8060_v52  ;;  %v10987_v30 = vrot.slane %v10944_v35, 1  ;;  %v412_v26 = vld [vmem:[%s10766_s15 + $0x8c] sm:$0x3] }
  0xea   : > { %16042 = vst [vmem:[#allocation52_spill] sm:$0xff] %v10948_v38  ;;  %16043 = vst [vmem:[#allocation53_spill] sm:$0xff] %v10951_v40  ;;  %v10989_v48 = vunpack.c.l.bf16 %v8061_v61  ;;  %v10991_v28 = vunpack.c.h.bf16 %v8061_v61  ;;  %v8485_v33 = vpack.i.bf16 %v10951_v40, %v10969_v63  ;;  %v592_v56 = vrot.slane %v10980_v9, 1 }
  0xeb   : > { %16044 = vst [vmem:[#allocation54_spill] sm:$0xff] %v10953_v47  ;;  %16045 = vst [vmem:[#allocation55_spill] sm:$0xff] %v10955_v50  ;;  %v593_v52 = vrot.slane %v10982_v14, 1  ;;  %v10998_v32 = vunpack.c.l.bf16 %v409_v7  ;;  %v8480_v38 = vpack.i.bf16 %v10978_v8, %v10933_v29  ;;  %v11004_v61 = vsel %vm551_vm0, %v597_v0, %v598_v1  ;;  %v416_v0 = vld [vmem:[%s10766_s15 + $0x9c] sm:$0xff]  }
  0xec   : > { %16046 = vst [vmem:[#allocation56_spill] sm:$0xff] %v10960_v55  ;;  %16047 = vst [vmem:[#allocation57_spill] sm:$0xff] %v10969_v63  ;;  %8476 = vrot.lane.b32.xlu1 %v8475_v62, %s10447_s8  ;;  %v11006_v51 = vunpack.c.l.bf16 %v406_v17  ;;  %v11008_v20 = vunpack.c.h.bf16 %v411_v18  ;;  %v602_v63 = vrot.slane %v10989_v48, 1  ;;  %v603_v7 = vrot.slane %v10991_v28, 1 }
  0xed   : > { %16048 = vst [vmem:[#allocation58_spill] sm:$0xff] %v10978_v8  ;;  %16049 = vst [vmem:[#allocation59_spill] sm:$0xff] %v10980_v9  ;;  %8471 = vrot.lane.b32.xlu0 %v8470_v53, %s10447_s8  ;;  %v11014_v40 = vrot.slane %v10998_v32, 1  ;;  %v11016_v62 = vunpack.c.l.bf16 %v412_v26  ;;  %v415_v8 = vld [vmem:[%s10766_s15 + $0x98] sm:$0x3]  ;;  %v11021_v29 = vsel %vm551_vm0, %v592_v56, %v593_v52  ;;  %v11025_v17 = vsel %vm551_vm0, %v593_v52, %v10987_v30 }
  0xee   : > { %16050 = vst [vmem:[#allocation60_spill] sm:$0xff] %v10982_v14  ;;  %16051 = vst [vmem:[#allocation61_spill] sm:$0xff] %v10987_v30  ;;  %v11028_v53 = vrot.slane %v11006_v51, 1  ;;  %v608_v55 = vrot.slane %v11008_v20, 1  ;;  %v11034_v26 = vunpack.c.l.bf16 %v411_v18  ;;  %v11040_v56 = vpack.i.bf16 %v11004_v61, %v10987_v30 }
  0xef   : > { %16052 = vst [vmem:[#allocation62_spill] sm:$0xff] %v10989_v48  ;;  %16053 = vst [vmem:[#allocation63_spill] sm:$0xff] %v10991_v28  ;;  %v11032_v2 = vrot.slane %v11016_v62, 1  ;;  %v11042_v52 = vunpack.c.l.bf16 %v415_v8  ;;  %v11044_v58 = vunpack.c.l.bf16 %v416_v0  ;;  %v11046_v19 = vunpack.c.h.bf16 %v416_v0  ;;  %v421_v0 = vld [vmem:[%s10766_s15 + $0xb0] sm:$0x3] }
  0xf0   : > { %16054 = vst [vmem:[#allocation64_spill] sm:$0xff] %v10998_v32  ;;  %16055 = vst [vmem:[#allocation65_spill] sm:$0xff] %v11004_v61  ;;  %8486 = vrot.lane.b32.xlu1 %v8485_v33, %s10447_s8  ;;  %v8490_v18 = vpack.i.bf16 %v11025_v17, %v11021_v29  ;;  %v11053_v36 = vsel %vm551_vm0, %v602_v63, %v603_v7  ;;  %v11057_v33 = vsel %vm551_vm0, %v603_v7, %v11014_v40  ;;  %vm4128_vm3 = vcmask 1041408  }
  0xf1   : > { %16056 = vst [vmem:[#allocation66_spill] sm:$0xff] %v11006_v51  ;;  %16057 = vst [vmem:[#allocation67_spill] sm:$0xff] %v11008_v20  ;;  %8481 = vrot.lane.b32.xlu0 %v8480_v38, %s10447_s8  ;;  %v11061_v8 = vsel %vm551_vm0, %v598_v1, %v11028_v53  ;;  %v607_v30 = vrot.slane %v11034_v26, 1  ;;  %v617_v38 = vrot.slane %v11044_v58, 1  ;;  %v618_v61 = vrot.slane %v11046_v19, 1 }
  0xf2   : > { %16058 = vst [vmem:[#allocation68_spill] sm:$0xff] %v11014_v40  ;;  %16059 = vst [vmem:[#allocation69_spill] sm:$0xff] %v11016_v62  ;;  %v11071_v63 = vsel %vm551_vm0, %v608_v55, %v11032_v2  ;;  %v11073_v7 = vunpack.c.h.bf16 %v8062_v57  ;;  %v11077_v1 = vunpack.c.h.bf16 %v8063_v49  ;;  %v11084_v37 = vpack.i.bf16 %v11057_v33, %v11053_v36 }
  0xf3   : > { %16060 = vst [vmem:[#allocation70_spill] sm:$0xff] %v11021_v29  ;;  %16061 = vst [vmem:[#allocation71_spill] sm:$0xff] %v11025_v17  ;;  %v11067_v17 = vunpack.c.l.bf16 %v8062_v57  ;;  %v11075_v29 = vunpack.c.l.bf16 %v8063_v49  ;;  %v11087_v43 = vrot.slane %v11042_v52, 1  ;;  %v11090_v23 = vunpack.c.l.bf16 %v421_v0  ;;  %v423_v57 = vld [vmem:[%s10766_s15 + $0xb4] sm:$0xff]  }
  0xf4   : > { %16062 = vst [vmem:[#allocation72_spill] sm:$0xff] %v11028_v53  ;;  %16063 = vst [vmem:[#allocation73_spill] sm:$0xff] %v11032_v2  ;;  %8496 = vrot.lane.b32.xlu1 %v11040_v56, %s10447_s8  ;;  %v11096_v49 = vpack.i.bf16 %v11028_v53, %v11061_v8  ;;  %v11106_v0 = vsel %vm551_vm0, %v617_v38, %v618_v61  ;;  %v11115_v62 = vunpack.c.h.bf16 %v423_v57  ;;  %v11128_v38 = vunpack.c.l.bf16 %v423_v57 }
  0xf5   : > { %16064 = vst [vmem:[#allocation74_spill] sm:$0xff] %v11034_v26  ;;  %16065 = vst [vmem:[#allocation75_spill] sm:$0xff] %v11040_v56  ;;  %v612_v24 = vrot.slane %v11067_v17, 1  ;;  %8491 = vrot.lane.b32.xlu0 %v8490_v18, %s10447_s8  ;;  %v613_v56 = vrot.slane %v11073_v7, 1  ;;  %v11108_v18 = vunpack.c.l.bf16 %v418_v16  ;;  %v622_v53 = vrot.slane %v11075_v29, 1 }
  0xf6   : > { %16066 = vst [vmem:[#allocation76_spill] sm:$0xff] %v11042_v52  ;;  %16067 = vst [vmem:[#allocation77_spill] sm:$0xff] %v11044_v58  ;;  %v424_v58 = vld [vmem:[%s10766_s15 + $0xbc] sm:$0x3]  ;;  %vm2110_vm4 = vcmask 64512   ;;  %vm10456_vm5 = vmmov 0  }
  0xf7   : > { %16068 = vst [vmem:[#allocation78_spill] sm:$0xff] %v11046_v19  ;;  %16069 = vst [vmem:[#allocation79_spill] sm:$0xff] %v11053_v36  ;;  %v8515_v36 = vpack.i.bf16 %v11032_v2, %v11071_v63  ;;  %v11113_v19 = vrot.slane %v11090_v23, 1  ;;  %v11126_v16 = vunpack.c.l.bf16 %v424_v58  ;;  %v11135_v2 = vrot.slane %v11108_v18, 1 }
  0xf8   : > { %16070 = vst [vmem:[#allocation80_spill] sm:$0xff] %v11057_v33  ;;  %16071 = vst [vmem:[#allocation81_spill] sm:$0xff] %v11061_v8  ;;  %v11103_v33 = vsel %vm551_vm0, %v607_v30, %v608_v55  ;;  %v623_v8 = vrot.slane %v11077_v1, 1  ;;  %8506 = vrot.lane.b32.xlu1 %v11084_v37, %s10447_s8  ;;  %v11120_v30 = vsel %vm551_vm0, %v612_v24, %v613_v56  ;;  %v428_v24 = vld [vmem:[%s10766_s15 + $0xcc] sm:$0xff]   ;;  %vm2165_vm6 = vcmask 97280  }
  0xf9   : > { %16072 = vst [vmem:[#allocation82_spill] sm:$0xff] %v11067_v17  ;;  %16073 = vst [vmem:[#allocation83_spill] sm:$0xff] %v11071_v63  ;;  %v11124_v55 = vsel %vm551_vm0, %v613_v56, %v11087_v43  ;;  %8501 = vrot.lane.b32.xlu0 %v11096_v49, %s10447_s8  ;;  %v8510_v63 = vpack.i.bf16 %v11103_v33, %v11014_v40  ;;  %v8525_v56 = vpack.i.bf16 %v11106_v0, %v11087_v43  ;;  %vm2220_vm7 = vcmask 130048  }
  0xfa   : > { %16074 = vst [vmem:[#allocation84_spill] sm:$0xff] %v11073_v7  ;;  %16075 = vst [vmem:[#allocation85_spill] sm:$0xff] %v11075_v29  ;;  %v8520_v58 = vpack.i.bf16 %v11124_v55, %v11120_v30  ;;  %v11145_v57 = vsel %vm551_vm0, %v622_v53, %v623_v8  ;;  %v11154_v40 = vrot.slane %v11126_v16, 1  ;;  %v11162_v53 = vsel %vm551_vm0, %v618_v61, %v11135_v2  ;;  %v430_v29 = vld [vmem:[%s10766_s15 + $0xd4] sm:$0x3] }
  0xfb   : > { %16076 = vst [vmem:[#allocation86_spill] sm:$0xff] %v11077_v1  ;;  %16077 = vst [vmem:[#allocation87_spill] sm:$0xff] %v11084_v37  ;;  %v427_v37 = vld [vmem:[%s10766_s15 + $0xc8] sm:$0x3]  ;;  %v8064_v1 = vld [vmem:[%s10766_s15 + $0xc0] sm:$0xff]   ;;  %v8530_v61 = vpack.i.bf16 %v11135_v2, %v11162_v53  ;;  %vm2275_vm8 = vcmask 162816  }
  0xfc   : > { %16078 = vst [vmem:[#allocation88_spill] sm:$0xff] %v11087_v43  ;;  %16079 = vst [vmem:[#allocation89_spill] sm:$0xff] %v11090_v23  ;;  %8516 = vrot.lane.b32.xlu1 %v8515_v36, %s10447_s8  ;;  %v627_v43 = vrot.slane %v11128_v38, 1  ;;  %v11168_v36 = vunpack.c.l.bf16 %v8064_v1  ;;  %vm2330_vm9 = vcmask 195584   ;;  %vm2385_vm10 = vcmask 228352  }
  0xfd   : > { %16080 = vst [vmem:[#allocation90_spill] sm:$0xff] %v11096_v49  ;;  %16081 = vst [vmem:[#allocation91_spill] sm:$0xff] %v11103_v33  ;;  %v11149_v49 = vsel %vm551_vm0, %v623_v8, %v11113_v19  ;;  %v628_v33 = vrot.slane %v11115_v62, 1  ;;  %8511 = vrot.lane.b32.xlu0 %v8510_v63, %s10447_s8  ;;  %v11166_v8 = vunpack.c.h.bf16 %v428_v24  ;;  %v11177_v63 = vrot.slane %v10789_v4, 2 }
  0xfe   : > { %16082 = vst [vmem:[#allocation92_spill] sm:$0xff] %v11106_v0  ;;  %16083 = vst [vmem:[#allocation93_spill] sm:$0xff] %v11108_v18  ;;  %v11157_v0 = vunpack.c.l.bf16 %v427_v37  ;;  %v8535_v37 = vpack.i.bf16 %v11149_v49, %v11145_v57  ;;  %v11198_v4 = vunpack.c.l.bf16 %v430_v29  ;;  %vm2440_vm11 = vcmask 261120  }
  0xff   : > { %16084 = vst [vmem:[#allocation94_spill] sm:$0xff] %v11113_v19  ;;  %16085 = vst [vmem:[#allocation95_spill] sm:$0xff] %v11115_v62  ;;  %vm4064_vm12 = vcmask 293888   ;;  %vm7352_vm15 = vcmask 1043456  }
 0x100   : > { %16086 = vst [vmem:[#allocation96_spill] sm:$0xff] %v11120_v30  ;;  %16087 = vst [vmem:[#allocation97_spill] sm:$0xff] %v11124_v55  ;;  %v11164_v55 = vunpack.c.l.bf16 %v428_v24  ;;  %v11170_v30 = vunpack.c.h.bf16 %v8064_v1  ;;  %8526 = vrot.lane.b32.xlu1 %v8525_v56, %s10447_s8  ;;  %v11184_v24 = vsel %vm551_vm0, %v628_v33, %v11154_v40  ;;  %v11187_v1 = vsel %vm551_vm0, %v627_v43, %v628_v33 }
 0x101   : > { %16088 = vst [vmem:[#allocation98_spill] sm:$0xff] %v11126_v16  ;;  %16089 = vst [vmem:[#allocation99_spill] sm:$0xff] %v11128_v38  ;;  %v811_v16 = vrot.slane %v10787_v3, 2  ;;  %v810_v3 = vrot.slane %v10791_v5, 2  ;;  %8521 = vrot.lane.b32.xlu0 %v8520_v58, %s10447_s8  ;;  %v638_v56 = vrot.slane %v11166_v8, 1  ;;  %v8545_v5 = vpack.i.bf16 %v11154_v40, %v11184_v24 }
 0x102   : > { %16090 = vst [vmem:[#allocation100_spill] sm:$0xff] %v11135_v2  ;;  %16091 = vst [vmem:[#allocation101_spill] sm:$0xff] %v11145_v57  ;;  %v11192_v57 = vrot.slane %v11157_v0, 1  ;;  %v632_v2 = vrot.slane %v11168_v36, 1 }
 0x103   : > { %16092 = vst [vmem:[#allocation102_spill] sm:$0xff] %v11149_v49  ;;  %16093 = vst [vmem:[#allocation103_spill] sm:$0xff] %v11154_v40  ;;  %v637_v49 = vrot.slane %v11164_v55, 1  ;;  %v11202_v43 = vsel %vm804_vm1, %v811_v16, %v11177_v63  ;;  %v11205_v33 = vsel %vm804_vm1, %v810_v3, %v811_v16  ;;  %v806_v3 = vrot.slane %v10798_v10, 2 }
 0x104   : > { %16094 = vst [vmem:[#allocation104_spill] sm:$0xff] %v11157_v0  ;;  %16095 = vst [vmem:[#allocation105_spill] sm:$0xff] %v11162_v53  ;;  %v633_v53 = vrot.slane %v11170_v30, 1  ;;  %8536 = vrot.lane.b32.xlu1 %v8535_v37, %s10447_s8  ;;  %v808_v16 = vrot.slane %v10800_v11, 2  ;;  %v11429_v40 = vrot.slane %v11108_v18, 2 }
 0x105   : > { %16096 = vst [vmem:[#allocation106_spill] sm:$0xff] %v11164_v55  ;;  %16097 = vst [vmem:[#allocation107_spill] sm:$0xff] %v11166_v8  ;;  %v8540_v55 = vpack.i.bf16 %v11187_v1, %v11113_v19  ;;  %8531 = vrot.lane.b32.xlu0 %v8530_v61, %s10447_s8  ;;  %v11216_v29 = vsel %vm551_vm0, %v637_v49, %v638_v56  ;;  %v805_v8 = vrot.slane %v10793_v6, 2  ;;  %v816_v6 = vrot.slane %v10804_v13, 2 }
 0x106   : > { %16098 = vst [vmem:[#allocation108_spill] sm:$0xff] %v11168_v36  ;;  %16099 = vst [vmem:[#allocation109_spill] sm:$0xff] %v11170_v30  ;;  %v11222_v58 = vsel %vm551_vm0, %v632_v2, %v633_v53  ;;  %v11226_v37 = vsel %vm551_vm0, %v633_v53, %v11192_v57  ;;  %v11234_v49 = vpack.i.bf16 %v11216_v29, %v11192_v57 }
 0x107   : > { %16100 = vst [vmem:[#allocation110_spill] sm:$0xff] %v11177_v63  ;;  %16101 = vst [vmem:[#allocation111_spill] sm:$0xff] %v11184_v24  ;;  %v11229_v24 = vrot.slane %v11198_v4, 1  ;;  %v8550_v61 = vpack.i.bf16 %v11226_v37, %v11222_v58  ;;  %v807_v2 = vsel %vm804_vm1, %v805_v8, %v806_v3  ;;  %v809_v11 = vsel %vm804_vm1, %v806_v3, %v808_v16 }
 0x108   : > { %16102 = vst [vmem:[#allocation112_spill] sm:$0xff] %v11187_v1  ;;  %16103 = vst [vmem:[#allocation113_spill] sm:$0xff] %v11192_v57  ;;  %8546 = vrot.lane.b32.xlu1 %v8545_v5, %s10447_s8  ;;  %v8565_v5 = vpack.i.bf16 %v809_v11, %v807_v2  ;;  %v821_v8 = vrot.slane %v10827_v27, 2  ;;  %v11255_v3 = vrot.slane %v10815_v21, 2  ;;  %v8575_v11 = vpack.i.bf16 %v11177_v63, %v11202_v43 }
 0x109   : > { %16104 = vst [vmem:[#allocation114_spill] sm:$0xff] %v11198_v4  ;;  %16105 = vst [vmem:[#allocation115_spill] sm:$0xff] %v11202_v43  ;;  %8541 = vrot.lane.b32.xlu0 %v8540_v55, %s10447_s8  ;;  %v11243_v53 = vsel %vm551_vm0, %v638_v56, %v11229_v24  ;;  %v815_v56 = vrot.slane %v10802_v12, 2  ;;  %v830_v57 = vrot.slane %v10858_v44, 2 }
 0x10a   : > { %16106 = vst [vmem:[#allocation116_spill] sm:$0xff] %v11205_v33  ;;  %16107 = vst [vmem:[#allocation117_spill] sm:$0xff] %v11216_v29  ;;  %v11250_v55 = vpack.i.bf16 %v11229_v24, %v11243_v53  ;;  %v820_v29 = vrot.slane %v10849_v41, 2  ;;  %v819_v43 = vsel %vm804_vm1, %v816_v6, %v11255_v3 }
 0x10b   : > { %16108 = vst [vmem:[#allocation118_spill] sm:$0xff] %v11222_v58  ;;  %16109 = vst [vmem:[#allocation119_spill] sm:$0xff] %v11226_v37  ;;  %v11337_v58 = vrot.slane %v10935_v31, 2 }
 0x10c   : > { %16110 = vst [vmem:[#allocation120_spill] sm:$0xff] %v11229_v24  ;;  %16111 = vst [vmem:[#allocation121_spill] sm:$0xff] %v11234_v49  ;;  %8556 = vrot.lane.b32.xlu1 %v11234_v49, %s10447_s8  ;;  %v11266_v2 = vsel %vm804_vm1, %v820_v29, %v821_v8  ;;  %v825_v49 = vrot.slane %v10862_v46, 2  ;;  %v826_v24 = vrot.slane %v10878_v54, 2 }
 0x10d   : > { %16112 = vst [vmem:[#allocation122_spill] sm:$0xff] %v11243_v53  ;;  %8551 = vrot.lane.b32.xlu0 %v8550_v61, %s10447_s8  ;;  %16113 = vst [vmem:[#allocation123_spill] sm:$0xff] %v11250_v55  ;;  %v8570_v61 = vpack.i.bf16 %v11205_v33, %v808_v16  ;;  %v11271_v53 = vrot.slane %v10851_v42, 2  ;;  %v11277_v16 = vrot.slane %v10846_v39, 2  ;;  %v8585_v29 = vpack.i.bf16 %v11266_v2, %v11255_v3 }
 0x10e   : > { %16114 = vst [vmem:[#allocation124_spill] sm:$0xff] %v11266_v2  ;;  %v11284_v33 = vrot.slane %v10922_v22, 2  ;;  %16127 = vst [vmem:[#allocation137_spill] sm:$0xff] %v11337_v58  ;;  %v11602_v2 = vpack.i.bf16 %v11008_v20, %v11034_v26 }
 0x10f   : > { %16115 = vst [vmem:[#allocation125_spill] sm:$0xff] %v11271_v53  ;;  %16116 = vst [vmem:[#allocation126_spill] sm:$0xff] %v11277_v16 }
 0x110   : > { %8566 = vrot.lane.b32.xlu1 %v8565_v5, %s10448_s18  ;;  %v817_v5 = vsel %vm804_vm1, %v815_v56, %v816_v6  ;;  %16117 = vst [vmem:[#allocation127_spill] sm:$0xff] %v11284_v33  ;;  %v11290_v56 = vsel %vm804_vm1, %v825_v49, %v826_v24  ;;  %v11294_v6 = vsel %vm804_vm1, %v826_v24, %v11271_v53  ;;  %v840_v49 = vrot.slane %v10942_v34, 2 }
 0x111   : > { %8561 = vrot.lane.b32.xlu0 %v11250_v55, %s10447_s8  ;;  %v831_v55 = vrot.slane %v10860_v45, 2  ;;  %v11287_v10 = vpack.i.bf16 %v819_v43, %v817_v5  ;;  %16119 = vst [vmem:[#allocation129_spill] sm:$0xff] %v11290_v56  ;;  %16120 = vst [vmem:[#allocation130_spill] sm:$0xff] %v11294_v6  ;;  %v841_v24 = vrot.slane %v10924_v25, 2  ;;  %s8016_s8 = sshll.u32 %s10525_s30, 12  ;;  %s7786_s30 = scalar_lea.sflag [#allocation4], %s10762_s13 }
 0x112   : > { %16147 = vst [vmem:[#allocation155_spill] sm:$0xff] %v11429_v40 }
 0x113   : > { %16118 = vst [vmem:[#allocation128_spill] sm:$0xff] %v11287_v10  ;;  %v11306_v43 = vsel %vm804_vm1, %v831_v55, %v11284_v33  ;;  %v11315_v5 = vsel %vm804_vm1, %v830_v57, %v831_v55  ;;  %v846_v57 = vrot.slane %v10982_v14, 2  ;;  %v11331_v55 = vrot.slane %v10944_v35, 2 }
 0x114   : > { %8576 = vrot.lane.b32.xlu1 %v8575_v11, %s10448_s18  ;;  %v11298_v11 = vsel %vm804_vm1, %v821_v8, %v11277_v16  ;;  %16122 = vst [vmem:[#allocation132_spill] sm:$0xff] %v11306_v43  ;;  %16123 = vst [vmem:[#allocation133_spill] sm:$0xff] %v11315_v5  ;;  %v8605_v37 = vpack.i.bf16 %v11284_v33, %v11306_v43  ;;  %v8600_v1 = vpack.i.bf16 %v11315_v5, %v11271_v53 }
 0x115   : > { %8571 = vrot.lane.b32.xlu0 %v8570_v61, %s10448_s18  ;;  %16121 = vst [vmem:[#allocation131_spill] sm:$0xff] %v11298_v11  ;;  %v8595_v61 = vpack.i.bf16 %v11294_v6, %v11290_v56  ;;  %v8590_v8 = vpack.i.bf16 %v11277_v16, %v11298_v11  ;;  %v835_v6 = vrot.slane %v10891_v59, 2  ;;  %v836_v56 = vrot.slane %v10893_v60, 2  ;;  %16126 = vst [vmem:[#allocation136_spill] sm:$0xff] %v11331_v55 }
 0x116   : > { %v845_v16 = vrot.slane %v10980_v9, 2  ;;  %v11354_v43 = vsel %vm804_vm1, %v846_v57, %v11331_v55  ;;  %v851_v53 = vrot.slane %v10955_v50, 2  ;;  %v8765_v11 = vpack.i.bf16 %v10989_v48, %v11006_v51 }
 0x117   : > { %16131 = vst [vmem:[#allocation141_spill] sm:$0xff] %v11354_v43 }
 0x118   : > { %8586 = vrot.lane.b32.xlu1 %v8585_v29, %s10448_s18  ;;  %v11318_v29 = vrot.slane %v10911_v15, 2 }
 0x119   : > { %8581 = vrot.lane.b32.xlu0 %v11287_v10, %s10448_s18  ;;  %v11326_v10 = vsel %vm804_vm1, %v840_v49, %v841_v24 }
 0x11a   : > { %16124 = vst [vmem:[#allocation134_spill] sm:$0xff] %v11318_v29  ;;  %16125 = vst [vmem:[#allocation135_spill] sm:$0xff] %v11326_v10  ;;  %v11344_v49 = vsel %vm804_vm1, %v836_v56, %v11318_v29  ;;  %v8615_v33 = vpack.i.bf16 %v11326_v10, %v11318_v29  ;;  %v11378_v10 = vrot.slane %v10998_v32, 2 }
 0x11b   : > { %16129 = vst [vmem:[#allocation139_spill] sm:$0xff] %v11344_v49 }
 0x11c   : > { %8596 = vrot.lane.b32.xlu1 %v8595_v61, %s10448_s18  ;;  %v11340_v61 = vsel %vm804_vm1, %v835_v6, %v836_v56  ;;  %v11358_v6 = vrot.slane %v11006_v51, 2  ;;  %16135 = vst [vmem:[#allocation145_spill] sm:$0xff] %v11378_v10 }
 0x11d   : > { %8591 = vrot.lane.b32.xlu0 %v8590_v8, %s10448_s18  ;;  %16128 = vst [vmem:[#allocation138_spill] sm:$0xff] %v11340_v61  ;;  %v11350_v8 = vsel %vm804_vm1, %v845_v16, %v846_v57  ;;  %v8610_v56 = vpack.i.bf16 %v11344_v49, %v11340_v61  ;;  %v850_v16 = vrot.slane %v10953_v47, 2 }
 0x11e   : > { %16130 = vst [vmem:[#allocation140_spill] sm:$0xff] %v11350_v8  ;;  %16132 = vst [vmem:[#allocation142_spill] sm:$0xff] %v11358_v6  ;;  %v8625_v57 = vpack.i.bf16 %v11354_v43, %v11350_v8  ;;  %v861_v43 = vrot.slane %v11008_v20, 2 }
 0x11f   : > { %v11383_v49 = vsel %vm804_vm1, %v850_v16, %v851_v53 }
 0x120   : > { %8606 = vrot.lane.b32.xlu1 %v8605_v37, %s10448_s18  ;;  %v11365_v37 = vsel %vm804_vm1, %v841_v24, %v11337_v58  ;;  %v860_v24 = vrot.slane %v11034_v26, 2  ;;  %16136 = vst [vmem:[#allocation146_spill] sm:$0xff] %v11383_v49 }
 0x121   : > { %8601 = vrot.lane.b32.xlu0 %v8600_v1, %s10448_s18  ;;  %16133 = vst [vmem:[#allocation143_spill] sm:$0xff] %v11365_v37  ;;  %v8620_v29 = vpack.i.bf16 %v11337_v58, %v11365_v37  ;;  %v11375_v1 = vsel %vm804_vm1, %v851_v53, %v11358_v6  ;;  %v856_v58 = vrot.slane %v10991_v28, 2  ;;  %v11395_v37 = vpack.i.bf16 %v11383_v49, %v11331_v55 }
 0x122   : > { %16134 = vst [vmem:[#allocation144_spill] sm:$0xff] %v11375_v1  ;;  %v11391_v8 = vpack.i.bf16 %v11358_v6, %v11375_v1  ;;  %v866_v53 = vrot.slane %v11073_v7, 2  ;;  %v11401_v16 = vsel %vm804_vm1, %v860_v24, %v861_v43  ;;  %v11407_v6 = vrot.slane %v11042_v52, 2  ;;  %v16141_v1 = vld [vmem:[#allocation69_spill] sm:$0xff] }
 0x123   : > { %16138 = vst [vmem:[#allocation148_spill] sm:$0xff] %v11395_v37  ;;  %16139 = vst [vmem:[#allocation149_spill] sm:$0xff] %v11401_v16  ;;  %v11410_v49 = vrot.slane %v16141_v1, 2  ;;  %v8780_v26 = vpack.i.bf16 %v11067_v17, %v16141_v1 }
 0x124   : > { %8616 = vrot.lane.b32.xlu1 %v8615_v33, %s10448_s18  ;;  %v855_v33 = vrot.slane %v10989_v48, 2  ;;  %16137 = vst [vmem:[#allocation147_spill] sm:$0xff] %v11391_v8  ;;  %16140 = vst [vmem:[#allocation150_spill] sm:$0xff] %v11407_v6 }
 0x125   : > { %8611 = vrot.lane.b32.xlu0 %v8610_v56, %s10448_s18  ;;  %v865_v56 = vrot.slane %v11067_v17, 2  ;;  %16142 = vst [vmem:[#allocation151_spill] sm:$0xff] %v11410_v49  ;;  %v16179_v17 = vld [vmem:[#allocation99_spill] sm:$0xff] }
 0x126   : > { %v857_v61 = vsel %vm804_vm1, %v855_v33, %v856_v58  ;;  %v16146_v33 = vld [vmem:[#allocation78_spill] sm:$0xff] }
 0x127   : > { %v11419_v24 = vsel %vm804_vm1, %v865_v56, %v866_v53  ;;  %v871_v5 = vrot.slane %v16146_v33, 2 }
 0x128   : > { %8626 = vrot.lane.b32.xlu1 %v8625_v57, %s10448_s18  ;;  %v859_v57 = vsel %vm804_vm1, %v856_v58, %v11378_v10  ;;  %16144 = vst [vmem:[#allocation153_spill] sm:$0xff] %v11419_v24  ;;  %v11425_v58 = vsel %vm804_vm1, %v866_v53, %v11407_v6 }
 0x129   : > { %8621 = vrot.lane.b32.xlu0 %v8620_v29, %s10448_s18  ;;  %v8645_v29 = vpack.i.bf16 %v11401_v16, %v11378_v10  ;;  %v11416_v55 = vpack.i.bf16 %v859_v57, %v857_v61  ;;  %16145 = vst [vmem:[#allocation154_spill] sm:$0xff] %v11425_v58  ;;  %v11434_v61 = vsel %vm804_vm1, %v861_v43, %v11410_v49  ;;  %v880_v57 = vrot.slane %v11128_v38, 2  ;;  %v16154_v16 = vld [vmem:[#allocation86_spill] sm:$0xff] }
 0x12a   : > { %16149 = vst [vmem:[#allocation156_spill] sm:$0xff] %v11434_v61  ;;  %v8655_v56 = vpack.i.bf16 %v11425_v58, %v11419_v24  ;;  %v8650_v53 = vpack.i.bf16 %v11410_v49, %v11434_v61  ;;  %v11453_v10 = vrot.slane %v11090_v23, 2  ;;  %v16153_v58 = vld [vmem:[#allocation85_spill] sm:$0xff]  ;;  %v876_v38 = vrot.slane %v16154_v16, 2 }
 0x12b   : > { %16143 = vst [vmem:[#allocation152_spill] sm:$0xff] %v11416_v55  ;;  %v875_v24 = vrot.slane %v16153_v58, 2  ;;  %v886_v61 = vrot.slane %v11170_v30, 2  ;;  %v11469_v23 = vrot.slane %v11157_v0, 2 }
 0x12c   : > { %8636 = vrot.lane.b32.xlu1 %v11391_v8, %s10448_s18  ;;  %v16148_v8 = vld [vmem:[#allocation77_spill] sm:$0xff]  ;;  %16152 = vst [vmem:[#allocation159_spill] sm:$0xff] %v11453_v10 }
 0x12d   : > { %8631 = vrot.lane.b32.xlu0 %v11395_v37, %s10448_s18  ;;  %v870_v19 = vrot.slane %v16148_v8, 2  ;;  %v11446_v37 = vsel %vm804_vm1, %v871_v5, %v11429_v40  ;;  %16156 = vst [vmem:[#allocation161_spill] sm:$0xff] %v11469_v23 }
 0x12e   : > { %16150 = vst [vmem:[#allocation157_spill] sm:$0xff] %v11446_v37 }
 0x12f   : > { %v11449_v43 = vsel %vm804_vm1, %v870_v19, %v871_v5  ;;  %v885_v5 = vrot.slane %v11168_v36, 2 }
 0x130   : > { %8646 = vrot.lane.b32.xlu1 %v8645_v29, %s10448_s18  ;;  %16151 = vst [vmem:[#allocation158_spill] sm:$0xff] %v11449_v43  ;;  %v881_v29 = vrot.slane %v11115_v62, 2  ;;  %v8660_v49 = vpack.i.bf16 %v11449_v43, %v11407_v6 }
 0x131   : > { %8641 = vrot.lane.b32.xlu0 %v11416_v55, %s10448_s18  ;;  %v8665_v55 = vpack.i.bf16 %v11429_v40, %v11446_v37  ;;  %v11476_v40 = vsel %vm804_vm1, %v876_v38, %v11453_v10  ;;  %v16159_v37 = vld [vmem:[#allocation98_spill] sm:$0xff]  ;;  %v11489_v36 = vsel %vm804_vm1, %v885_v5, %v886_v61  ;;  %v8710_v5 = vpack.i.bf16 %v10815_v21, %v10804_v13 }
 0x132   : > { %v11464_v19 = vsel %vm804_vm1, %v880_v57, %v881_v29  ;;  %16158 = vst [vmem:[#allocation163_spill] sm:$0xff] %v11476_v40  ;;  %v11479_v6 = vrot.slane %v16159_v37, 2  ;;  %16162 = vst [vmem:[#allocation165_spill] sm:$0xff] %v11489_v36  ;;  %v11496_v37 = vrot.slane %v11198_v4, 2 }
 0x133   : > { %16155 = vst [vmem:[#allocation160_spill] sm:$0xff] %v11464_v19  ;;  %v8675_v57 = vpack.i.bf16 %v11464_v19, %v11453_v10  ;;  %v16166_v10 = vld [vmem:[#allocation106_spill] sm:$0xff] }
 0x134   : > { %8656 = vrot.lane.b32.xlu1 %v8655_v56, %s10448_s18  ;;  %v11472_v56 = vsel %vm804_vm1, %v875_v24, %v876_v38  ;;  %16160 = vst [vmem:[#allocation164_spill] sm:$0xff] %v11479_v6  ;;  %v11493_v38 = vsel %vm804_vm1, %v886_v61, %v11469_v23  ;;  %16164 = vst [vmem:[#allocation167_spill] sm:$0xff] %v11496_v37  ;;  %v890_v19 = vrot.slane %v16166_v10, 2 }
 0x135   : > { %8651 = vrot.lane.b32.xlu0 %v8650_v53, %s10448_s18  ;;  %16157 = vst [vmem:[#allocation162_spill] sm:$0xff] %v11472_v56  ;;  %v16161_v53 = vld [vmem:[#allocation107_spill] sm:$0xff]  ;;  %v8670_v24 = vpack.i.bf16 %v11476_v40, %v11472_v56  ;;  %16163 = vst [vmem:[#allocation166_spill] sm:$0xff] %v11493_v38  ;;  %v8685_v61 = vpack.i.bf16 %v11493_v38, %v11489_v36  ;;  %v8745_v38 = vpack.i.bf16 %v10924_v25, %v10942_v34 }
 0x136   : > { %v891_v43 = vrot.slane %v16161_v53, 2  ;;  %v8755_v36 = vpack.i.bf16 %v10944_v35, %v10982_v14  ;;  %v16258_v34 = vld [vmem:[#allocation111_spill] sm:$0xff] }
 0x137   : > { %v16259_v25 = vld [vmem:[#allocation119_spill] sm:$0xff] }
 0x138   : > { %8666 = vrot.lane.b32.xlu1 %v8665_v55, %s10448_s18  ;;  %v11500_v55 = vsel %vm804_vm1, %v881_v29, %v11479_v6  ;;  %v11515_v29 = vsel %vm804_vm1, %v891_v43, %v11496_v37  ;;  %v11518_v56 = vsel %vm804_vm1, %v890_v19, %v891_v43  ;;  %v16171_v43 = vld [vmem:[#allocation21_spill] sm:$0xff] }
 0x139   : > { %8661 = vrot.lane.b32.xlu0 %v8660_v49, %s10448_s18  ;;  %16165 = vst [vmem:[#allocation168_spill] sm:$0xff] %v11500_v55  ;;  %v8680_v40 = vpack.i.bf16 %v11479_v6, %v11500_v55  ;;  %16167 = vst [vmem:[#allocation169_spill] sm:$0xff] %v11515_v29  ;;  %v8705_v19 = vpack.i.bf16 %v10802_v12, %v16171_v43  ;;  %v16173_v49 = vld [vmem:[#allocation20_spill] sm:$0xff] }
 0x13a   : > { %16168 = vst [vmem:[#allocation170_spill] sm:$0xff] %v11518_v56 }
 0x13c   : > { %8676 = vrot.lane.b32.xlu1 %v8675_v57, %s10448_s18  ;;  %v11523_v57 = vpack.i.bf16 %v11496_v37, %v11515_v29 }
 0x13d   : > { %8671 = vrot.lane.b32.xlu0 %v8670_v24, %s10448_s18  ;;  %v11528_v24 = vpack.i.bf16 %v11518_v56, %v11469_v23  ;;  %v8730_v56 = vpack.i.bf16 %v10860_v45, %v10858_v44 }
 0x13e   : > { %16169 = vst [vmem:[#allocation171_spill] sm:$0xff] %v11523_v57 }
 0x13f   : > { %16170 = vst [vmem:[#allocation172_spill] sm:$0xff] %v11528_v24 }
 0x140   : > { %8686 = vrot.lane.b32.xlu1 %v8685_v61, %s10448_s18  ;;  %v16172_v61 = vld [vmem:[#allocation22_spill] sm:$0xff] }
 0x141   : > { %8681 = vrot.lane.b32.xlu0 %v8680_v40, %s10448_s18  ;;  %v8700_v37 = vpack.i.bf16 %v16173_v49, %v16172_v61  ;;  %v11543_v40 = vpack.i.bf16 %v10827_v27, %v10849_v41  ;;  %16175 = vst [vmem:[#allocation22_spill] sm:$0xff] %v11602_v2 }
 0x143   : > { %16174 = vst [vmem:[#allocation21_spill] sm:$0xff] %v11543_v40 }
 0x144   : > { %8696 = vrot.lane.b32.xlu1 %v11523_v57, %s10448_s18  ;;  %v8725_v57 = vpack.i.bf16 %v10851_v42, %v10878_v54 }
 0x145   : > { %8691 = vrot.lane.b32.xlu0 %v11528_v24, %s10448_s18 }
 0x148   : > { %8706 = vrot.lane.b32.xlu1 %v8705_v19, %s10449_s14  ;;  %v8720_v19 = vpack.i.bf16 %v10862_v46, %v10846_v39 }
 0x149   : > { %8701 = vrot.lane.b32.xlu0 %v8700_v37, %s10449_s14  ;;  %v8735_v37 = vpack.i.bf16 %v10891_v59, %v10922_v22 }
 0x14c   : > { %8716 = vrot.lane.b32.xlu1 %v11543_v40, %s10449_s14 }
 0x14d   : > { %8711 = vrot.lane.b32.xlu0 %v8710_v5, %s10449_s14 }
 0x14e   : > { %v11555_v24 = vpop.permute.xlu1 %8441 }
 0x14f   : > { %v11557_v29 = vpop.permute.xlu0 %8431 }
 0x150   : > { %8726 = vrot.lane.b32.xlu1 %v8725_v57, %s10449_s14  ;;  %v8740_v57 = vpack.i.bf16 %v10911_v15, %v10893_v60 }
 0x151   : > { %8721 = vrot.lane.b32.xlu0 %v8720_v19, %s10449_s14 }
 0x152   : > { %v11565_v23 = vpop.permute.xlu1 %8446 }
 0x153   : > { %v11567_v5 = vpop.permute.xlu0 %8436 }
 0x154   : > { %8736 = vrot.lane.b32.xlu1 %v8735_v37, %s10449_s14  ;;  %v8750_v37 = vpack.i.bf16 %v10980_v9, %v10935_v31 }
 0x155   : > { %8731 = vrot.lane.b32.xlu0 %v8730_v56, %s10449_s14 }
 0x156   : > { %v11575_v6 = vpop.permute.xlu1 %8456 }
 0x157   : > { %v11577_v19 = vpop.permute.xlu0 %8451 }
 0x158   : > { %8746 = vrot.lane.b32.xlu1 %v8745_v38, %s10449_s14  ;;  %v8760_v38 = vpack.i.bf16 %v10955_v50, %v10953_v47 }
 0x159   : > { %8741 = vrot.lane.b32.xlu0 %v8740_v57, %s10449_s14 }
 0x15a   : > { %v11585_v55 = vpop.permute.xlu1 %8466 }
 0x15b   : > { %v11587_v56 = vpop.permute.xlu0 %8461 }
 0x15c   : > { %8756 = vrot.lane.b32.xlu1 %v8755_v36, %s10449_s14  ;;  %v8770_v36 = vpack.i.bf16 %v10998_v32, %v10991_v28  ;;  %v8795_v32 = vpack.i.bf16 %v16153_v58, %v11108_v18  ;;  %v8065_v58 = vld [vmem:[%s10766_s15 + $0xd8] sm:$0xff]  }
 0x15d   : > { %8751 = vrot.lane.b32.xlu0 %v8750_v37, %s10449_s14 }
 0x15e   : > { %v11595_v63 = vpop.permute.xlu1 %8476 }
 0x15f   : > { %v11597_v57 = vpop.permute.xlu0 %8471 }
 0x160   : > { %8766 = vrot.lane.b32.xlu1 %v8765_v11, %s10449_s14  ;;  %v8785_v11 = vpack.i.bf16 %v11042_v52, %v11073_v7  ;;  %v8805_v52 = vpack.i.bf16 %v11115_v62, %v16179_v17  ;;  %v16185_v17 = vld [vmem:[#allocation108_spill] sm:$0xff] }
 0x161   : > { %8761 = vrot.lane.b32.xlu0 %v8760_v38, %s10449_s14 }
 0x162   : > { %v11607_v40 = vpop.permute.xlu1 %8486 }
 0x163   : > { %v11609_v37 = vpop.permute.xlu0 %8481 }
 0x164   : > { %8776 = vrot.lane.b32.xlu1 %v11602_v2, %s10449_s14  ;;  %v8790_v2 = vpack.i.bf16 %v16146_v33, %v16148_v8  ;;  %v8815_v33 = vpack.i.bf16 %v11157_v0, %v11170_v30  ;;  %v11646_v8 = vunpack.c.l.bf16 %v8065_v58  ;;  %v8820_v30 = vpack.i.bf16 %v16161_v53, %v16166_v10  ;;  %v16198_v10 = vld [vmem:[#allocation30_spill] sm:$0xff] }
 0x165   : > { %8771 = vrot.lane.b32.xlu0 %v8770_v36, %s10449_s14  ;;  %v11662_v0 = vunpack.c.h.bf16 %v8065_v58  ;;  %v16194_v58 = vld [vmem:[#allocation27_spill] sm:$0xff] }
 0x166   : > { %v11618_v38 = vpop.permute.xlu1 %8496  ;;  %16183 = vst [vmem:[#allocation177_spill] sm:$0xff] %v11646_v8 }
 0x167   : > { %v11620_v20 = vpop.permute.xlu0 %8491  ;;  %16188 = vst [vmem:[#allocation180_spill] sm:$0xff] %v11662_v0 }
 0x168   : > { %16176 = vst [vmem:[#allocation20_spill] sm:$0xff] %v11620_v20  ;;  %8786 = vrot.lane.b32.xlu1 %v8785_v11, %s10449_s14  ;;  %v16180_v11 = vld [vmem:[#allocation89_spill] sm:$0xff] }
 0x169   : > { %8781 = vrot.lane.b32.xlu0 %v8780_v26, %s10449_s14  ;;  %v8800_v18 = vpack.i.bf16 %v16180_v11, %v16154_v16  ;;  %v433_v11 = vld [vmem:[%s10766_s15 + $0xe0] sm:$0x3] }
 0x16a   : > { %v11628_v7 = vpop.permute.xlu1 %8506  ;;  %v16260_v20 = vld [vmem:[#allocation113_spill] sm:$0xff] }
 0x16b   : > { %16177 = vst [vmem:[#allocation173_spill] sm:$0xff] %v11628_v7  ;;  %v11630_v36 = vpop.permute.xlu0 %8501 }
 0x16c   : > { %16178 = vst [vmem:[#allocation174_spill] sm:$0xff] %v11630_v36  ;;  %8796 = vrot.lane.b32.xlu1 %v8795_v32, %s10449_s14  ;;  %v16184_v32 = vld [vmem:[#allocation98_spill] sm:$0xff] }
 0x16d   : > { %8791 = vrot.lane.b32.xlu0 %v8790_v2, %s10449_s14  ;;  %v8810_v2 = vpack.i.bf16 %v16185_v17, %v16184_v32  ;;  %v16252_v36 = vld [vmem:[#allocation94_spill] sm:$0xff] }
 0x16e   : > { %v11639_v26 = vpop.permute.xlu1 %8516 }
 0x16f   : > { %16181 = vst [vmem:[#allocation175_spill] sm:$0xff] %v11639_v26  ;;  %v11641_v1 = vpop.permute.xlu0 %8511  ;;  %v16228_v26 = vld [vmem:[#allocation65_spill] sm:$0xff] }
 0x170   : > { %16182 = vst [vmem:[#allocation176_spill] sm:$0xff] %v11641_v1  ;;  %8806 = vrot.lane.b32.xlu1 %v8805_v52, %s10449_s14  ;;  %v8825_v52 = vpack.i.bf16 %v11646_v8, %v11198_v4  ;;  %v16197_v4 = vld [vmem:[#allocation31_spill] sm:$0xff]  ;;  %v16222_v1 = vld [vmem:[#allocation53_spill] sm:$0xff] }
 0x171   : > { %8801 = vrot.lane.b32.xlu0 %v8800_v18, %s10449_s14  ;;  %v11664_v18 = vunpack.c.l.bf16 %v433_v11  ;;  %v16195_v11 = vld [vmem:[#allocation28_spill] sm:$0xff] }
 0x172   : > { %v11651_v62 = vpop.permute.xlu1 %8526  ;;  %v16196_v53 = vpack.i.bf16 %v16194_v58, %v16195_v11  ;;  %v16206_v58 = vld [vmem:[#allocation36_spill] sm:$0xff] }
 0x173   : > { %16186 = vst [vmem:[#allocation178_spill] sm:$0xff] %v11651_v62  ;;  %v11654_v16 = vpop.permute.xlu0 %8521  ;;  %16189 = vst [vmem:[#allocation181_spill] sm:$0xff] %v11664_v18 }
 0x174   : > { %16187 = vst [vmem:[#allocation179_spill] sm:$0xff] %v11654_v16  ;;  %8816 = vrot.lane.b32.xlu1 %v8815_v33, %s10449_s14  ;;  %v8830_v33 = vpack.i.bf16 %v11664_v18, %v11662_v0  ;;  %v16203_v0 = vld [vmem:[#allocation34_spill] sm:$0xff] }
 0x175   : > { %8811 = vrot.lane.b32.xlu0 %v8810_v2, %s10449_s14 }
 0x176   : > { %v11666_v17 = vpop.permute.xlu1 %8536 }
 0x177   : > { %16190 = vst [vmem:[#allocation182_spill] sm:$0xff] %v11666_v17  ;;  %v11668_v32 = vpop.permute.xlu0 %8531 }
 0x178   : > { %16191 = vst [vmem:[#allocation183_spill] sm:$0xff] %v11668_v32  ;;  %8826 = vrot.lane.b32.xlu1 %v8825_v52, %s10449_s14  ;;  %v8845_v32 = vpack.i.bf16 %v16198_v10, %v16197_v4  ;;  %v16199_v52 = vld [vmem:[#allocation26_spill] sm:$0xff] }
 0x179   : > { %8821 = vrot.lane.b32.xlu0 %v8820_v30, %s10449_s14  ;;  %v16200_v30 = vld [vmem:[#allocation29_spill] sm:$0xff] }
 0x17a   : > { %v11674_v8 = vpop.permute.xlu1 %8546  ;;  %v8840_v17 = vpack.i.bf16 %v16200_v30, %v16199_v52  ;;  %v16210_v52 = vld [vmem:[#allocation40_spill] sm:$0xff] }
 0x17b   : > { %16192 = vst [vmem:[#allocation184_spill] sm:$0xff] %v11674_v8  ;;  %v11676_v2 = vpop.permute.xlu0 %8541  ;;  %v16211_v30 = vld [vmem:[#allocation56_spill] sm:$0xff] }
 0x17c   : > { %16193 = vst [vmem:[#allocation185_spill] sm:$0xff] %v11676_v2  ;;  %8836 = vrot.lane.b32.xlu1 %v16196_v53, %s10450_s22  ;;  %v16204_v2 = vld [vmem:[#allocation42_spill] sm:$0xff]  ;;  %v16205_v53 = vld [vmem:[#allocation37_spill] sm:$0xff] }
 0x17d   : > { %8831 = vrot.lane.b32.xlu0 %v8830_v33, %s10449_s14  ;;  %v8855_v8 = vpack.i.bf16 %v16204_v2, %v16203_v0  ;;  %v11697_v11 = vpack.i.bf16 %v16206_v58, %v16205_v53  ;;  %v16216_v53 = vld [vmem:[#allocation52_spill] sm:$0xff]  ;;  %v16217_v58 = vld [vmem:[#allocation47_spill] sm:$0xff] }
 0x17e   : > { %v11687_v16 = vpop.permute.xlu1 %8556 }
 0x17f   : > { %16201 = vst [vmem:[#allocation27_spill] sm:$0xff] %v11687_v16  ;;  %v11689_v18 = vpop.permute.xlu0 %8551  ;;  %16207 = vst [vmem:[#allocation31_spill] sm:$0xff] %v11697_v11  ;;  %v16213_v16 = vld [vmem:[#allocation35_spill] sm:$0xff] }
 0x180   : > { %16202 = vst [vmem:[#allocation28_spill] sm:$0xff] %v11689_v18  ;;  %8846 = vrot.lane.b32.xlu1 %v8845_v32, %s10450_s22  ;;  %v8865_v18 = vpack.i.bf16 %v16211_v30, %v16210_v52  ;;  %v16212_v32 = vld [vmem:[#allocation43_spill] sm:$0xff]  ;;  %v8458_v52 = vunpack.i.l.bf16 %v11575_v6 }
 0x181   : > { %8841 = vrot.lane.b32.xlu0 %v8840_v17, %s10450_s22  ;;  %v8860_v62 = vpack.i.bf16 %v16213_v16, %v16212_v32 }
 0x182   : > { %v11699_v4 = vpop.permute.xlu1 %8566 }
 0x183   : > { %16208 = vst [vmem:[#allocation30_spill] sm:$0xff] %v11699_v4  ;;  %v11701_v33 = vpop.permute.xlu0 %8561  ;;  %v16219_v4 = vld [vmem:[#allocation46_spill] sm:$0xff] }
 0x184   : > { %16209 = vst [vmem:[#allocation26_spill] sm:$0xff] %v11701_v33  ;;  %8856 = vrot.lane.b32.xlu1 %v8855_v8, %s10450_s22  ;;  %v8875_v33 = vpack.i.bf16 %v16217_v58, %v16216_v53  ;;  %v16218_v8 = vld [vmem:[#allocation49_spill] sm:$0xff] }
 0x185   : > { %8851 = vrot.lane.b32.xlu0 %v11697_v11, %s10450_s22  ;;  %v8870_v51 = vpack.i.bf16 %v16219_v4, %v16218_v8 }
 0x186   : > { %v11710_v17 = vpop.permute.xlu1 %8576 }
 0x187   : > { %16214 = vst [vmem:[#allocation29_spill] sm:$0xff] %v11710_v17  ;;  %v11712_v50 = vpop.permute.xlu0 %8571  ;;  %v16223_v17 = vld [vmem:[#allocation70_spill] sm:$0xff] }
 0x188   : > { %16215 = vst [vmem:[#allocation34_spill] sm:$0xff] %v11712_v50  ;;  %8866 = vrot.lane.b32.xlu1 %v8865_v18, %s10450_s22  ;;  %v8885_v28 = vpack.i.bf16 %v16223_v17, %v16222_v1  ;;  %v16224_v18 = vld [vmem:[#allocation58_spill] sm:$0xff]  ;;  %v16225_v50 = vld [vmem:[#allocation57_spill] sm:$0xff]  ;;  %v16234_v17 = vld [vmem:[#allocation80_spill] sm:$0xff] }
 0x189   : > { %8861 = vrot.lane.b32.xlu0 %v8860_v62, %s10450_s22  ;;  %v8880_v9 = vpack.i.bf16 %v16225_v50, %v16224_v18  ;;  %v16251_v18 = vld [vmem:[#allocation102_spill] sm:$0xff] }
 0x18a   : > { %v11720_v48 = vpop.permute.xlu1 %8586 }
 0x18b   : > { %16220 = vst [vmem:[#allocation42_spill] sm:$0xff] %v11720_v48  ;;  %v11722_v11 = vpop.permute.xlu0 %8581  ;;  %v16229_v48 = vld [vmem:[#allocation81_spill] sm:$0xff] }
 0x18c   : > { %16221 = vst [vmem:[#allocation37_spill] sm:$0xff] %v11722_v11  ;;  %8876 = vrot.lane.b32.xlu1 %v8875_v33, %s10450_s22  ;;  %v8895_v35 = vpack.i.bf16 %v16229_v48, %v16228_v26  ;;  %v16230_v33 = vld [vmem:[#allocation71_spill] sm:$0xff]  ;;  %v16231_v11 = vld [vmem:[#allocation61_spill] sm:$0xff] }
 0x18d   : > { %8871 = vrot.lane.b32.xlu0 %v8870_v51, %s10450_s22  ;;  %v8890_v47 = vpack.i.bf16 %v16231_v11, %v16230_v33  ;;  %v16240_v26 = vld [vmem:[#allocation73_spill] sm:$0xff]  ;;  %v16241_v11 = vld [vmem:[#allocation96_spill] sm:$0xff] }
 0x18e   : > { %v11730_v14 = vpop.permute.xlu1 %8596 }
 0x18f   : > { %16226 = vst [vmem:[#allocation36_spill] sm:$0xff] %v11730_v14  ;;  %v11732_v62 = vpop.permute.xlu0 %8591  ;;  %v16235_v14 = vld [vmem:[#allocation68_spill] sm:$0xff] }
 0x190   : > { %16227 = vst [vmem:[#allocation43_spill] sm:$0xff] %v11732_v62  ;;  %8886 = vrot.lane.b32.xlu1 %v8885_v28, %s10450_s22  ;;  %v8905_v50 = vpack.i.bf16 %v16235_v14, %v16234_v17  ;;  %v16236_v28 = vld [vmem:[#allocation72_spill] sm:$0xff]  ;;  %v16237_v62 = vld [vmem:[#allocation79_spill] sm:$0xff] }
 0x191   : > { %8881 = vrot.lane.b32.xlu0 %v8880_v9, %s10450_s22  ;;  %v8900_v58 = vpack.i.bf16 %v16237_v62, %v16236_v28  ;;  %v16247_v62 = vld [vmem:[#allocation92_spill] sm:$0xff]  ;;  %v16248_v28 = vld [vmem:[#allocation105_spill] sm:$0xff] }
 0x192   : > { %v11740_v1 = vpop.permute.xlu1 %8606  ;;  %v8925_v14 = vpack.i.bf16 %v16248_v28, %v16247_v62  ;;  %v16264_v62 = vld [vmem:[#allocation126_spill] sm:$0xff] }
 0x193   : > { %16232 = vst [vmem:[#allocation65_spill] sm:$0xff] %v11740_v1  ;;  %v11742_v51 = vpop.permute.xlu0 %8601  ;;  %v8915_v1 = vpack.i.bf16 %v16241_v11, %v16240_v26  ;;  %v8935_v26 = vpack.i.bf16 %v16252_v36, %v16251_v18  ;;  %v16253_v11 = vld [vmem:[#allocation100_spill] sm:$0xff]  ;;  %v16263_v36 = vld [vmem:[#allocation129_spill] sm:$0xff] }
 0x194   : > { %16233 = vst [vmem:[#allocation81_spill] sm:$0xff] %v11742_v51  ;;  %8896 = vrot.lane.b32.xlu1 %v8895_v35, %s10450_s22  ;;  %v16242_v35 = vld [vmem:[#allocation91_spill] sm:$0xff] }
 0x195   : > { %8891 = vrot.lane.b32.xlu0 %v8890_v47, %s10450_s22  ;;  %v16243_v51 = vld [vmem:[#allocation83_spill] sm:$0xff] }
 0x196   : > { %v11750_v48 = vpop.permute.xlu1 %8616  ;;  %v11760_v33 = vpack.i.bf16 %v16243_v51, %v16242_v35  ;;  %v16255_v51 = vld [vmem:[#allocation103_spill] sm:$0xff]  ;;  %v16256_v35 = vld [vmem:[#allocation118_spill] sm:$0xff] }
 0x197   : > { %16238 = vst [vmem:[#allocation61_spill] sm:$0xff] %v11750_v48  ;;  %v11752_v9 = vpop.permute.xlu0 %8611  ;;  %v16249_v48 = vld [vmem:[#allocation97_spill] sm:$0xff]  ;;  %v8945_v15 = vpack.i.bf16 %v16256_v35, %v16255_v51  ;;  %v8434_v51 = vunpack.i.h.bf16 %v11557_v29 }
 0x198   : > { %16239 = vst [vmem:[#allocation80_spill] sm:$0xff] %v11752_v9  ;;  %8906 = vrot.lane.b32.xlu1 %v8905_v50, %s10450_s22  ;;  %16244 = vst [vmem:[#allocation72_spill] sm:$0xff] %v11760_v33  ;;  %v16250_v9 = vld [vmem:[#allocation88_spill] sm:$0xff] }
 0x199   : > { %8901 = vrot.lane.b32.xlu0 %v8900_v58, %s10450_s22  ;;  %v8920_v50 = vpack.i.bf16 %v16250_v9, %v16249_v48  ;;  %v16254_v58 = vld [vmem:[#allocation101_spill] sm:$0xff]  ;;  %v8449_v9 = vunpack.i.h.bf16 %v11565_v23 }
 0x19a   : > { %v11762_v47 = vpop.permute.xlu1 %8626  ;;  %v8930_v7 = vpack.i.bf16 %v16254_v58, %v16253_v11  ;;  %v8443_v11 = vunpack.i.l.bf16 %v11555_v24  ;;  %v8439_v58 = vunpack.i.h.bf16 %v11567_v5 }
 0x19b   : > { %16245 = vst [vmem:[#allocation79_spill] sm:$0xff] %v11762_v47  ;;  %v11764_v17 = vpop.permute.xlu0 %8621  ;;  %v16257_v47 = vld [vmem:[#allocation112_spill] sm:$0xff] }
 0x19c   : > { %16246 = vst [vmem:[#allocation91_spill] sm:$0xff] %v11764_v17  ;;  %8916 = vrot.lane.b32.xlu1 %v8915_v1, %s10450_s22  ;;  %v8444_v1 = vunpack.i.h.bf16 %v11555_v24  ;;  %v8433_v17 = vunpack.i.l.bf16 %v11557_v29  ;;  %v8448_v29 = vunpack.i.l.bf16 %v11565_v23  ;;  %v11823_v48 = vsel %vm2055_vm2, %v16173_v49, %v8443_v11 }
 0x19d   : > { %8911 = vrot.lane.b32.xlu0 %v11760_v33, %s10450_s22  ;;  %v16266_v33 = vld [vmem:[#allocation24_spill] sm:$0xff]  ;;  %v8459_v23 = vunpack.i.h.bf16 %v11575_v6 }
 0x19e   : > { %v11791_v35 = vpop.permute.xlu1 %8636  ;;  %v11827_v18 = vsel %vm2055_vm2, %v16266_v33, %v8434_v51  ;;  %v11843_v33 = vsel %vm2055_vm2, %v10804_v13, %v8449_v9  ;;  %v11847_v11 = vsel %vm2055_vm2, %v10802_v12, %v8448_v29  ;;  %v8468_v29 = vunpack.i.l.bf16 %v11585_v55 }
 0x19f   : > { %16261 = vst [vmem:[#allocation83_spill] sm:$0xff] %v11791_v35  ;;  %v11793_v28 = vpop.permute.xlu0 %8631  ;;  %v16265_v35 = vld [vmem:[#allocation130_spill] sm:$0xff]  ;;  %v8463_v51 = vunpack.i.l.bf16 %v11587_v56 }
 0x1a0   : > { %16262 = vst [vmem:[#allocation113_spill] sm:$0xff] %v11793_v28  ;;  %8926 = vrot.lane.b32.xlu1 %v8925_v14, %s10450_s22  ;;  %v8438_v28 = vunpack.i.l.bf16 %v11567_v5  ;;  %v11819_v14 = vsel %vm2055_vm2, %v16171_v43, %v8444_v1  ;;  %v16267_v5 = vld [vmem:[#allocation23_spill] sm:$0xff]  ;;  %v8454_v43 = vunpack.i.h.bf16 %v11577_v19  ;;  %v8453_v1 = vunpack.i.l.bf16 %v11577_v19 }
 0x1a1   : > { %8921 = vrot.lane.b32.xlu0 %v8920_v50, %s10450_s22  ;;  %v11831_v50 = vsel %vm2055_vm2, %v16267_v5, %v8433_v17  ;;  %v11856_v19 = vsel %vm2055_vm2, %v16172_v61, %v8439_v58  ;;  %v8479_v58 = vunpack.i.h.bf16 %v11595_v63  ;;  %v8478_v61 = vunpack.i.l.bf16 %v11595_v63  ;;  %v16331_v17 = vld [vmem:[#allocation179_spill] sm:$0xff] }
 0x1a2   : > { %v11833_v24 = vpop.permute.xlu1 %8646  ;;  %v16280_v63 = vpack.i.bf16 %v16258_v34, %v16257_v47  ;;  %v8484_v34 = vunpack.i.h.bf16 %v11609_v37  ;;  %v8483_v5 = vunpack.i.l.bf16 %v11609_v37  ;;  %v16286_v37 = vld [vmem:[#allocation115_spill] sm:$0xff] }
 0x1a3   : > { %16268 = vst [vmem:[#allocation129_spill] sm:$0xff] %v11833_v24  ;;  %v11839_v49 = vpop.permute.xlu0 %8641  ;;  %v16272_v24 = vld [vmem:[#allocation25_spill] sm:$0xff] }
 0x1a4   : > { %16269 = vst [vmem:[#allocation126_spill] sm:$0xff] %v11839_v49  ;;  %8936 = vrot.lane.b32.xlu1 %v8935_v26, %s10450_s22  ;;  %v11860_v9 = vsel %vm2055_vm2, %v16272_v24, %v8438_v28  ;;  %v8469_v49 = vunpack.i.h.bf16 %v11585_v55  ;;  %v8464_v26 = vunpack.i.h.bf16 %v11587_v56  ;;  %v11875_v28 = vsel %vm2055_vm2, %v10846_v39, %v8459_v23 }
 0x1a5   : > { %8931 = vrot.lane.b32.xlu0 %v8930_v7, %s10450_s22  ;;  %16274 = vst [vmem:[#allocation24_spill] sm:$0xff] %v11875_v28  ;;  %v11879_v55 = vsel %vm2055_vm2, %v10827_v27, %v8458_v52  ;;  %v11883_v7 = vsel %vm2055_vm2, %v10849_v41, %v8454_v43  ;;  %v11887_v56 = vsel %vm2055_vm2, %v10815_v21, %v8453_v1  ;;  %v8474_v23 = vunpack.i.h.bf16 %v11597_v57  ;;  %v10150_v28 = vld [vmem:[#allocation5] sm:$0xff]   ;;  %v16304_v27 = vld [vmem:[#allocation54_spill] sm:$0xff] }
 0x1a6   : > { %v11867_v16 = vpop.permute.xlu1 %8656  ;;  %16275 = vst [vmem:[#allocation23_spill] sm:$0xff] %v11879_v55  ;;  %v11899_v41 = vsel %vm2055_vm2, %v10858_v44, %v8469_v49  ;;  %v11903_v43 = vsel %vm2055_vm2, %v10851_v42, %v8468_v29  ;;  %v8473_v1 = vunpack.i.l.bf16 %v11597_v57  ;;  %v11914_v52 = vsel %vm2055_vm2, %v10878_v54, %v8464_v26  ;;  %v16287_v57 = vld [vmem:[#allocation116_spill] sm:$0xff] }
 0x1a7   : > { %16273 = vst [vmem:[#allocation130_spill] sm:$0xff] %v11867_v16  ;;  %v11889_v24 = vpop.permute.xlu0 %8651  ;;  %16278 = vst [vmem:[#allocation186_spill] sm:$0xff] %v11899_v41  ;;  %v11918_v49 = vsel %vm2055_vm2, %v10862_v46, %v8463_v51  ;;  %v8489_v29 = vunpack.i.h.bf16 %v11607_v40  ;;  %v11934_v51 = vsel %vm2055_vm2, %v10893_v60, %v8479_v58  ;;  %v11938_v41 = vsel %vm2055_vm2, %v10891_v59, %v8478_v61  ;;  %v16297_v60 = vld [vmem:[#allocation41_spill] sm:$0xff]  ;;  %v16309_v16 = vld [vmem:[#allocation60_spill] sm:$0xff] }
 0x1a8   : > { %16276 = vst [vmem:[#allocation25_spill] sm:$0xff] %v11889_v24  ;;  %8946 = vrot.lane.b32.xlu1 %v8945_v15, %s10450_s22  ;;  %16279 = vst [vmem:[#allocation187_spill] sm:$0xff] %v11903_v43  ;;  %v16288_v55 = vpack.i.bf16 %v16286_v37, %v16287_v57  ;;  %v11950_v26 = vsel %vm2055_vm2, %v10860_v45, %v8473_v1  ;;  %v8499_v58 = vunpack.i.h.bf16 %v11618_v38  ;;  %v8498_v61 = vunpack.i.l.bf16 %v11618_v38  ;;  %v16292_v1 = vld [vmem:[#allocation20_spill] sm:$0xff]  ;;  %v16320_v59 = vld [vmem:[#allocation66_spill] sm:$0xff] }
 0x1a9   : > { %8941 = vrot.lane.b32.xlu0 %v16280_v63, %s10450_s22  ;;  %16282 = vst [vmem:[#allocation188_spill] sm:$0xff] %v11914_v52  ;;  %16283 = vst [vmem:[#allocation189_spill] sm:$0xff] %v11918_v49  ;;  %v8488_v63 = vunpack.i.l.bf16 %v11607_v40  ;;  %v11942_v40 = vsel %vm2055_vm2, %v10922_v22, %v8474_v23  ;;  %v16290_v23 = vpack.i.bf16 %v16260_v20, %v16259_v25  ;;  %v15929_v22 = vmov 0.0   ;;  %v16296_v25 = vld [vmem:[#allocation50_spill] sm:$0xff] }
 0x1aa   : > { %v11921_v43 = vpop.permute.xlu1 %8666  ;;  %16289 = vst [vmem:[#allocation115_spill] sm:$0xff] %v11950_v26  ;;  %8128 = vmatprep.subr.bf16.mxu0 %v15929_v22  ;;  %v8494_v57 = vunpack.i.h.bf16 %v16292_v1  ;;  %v8493_v37 = vunpack.i.l.bf16 %v16292_v1  ;;  %8294 = vmatprep.subr.bf16.mxu1 %v15929_v22  ;;  %v11982_v8 = vsel %vm2055_vm2, %v16297_v60, %v8483_v5  ;;  %v16298_v1 = vld [vmem:[#allocation173_spill] sm:$0xff]  ;;  %v16300_v52 = vld [vmem:[#allocation174_spill] sm:$0xff]  ;;  %v16322_v5 = vld [vmem:[#allocation55_spill] sm:$0xff] }
 0x1ab   : > { %16284 = vst [vmem:[#allocation190_spill] sm:$0xff] %v11921_v43  ;;  %v11928_v47 = vpop.permute.xlu0 %8661  ;;  %8129 = vmatpush3.bf16.msra.mxu0 %v10150_v28  ;;  %8297 = vmatpush3.bf16.msra.mxu1 %v10150_v28  ;;  %v8508_v20 = vunpack.i.l.bf16 %v16298_v1  ;;  %v8503_v43 = vunpack.i.l.bf16 %v16300_v52  ;;  %v16305_v28 = vld [vmem:[#allocation51_spill] sm:$0xff]  ;;  %v16325_v26 = vld [vmem:[#allocation69_spill] sm:$0xff] }
 0x1ac   : > { %16285 = vst [vmem:[#allocation191_spill] sm:$0xff] %v11928_v47  ;;  %8956 = vrot.lane.b32.xlu1 %v16288_v55, %s10451_s12  ;;  %v11963_v55 = vsel %vm2055_vm2, %v10935_v31, %v8489_v29  ;;  %v11978_v29 = vsel %vm2055_vm2, %v16296_v25, %v8484_v34  ;;  %8130 = vmatprep.subr.bf16.mxu0 %v15929_v22  ;;  %v16301_v34 = vld [vmem:[#allocation33_spill] sm:$0xff]  ;;  %v16307_v47 = vld [vmem:[#allocation175_spill] sm:$0xff]  ;;  %v16316_v25 = vld [vmem:[#allocation176_spill] sm:$0xff] }
 0x1ad   : > { %8951 = vrot.lane.b32.xlu0 %v16290_v23, %s10450_s22  ;;  %v16295_v23 = vld [vmem:[#allocation45_spill] sm:$0xff]  ;;  %8295 = vmatprep.subr.bf16.mxu1 %v15929_v22  ;;  %v8519_v45 = vunpack.i.h.bf16 %v16307_v47  ;;  %v12013_v22 = vsel %vm2055_vm2, %v16309_v16, %v8494_v57  ;;  %v8518_v57 = vunpack.i.l.bf16 %v16307_v47  ;;  %v8514_v60 = vunpack.i.h.bf16 %v16316_v25  ;;  %v16324_v47 = vld [vmem:[#allocation128_spill] sm:$0xff]  ;;  %v16376_v16 = vld [vmem:[#allocation98_spill] sm:$0xff] }
 0x1ae   : > { %v11967_v38 = vpop.permute.xlu1 %8676  ;;  %v11974_v49 = vsel %vm2055_vm2, %v16295_v23, %v8488_v63  ;;  %v8504_v63 = vunpack.i.h.bf16 %v16300_v52  ;;  %v16308_v52 = vpack.i.bf16 %v10804_v13, %v10802_v12  ;;  %v10151_v13 = vld [vmem:[#allocation5 + $0x8] sm:$0xff]  }
 0x1af   : > { %16293 = vst [vmem:[#allocation116_spill] sm:$0xff] %v11967_v38  ;;  %v8509_v38 = vunpack.i.h.bf16 %v16298_v1  ;;  %v11985_v53 = vpop.permute.xlu0 %8671  ;;  %v12002_v1 = vsel %vm2055_vm2, %v16305_v28, %v8498_v61  ;;  %8131 = vmatpush3.bf16.msra.mxu0 %v10151_v13  ;;  %8298 = vmatpush3.bf16.msra.mxu1 %v10151_v13  ;;  %v16337_v23 = vld [vmem:[#allocation64_spill] sm:$0xff]  ;;  %v16394_v28 = vld [vmem:[#allocation42_spill] sm:$0xff] }
 0x1b0   : > { %16299 = vst [vmem:[#allocation20_spill] sm:$0xff] %v11985_v53  ;;  %8966 = vrot.lane.b32.xlu1 %v16301_v34, %s10453_s16  ;;  %v11998_v53 = vsel %vm2055_vm2, %v16304_v27, %v8499_v58  ;;  %16306 = vst [vmem:[#allocation173_spill] sm:$0xff] %v12002_v1  ;;  %v16310_v58 = vld [vmem:[#allocation59_spill] sm:$0xff]  ;;  %v12040_v12 = vsel %vm2055_vm2, %v16320_v59, %v8504_v63  ;;  %v8588_v27 = vunpack.i.l.bf16 %v16394_v28 }
 0x1b1   : > { %8961 = vrot.lane.b32.xlu0 %v16308_v52, %s10454_s21  ;;  %v12017_v15 = vsel %vm2055_vm2, %v16310_v58, %v8493_v37  ;;  %v16314_v52 = vld [vmem:[#allocation63_spill] sm:$0xff]  ;;  %v8513_v37 = vunpack.i.l.bf16 %v16316_v25  ;;  %16321 = vst [vmem:[#allocation176_spill] sm:$0xff] %v12040_v12  ;;  %v12050_v25 = vsel %vm2055_vm2, %v16325_v26, %v8519_v45  ;;  %v8524_v45 = vunpack.i.h.bf16 %v16331_v17  ;;  %v16335_v12 = vld [vmem:[#allocation74_spill] sm:$0xff] }
 0x1b2   : > { %v12019_v61 = vpop.permute.xlu1 %8686  ;;  %v12027_v34 = vsel %vm2055_vm2, %v16314_v52, %v8509_v38  ;;  %v12044_v38 = vsel %vm2055_vm2, %v16322_v5, %v8503_v43  ;;  %16326 = vst [vmem:[#allocation128_spill] sm:$0xff] %v12050_v25  ;;  %v8523_v26 = vunpack.i.l.bf16 %v16331_v17  ;;  %v12071_v43 = vsel %vm2055_vm2, %v16335_v12, %v8514_v60  ;;  %v16340_v17 = vld [vmem:[#allocation182_spill] sm:$0xff]  ;;  %v16350_v60 = vld [vmem:[#allocation84_spill] sm:$0xff] }
 0x1b3   : > { %16311 = vst [vmem:[#allocation174_spill] sm:$0xff] %v12019_v61  ;;  %16315 = vst [vmem:[#allocation33_spill] sm:$0xff] %v12027_v34  ;;  %v12032_v4 = vpop.permute.xlu0 %8681  ;;  %v16318_v61 = vld [vmem:[#allocation62_spill] sm:$0xff]  ;;  %v12075_v58 = vsel %vm2055_vm2, %v16337_v23, %v8513_v37  ;;  %v8539_v63 = vunpack.i.h.bf16 %v16340_v17  ;;  %v8538_v13 = vunpack.i.l.bf16 %v16340_v17  ;;  %v16344_v37 = vld [vmem:[#allocation77_spill] sm:$0xff]  ;;  %v12102_v30 = vsel %vm2055_vm2, %v16350_v60, %v8524_v45 }
 0x1b4   : > { %16317 = vst [vmem:[#allocation175_spill] sm:$0xff] %v12032_v4  ;;  %v12036_v24 = vsel %vm2055_vm2, %v16318_v61, %v8508_v20  ;;  %16323 = vst [vmem:[#allocation66_spill] sm:$0xff] %v12044_v38  ;;  %8976 = vrot.lane.b32.xlu1 %v16324_v47, %s10451_s12  ;;  %v16327_v4 = vld [vmem:[#allocation178_spill] sm:$0xff]  ;;  %v16330_v38 = vmov 0.0   ;;  %v16347_v17 = vld [vmem:[#allocation21_spill] sm:$0xff] }
 0x1b5   : > { %16319 = vst [vmem:[#allocation63_spill] sm:$0xff] %v12036_v24  ;;  %v8529_v34 = vunpack.i.h.bf16 %v16327_v4  ;;  %8971 = vrot.lane.b32.xlu0 %v16324_v47, %s10455_s19  ;;  %8132 = vmatprep.subr.bf16.mxu0 %v16330_v38  ;;  %v10152_v24 = vld [vmem:[#allocation5 + $0x10] ss:$0 sps:$4 sm:$0x33]   ;;  %v8528_v6 = vunpack.i.l.bf16 %v16327_v4  ;;  %v16333_v47 = vld [vmem:[#allocation67_spill] sm:$0xff]  ;;  %16338 = vst [vmem:[#allocation74_spill] sm:$0xff] %v12075_v58 }
 0x1b6   : > { %v12063_v25 = vpop.permute.xlu1 %8696  ;;  %v12067_v1 = vsel %vm2055_vm2, %v16333_v47, %v8518_v57  ;;  %16336 = vst [vmem:[#allocation67_spill] sm:$0xff] %v12071_v43  ;;  %v4130_v20 = vsel %vm4128_vm3, %v10152_v24, 0  ;;  %8296 = vmatprep.subr.bf16.mxu1 %v16330_v38  ;;  %v16341_v57 = vld [vmem:[#allocation31_spill] sm:$0xff]  ;;  %v16348_v43 = vld [vmem:[#allocation76_spill] sm:$0xff]  ;;  %8134 = vmatprep.mubr.msk.bf16.mxu0 %vm10456_vm5, %v16330_v38  ;;  %v16381_v12 = vld [vmem:[#allocation30_spill] sm:$0xff]  ;;  %vm7145_vm3 = vcmask 392192  }
 0x1b7   : > { %16332 = vst [vmem:[#allocation178_spill] sm:$0xff] %v12063_v25  ;;  %16334 = vst [vmem:[#allocation179_spill] sm:$0xff] %v12067_v1  ;;  %v12077_v4 = vpop.permute.xlu0 %8691  ;;  %8133 = vmatpush3.bf16.msra.mxu0 %v4130_v20  ;;  %v12090_v23 = vsel %vm2055_vm2, %v16344_v37, %v8529_v34  ;;  %v16346_v24 = vld [vmem:[#allocation183_spill] sm:$0xff]  ;;  %v16352_v25 = vld [vmem:[#allocation82_spill] sm:$0xff]  ;;  %8299 = vmatpush3.bf16.msra.mxu1 %v4130_v20 }
 0x1b8   : > { %16339 = vst [vmem:[#allocation192_spill] sm:$0xff] %v12077_v4  ;;  %8986 = vrot.lane.b32.xlu1 %v16341_v57, %s10453_s16  ;;  %16345 = vst [vmem:[#allocation182_spill] sm:$0xff] %v12090_v23  ;;  %v8534_v4 = vunpack.i.h.bf16 %v16346_v24  ;;  %v8533_v1 = vunpack.i.l.bf16 %v16346_v24  ;;  %v12098_v57 = vsel %vm2055_vm2, %v16348_v43, %v8528_v6  ;;  %v12106_v47 = vsel %vm2055_vm2, %v16352_v25, %v8523_v26  ;;  %v16355_v24 = vld [vmem:[#allocation184_spill] sm:$0xff]  ;;  %v16356_v43 = vld [vmem:[#allocation185_spill] sm:$0xff] }
 0x1b9   : > { %8981 = vrot.lane.b32.xlu0 %v16347_v17, %s10454_s21  ;;  %16349 = vst [vmem:[#allocation31_spill] sm:$0xff] %v12098_v57  ;;  %16351 = vst [vmem:[#allocation183_spill] sm:$0xff] %v12102_v30  ;;  %v8549_v17 = vunpack.i.h.bf16 %v16355_v24  ;;  %v8548_v6 = vunpack.i.l.bf16 %v16355_v24  ;;  %v8544_v37 = vunpack.i.h.bf16 %v16356_v43  ;;  %v8543_v45 = vunpack.i.l.bf16 %v16356_v43  ;;  %8210 = vmatprep.mubr.msk.bf16.mxu1 %vm10456_vm5, %v16330_v38  ;;  %v16358_v26 = vld [vmem:[#allocation86_spill] sm:$0xff]  ;;  %v16360_v25 = vld [vmem:[#allocation85_spill] sm:$0xff] }
 0x1ba   : > { %16353 = vst [vmem:[#allocation21_spill] sm:$0xff] %v12106_v47  ;;  %v12108_v34 = vpop.permute.xlu1 %8706  ;;  %v12126_v20 = vsel %vm2055_vm2, %v16360_v25, %v8538_v13  ;;  %v16362_v30 = vld [vmem:[#allocation124_spill] sm:$0xff]  ;;  %v16363_v24 = vld [vmem:[#allocation110_spill] sm:$0xff]  ;;  %v16367_v38 = vld [vmem:[#allocation93_spill] sm:$0xff] }
 0x1bb   : > { %16354 = vst [vmem:[#allocation193_spill] sm:$0xff] %v12108_v34  ;;  %v12116_v60 = vpop.permute.xlu0 %8701  ;;  %v12122_v34 = vsel %vm2055_vm2, %v16358_v26, %v8539_v63  ;;  %16361 = vst [vmem:[#allocation194_spill] sm:$0xff] %v12126_v20  ;;  %v16364_v47 = vpack.i.bf16 %v16362_v30, %v16363_v24  ;;  %v12138_v58 = vsel %vm2055_vm2, %v16367_v38, %v8534_v4  ;;  %v16368_v63 = vld [vmem:[#allocation78_spill] sm:$0xff]  ;;  %v16369_v13 = vld [vmem:[#allocation27_spill] sm:$0xff]  ;;  %v8568_v4 = vunpack.i.l.bf16 %v16381_v12 }
 0x1bc   : > { %16357 = vst [vmem:[#allocation184_spill] sm:$0xff] %v12116_v60  ;;  %16359 = vst [vmem:[#allocation185_spill] sm:$0xff] %v12122_v34  ;;  %v12142_v26 = vsel %vm2055_vm2, %v16368_v63, %v8533_v1  ;;  %v8559_v25 = vunpack.i.h.bf16 %v16369_v13  ;;  %v8558_v20 = vunpack.i.l.bf16 %v16369_v13  ;;  %v16372_v23 = vld [vmem:[#allocation28_spill] sm:$0xff]  ;;  %v16375_v1 = vld [vmem:[#allocation141_spill] sm:$0xff]  ;;  %v12160_v13 = vsel %vm2055_vm2, %v16376_v16, %v8549_v17 }
 0x1bd   : > { %8996 = vrot.lane.b32.xlu1 %v16364_v47, %s10451_s12  ;;  %v16370_v47 = vld [vmem:[#allocation131_spill] sm:$0xff]  ;;  %v8554_v57 = vunpack.i.h.bf16 %v16372_v23  ;;  %v8553_v60 = vunpack.i.l.bf16 %v16372_v23  ;;  %v16379_v23 = vld [vmem:[#allocation89_spill] sm:$0xff]  ;;  %v8569_v63 = vunpack.i.h.bf16 %v16381_v12  ;;  %v16382_v17 = vld [vmem:[#allocation26_spill] sm:$0xff]  ;;  %v16387_v12 = vpack.i.bf16 %v10862_v46, %v10815_v21 }
 0x1be   : > { %v16371_v24 = vpack.i.bf16 %v16370_v47, %v16362_v30  ;;  %v12152_v31 = vpop.permute.xlu1 %8716  ;;  %v16377_v43 = vld [vmem:[#allocation95_spill] sm:$0xff]  ;;  %v8564_v16 = vunpack.i.h.bf16 %v16382_v17 }
 0x1bf   : > { %16373 = vst [vmem:[#allocation124_spill] sm:$0xff] %v12152_v31  ;;  %v12164_v30 = vsel %vm2055_vm2, %v16377_v43, %v8548_v6  ;;  %v12172_v31 = vsel %vm2055_vm2, %v16379_v23, %v8543_v45  ;;  %v12174_v38 = vpop.permute.xlu0 %8711  ;;  %v16383_v6 = vpack.i.bf16 %v16204_v2, %v16198_v10  ;;  %v16384_v43 = vld [vmem:[#allocation106_spill] sm:$0xff]  ;;  %v8563_v23 = vunpack.i.l.bf16 %v16382_v17  ;;  %v16388_v10 = vld [vmem:[#allocation109_spill] sm:$0xff] }
 0x1c0   : > { %8991 = vrot.lane.b32.xlu0 %v16371_v24, %s10455_s19  ;;  %v16378_v24 = vld [vmem:[#allocation99_spill] sm:$0xff]  ;;  %16380 = vst [vmem:[#allocation110_spill] sm:$0xff] %v12174_v38  ;;  %v12200_v2 = vsel %vm2055_vm2, %v16388_v10, %v8554_v57  ;;  %v12218_v10 = vsel %vm2110_vm4, %v11831_v50, %v8568_v4  ;;  %v8589_v4 = vunpack.i.h.bf16 %v16394_v28  ;;  %v16402_v28 = vld [vmem:[#allocation80_spill] sm:$0xff] }
 0x1c1   : > { %v12168_v34 = vsel %vm2055_vm2, %v16378_v24, %v8544_v37  ;;  %9006 = vrot.lane.b32.xlu1 %v16383_v6, %s10453_s16  ;;  %v12185_v37 = vsel %vm2055_vm2, %v16384_v43, %v8559_v25  ;;  %v16385_v24 = vld [vmem:[#allocation104_spill] sm:$0xff]  ;;  %v16396_v57 = vld [vmem:[#allocation107_spill] sm:$0xff]  ;;  %v8614_v5 = vunpack.i.h.bf16 %v16402_v28 }
 0x1c2   : > { %v12189_v45 = vsel %vm2055_vm2, %v16385_v24, %v8558_v20  ;;  %v16389_v25 = vld [vmem:[#allocation108_spill] sm:$0xff]  ;;  %v16390_v20 = vld [vmem:[#allocation29_spill] sm:$0xff]  ;;  %v12208_v24 = vpop.permute.xlu1 %8726  ;;  %v12235_v50 = vsel %vm2055_vm2, %v16396_v57, %v8563_v23 }
 0x1c3   : > { %16386 = vst [vmem:[#allocation27_spill] sm:$0xff] %v12189_v45  ;;  %v12204_v6 = vsel %vm2055_vm2, %v16389_v25, %v8553_v60  ;;  %v8579_v43 = vunpack.i.h.bf16 %v16390_v20  ;;  %v8578_v17 = vunpack.i.l.bf16 %v16390_v20  ;;  %v16391_v45 = vld [vmem:[#allocation34_spill] sm:$0xff]  ;;  %v12222_v60 = vsel %vm2110_vm4, %v11827_v18, %v8569_v63  ;;  %v16397_v18 = vld [vmem:[#allocation37_spill] sm:$0xff] }
 0x1c4   : > { %9001 = vrot.lane.b32.xlu0 %v16387_v12, %s10454_s21  ;;  %v8574_v21 = vunpack.i.h.bf16 %v16391_v45  ;;  %v8573_v46 = vunpack.i.l.bf16 %v16391_v45  ;;  %v12212_v12 = vpop.permute.xlu0 %8721  ;;  %v16393_v20 = vld [vmem:[#allocation114_spill] sm:$0xff]  ;;  %v16395_v45 = vpack.i.bf16 %v11255_v3, %v16370_v47  ;;  %v8584_v63 = vunpack.i.h.bf16 %v16397_v18 }
 0x1c5   : > { %v12226_v25 = vsel %vm2055_vm2, %v16393_v20, %v8564_v16  ;;  %v8583_v38 = vunpack.i.l.bf16 %v16397_v18  ;;  %v16398_v16 = vpack.i.bf16 %v16263_v36, %v11255_v3  ;;  %v12246_v20 = vsel %vm2110_vm4, %v11819_v14, %v8579_v43  ;;  %v16400_v43 = vld [vmem:[#allocation144_spill] sm:$0xff] }
 0x1c6   : > { %9016 = vrot.lane.b32.xlu1 %v16395_v45, %s10451_s12  ;;  %v12250_v47 = vsel %vm2110_vm4, %v11823_v48, %v8578_v17  ;;  %v12252_v23 = vpop.permute.xlu1 %8736  ;;  %v12258_v45 = vsel %vm2110_vm4, %v11860_v9, %v8573_v46  ;;  %v12262_v3 = vsel %vm2110_vm4, %v11856_v19, %v8574_v21  ;;  %v12270_v48 = vsel %vm2110_vm4, %v11887_v56, %v8588_v27  ;;  %v16401_v17 = vld [vmem:[#allocation65_spill] sm:$0xff]  ;;  %v16404_v27 = vld [vmem:[#allocation36_spill] sm:$0xff] }
 0x1c7   : > { %v8609_v57 = vunpack.i.h.bf16 %v16401_v17  ;;  %v8613_v9 = vunpack.i.l.bf16 %v16402_v28  ;;  %v16403_v19 = vpack.i.bf16 %v16203_v0, %v16212_v32  ;;  %v12281_v21 = vsel %vm2110_vm4, %v11883_v7, %v8589_v4  ;;  %v16406_v32 = vld [vmem:[#allocation43_spill] sm:$0xff] }
 0x1c8   : > { %9011 = vrot.lane.b32.xlu0 %v16398_v16, %s10455_s19  ;;  %v12264_v18 = vpop.permute.xlu0 %8731  ;;  %v12285_v46 = vsel %vm2110_vm4, %v11843_v33, %v8584_v63  ;;  %v12289_v56 = vsel %vm2110_vm4, %v11847_v11, %v8583_v38  ;;  %v16405_v28 = vpack.i.bf16 %v10846_v39, %v10878_v54  ;;  %v16407_v63 = vld [vmem:[#allocation91_spill] sm:$0xff]  ;;  %v2130_v54 = vsel %vm2110_vm4, %v11934_v51, %v8614_v5 }
 0x1c9   : > { %v8623_v11 = vunpack.i.l.bf16 %v16407_v63  ;;  %v2128_v39 = vsel %vm2110_vm4, %v11942_v40, %v8609_v57  ;;  %v16408_v33 = vpack.i.bf16 %v16264_v62, %v16263_v36  ;;  %v16413_v5 = vld [vmem:[#allocation79_spill] sm:$0xff]  ;;  %vm7112_vm2 = vcmask 326656  }
 0x1ca   : > { %9026 = vrot.lane.b32.xlu1 %v16403_v19, %s10453_s16  ;;  %v8747_v4 = vpop.permute.xlu1 %8746  ;;  %v8624_v19 = vunpack.i.h.bf16 %v16407_v63  ;;  %v16409_v63 = vld [vmem:[#allocation61_spill] sm:$0xff]  ;;  %v8629_v36 = vunpack.i.h.bf16 %v16413_v5  ;;  %v8628_v57 = vunpack.i.l.bf16 %v16413_v5  ;;  %v16415_v5 = vld [vmem:[#allocation35_spill] sm:$0xff] }
 0x1cb   : > { %v8749_v38 = vunpack.i.h.bf16 %v8747_v4  ;;  %v8748_v14 = vunpack.i.l.bf16 %v8747_v4  ;;  %v8619_v4 = vunpack.i.h.bf16 %v16409_v63  ;;  %v8618_v0 = vunpack.i.l.bf16 %v16409_v63  ;;  %v16414_v63 = vld [vmem:[#allocation113_spill] sm:$0xff] }
 0x1cc   : > { %9021 = vrot.lane.b32.xlu0 %v16405_v28, %s10454_s21  ;;  %v12302_v16 = vpop.permute.xlu0 %8741  ;;  %v2129_v28 = vsel %vm2110_vm4, %v11938_v41, %v8613_v9  ;;  %v16412_v41 = vpack.i.bf16 %v16264_v62, %v16265_v35  ;;  %v8633_v51 = vunpack.i.l.bf16 %v16414_v63 }
 0x1cd   : > { %v8744_v7 = vunpack.i.h.bf16 %v12302_v16  ;;  %v12318_v61 = vsel %vm2165_vm6, %v2129_v28, %v8748_v14  ;;  %v12321_v40 = vsel %vm2165_vm6, %v2130_v54, %v8749_v38  ;;  %v2134_v14 = vsel %vm2110_vm4, %v11963_v55, %v8624_v19 }
 0x1ce   : > { %9036 = vrot.lane.b32.xlu1 %v16408_v33, %s10451_s12  ;;  %16410 = vst [vmem:[#allocation131_spill] sm:$0xff] %v12318_v61  ;;  %16411 = vst [vmem:[#allocation28_spill] sm:$0xff] %v12321_v40  ;;  %v8757_v33 = vpop.permute.xlu1 %8756  ;;  %v2133_v38 = vsel %vm2110_vm4, %v11974_v49, %v8623_v11  ;;  %v2131_v55 = vsel %vm2110_vm4, %v11982_v8, %v8618_v0  ;;  %v2132_v49 = vsel %vm2110_vm4, %v11978_v29, %v8619_v4 }
 0x1cf   : > { %v12331_v9 = vsel %vm2165_vm6, %v2128_v39, %v8744_v7  ;;  %v8759_v54 = vunpack.i.h.bf16 %v8757_v33  ;;  %v8758_v28 = vunpack.i.l.bf16 %v8757_v33  ;;  %v16416_v7 = vld [vmem:[#allocation40_spill] sm:$0xff]  ;;  %v16420_v33 = vpack.i.bf16 %v10851_v42, %v10858_v44 }
 0x1d0   : > { %9031 = vrot.lane.b32.xlu0 %v16412_v41, %s10455_s19  ;;  %v8752_v62 = vpop.permute.xlu0 %8751  ;;  %v8634_v41 = vunpack.i.h.bf16 %v16414_v63  ;;  %v16417_v39 = vpack.i.bf16 %v16415_v5, %v16416_v7  ;;  %v2136_v8 = vsel %vm2110_vm4, %v12013_v22, %v8629_v36  ;;  %v16423_v63 = vld [vmem:[#allocation133_spill] sm:$0xff]  ;;  %v16425_v5 = vld [vmem:[#allocation83_spill] sm:$0xff] }
 0x1d1   : > { %v8754_v40 = vunpack.i.h.bf16 %v8752_v62  ;;  %v8753_v61 = vunpack.i.l.bf16 %v8752_v62  ;;  %v12348_v19 = vsel %vm2165_vm6, %v2133_v38, %v8758_v28  ;;  %v12351_v11 = vsel %vm2165_vm6, %v2134_v14, %v8759_v54  ;;  %v16421_v14 = vld [vmem:[#allocation126_spill] sm:$0xff] }
 0x1d2   : > { %9046 = vrot.lane.b32.xlu1 %v16417_v39, %s10453_s16  ;;  %16418 = vst [vmem:[#allocation141_spill] sm:$0xff] %v12348_v19  ;;  %16419 = vst [vmem:[#allocation30_spill] sm:$0xff] %v12351_v11  ;;  %v2135_v62 = vsel %vm2110_vm4, %v12017_v15, %v8628_v57  ;;  %v8767_v4 = vpop.permute.xlu1 %8766  ;;  %v8644_v38 = vunpack.i.h.bf16 %v16421_v14  ;;  %v8643_v54 = vunpack.i.l.bf16 %v16421_v14  ;;  %v2138_v15 = vsel %vm2110_vm4, %v11998_v53, %v8634_v41  ;;  %v16422_v57 = vld [vmem:[#allocation173_spill] sm:$0xff]  ;;  %v16444_v19 = vld [vmem:[#allocation74_spill] sm:$0xff] }
 0x1d3   : > { %v12362_v0 = vsel %vm2165_vm6, %v2131_v55, %v8753_v61  ;;  %v12365_v29 = vsel %vm2165_vm6, %v2132_v49, %v8754_v40  ;;  %v8769_v28 = vunpack.i.h.bf16 %v8767_v4  ;;  %v8768_v42 = vunpack.i.l.bf16 %v8767_v4  ;;  %v16428_v53 = vld [vmem:[#allocation125_spill] sm:$0xff] }
 0x1d4   : > { %9041 = vrot.lane.b32.xlu0 %v16420_v33, %s10454_s21  ;;  %v8762_v44 = vpop.permute.xlu0 %8761  ;;  %v2137_v22 = vsel %vm2110_vm4, %v16422_v57, %v8633_v51  ;;  %v16424_v40 = vpack.i.bf16 %v16423_v63, %v16265_v35  ;;  %v8639_v7 = vunpack.i.h.bf16 %v16425_v5  ;;  %v8638_v39 = vunpack.i.l.bf16 %v16425_v5  ;;  %v16430_v41 = vld [vmem:[#allocation129_spill] sm:$0xff] }
 0x1d5   : > { %v8764_v36 = vunpack.i.h.bf16 %v8762_v44  ;;  %v8763_v61 = vunpack.i.l.bf16 %v8762_v44  ;;  %v12380_v55 = vsel %vm2165_vm6, %v2137_v22, %v8768_v42  ;;  %v12383_v49 = vsel %vm2165_vm6, %v2138_v15, %v8769_v28  ;;  %v16431_v44 = vld [vmem:[#allocation33_spill] sm:$0xff]  ;;  %v16432_v15 = vld [vmem:[#allocation63_spill] sm:$0xff] }
 0x1d6   : > { %9056 = vrot.lane.b32.xlu1 %v16424_v40, %s10451_s12  ;;  %16426 = vst [vmem:[#allocation26_spill] sm:$0xff] %v12380_v55  ;;  %16427 = vst [vmem:[#allocation29_spill] sm:$0xff] %v12383_v49  ;;  %v16429_v51 = vpack.i.bf16 %v16428_v53, %v16423_v63  ;;  %v8649_v33 = vunpack.i.h.bf16 %v16430_v41  ;;  %v8648_v35 = vunpack.i.l.bf16 %v16430_v41  ;;  %v8777_v42 = vpop.permute.xlu1 %8776  ;;  %v2142_v28 = vsel %vm2110_vm4, %v16431_v44, %v8644_v38  ;;  %v16433_v5 = vld [vmem:[#allocation25_spill] sm:$0xff]  ;;  %v16437_v55 = vld [vmem:[#allocation66_spill] sm:$0xff] }
 0x1d7   : > { %v12392_v4 = vsel %vm2165_vm6, %v2135_v62, %v8763_v61  ;;  %v12395_v14 = vsel %vm2165_vm6, %v2136_v8, %v8764_v36  ;;  %v2141_v57 = vsel %vm2110_vm4, %v16432_v15, %v8643_v54  ;;  %v8779_v22 = vunpack.i.h.bf16 %v8777_v42  ;;  %v16434_v61 = vld [vmem:[#allocation46_spill] sm:$0xff]  ;;  %v16435_v8 = vld [vmem:[#allocation56_spill] sm:$0xff] }
 0x1d8   : > { %9051 = vrot.lane.b32.xlu0 %v16429_v51, %s10455_s19  ;;  %v8778_v63 = vunpack.i.l.bf16 %v8777_v42  ;;  %v8772_v40 = vpop.permute.xlu0 %8771  ;;  %v8654_v51 = vunpack.i.h.bf16 %v16433_v5  ;;  %v8653_v41 = vunpack.i.l.bf16 %v16433_v5  ;;  %v16436_v36 = vpack.i.bf16 %v16434_v61, %v16435_v8  ;;  %v16438_v44 = vld [vmem:[#allocation176_spill] sm:$0xff]  ;;  %v16441_v5 = vld [vmem:[#allocation38_spill] sm:$0xff]  ;;  %v16445_v8 = vld [vmem:[#allocation67_spill] sm:$0xff] }
 0x1d9   : > { %v8774_v49 = vunpack.i.h.bf16 %v8772_v40  ;;  %v8773_v62 = vunpack.i.l.bf16 %v8772_v40  ;;  %v2139_v38 = vsel %vm2110_vm4, %v16437_v55, %v8638_v39  ;;  %v2140_v54 = vsel %vm2110_vm4, %v16438_v44, %v8639_v7  ;;  %v16442_v40 = vld [vmem:[#allocation32_spill] sm:$0xff] }
 0x1da   : > { %9066 = vrot.lane.b32.xlu1 %v16436_v36, %s10453_s16  ;;  %v12412_v42 = vsel %vm2165_vm6, %v2141_v57, %v8778_v63  ;;  %v12415_v15 = vsel %vm2165_vm6, %v2142_v28, %v8779_v22  ;;  %v16443_v11 = vpack.i.bf16 %v16441_v5, %v16442_v40  ;;  %v2143_v61 = vsel %vm2110_vm4, %v16444_v19, %v8648_v35  ;;  %v8787_v57 = vpop.permute.xlu1 %8786  ;;  %v16448_v28 = vld [vmem:[#allocation191_spill] sm:$0xff]  ;;  %v16449_v5 = vld [vmem:[#allocation128_spill] sm:$0xff] }
 0x1db   : > { %16439 = vst [vmem:[#allocation34_spill] sm:$0xff] %v12412_v42  ;;  %16440 = vst [vmem:[#allocation42_spill] sm:$0xff] %v12415_v15  ;;  %v2144_v39 = vsel %vm2110_vm4, %v16445_v8, %v8649_v33  ;;  %v12426_v55 = vsel %vm2165_vm6, %v2139_v38, %v8773_v62  ;;  %v12429_v7 = vsel %vm2165_vm6, %v2140_v54, %v8774_v49  ;;  %v8664_v22 = vunpack.i.h.bf16 %v16448_v28  ;;  %v16450_v35 = vld [vmem:[#allocation179_spill] sm:$0xff]  ;;  %v16451_v38 = vld [vmem:[#allocation132_spill] sm:$0xff] }
 0x1dc   : > { %9061 = vrot.lane.b32.xlu0 %v16443_v11, %s10454_s21  ;;  %16446 = vst [vmem:[#allocation37_spill] sm:$0xff] %v12426_v55  ;;  %16447 = vst [vmem:[#allocation144_spill] sm:$0xff] %v12429_v7  ;;  %v8663_v63 = vunpack.i.l.bf16 %v16448_v28  ;;  %v8789_v36 = vunpack.i.h.bf16 %v8787_v57  ;;  %v8788_v44 = vunpack.i.l.bf16 %v8787_v57  ;;  %v8782_v11 = vpop.permute.xlu0 %8781  ;;  %v2146_v19 = vsel %vm2110_vm4, %v16449_v5, %v8654_v51  ;;  %v16453_v54 = vld [vmem:[#allocation130_spill] sm:$0xff] }
 0x1dd   : > { %v2145_v33 = vsel %vm2110_vm4, %v16450_v35, %v8653_v41  ;;  %v8784_v40 = vunpack.i.h.bf16 %v8782_v11  ;;  %v8783_v62 = vunpack.i.l.bf16 %v8782_v11  ;;  %v16452_v49 = vpack.i.bf16 %v16451_v38, %v16428_v53  ;;  %v16456_v51 = vld [vmem:[#allocation138_spill] sm:$0xff] }
 0x1de   : > { %v8659_v8 = vunpack.i.h.bf16 %v16453_v54  ;;  %v8658_v28 = vunpack.i.l.bf16 %v16453_v54  ;;  %v12444_v57 = vsel %vm2165_vm6, %v2145_v33, %v8788_v44  ;;  %v12447_v15 = vsel %vm2165_vm6, %v2146_v19, %v8789_v36  ;;  %v16458_v11 = vld [vmem:[#allocation190_spill] sm:$0xff]  ;;  %v8797_v44 = vpop.permute.xlu1 %8796  ;;  %v16462_v19 = vld [vmem:[#allocation31_spill] sm:$0xff] }
 0x1df   : > { %9076 = vrot.lane.b32.xlu1 %v16452_v49, %s10451_s12  ;;  %16454 = vst [vmem:[#allocation65_spill] sm:$0xff] %v12444_v57  ;;  %16455 = vst [vmem:[#allocation80_spill] sm:$0xff] %v12447_v15  ;;  %v16457_v41 = vpack.i.bf16 %v16456_v51, %v16451_v38  ;;  %v8669_v5 = vunpack.i.h.bf16 %v16458_v11  ;;  %v8668_v53 = vunpack.i.l.bf16 %v16458_v11  ;;  %v12456_v35 = vsel %vm2165_vm6, %v2143_v61, %v8783_v62  ;;  %v16461_v33 = vld [vmem:[#allocation182_spill] sm:$0xff]  ;;  %v16463_v57 = vld [vmem:[#allocation20_spill] sm:$0xff] }
 0x1e0   : > { %16459 = vst [vmem:[#allocation36_spill] sm:$0xff] %v12456_v35  ;;  %v12459_v49 = vsel %vm2165_vm6, %v2144_v39, %v8784_v40  ;;  %v2150_v36 = vsel %vm2110_vm4, %v16461_v33, %v8664_v22  ;;  %v2149_v54 = vsel %vm2110_vm4, %v16462_v19, %v8663_v63  ;;  %v8799_v15 = vunpack.i.h.bf16 %v8797_v44  ;;  %v16464_v62 = vld [vmem:[#allocation52_spill] sm:$0xff]  ;;  %v16465_v39 = vld [vmem:[#allocation49_spill] sm:$0xff]  ;;  %v16468_v33 = vld [vmem:[#allocation183_spill] sm:$0xff] }
 0x1e1   : > { %9071 = vrot.lane.b32.xlu0 %v16457_v41, %s10455_s19  ;;  %16460 = vst [vmem:[#allocation43_spill] sm:$0xff] %v12459_v49  ;;  %v8798_v38 = vunpack.i.l.bf16 %v8797_v44  ;;  %v8792_v41 = vpop.permute.xlu0 %8791  ;;  %v8674_v42 = vunpack.i.h.bf16 %v16463_v57  ;;  %v8673_v11 = vunpack.i.l.bf16 %v16463_v57  ;;  %v16466_v40 = vpack.i.bf16 %v16464_v62, %v16465_v39  ;;  %v16467_v49 = vld [vmem:[#allocation21_spill] sm:$0xff]  ;;  %v16471_v57 = vld [vmem:[#allocation39_spill] sm:$0xff] }
 0x1e2   : > { %v8794_v7 = vunpack.i.h.bf16 %v8792_v41  ;;  %v8793_v61 = vunpack.i.l.bf16 %v8792_v41  ;;  %v2147_v22 = vsel %vm2110_vm4, %v16467_v49, %v8658_v28  ;;  %v2148_v63 = vsel %vm2110_vm4, %v16468_v33, %v8659_v8  ;;  %v16472_v41 = vld [vmem:[#allocation44_spill] sm:$0xff]  ;;  %v16477_v33 = vld [vmem:[#allocation185_spill] sm:$0xff] }
 0x1e3   : > { %9086 = vrot.lane.b32.xlu1 %v16466_v40, %s10453_s16  ;;  %v12476_v44 = vsel %vm2165_vm6, %v2149_v54, %v8798_v38  ;;  %v12479_v19 = vsel %vm2165_vm6, %v2150_v36, %v8799_v15  ;;  %v16473_v35 = vpack.i.bf16 %v16471_v57, %v16472_v41  ;;  %v2151_v62 = vsel %vm2110_vm4, %v12142_v26, %v8668_v53  ;;  %v8807_v54 = vpop.permute.xlu1 %8806  ;;  %v16476_v15 = vld [vmem:[#allocation175_spill] sm:$0xff]  ;;  %v16478_v53 = vld [vmem:[#allocation194_spill] sm:$0xff] }
 0x1e4   : > { %16469 = vst [vmem:[#allocation91_spill] sm:$0xff] %v12476_v44  ;;  %16470 = vst [vmem:[#allocation61_spill] sm:$0xff] %v12479_v19  ;;  %v2152_v28 = vsel %vm2110_vm4, %v12138_v58, %v8669_v5  ;;  %v12490_v49 = vsel %vm2165_vm6, %v2147_v22, %v8793_v61  ;;  %v12493_v8 = vsel %vm2165_vm6, %v2148_v63, %v8794_v7  ;;  %v8684_v36 = vunpack.i.h.bf16 %v16476_v15  ;;  %v16479_v22 = vld [vmem:[#allocation127_spill] sm:$0xff]  ;;  %v16481_v63 = vld [vmem:[#allocation116_spill] sm:$0xff] }
 0x1e5   : > { %9081 = vrot.lane.b32.xlu0 %v16473_v35, %s10454_s21  ;;  %16474 = vst [vmem:[#allocation79_spill] sm:$0xff] %v12490_v49  ;;  %16475 = vst [vmem:[#allocation113_spill] sm:$0xff] %v12493_v8  ;;  %v8683_v38 = vunpack.i.l.bf16 %v16476_v15  ;;  %v8809_v39 = vunpack.i.h.bf16 %v8807_v54  ;;  %v8808_v40 = vunpack.i.l.bf16 %v8807_v54  ;;  %v8802_v35 = vpop.permute.xlu0 %8801  ;;  %v2154_v26 = vsel %vm2110_vm4, %v16477_v33, %v8674_v42  ;;  %v16484_v42 = vld [vmem:[#allocation139_spill] sm:$0xff]  ;;  %v16557_v44 = vld [vmem:[#allocation53_spill] sm:$0xff] }
 0x1e6   : > { %v2153_v58 = vsel %vm2110_vm4, %v16478_v53, %v8673_v11  ;;  %v8804_v5 = vunpack.i.h.bf16 %v8802_v35  ;;  %v8803_v61 = vunpack.i.l.bf16 %v8802_v35  ;;  %v16480_v7 = vpack.i.bf16 %v16479_v22, %v16456_v51  ;;  %v16486_v35 = vld [vmem:[#allocation174_spill] sm:$0xff]  ;;  %v16563_v8 = vld [vmem:[#allocation48_spill] sm:$0xff] }
 0x1e7   : > { %v8679_v57 = vunpack.i.h.bf16 %v16481_v63  ;;  %v8678_v41 = vunpack.i.l.bf16 %v16481_v63  ;;  %v12508_v54 = vsel %vm2165_vm6, %v2153_v58, %v8808_v40  ;;  %v12511_v15 = vsel %vm2165_vm6, %v2154_v26, %v8809_v39  ;;  %v8817_v40 = vpop.permute.xlu1 %8816 }
 0x1e8   : > { %9096 = vrot.lane.b32.xlu1 %v16480_v7, %s10451_s12  ;;  %16482 = vst [vmem:[#allocation35_spill] sm:$0xff] %v12508_v54  ;;  %16483 = vst [vmem:[#allocation40_spill] sm:$0xff] %v12511_v15  ;;  %v16485_v11 = vpack.i.bf16 %v16484_v42, %v16479_v22  ;;  %v8689_v33 = vunpack.i.h.bf16 %v16486_v35  ;;  %v8688_v51 = vunpack.i.l.bf16 %v16486_v35  ;;  %v12520_v53 = vsel %vm2165_vm6, %v2151_v62, %v8803_v61  ;;  %v16490_v61 = vld [vmem:[#allocation47_spill] sm:$0xff] }
 0x1e9   : > { %16487 = vst [vmem:[#allocation126_spill] sm:$0xff] %v12520_v53  ;;  %v12523_v7 = vsel %vm2165_vm6, %v2152_v28, %v8804_v5  ;;  %v2158_v39 = vsel %vm2110_vm4, %v12160_v13, %v8684_v36  ;;  %v2157_v26 = vsel %vm2110_vm4, %v12164_v30, %v8683_v38  ;;  %v8819_v58 = vunpack.i.h.bf16 %v8817_v40  ;;  %v8812_v63 = vpop.permute.xlu0 %8811  ;;  %v16491_v28 = vld [vmem:[#allocation58_spill] sm:$0xff] }
 0x1ea   : > { %9091 = vrot.lane.b32.xlu0 %v16485_v11, %s10455_s19  ;;  %16488 = vst [vmem:[#allocation173_spill] sm:$0xff] %v12523_v7  ;;  %v8818_v22 = vunpack.i.l.bf16 %v8817_v40  ;;  %v16489_v11 = vld [vmem:[#allocation192_spill] sm:$0xff]  ;;  %v8814_v54 = vunpack.i.h.bf16 %v8812_v63  ;;  %v8813_v62 = vunpack.i.l.bf16 %v8812_v63  ;;  %v16492_v5 = vpack.i.bf16 %v16490_v61, %v16491_v28  ;;  %v16495_v40 = vld [vmem:[#allocation41_spill] sm:$0xff]  ;;  %v16496_v63 = vld [vmem:[#allocation50_spill] sm:$0xff] }
 0x1eb   : > { %v8694_v15 = vunpack.i.h.bf16 %v16489_v11  ;;  %v8693_v35 = vunpack.i.l.bf16 %v16489_v11  ;;  %v2155_v13 = vsel %vm2110_vm4, %v12172_v31, %v8678_v41  ;;  %v2156_v30 = vsel %vm2110_vm4, %v12168_v34, %v8679_v57  ;;  %v16499_v28 = vld [vmem:[#allocation189_spill] sm:$0xff]  ;;  %v8827_v57 = vpop.permute.xlu1 %8826  ;;  %v16550_v7 = vld [vmem:[#allocation184_spill] sm:$0xff] }
 0x1ec   : > { %9106 = vrot.lane.b32.xlu1 %v16492_v5, %s10453_s16  ;;  %v12540_v36 = vsel %vm2165_vm6, %v2157_v26, %v8818_v22  ;;  %v12543_v38 = vsel %vm2165_vm6, %v2158_v39, %v8819_v58  ;;  %v16497_v11 = vpack.i.bf16 %v16495_v40, %v16496_v63  ;;  %v16498_v61 = vunpack.i.l.bf16 %v16404_v27  ;;  %v16502_v63 = vld [vmem:[#allocation27_spill] sm:$0xff] }
 0x1ed   : > { %16493 = vst [vmem:[#allocation133_spill] sm:$0xff] %v12540_v36  ;;  %16494 = vst [vmem:[#allocation83_spill] sm:$0xff] %v12543_v38  ;;  %v12556_v31 = vsel %vm2165_vm6, %v2155_v13, %v8813_v62  ;;  %v12559_v34 = vsel %vm2165_vm6, %v2156_v30, %v8814_v54  ;;  %v2159_v41 = vsel %vm2110_vm4, %v12204_v6, %v8688_v51  ;;  %v8829_v26 = vunpack.i.h.bf16 %v8827_v57  ;;  %v8822_v22 = vpop.permute.xlu0 %8821  ;;  %v16503_v54 = vld [vmem:[#allocation135_spill] sm:$0xff]  ;;  %v16505_v6 = vld [vmem:[#allocation178_spill] sm:$0xff] }
 0x1ee   : > { %9101 = vrot.lane.b32.xlu0 %v16497_v11, %s10454_s21  ;;  %v12553_v5 = vsel %vm2110_vm4, %v16499_v28, %v16498_v61  ;;  %16500 = vst [vmem:[#allocation125_spill] sm:$0xff] %v12556_v31  ;;  %16501 = vst [vmem:[#allocation129_spill] sm:$0xff] %v12559_v34  ;;  %v2160_v39 = vsel %vm2110_vm4, %v12200_v2, %v8689_v33  ;;  %v8828_v58 = vunpack.i.l.bf16 %v8827_v57  ;;  %v8824_v13 = vunpack.i.h.bf16 %v8822_v22  ;;  %v16546_v34 = vld [vmem:[#allocation193_spill] sm:$0xff] }
 0x1ef   : > { %v2162_v40 = vsel %vm2110_vm4, %v12185_v37, %v8694_v15  ;;  %v2161_v62 = vsel %vm2110_vm4, %v16502_v63, %v8693_v35  ;;  %v8823_v11 = vunpack.i.l.bf16 %v8822_v22  ;;  %v16504_v30 = vpack.i.bf16 %v16503_v54, %v16484_v42  ;;  %v16508_v37 = vld [vmem:[#allocation134_spill] sm:$0xff]  ;;  %v12591_v28 = vpop.permute.xlu1 %8836 }
 0x1f0   : > { %v8699_v51 = vunpack.i.h.bf16 %v16505_v6  ;;  %v8698_v2 = vunpack.i.l.bf16 %v16505_v6  ;;  %v12576_v33 = vsel %vm2165_vm6, %v2161_v62, %v8828_v58  ;;  %v12579_v61 = vsel %vm2165_vm6, %v2162_v40, %v8829_v26  ;;  %v16513_v26 = vld [vmem:[#allocation188_spill] sm:$0xff] }
 0x1f1   : > { %9116 = vrot.lane.b32.xlu1 %v16504_v30, %s10451_s12  ;;  %16506 = vst [vmem:[#allocation33_spill] sm:$0xff] %v12576_v33  ;;  %16507 = vst [vmem:[#allocation63_spill] sm:$0xff] %v12579_v61  ;;  %v16509_v15 = vpack.i.bf16 %v16508_v37, %v16503_v54  ;;  %v12586_v35 = vsel %vm2165_vm6, %v2159_v41, %v8823_v11  ;;  %v12589_v42 = vsel %vm2165_vm6, %v2160_v39, %v8824_v13  ;;  %v10457_v57 = vmov 1983009808   ;;  %v16514_v54 = vld [vmem:[#allocation81_spill] sm:$0xff]  ;;  %v8832_v11 = vpop.permute.xlu0 %8831  ;;  %v16516_v13 = vld [vmem:[#allocation24_spill] sm:$0xff] }
 0x1f2   : > { %16510 = vst [vmem:[#allocation25_spill] sm:$0xff] %v12586_v35  ;;  %16511 = vst [vmem:[#allocation46_spill] sm:$0xff] %v12589_v42  ;;  %v2551_v22 = vunpack.c.l.s4 %v10457_v57  ;;  %v2553_v58 = vlaneseq  ;;  %v16512_v63 = vunpack.i.h.bf16 %v16404_v27  ;;  %v8608_v62 = vunpack.i.l.bf16 %v16401_v17  ;;  %v16518_v27 = vld [vmem:[#allocation23_spill] sm:$0xff]  ;;  %v16519_v17 = vld [vmem:[#allocation70_spill] sm:$0xff] }
 0x1f3   : > { %9111 = vrot.lane.b32.xlu0 %v16509_v15, %s10455_s19  ;;  %v8604_v30 = vunpack.i.h.bf16 %v16514_v54  ;;  %v8603_v41 = vunpack.i.l.bf16 %v16514_v54  ;;  %v16515_v39 = vunpack.i.h.bf16 %v16406_v32  ;;  %v16517_v15 = vunpack.i.l.bf16 %v16406_v32  ;;  %v16520_v33 = vld [vmem:[#allocation57_spill] sm:$0xff]  ;;  %v16570_v35 = vld [vmem:[#allocation110_spill] sm:$0xff] }
 0x1f4   : > { %v12597_v40 = vsel %vm2110_vm4, %v16513_v26, %v16512_v63  ;;  %v8834_v63 = vunpack.i.h.bf16 %v8832_v11  ;;  %v8833_v26 = vunpack.i.l.bf16 %v8832_v11  ;;  %v16521_v61 = vpack.i.bf16 %v16519_v17, %v16520_v33  ;;  %v16523_v32 = vld [vmem:[#allocation45_spill] sm:$0xff] }
 0x1f5   : > { %v12606_v6 = vsel %vm2110_vm4, %v16516_v13, %v16515_v39  ;;  %v12612_v57 = vsel %vm2110_vm4, %v16518_v27, %v16517_v15  ;;  %v2163_v54 = vsel %vm2110_vm4, %v12235_v50, %v8698_v2  ;;  %v2164_v39 = vsel %vm2110_vm4, %v12226_v25, %v8699_v51  ;;  %v16522_v13 = vld [vmem:[#allocation59_spill] sm:$0xff]  ;;  %v12632_v27 = vpop.permute.xlu1 %8846  ;;  %v16529_v25 = vld [vmem:[#allocation186_spill] sm:$0xff]  ;;  %v12648_v17 = vpop.permute.xlu0 %8841 }
 0x1f6   : > { %9126 = vrot.lane.b32.xlu1 %v16521_v61, %s10453_s16  ;;  %v16524_v42 = vpack.i.bf16 %v16522_v13, %v16523_v32  ;;  %v12627_v15 = vsel %vm2165_vm6, %v2163_v54, %v8833_v26  ;;  %v12630_v11 = vsel %vm2165_vm6, %v2164_v39, %v8834_v63  ;;  %v2552_v33 = vunpack.c.0.s8 %v2551_v22  ;;  %v16528_v50 = vld [vmem:[#allocation115_spill] sm:$0xff]  ;;  %v16534_v54 = vld [vmem:[#allocation149_spill] sm:$0xff]  ;;  %v16552_v13 = vld [vmem:[#allocation154_spill] sm:$0xff] }
 0x1f7   : > { %16525 = vst [vmem:[#allocation56_spill] sm:$0xff] %v12627_v15  ;;  %16526 = vst [vmem:[#allocation66_spill] sm:$0xff] %v12630_v11  ;;  %v12634_v61 = vshrl.u32 %v2553_v58, 7  ;;  %v12638_v2 = vsel %vm2110_vm4, %v16528_v50, %v8608_v62  ;;  %v12642_v51 = vsel %vm2110_vm4, %v16529_v25, %v8604_v30  ;;  %v16531_v63 = vld [vmem:[#allocation143_spill] sm:$0xff]  ;;  %v16533_v58 = vld [vmem:[#allocation142_spill] sm:$0xff]  ;;  %v8709_v31 = vunpack.i.h.bf16 %v16546_v34 }
 0x1f8   : > { %9121 = vrot.lane.b32.xlu0 %v16524_v42, %s10454_s21  ;;  %v16530_v42 = vld [vmem:[#allocation187_spill] sm:$0xff]  ;;  %v16532_v22 = vpack.i.bf16 %v16531_v63, %v16508_v37  ;;  %v16535_v62 = vld [vmem:[#allocation156_spill] sm:$0xff]  ;;  %v8708_v50 = vunpack.i.l.bf16 %v16546_v34  ;;  %v8704_v49 = vunpack.i.h.bf16 %v16550_v7  ;;  %v16559_v15 = vld [vmem:[#allocation77_spill] sm:$0xff]  ;;  %v8729_v55 = vunpack.i.h.bf16 %v12208_v24 }
 0x1f9   : > { %16527 = vst [vmem:[#allocation176_spill] sm:$0xff] %v12634_v61  ;;  %v12646_v26 = vsel %vm2110_vm4, %v16530_v42, %v8603_v41  ;;  %v16538_v25 = vld [vmem:[#allocation140_spill] sm:$0xff]  ;;  %v12674_v19 = vpop.permute.xlu1 %8856  ;;  %v12682_v53 = vpop.permute.xlu0 %8851  ;;  %v16561_v37 = vld [vmem:[#allocation158_spill] sm:$0xff]  ;;  %v16567_v30 = vld [vmem:[#allocation101_spill] sm:$0xff]  ;;  %v8728_v34 = vunpack.i.l.bf16 %v12208_v24  ;;  %v8839_v32 = vunpack.i.h.bf16 %v12591_v28 }
 0x1fa   : > { %9136 = vrot.lane.b32.xlu1 %v16532_v22, %s10451_s12  ;;  %v16539_v41 = vpack.i.bf16 %v16538_v25, %v16531_v63  ;;  %v12677_v63 = vsub.s32 %v2552_v33, %v12634_v61  ;;  %v8703_v22 = vunpack.i.l.bf16 %v16550_v7  ;;  %v16555_v33 = vld [vmem:[#allocation124_spill] sm:$0xff]  ;;  %v16565_v7 = vld [vmem:[#allocation150_spill] sm:$0xff]  ;;  %v12713_v11 = vsel %vm2165_vm6, %v12258_v45, %v8708_v50 }
 0x1fb   : > { %v8718_v61 = vunpack.i.l.bf16 %v16555_v33  ;;  %v16560_v42 = vld [vmem:[#allocation76_spill] sm:$0xff]  ;;  %v8719_v38 = vunpack.i.h.bf16 %v16555_v33  ;;  %v12717_v33 = vsel %vm2165_vm6, %v12262_v3, %v8709_v31  ;;  %v8723_v45 = vunpack.i.l.bf16 %v12212_v12 }
 0x1fc   : > { %9131 = vrot.lane.b32.xlu0 %v16539_v41, %s10455_s19  ;;  %16547 = vst [vmem:[#allocation38_spill] sm:$0xff] %v12677_v63  ;;  %v16556_v63 = vld [vmem:[#allocation71_spill] sm:$0xff]  ;;  %v16562_v39 = vld [vmem:[#allocation60_spill] sm:$0xff]  ;;  %v2167_v3 = vsel %vm2165_vm6, %v12222_v60, %v8704_v49  ;;  %v8733_v60 = vunpack.i.l.bf16 %v12264_v18 }
 0x1fd   : > { %v16558_v41 = vpack.i.bf16 %v16556_v63, %v16557_v44  ;;  %v16564_v36 = vpack.i.bf16 %v16562_v39, %v16563_v8  ;;  %v8714_v8 = vunpack.i.h.bf16 %v16570_v35  ;;  %v12721_v39 = vpop.permute.xlu1 %8866  ;;  %v12725_v44 = vsel %vm2165_vm6, %v12218_v10, %v8703_v22  ;;  %v12730_v50 = vpop.permute.xlu0 %8861  ;;  %v16571_v22 = vld [vmem:[#allocation137_spill] sm:$0xff] }
 0x1fe   : > { %v12736_v31 = vsel %vm2165_vm6, %v12289_v56, %v8718_v61  ;;  %v8738_v10 = vunpack.i.l.bf16 %v12252_v23  ;;  %v16572_v63 = vpack.i.bf16 %v16538_v25, %v16571_v22  ;;  %v12746_v24 = vsel %vm2165_vm6, %v12285_v46, %v8719_v38  ;;  %v436_v56 = vld [vmem:[%s10766_s15 + $0xec] sm:$0x3] }
 0x1ff   : > { %9146 = vrot.lane.b32.xlu1 %v16558_v41, %s10453_s16  ;;  %v8739_v41 = vunpack.i.h.bf16 %v12252_v23  ;;  %v2171_v61 = vsel %vm2165_vm6, %v12246_v20, %v8714_v8  ;;  %v8734_v38 = vunpack.i.h.bf16 %v12264_v18  ;;  %v8743_v23 = vunpack.i.l.bf16 %v12302_v16 }
 0x200   : > { %9141 = vrot.lane.b32.xlu0 %v16564_v36, %s10454_s21  ;;  %v8713_v36 = vunpack.i.l.bf16 %v16570_v35  ;;  %v8724_v35 = vunpack.i.h.bf16 %v12212_v12  ;;  %v16573_v12 = vpack.i.bf16 %v16375_v1, %v16571_v22  ;;  %v12770_v22 = vsel %vm2165_vm6, %v12606_v6, %v8729_v55 }
 0x201   : > { %v12762_v25 = vpop.permute.xlu1 %8876  ;;  %v2174_v20 = vsel %vm2165_vm6, %v12270_v48, %v8723_v45  ;;  %v12774_v8 = vpop.permute.xlu0 %8871  ;;  %v12792_v49 = vsel %vm2165_vm6, %v12642_v51, %v8739_v41  ;;  %v12808_v45 = vsel %vm2165_vm6, %v12597_v40, %v8734_v38  ;;  %v12812_v51 = vsel %vm2165_vm6, %v12638_v2, %v8743_v23  ;;  %v16600_v2 = vld [vmem:[#allocation148_spill] sm:$0xff]  ;;  %v16621_v40 = vld [vmem:[#allocation177_spill] sm:$0xff] }
 0x202   : > { %v2170_v46 = vsel %vm2165_vm6, %v12250_v47, %v8713_v36  ;;  %v2175_v16 = vsel %vm2165_vm6, %v12281_v21, %v8724_v35  ;;  %v12782_v36 = vsel %vm2165_vm6, %v12646_v26, %v8738_v10  ;;  %v12796_v21 = vsel %vm2165_vm6, %v12553_v5, %v8733_v60  ;;  %v16581_v26 = vld [vmem:[#allocation54_spill] sm:$0xff]  ;;  %v16582_v35 = vld [vmem:[#allocation51_spill] sm:$0xff]  ;;  %v16633_v41 = vld [vmem:[#allocation152_spill] sm:$0xff] }
 0x203   : > { %9156 = vrot.lane.b32.xlu1 %v16572_v63, %s10451_s12  ;;  %v12766_v63 = vsel %vm2165_vm6, %v12612_v57, %v8728_v34  ;;  %v16576_v57 = vld [vmem:[#allocation75_spill] sm:$0xff]  ;;  %v16583_v10 = vpack.i.bf16 %v16581_v26, %v16582_v35  ;;  %v8838_v26 = vunpack.i.l.bf16 %v12591_v28  ;;  %v8844_v55 = vunpack.i.h.bf16 %v12648_v17 }
 0x204   : > { %9151 = vrot.lane.b32.xlu0 %v16573_v12, %s10455_s19  ;;  %v16596_v12 = vld [vmem:[#allocation136_spill] sm:$0xff]  ;;  %v8859_v23 = vunpack.i.h.bf16 %v12674_v19  ;;  %v8858_v28 = vunpack.i.l.bf16 %v12674_v19  ;;  %v16611_v19 = vld [vmem:[#allocation55_spill] sm:$0xff]  ;;  %vm7211_vm6 = vcmask 523264  }
 0x205   : > { %v12814_v5 = vpop.permute.xlu1 %8886  ;;  %v12820_v18 = vpop.permute.xlu0 %8881  ;;  %v16597_v35 = vpack.i.bf16 %v16596_v12, %v16375_v1  ;;  %v12864_v12 = vsel %vm2220_vm7, %v12725_v44, %v8838_v26  ;;  %v16612_v38 = vpack.i.bf16 %v16320_v59, %v16611_v19  ;;  %v12893_v59 = vsel %vm2220_vm7, %v12717_v33, %v8844_v55  ;;  %v16619_v33 = vld [vmem:[#allocation146_spill] sm:$0xff]  ;;  %v16629_v1 = vld [vmem:[#allocation87_spill] sm:$0xff] }
 0x206   : > { %v12898_v19 = vsel %vm2220_vm7, %v2174_v20, %v8858_v28  ;;  %v16620_v55 = vpack.i.bf16 %v16400_v43, %v16619_v33  ;;  %v1389_v20 = vrot.slane %v16621_v40, 2  ;;  %v16622_v28 = vld [vmem:[#allocation180_spill] sm:$0xff]  ;;  %v1222_v26 = vrot.slane %v16621_v40, 1 }
 0x207   : > { %9166 = vrot.lane.b32.xlu1 %v16576_v57, %s10453_s16  ;;  %16617 = vst [vmem:[#allocation32_spill] sm:$0xff] %v12898_v19  ;;  %v1390_v6 = vrot.slane %v16622_v28, 2  ;;  %v1223_v48 = vrot.slane %v16622_v28, 1  ;;  %v8869_v33 = vunpack.i.h.bf16 %v12721_v39  ;;  %v8864_v40 = vunpack.i.h.bf16 %v12730_v50 }
 0x208   : > { %9161 = vrot.lane.b32.xlu0 %v16583_v10, %s10454_s21  ;;  %v8848_v10 = vunpack.i.l.bf16 %v12632_v27  ;;  %v8863_v28 = vunpack.i.l.bf16 %v12730_v50 }
 0x209   : > { %v12854_v57 = vpop.permute.xlu1 %8896  ;;  %v12858_v47 = vpop.permute.xlu0 %8891 }
 0x20b   : > { %9176 = vrot.lane.b32.xlu1 %v16597_v35, %s10451_s12  ;;  %v8849_v35 = vunpack.i.h.bf16 %v12632_v27  ;;  %v12867_v27 = vsel %vm2220_vm7, %v2167_v3, %v8839_v32  ;;  %v12882_v32 = vsel %vm2220_vm7, %v2170_v46, %v8848_v10  ;;  %v12901_v46 = vsel %vm2220_vm7, %v2175_v16, %v8859_v23  ;;  %v16623_v16 = vld [vmem:[#allocation181_spill] sm:$0xff] }
 0x20c   : > { %9171 = vrot.lane.b32.xlu0 %v16600_v2, %s10455_s19  ;;  %v8843_v2 = vunpack.i.l.bf16 %v12648_v17  ;;  %v16609_v17 = vld [vmem:[#allocation90_spill] sm:$0xff]  ;;  %16618 = vst [vmem:[#allocation74_spill] sm:$0xff] %v12901_v46  ;;  %v8854_v10 = vunpack.i.h.bf16 %v12682_v53  ;;  %v12916_v23 = vrot.slane %v16623_v16, 2  ;;  %v12926_v43 = vrot.slane %v16623_v16, 1  ;;  %v16659_v16 = vld [vmem:[#allocation43_spill] sm:$0xff] }
 0x20d   : > { %v12885_v3 = vsel %vm2220_vm7, %v2171_v61, %v8849_v35  ;;  %v8853_v61 = vunpack.i.l.bf16 %v12682_v53  ;;  %v12905_v35 = vpop.permute.xlu0 %8901  ;;  %v16624_v53 = vld [vmem:[#allocation147_spill] sm:$0xff] }
 0x20e   : > { %v12949_v19 = vsel %vm2220_vm7, %v12746_v24, %v8854_v10  ;;  %v1393_v50 = vsel %vm804_vm1, %v1390_v6, %v12916_v23  ;;  %v16630_v24 = vld [vmem:[#allocation62_spill] sm:$0xff] }
 0x20f   : > { %9186 = vrot.lane.b32.xlu1 %v16609_v17, %s10453_s16  ;;  %v12889_v17 = vsel %vm2220_vm7, %v12713_v11, %v8843_v2  ;;  %v434_v11 = vld [vmem:[%s10766_s15 + $0xe4] sm:$0xff]   ;;  %v8868_v2 = vunpack.i.l.bf16 %v12721_v39  ;;  %v12939_v44 = vsel %vm2220_vm7, %v12736_v31, %v8853_v61  ;;  %v12945_v39 = vunpack.c.l.bf16 %v436_v56  ;;  %s15471_s15 = scalar_lea.vmem [#allocation14], %s7946_s29 }
 0x210   : > { %9181 = vrot.lane.b32.xlu0 %v16612_v38, %s10454_s21  ;;  %v12895_v38 = vpop.permute.xlu1 %8906  ;;  %v12933_v34 = vunpack.c.l.bf16 %v434_v11  ;;  %v1391_v31 = vsel %vm804_vm1, %v1389_v20, %v1390_v6  ;;  %v8879_v61 = vunpack.i.h.bf16 %v12762_v25  ;;  %v8878_v56 = vunpack.i.l.bf16 %v12762_v25  ;;  %s7799_s14 = sshll.u32 %s15471_s15, 4  ;;  %s15540_s14 = int_to_ptr.vmem [resolvable:$true] %s7799_s14 }
 0x211   : > { %v12943_v46 = vpop.permute.xlu0 %8911  ;;  %v16631_v10 = vpack.i.bf16 %v16314_v52, %v16630_v24  ;;  %v8873_v6 = vunpack.i.l.bf16 %v12774_v8  ;;  %v12980_v52 = vsel %vm2220_vm7, %v12766_v63, %v8863_v28  ;;  %v8874_v24 = vunpack.i.h.bf16 %v12774_v8 }
 0x212   : > { %16627 = vst [vmem:[#allocation67_spill] sm:$0xff] %v12933_v34  ;;  %v1721_v25 = vrot.slane %v12933_v34, 1  ;;  %v12999_v63 = vsel %vm2220_vm7, %v12812_v51, %v8878_v56  ;;  %v8884_v28 = vunpack.i.h.bf16 %v12820_v18 }
 0x213   : > { %9196 = vrot.lane.b32.xlu1 %v16620_v55, %s10451_s12  ;;  %v13010_v8 = vsel %vm2220_vm7, %v12782_v36, %v8873_v6  ;;  %v16635_v6 = vld [vmem:[#allocation22_spill] sm:$0xff] }
 0x214   : > { %9191 = vrot.lane.b32.xlu0 %v16624_v53, %s10455_s19  ;;  %v12929_v55 = vpop.permute.xlu1 %8916  ;;  %v12935_v53 = vunpack.c.h.bf16 %v434_v11  ;;  %v12953_v11 = vsel %vm2220_vm7, %v12796_v21, %v8868_v2  ;;  %v1224_v21 = vsel %vm551_vm0, %v1222_v26, %v1223_v48  ;;  %v1226_v2 = vsel %vm551_vm0, %v1223_v48, %v12926_v43 }
 0x215   : > { %v12984_v26 = vsel %vm2220_vm7, %v12770_v22, %v8864_v40  ;;  %v12986_v48 = vpop.permute.xlu0 %8921  ;;  %v13003_v22 = vsel %vm2220_vm7, %v12331_v9, %v8879_v61  ;;  %v8889_v40 = vunpack.i.h.bf16 %v12814_v5  ;;  %v8899_v9 = vunpack.i.h.bf16 %v12854_v57 }
 0x216   : > { %16628 = vst [vmem:[#allocation191_spill] sm:$0xff] %v12935_v53  ;;  %v1722_v60 = vrot.slane %v12935_v53, 1  ;;  %v8893_v61 = vunpack.i.l.bf16 %v12858_v47 }
 0x217   : > { %9206 = vrot.lane.b32.xlu1 %v16629_v1, %s10453_s16  ;;  %v12971_v1 = vsel %vm2220_vm7, %v12808_v45, %v8869_v33  ;;  %v12988_v45 = vpack.i.bf16 %v1393_v50, %v1391_v31  ;;  %v15980_v33 = vrot.slane %v12945_v39, 1  ;;  %v8883_v31 = vunpack.i.l.bf16 %v12820_v18 }
 0x218   : > { %9201 = vrot.lane.b32.xlu0 %v16631_v10, %s10454_s21  ;;  %16632 = vst [vmem:[#allocation128_spill] sm:$0xff] %v12971_v1  ;;  %v12974_v20 = vpop.permute.xlu1 %8926  ;;  %v8888_v10 = vunpack.i.l.bf16 %v12814_v5  ;;  %v12995_v1 = vpack.i.bf16 %v1226_v2, %v1224_v21  ;;  %v13017_v51 = vsel %vm551_vm0, %v1721_v25, %v1722_v60  ;;  %v8898_v5 = vunpack.i.l.bf16 %v12854_v57  ;;  %v16634_v57 = vld [vmem:[#allocation72_spill] sm:$0xff] }
 0x219   : > { %v13027_v36 = vsel %vm551_vm0, %v1722_v60, %v15980_v33  ;;  %v13031_v18 = vsel %vm2220_vm7, %v12792_v49, %v8874_v24  ;;  %v8894_v21 = vunpack.i.h.bf16 %v12858_v47  ;;  %v13044_v60 = vsel %vm2220_vm7, %v12365_v29, %v8889_v40  ;;  %v16636_v47 = vld [vmem:[#allocation131_spill] sm:$0xff] }
 0x21a   : > { %v13035_v56 = vsel %vm2220_vm7, %v12362_v0, %v8888_v10  ;;  %v1888_v49 = vrot.slane %v12933_v34, 2  ;;  %v1889_v0 = vrot.slane %v12935_v53, 2  ;;  %v1891_v25 = vrot.slane %v12945_v39, 2  ;;  %v16637_v10 = vld [vmem:[#allocation28_spill] sm:$0xff]  ;;  %v16641_v34 = vld [vmem:[#allocation30_spill] sm:$0xff] }
 0x21b   : > { %9216 = vrot.lane.b32.xlu1 %v16633_v41, %s10451_s12  ;;  %v13053_v24 = vsel %vm2220_vm7, %v16636_v47, %v8883_v31  ;;  %v8908_v29 = vunpack.i.l.bf16 %v12895_v38  ;;  %v13066_v2 = vsel %vm2220_vm7, %v12392_v4, %v8898_v5  ;;  %v13070_v31 = vsel %vm2220_vm7, %v12395_v14, %v8899_v9  ;;  %v16640_v47 = vld [vmem:[#allocation141_spill] sm:$0xff] }
 0x21c   : > { %9211 = vrot.lane.b32.xlu0 %v16633_v41, %s10455_s19  ;;  %v13014_v50 = vpop.permute.xlu1 %8936  ;;  %v13022_v41 = vpop.permute.xlu0 %8931  ;;  %16638 = vst [vmem:[#allocation179_spill] sm:$0xff] %v13066_v2  ;;  %16639 = vst [vmem:[#allocation132_spill] sm:$0xff] %v13070_v31  ;;  %v8904_v4 = vunpack.i.h.bf16 %v12905_v35  ;;  %v8903_v5 = vunpack.i.l.bf16 %v12905_v35  ;;  %v8918_v14 = vunpack.i.l.bf16 %v12929_v55  ;;  %v16642_v9 = vpack.i.bf16 %v16534_v54, %v16533_v58  ;;  %v16645_v31 = vld [vmem:[#allocation37_spill] sm:$0xff]  ;;  %v16654_v2 = vld [vmem:[#allocation36_spill] sm:$0xff] }
 0x21d   : > { %v13105_v58 = vsel %vm2220_vm7, %v16645_v31, %v8908_v29  ;;  %v8929_v35 = vunpack.i.h.bf16 %v12974_v20  ;;  %v8928_v29 = vunpack.i.l.bf16 %v12974_v20  ;;  %v16669_v20 = vld [vmem:[#allocation42_spill] sm:$0xff] }
 0x21e   : > { %16646 = vst [vmem:[#allocation130_spill] sm:$0xff] %v13105_v58  ;;  %v16650_v58 = vld [vmem:[#allocation26_spill] sm:$0xff] }
 0x21f   : > { %9226 = vrot.lane.b32.xlu1 %v16634_v57, %s10453_s16  ;;  %v13057_v57 = vsel %vm2220_vm7, %v16637_v10, %v8884_v28  ;;  %v13074_v28 = vsel %vm2220_vm7, %v16640_v47, %v8893_v61  ;;  %v8909_v10 = vunpack.i.h.bf16 %v12895_v38  ;;  %v8919_v38 = vunpack.i.h.bf16 %v12929_v55 }
 0x220   : > { %9221 = vrot.lane.b32.xlu0 %v16635_v6, %s10454_s21  ;;  %v13060_v40 = vpop.permute.xlu1 %8946  ;;  %v13077_v33 = vpop.permute.xlu0 %8941  ;;  %v13081_v6 = vsel %vm2220_vm7, %v16641_v34, %v8894_v21  ;;  %v16643_v61 = vpack.i.bf16 %v16535_v62, %v16534_v54  ;;  %v13096_v34 = vsel %vm804_vm1, %v1888_v49, %v1889_v0  ;;  %v13099_v21 = vsel %vm804_vm1, %v1889_v0, %v1891_v25  ;;  %v16652_v54 = vld [vmem:[#allocation29_spill] sm:$0xff] }
 0x221   : > { %v8913_v55 = vunpack.i.l.bf16 %v12943_v46  ;;  %v8914_v47 = vunpack.i.h.bf16 %v12943_v46  ;;  %v13123_v53 = vsel %vm2220_vm7, %v16650_v58, %v8903_v5  ;;  %v13127_v49 = vsel %vm2220_vm7, %v16652_v54, %v8904_v4  ;;  %v16656_v46 = vld [vmem:[#allocation96_spill] sm:$0xff]  ;;  %v16661_v4 = vld [vmem:[#allocation82_spill] sm:$0xff] }
 0x222   : > { %16651 = vst [vmem:[#allocation190_spill] sm:$0xff] %v13123_v53  ;;  %16653 = vst [vmem:[#allocation182_spill] sm:$0xff] %v13127_v49  ;;  %v13141_v5 = vsel %vm2220_vm7, %v16659_v16, %v8919_v38  ;;  %v16662_v54 = vld [vmem:[#allocation64_spill] sm:$0xff]  ;;  %v8923_v16 = vunpack.i.l.bf16 %v12986_v48 }
 0x223   : > { %9236 = vrot.lane.b32.xlu1 %v16642_v9, %s10451_s12  ;;  %16660 = vst [vmem:[#allocation20_spill] sm:$0xff] %v13141_v5  ;;  %v16663_v49 = vpack.i.bf16 %v16661_v4, %v16662_v54  ;;  %v16671_v4 = vld [vmem:[#allocation79_spill] sm:$0xff] }
 0x224   : > { %9231 = vrot.lane.b32.xlu0 %v16643_v61, %s10455_s19  ;;  %v8957_v9 = vpop.permute.xlu1 %8956  ;;  %v16648_v61 = vld [vmem:[#allocation144_spill] sm:$0xff]  ;;  %v13119_v31 = vpop.permute.xlu0 %8951  ;;  %v13167_v54 = vsel %vm2220_vm7, %v16671_v4, %v8928_v29 }
 0x225   : > { %v13114_v0 = vsel %vm2220_vm7, %v16648_v61, %v8909_v10  ;;  %v13131_v10 = vsel %vm2220_vm7, %v16654_v2, %v8918_v14  ;;  %v16657_v61 = vld [vmem:[#allocation68_spill] sm:$0xff]  ;;  %v8959_v58 = vunpack.i.h.bf16 %v8957_v9  ;;  %v8958_v53 = vunpack.i.l.bf16 %v8957_v9  ;;  %16672 = vst [vmem:[#allocation39_spill] sm:$0xff] %v13167_v54  ;;  %v16679_v54 = vld [vmem:[#allocation65_spill] sm:$0xff] }
 0x226   : > { %16649 = vst [vmem:[#allocation138_spill] sm:$0xff] %v13114_v0  ;;  %16655 = vst [vmem:[#allocation31_spill] sm:$0xff] %v13131_v10  ;;  %v16658_v0 = vpack.i.bf16 %v16656_v46, %v16657_v61  ;;  %v16664_v2 = vrot.slane %v12945_v39, 1  ;;  %v8924_v61 = vunpack.i.h.bf16 %v12986_v48  ;;  %v13159_v9 = vpack.i.bf16 %v1891_v25, %v12916_v23 }
 0x227   : > { %v8939_v48 = vunpack.i.h.bf16 %v13014_v50  ;;  %v8933_v25 = vunpack.i.l.bf16 %v13022_v41  ;;  %v2276_v29 = vsel %vm2275_vm8, %v12864_v12, %v8958_v53 }
 0x228   : > { %9246 = vrot.lane.b32.xlu1 %v16658_v0, %s10453_s16  ;;  %9241 = vrot.lane.b32.xlu0 %v16663_v49, %s10454_s21  ;;  %v13150_v14 = vpack.i.bf16 %v16664_v2, %v12926_v43  ;;  %v16666_v0 = vld [vmem:[#allocation34_spill] sm:$0xff]  ;;  %v8967_v38 = vpop.permute.xlu1 %8966  ;;  %16668 = vst [vmem:[#allocation21_spill] sm:$0xff] %v13159_v9  ;;  %v13163_v49 = vsel %vm2220_vm7, %v16669_v20, %v8914_v47  ;;  %v16673_v2 = vld [vmem:[#allocation113_spill] sm:$0xff]  ;;  %v8962_v5 = vpop.permute.xlu0 %8961 }
 0x229   : > { %v13154_v46 = vsel %vm2220_vm7, %v16666_v0, %v8913_v55  ;;  %16670 = vst [vmem:[#allocation183_spill] sm:$0xff] %v13163_v49  ;;  %v13171_v55 = vsel %vm2220_vm7, %v16673_v2, %v8929_v35  ;;  %v8938_v0 = vunpack.i.l.bf16 %v13014_v50  ;;  %v8964_v10 = vunpack.i.h.bf16 %v8962_v5  ;;  %v16675_v47 = vld [vmem:[#allocation145_spill] sm:$0xff]  ;;  %v16681_v49 = vld [vmem:[#allocation80_spill] sm:$0xff] }
 0x22a   : > { %16665 = vst [vmem:[#allocation52_spill] sm:$0xff] %v13150_v14  ;;  %16667 = vst [vmem:[#allocation49_spill] sm:$0xff] %v13154_v46  ;;  %v8963_v46 = vunpack.i.l.bf16 %v8962_v5  ;;  %v16676_v20 = vpack.i.bf16 %v16675_v47, %v16535_v62  ;;  %v2277_v35 = vsel %vm2275_vm8, %v12867_v27, %v8959_v58  ;;  %v8969_v4 = vunpack.i.h.bf16 %v8967_v38  ;;  %v16683_v58 = vld [vmem:[#allocation126_spill] sm:$0xff] }
 0x22b   : > { %16674 = vst [vmem:[#allocation44_spill] sm:$0xff] %v13171_v55  ;;  %v8968_v2 = vunpack.i.l.bf16 %v8967_v38  ;;  %v16677_v55 = vld [vmem:[#allocation153_spill] sm:$0xff]  ;;  %v13190_v5 = vsel %vm2220_vm7, %v16679_v54, %v8923_v16  ;;  %v13194_v62 = vsel %vm2220_vm7, %v16681_v49, %v8924_v61  ;;  %v2332_v53 = vsel %vm2330_vm9, %v2277_v35, %v8964_v10  ;;  %v16687_v61 = vld [vmem:[#allocation91_spill] sm:$0xff] }
 0x22c   : > { %9256 = vrot.lane.b32.xlu1 %v16676_v20, %s10451_s12  ;;  %v16678_v50 = vpack.i.bf16 %v16677_v55, %v16675_v47  ;;  %16680 = vst [vmem:[#allocation175_spill] sm:$0xff] %v13190_v5  ;;  %16682 = vst [vmem:[#allocation185_spill] sm:$0xff] %v13194_v62  ;;  %v2331_v12 = vsel %vm2330_vm9, %v2276_v29, %v8963_v46  ;;  %v8977_v27 = vpop.permute.xlu1 %8976  ;;  %v13200_v38 = vsel %vm2220_vm7, %v16683_v58, %v8938_v0  ;;  %v8972_v14 = vpop.permute.xlu0 %8971  ;;  %v16685_v16 = vld [vmem:[#allocation173_spill] sm:$0xff] }
 0x22d   : > { %16684 = vst [vmem:[#allocation194_spill] sm:$0xff] %v13200_v38  ;;  %v8934_v47 = vunpack.i.h.bf16 %v13022_v41  ;;  %v8979_v20 = vunpack.i.h.bf16 %v8977_v27  ;;  %v13205_v54 = vsel %vm2220_vm7, %v16685_v16, %v8939_v48  ;;  %v13209_v49 = vsel %vm2220_vm7, %v16687_v61, %v8933_v25  ;;  %v16689_v29 = vld [vmem:[#allocation73_spill] sm:$0xff] }
 0x22e   : > { %9251 = vrot.lane.b32.xlu0 %v16678_v50, %s10455_s19  ;;  %v8978_v50 = vunpack.i.l.bf16 %v8977_v27  ;;  %16686 = vst [vmem:[#allocation127_spill] sm:$0xff] %v13205_v54  ;;  %16688 = vst [vmem:[#allocation116_spill] sm:$0xff] %v13209_v49  ;;  %v8974_v46 = vunpack.i.h.bf16 %v8972_v14  ;;  %v8973_v10 = vunpack.i.l.bf16 %v8972_v14  ;;  %v16690_v35 = vld [vmem:[#allocation97_spill] sm:$0xff]  ;;  %v8949_v41 = vunpack.i.h.bf16 %v13060_v40  ;;  %v16693_v54 = vld [vmem:[#allocation84_spill] sm:$0xff] }
 0x22f   : > { %v16691_v0 = vpack.i.bf16 %v16689_v29, %v16690_v35  ;;  %v8948_v27 = vunpack.i.l.bf16 %v13060_v40  ;;  %v2386_v58 = vsel %vm2385_vm10, %v2331_v12, %v8968_v2  ;;  %v2387_v48 = vsel %vm2385_vm10, %v2332_v53, %v8969_v4  ;;  %v16692_v16 = vld [vmem:[#allocation69_spill] sm:$0xff]  ;;  %v16695_v2 = vld [vmem:[#allocation38_spill] sm:$0xff] }
 0x230   : > { %v16694_v25 = vpack.i.bf16 %v16692_v16, %v16693_v54  ;;  %v2279_v14 = vsel %vm2275_vm8, %v12893_v59, %v8978_v50  ;;  %v2280_v61 = vsel %vm2275_vm8, %v12882_v32, %v8979_v20  ;;  %v2441_v29 = vsel %vm2440_vm11, %v2386_v58, %v8973_v10  ;;  %v8987_v40 = vpop.permute.xlu1 %8986  ;;  %v8982_v38 = vpop.permute.xlu0 %8981  ;;  %v16696_v59 = vld [vmem:[#allocation151_spill] sm:$0xff] }
 0x231   : > { %9266 = vrot.lane.b32.xlu1 %v16691_v0, %s10453_s16  ;;  %v2442_v35 = vsel %vm2440_vm11, %v2387_v48, %v8974_v46  ;;  %v2549_v0 = vcombine.high %v2441_v29, %v2441_v29  ;;  %v2556_v12 = vrot.slane %v2441_v29, %v16695_v2  ;;  %v8989_v54 = vunpack.i.h.bf16 %v8987_v40  ;;  %v16699_v48 = vld [vmem:[#allocation61_spill] sm:$0xff] }
 0x232   : > { %9261 = vrot.lane.b32.xlu0 %v16694_v25, %s10454_s21  ;;  %v2566_v4 = vcombine.high %v2442_v35, %v2442_v35  ;;  %v2573_v53 = vrot.slane %v2442_v35, %v16695_v2  ;;  %v8988_v16 = vunpack.i.l.bf16 %v8987_v40  ;;  %v8984_v25 = vunpack.i.h.bf16 %v8982_v38 }
 0x233   : > { %v8983_v49 = vunpack.i.l.bf16 %v8982_v38  ;;  %v16697_v32 = vpack.i.bf16 %v16696_v59, %v16677_v55  ;;  %v2563_v20 = vrot.slane %v2549_v0, %v16695_v2  ;;  %v2564_v50 = vcombine.high %v2556_v12, %v2556_v12  ;;  %v16701_v38 = vld [vmem:[#allocation125_spill] sm:$0xff] }
 0x234   : > { %v2580_v46 = vrot.slane %v2566_v4, %v16695_v2  ;;  %v2581_v10 = vcombine.high %v2573_v53, %v2573_v53  ;;  %v16698_v58 = vpack.i.bf16 %v16696_v59, %v16552_v13  ;;  %v13243_v29 = vsel %vm2220_vm7, %v16699_v48, %v8934_v47  ;;  %v8997_v0 = vpop.permute.xlu1 %8996  ;;  %v16703_v4 = vld [vmem:[#allocation129_spill] sm:$0xff]  ;;  %v8992_v5 = vpop.permute.xlu0 %8991 }
 0x235   : > { %9276 = vrot.lane.b32.xlu1 %v16697_v32, %s10451_s12  ;;  %16700 = vst [vmem:[#allocation139_spill] sm:$0xff] %v13243_v29  ;;  %v13247_v35 = vsel %vm2220_vm7, %v16701_v38, %v8948_v27  ;;  %v2334_v55 = vsel %vm2330_vm9, %v2279_v14, %v8983_v49  ;;  %v2335_v40 = vsel %vm2330_vm9, %v2280_v61, %v8984_v25  ;;  %v8999_v9 = vunpack.i.h.bf16 %v8997_v0  ;;  %v16704_v27 = vld [vmem:[#allocation88_spill] sm:$0xff] }
 0x236   : > { %9271 = vrot.lane.b32.xlu0 %v16698_v58, %s10455_s19  ;;  %16702 = vst [vmem:[#allocation174_spill] sm:$0xff] %v13247_v35  ;;  %v13253_v32 = vsel %vm2220_vm7, %v16703_v4, %v8949_v41  ;;  %v2565_v62 = vcombine.high %v2563_v20, %v2563_v20  ;;  %v2582_v59 = vcombine.high %v2580_v46, %v2580_v46  ;;  %v8998_v47 = vunpack.i.l.bf16 %v8997_v0  ;;  %v16705_v38 = vld [vmem:[#allocation92_spill] sm:$0xff] }
 0x237   : > { %v3287_v58 = vcombine.low %v2556_v12, %v2564_v50  ;;  %v8994_v48 = vunpack.i.h.bf16 %v8992_v5  ;;  %v8993_v29 = vunpack.i.l.bf16 %v8992_v5  ;;  %v16706_v35 = vpack.i.bf16 %v16704_v27, %v16705_v38 }
 0x238   : > { %v3288_v49 = vcombine.low %v2563_v20, %v2565_v62  ;;  %v13259_v14 = vcombine.low %v2573_v53, %v2581_v10  ;;  %v2389_v61 = vsel %vm2385_vm10, %v2334_v55, %v8988_v16  ;;  %v2390_v41 = vsel %vm2385_vm10, %v2335_v40, %v8989_v54  ;;  %v9007_v53 = vpop.permute.xlu1 %9006 }
 0x239   : > { %9286 = vrot.lane.b32.xlu1 %v16706_v35, %s10453_s16  ;;  %v16707_v12 = vpack.i.bf16 %v16560_v42, %v16559_v15  ;;  %v2278_v5 = vsel %vm2275_vm8, %v12889_v17, %v8998_v47  ;;  %v2282_v25 = vsel %vm2275_vm8, %v12939_v44, %v8999_v9  ;;  %v2444_v50 = vsel %vm2440_vm11, %v2389_v61, %v8993_v29  ;;  %v9002_v35 = vpop.permute.xlu0 %9001 }
 0x23a   : > { %v2445_v62 = vsel %vm2440_vm11, %v2390_v41, %v8994_v48  ;;  %v2590_v20 = vcombine.high %v2444_v50, %v2444_v50  ;;  %v2597_v16 = vrot.slane %v2444_v50, %v16695_v2  ;;  %v9009_v15 = vunpack.i.h.bf16 %v9007_v53 }
 0x23b   : > { %9281 = vrot.lane.b32.xlu0 %v16707_v12, %s10454_s21  ;;  %v2607_v54 = vcombine.high %v2445_v62, %v2445_v62  ;;  %v2614_v10 = vrot.slane %v2445_v62, %v16695_v2  ;;  %v9008_v42 = vunpack.i.l.bf16 %v9007_v53  ;;  %v9004_v55 = vunpack.i.h.bf16 %v9002_v35 }
 0x23c   : > { %v9003_v40 = vunpack.i.l.bf16 %v9002_v35  ;;  %v16708_v44 = vpack.i.bf16 %v16561_v37, %v16552_v13  ;;  %v2604_v17 = vrot.slane %v2590_v20, %v16695_v2  ;;  %v2605_v9 = vcombine.high %v2597_v16, %v2597_v16  ;;  %v9017_v38 = vpop.permute.xlu1 %9016  ;;  %v16712_v35 = vld [vmem:[#allocation85_spill] sm:$0xff] }
 0x23d   : > { %v13281_v29 = vrot.slane %v2607_v54, %v16695_v2  ;;  %v2622_v0 = vcombine.high %v2614_v10, %v2614_v10  ;;  %v16709_v4 = vpack.i.bf16 %v16565_v7, %v16561_v37  ;;  %v3305_v47 = vcombine.low %v2580_v46, %v2582_v59  ;;  %v9012_v50 = vpop.permute.xlu0 %9011 }
 0x23e   : > { %9296 = vrot.lane.b32.xlu1 %v16708_v44, %s10451_s12  ;;  %v2333_v48 = vsel %vm2330_vm9, %v2278_v5, %v9003_v40  ;;  %v2337_v27 = vsel %vm2330_vm9, %v2282_v25, %v9004_v55  ;;  %v3302_v13 = vrot.slane %v3288_v49, %v16695_v2  ;;  %v2606_v61 = vcombine.high %v2604_v17, %v2604_v17  ;;  %v16710_v5 = vld [vmem:[#allocation105_spill] sm:$0xff]  ;;  %v16713_v55 = vld [vmem:[#allocation78_spill] sm:$0xff] }
 0x23f   : > { %9291 = vrot.lane.b32.xlu0 %v16709_v4, %s10455_s19  ;;  %v13290_v41 = vcombine.low %v2605_v9, %v2604_v17  ;;  %v9019_v12 = vunpack.i.h.bf16 %v9017_v38  ;;  %v3295_v62 = vrot.slane %v3287_v58, %v16695_v2  ;;  %v13294_v53 = vcombine.low %v2622_v0, %v13281_v29 }
 0x240   : > { %v9018_v37 = vunpack.i.l.bf16 %v9017_v38  ;;  %v9014_v46 = vunpack.i.h.bf16 %v9012_v50  ;;  %v9013_v59 = vunpack.i.l.bf16 %v9012_v50  ;;  %v16711_v25 = vpack.i.bf16 %v16567_v30, %v16710_v5  ;;  %v9027_v9 = vpop.permute.xlu1 %9026 }
 0x241   : > { %v13300_v49 = vcombine.low %v2606_v61, %v2614_v10  ;;  %v2281_v20 = vsel %vm2275_vm8, %v12885_v3, %v9019_v12  ;;  %v2388_v54 = vsel %vm2385_vm10, %v2333_v48, %v9008_v42  ;;  %v2392_v58 = vsel %vm2385_vm10, %v2337_v27, %v9009_v15  ;;  %v9022_v4 = vpop.permute.xlu0 %9021 }
 0x242   : > { %9306 = vrot.lane.b32.xlu1 %v16711_v25, %s10453_s16  ;;  %v16714_v40 = vpack.i.bf16 %v16712_v35, %v16713_v55  ;;  %v2443_v44 = vsel %vm2440_vm11, %v2388_v54, %v9013_v59  ;;  %v2447_v17 = vsel %vm2440_vm11, %v2392_v58, %v9014_v46  ;;  %v3303_v30 = vcombine.low %v3295_v62, %v3302_v13  ;;  %v16715_v13 = vld [vmem:[#allocation157_spill] sm:$0xff]  ;;  %v16717_v59 = vld [vmem:[#allocation162_spill] sm:$0xff] }
 0x243   : > { %v3312_v10 = vrot.slane %v13259_v14, %v16695_v2  ;;  %v2589_v3 = vrot.slane %v2443_v44, %v16695_v2  ;;  %v2631_v0 = vcombine.high %v2447_v17, %v2447_v17  ;;  %v2638_v42 = vrot.slane %v2447_v17, %v16695_v2 }
 0x244   : > { %9301 = vrot.lane.b32.xlu0 %v16714_v40, %s10454_s21  ;;  %v3319_v15 = vrot.slane %v3305_v47, %v16695_v2  ;;  %v2283_v48 = vsel %vm2275_vm8, %v12949_v19, %v9018_v37  ;;  %v9029_v27 = vunpack.i.h.bf16 %v9027_v9  ;;  %v9024_v38 = vunpack.i.h.bf16 %v9022_v4  ;;  %v9037_v25 = vpop.permute.xlu1 %9036 }
 0x245   : > { %v9023_v61 = vunpack.i.l.bf16 %v9022_v4  ;;  %v16716_v12 = vpack.i.bf16 %v16715_v13, %v16565_v7  ;;  %v2645_v14 = vrot.slane %v2631_v0, %v16695_v2  ;;  %v2646_v50 = vcombine.high %v2638_v42, %v2638_v42  ;;  %v9032_v55 = vpop.permute.xlu0 %9031 }
 0x246   : > { %v3320_v62 = vcombine.low %v3312_v10, %v3319_v15  ;;  %v9028_v46 = vunpack.i.l.bf16 %v9027_v9  ;;  %v16718_v47 = vpack.i.bf16 %v16717_v59, %v16715_v13  ;;  %v3321_v5 = vcombine.low %v2589_v3, %v2597_v16  ;;  %v16720_v9 = vld [vmem:[#allocation100_spill] sm:$0xff]  ;;  %v16723_v15 = vld [vmem:[#allocation93_spill] sm:$0xff] }
 0x247   : > { %9316 = vrot.lane.b32.xlu1 %v16716_v12, %s10451_s12  ;;  %v2336_v19 = vsel %vm2330_vm9, %v2281_v20, %v9024_v38  ;;  %v2338_v37 = vsel %vm2330_vm9, %v2283_v48, %v9023_v61  ;;  %v2623_v7 = vcombine.high %v13281_v29, %v13281_v29  ;;  %v2647_v54 = vcombine.high %v2645_v14, %v2645_v14  ;;  %v16719_v20 = vld [vmem:[#allocation102_spill] sm:$0xff]  ;;  %v16725_v48 = vld [vmem:[#allocation32_spill] sm:$0xff] }
 0x248   : > { %9311 = vrot.lane.b32.xlu0 %v16718_v47, %s10455_s19  ;;  %v4016_v58 = vpack.c.bf16 %v3320_v62, %v3303_v30  ;;  %v9039_v35 = vunpack.i.h.bf16 %v9037_v25  ;;  %v3336_v40 = vrot.slane %v13290_v41, %v16695_v2  ;;  %v13334_v44 = vcombine.low %v2638_v42, %v2646_v50  ;;  %v16722_v42 = vld [vmem:[#allocation86_spill] sm:$0xff]  ;;  %v9047_v12 = vpop.permute.xlu1 %9046 }
 0x249   : > { %v9038_v17 = vunpack.i.l.bf16 %v9037_v25  ;;  %v9034_v10 = vunpack.i.h.bf16 %v9032_v55  ;;  %v9033_v16 = vunpack.i.l.bf16 %v9032_v55  ;;  %v16721_v3 = vpack.i.bf16 %v16719_v20, %v16720_v9  ;;  %v16727_v50 = vld [vmem:[#allocation74_spill] sm:$0xff]  ;;  %v16728_v55 = vld [vmem:[#allocation155_spill] sm:$0xff] }
 0x24a   : > { %v8944_v0 = vunpack.i.h.bf16 %v13077_v33  ;;  %v13341_v29 = vcombine.low %v2645_v14, %v2647_v54  ;;  %8135 = vmatmul.mubr.msk.bf16.vlgmr.msra.gmra.mrb[0].mxu0 %vm4064_vm12, %v4016_v58  ;;  %v2391_v30 = vsel %vm2385_vm10, %v2336_v19, %v9029_v27  ;;  %v2393_v41 = vsel %vm2385_vm10, %v2338_v37, %v9028_v46  ;;  %v9042_v37 = vpop.permute.xlu0 %9041 }
 0x24b   : > { %9326 = vrot.lane.b32.xlu1 %v16721_v3, %s10453_s16  ;;  %v16724_v4 = vpack.i.bf16 %v16722_v42, %v16723_v15  ;;  %v2284_v38 = vsel %vm2275_vm8, %v16725_v48, %v9039_v35  ;;  %v2446_v61 = vsel %vm2440_vm11, %v2391_v30, %v9034_v10  ;;  %v2448_v13 = vsel %vm2440_vm11, %v2393_v41, %v9033_v16 }
 0x24c   : > { %v16726_v14 = vmov 0.0   ;;  %v3329_v27 = vrot.slane %v3321_v5, %v16695_v2  ;;  %v2285_v62 = vsel %vm2275_vm8, %v16727_v50, %v9038_v17  ;;  %v2630_v46 = vrot.slane %v2446_v61, %v16695_v2  ;;  %v16730_v17 = vld [vmem:[#allocation163_spill] sm:$0xff]  ;;  %v9057_v15 = vpop.permute.xlu1 %9056 }
 0x24d   : > { %9321 = vrot.lane.b32.xlu0 %v16724_v4, %s10454_s21  ;;  %8138 = vmatprep.mubr.msk.bf16.mxu0 %vm10456_vm5, %v16726_v14  ;;  %v2648_v47 = vcombine.high %v2448_v13, %v2448_v13  ;;  %v2655_v19 = vrot.slane %v2448_v13, %v16695_v2  ;;  %v9049_v25 = vunpack.i.h.bf16 %v9047_v12  ;;  %v9048_v54 = vunpack.i.l.bf16 %v9047_v12 }
 0x24e   : > { %v9044_v58 = vunpack.i.h.bf16 %v9042_v37  ;;  %v9043_v35 = vunpack.i.l.bf16 %v9042_v37  ;;  %v16729_v10 = vpack.i.bf16 %v16728_v55, %v16717_v59  ;;  %v16731_v20 = vpack.i.bf16 %v16730_v17, %v16728_v55  ;;  %v9052_v13 = vpop.permute.xlu0 %9051 }
 0x24f   : > { %v2662_v5 = vrot.slane %v2648_v47, %v16695_v2  ;;  %v2663_v16 = vcombine.high %v2655_v19, %v2655_v19  ;;  %v3337_v9 = vcombine.low %v3329_v27, %v3336_v40  ;;  %v3346_v3 = vrot.slane %v13300_v49, %v16695_v2 }
 0x250   : > { %9336 = vrot.lane.b32.xlu1 %v16729_v10, %s10451_s12  ;;  %v3355_v30 = vcombine.low %v2623_v7, %v2630_v46  ;;  %v2339_v41 = vsel %vm2330_vm9, %v2284_v38, %v9044_v58  ;;  %v2340_v42 = vsel %vm2330_vm9, %v2285_v62, %v9043_v35  ;;  %v3353_v59 = vrot.slane %v13294_v53, %v16695_v2  ;;  %v16732_v7 = vld [vmem:[#allocation94_spill] sm:$0xff]  ;;  %v16733_v38 = vld [vmem:[#allocation112_spill] sm:$0xff] }
 0x251   : > { %9331 = vrot.lane.b32.xlu0 %v16731_v20, %s10455_s19  ;;  %v2664_v4 = vcombine.high %v2662_v5, %v2662_v5  ;;  %v9059_v48 = vunpack.i.h.bf16 %v9057_v15  ;;  %v9058_v61 = vunpack.i.l.bf16 %v9057_v15  ;;  %v3370_v12 = vrot.slane %v13334_v44, %v16695_v2  ;;  %v16735_v44 = vld [vmem:[#allocation89_spill] sm:$0xff]  ;;  %v16738_v15 = vld [vmem:[#allocation160_spill] sm:$0xff] }
 0x252   : > { %v3373_v40 = vcombine.low %v2655_v19, %v2663_v16  ;;  %v3354_v27 = vcombine.low %v3346_v3, %v3353_v59  ;;  %v9054_v50 = vunpack.i.h.bf16 %v9052_v13  ;;  %v9053_v49 = vunpack.i.l.bf16 %v9052_v13  ;;  %v16736_v19 = vld [vmem:[#allocation99_spill] sm:$0xff]  ;;  %v9067_v16 = vpop.permute.xlu1 %9066  ;;  %v9062_v3 = vpop.permute.xlu0 %9061 }
 0x253   : > { %v16734_v46 = vpack.i.bf16 %v16732_v7, %v16733_v38  ;;  %v13382_v62 = vcombine.low %v2662_v5, %v2664_v4  ;;  %v2286_v53 = vsel %vm2275_vm8, %v12980_v52, %v9058_v61  ;;  %v2394_v47 = vsel %vm2385_vm10, %v2339_v41, %v9049_v25  ;;  %v16740_v61 = vld [vmem:[#allocation159_spill] sm:$0xff] }
 0x254   : > { %v2395_v37 = vsel %vm2385_vm10, %v2340_v42, %v9048_v54  ;;  %v16737_v58 = vpack.i.bf16 %v16735_v44, %v16736_v19  ;;  %v4017_v35 = vpack.c.bf16 %v3354_v27, %v3337_v9  ;;  %v2449_v55 = vsel %vm2440_vm11, %v2394_v47, %v9054_v50 }
 0x255   : > { %9346 = vrot.lane.b32.xlu1 %v16734_v46, %s10453_s16  ;;  %v2450_v10 = vsel %vm2440_vm11, %v2395_v37, %v9053_v49  ;;  %v3363_v5 = vrot.slane %v3355_v30, %v16695_v2  ;;  %v2288_v52 = vsel %vm2275_vm8, %v12953_v11, %v9059_v48  ;;  %v2671_v25 = vrot.slane %v2449_v55, %v16695_v2 }
 0x256   : > { %9341 = vrot.lane.b32.xlu0 %v16737_v58, %s10454_s21  ;;  %v2672_v20 = vcombine.high %v2450_v10, %v2450_v10  ;;  %v2679_v54 = vrot.slane %v2450_v10, %v16695_v2  ;;  %8139 = vmatmul.mubr.msk.bf16.gmra.mrb[4].mxu0 %vm4064_vm12, %v4017_v35  ;;  %v9069_v41 = vunpack.i.h.bf16 %v9067_v16  ;;  %v9068_v9 = vunpack.i.l.bf16 %v9067_v16  ;;  %v9077_v7 = vpop.permute.xlu1 %9076  ;;  %v9072_v44 = vpop.permute.xlu0 %9071  ;;  %v16743_v10 = vld [vmem:[#allocation111_spill] sm:$0xff] }
 0x257   : > { %v9064_v42 = vunpack.i.h.bf16 %v9062_v3  ;;  %v9063_v59 = vunpack.i.l.bf16 %v9062_v3  ;;  %v16739_v4 = vpack.i.bf16 %v16738_v15, %v16730_v17  ;;  %v8943_v30 = vunpack.i.l.bf16 %v13077_v33  ;;  %8142 = vmatprep.mubr.msk.bf16.mxu0 %vm10456_vm5, %v16726_v14 }
 0x258   : > { %v2686_v11 = vrot.slane %v2672_v20, %v16695_v2  ;;  %v2687_v48 = vcombine.high %v2679_v54, %v2679_v54  ;;  %v16741_v13 = vpack.i.bf16 %v16740_v61, %v16738_v15  ;;  %v3371_v27 = vcombine.low %v3363_v5, %v3370_v12  ;;  %v16745_v5 = vld [vmem:[#allocation128_spill] sm:$0xff] }
 0x259   : > { %9356 = vrot.lane.b32.xlu1 %v16739_v4, %s10451_s12  ;;  %v3390_v50 = vcombine.low %v2671_v25, %v2679_v54  ;;  %v2341_v49 = vsel %vm2330_vm9, %v2286_v53, %v9063_v59  ;;  %v2343_v17 = vsel %vm2330_vm9, %v2288_v52, %v9064_v42  ;;  %v3387_v38 = vrot.slane %v3373_v40, %v16695_v2  ;;  %v16742_v53 = vld [vmem:[#allocation118_spill] sm:$0xff]  ;;  %v16747_v54 = vld [vmem:[#allocation95_spill] sm:$0xff] }
 0x25a   : > { %9351 = vrot.lane.b32.xlu0 %v16741_v13, %s10455_s19  ;;  %v13415_v46 = vcombine.low %v2687_v48, %v2686_v11  ;;  %v9079_v47 = vunpack.i.h.bf16 %v9077_v7  ;;  %v9078_v37 = vunpack.i.l.bf16 %v9077_v7  ;;  %v3380_v19 = vrot.slane %v13341_v29, %v16695_v2  ;;  %v16746_v29 = vld [vmem:[#allocation108_spill] sm:$0xff]  ;;  %v9087_v42 = vpop.permute.xlu1 %9086  ;;  %v9082_v13 = vpop.permute.xlu0 %9081 }
 0x25b   : > { %v9074_v58 = vunpack.i.h.bf16 %v9072_v44  ;;  %v9073_v35 = vunpack.i.l.bf16 %v9072_v44  ;;  %v2396_v12 = vsel %vm2385_vm10, %v2341_v49, %v9068_v9  ;;  %v2398_v55 = vsel %vm2385_vm10, %v2343_v17, %v9069_v41 }
 0x25c   : > { %v16744_v16 = vpack.i.bf16 %v16742_v53, %v16743_v10  ;;  %v2287_v40 = vsel %vm2275_vm8, %v12984_v26, %v9078_v37  ;;  %v2289_v52 = vsel %vm2275_vm8, %v16745_v5, %v9079_v47  ;;  %v2688_v25 = vcombine.high %v2686_v11, %v2686_v11  ;;  %v16749_v47 = vld [vmem:[#allocation168_spill] sm:$0xff] }
 0x25d   : > { %v3388_v20 = vcombine.low %v3380_v19, %v3387_v38  ;;  %v16748_v3 = vpack.i.bf16 %v16746_v29, %v16747_v54  ;;  %v2451_v41 = vsel %vm2440_vm11, %v2396_v12, %v9073_v35  ;;  %v2453_v9 = vsel %vm2440_vm11, %v2398_v55, %v9074_v58  ;;  %v16751_v58 = vld [vmem:[#allocation165_spill] sm:$0xff] }
 0x25e   : > { %9366 = vrot.lane.b32.xlu1 %v16744_v16, %s10453_s16  ;;  %v3397_v59 = vrot.slane %v13382_v62, %v16695_v2  ;;  %v3404_v26 = vrot.slane %v3390_v50, %v16695_v2  ;;  %v2689_v15 = vcombine.high %v2451_v41, %v2451_v41  ;;  %v2696_v4 = vrot.slane %v2451_v41, %v16695_v2  ;;  %v9097_v53 = vpop.permute.xlu1 %9096 }
 0x25f   : > { %9361 = vrot.lane.b32.xlu0 %v16748_v3, %s10454_s21  ;;  %v2713_v11 = vcombine.high %v2453_v9, %v2453_v9  ;;  %v2720_v48 = vrot.slane %v2453_v9, %v16695_v2  ;;  %v4018_v49 = vpack.c.bf16 %v3388_v20, %v3371_v27  ;;  %v9089_v17 = vunpack.i.h.bf16 %v9087_v42  ;;  %v9092_v20 = vpop.permute.xlu0 %9091  ;;  %v16754_v9 = vld [vmem:[#allocation103_spill] sm:$0xff] }
 0x260   : > { %v9088_v7 = vunpack.i.l.bf16 %v9087_v42  ;;  %v9084_v38 = vunpack.i.h.bf16 %v9082_v13  ;;  %v16750_v37 = vpack.i.bf16 %v16749_v47, %v16740_v61  ;;  %v2703_v62 = vrot.slane %v2689_v15, %v16695_v2 }
 0x261   : > { %v2704_v44 = vcombine.high %v2696_v4, %v2696_v4  ;;  %v2727_v50 = vrot.slane %v2713_v11, %v16695_v2  ;;  %v2728_v19 = vcombine.high %v2720_v48, %v2720_v48  ;;  %v16752_v35 = vpack.i.bf16 %v16751_v58, %v16749_v47  ;;  %8143 = vmatmul.mubr.msk.bf16.gmra.mrb[8].mxu0 %vm4064_vm12, %v4018_v49 }
 0x262   : > { %9376 = vrot.lane.b32.xlu1 %v16750_v37, %s10451_s12  ;;  %v3407_v27 = vcombine.low %v2688_v25, %v2696_v4  ;;  %v9083_v12 = vunpack.i.l.bf16 %v9082_v13  ;;  %v2344_v55 = vsel %vm2330_vm9, %v2289_v52, %v9084_v38  ;;  %v3414_v61 = vrot.slane %v13415_v46, %v16695_v2  ;;  %8146 = vmatprep.mubr.msk.bf16.mxu0 %vm10456_vm5, %v16726_v14  ;;  %v16753_v52 = vld [vmem:[#allocation119_spill] sm:$0xff]  ;;  %v9107_v47 = vpop.permute.xlu1 %9106 }
 0x263   : > { %9371 = vrot.lane.b32.xlu0 %v16752_v35, %s10455_s19  ;;  %v2729_v10 = vcombine.high %v2727_v50, %v2727_v50  ;;  %v13454_v16 = vcombine.low %v2704_v44, %v2703_v62  ;;  %v9099_v5 = vunpack.i.h.bf16 %v9097_v53  ;;  %v3405_v29 = vcombine.low %v3397_v59, %v3404_v26  ;;  %v16756_v59 = vld [vmem:[#allocation109_spill] sm:$0xff]  ;;  %v16757_v26 = vld [vmem:[#allocation98_spill] sm:$0xff] }
 0x264   : > { %v2342_v25 = vsel %vm2330_vm9, %v2287_v40, %v9083_v12  ;;  %v9098_v54 = vunpack.i.l.bf16 %v9097_v53  ;;  %v9094_v3 = vunpack.i.h.bf16 %v9092_v20  ;;  %v9093_v41 = vunpack.i.l.bf16 %v9092_v20  ;;  %v16761_v20 = vld [vmem:[#allocation166_spill] sm:$0xff] }
 0x265   : > { %v16755_v42 = vpack.i.bf16 %v16753_v52, %v16754_v9  ;;  %v13463_v46 = vcombine.low %v2720_v48, %v2728_v19  ;;  %v13465_v15 = vcombine.low %v2727_v50, %v2729_v10  ;;  %v2397_v4 = vsel %vm2385_vm10, %v2342_v25, %v9088_v7  ;;  %v9102_v50 = vpop.permute.xlu0 %9101 }
 0x266   : > { %v2399_v11 = vsel %vm2385_vm10, %v2344_v55, %v9089_v17  ;;  %v16758_v40 = vpack.i.bf16 %v16756_v59, %v16757_v26  ;;  %v2290_v13 = vsel %vm2275_vm8, %v13010_v8, %v9099_v5  ;;  %v2291_v49 = vsel %vm2275_vm8, %v13031_v18, %v9098_v54  ;;  %v16759_v8 = vld [vmem:[#allocation164_spill] sm:$0xff]  ;;  %v9117_v52 = vpop.permute.xlu1 %9116 }
 0x267   : > { %9386 = vrot.lane.b32.xlu1 %v16755_v42, %s10453_s16  ;;  %v2452_v48 = vsel %vm2440_vm11, %v2397_v4, %v9093_v41  ;;  %v2454_v38 = vsel %vm2440_vm11, %v2399_v11, %v9094_v3  ;;  %v2705_v37 = vcombine.high %v2703_v62, %v2703_v62  ;;  %v9109_v19 = vunpack.i.h.bf16 %v9107_v47 }
 0x268   : > { %9381 = vrot.lane.b32.xlu0 %v16758_v40, %s10454_s21  ;;  %v2712_v7 = vrot.slane %v2452_v48, %v16695_v2  ;;  %v2730_v17 = vcombine.high %v2454_v38, %v2454_v38  ;;  %v2737_v44 = vrot.slane %v2454_v38, %v16695_v2  ;;  %v9104_v35 = vunpack.i.h.bf16 %v9102_v50 }
 0x269   : > { %v9103_v12 = vunpack.i.l.bf16 %v9102_v50  ;;  %v16760_v55 = vpack.i.bf16 %v16751_v58, %v16759_v8  ;;  %v3421_v18 = vrot.slane %v3407_v27, %v16695_v2  ;;  %v9108_v5 = vunpack.i.l.bf16 %v9107_v47  ;;  %v9112_v4 = vpop.permute.xlu0 %9111  ;;  %v16764_v47 = vld [vmem:[#allocation106_spill] sm:$0xff] }
 0x26a   : > { %v2744_v53 = vrot.slane %v2730_v17, %v16695_v2  ;;  %v2745_v10 = vcombine.high %v2737_v44, %v2737_v44  ;;  %v3424_v62 = vcombine.low %v2705_v37, %v2712_v7  ;;  %v16762_v25 = vpack.i.bf16 %v16761_v20, %v16759_v8  ;;  %v9127_v17 = vpop.permute.xlu1 %9126 }
 0x26b   : > { %9396 = vrot.lane.b32.xlu1 %v16760_v55, %s10451_s12  ;;  %v2345_v54 = vsel %vm2330_vm9, %v2290_v13, %v9104_v35  ;;  %v2346_v3 = vsel %vm2330_vm9, %v2291_v49, %v9103_v12  ;;  %v3422_v41 = vcombine.low %v3414_v61, %v3421_v18  ;;  %v3431_v58 = vrot.slane %v13454_v16, %v16695_v2  ;;  %v16763_v13 = vld [vmem:[#allocation121_spill] sm:$0xff] }
 0x26c   : > { %9391 = vrot.lane.b32.xlu0 %v16762_v25, %s10455_s19  ;;  %v2746_v27 = vcombine.high %v2744_v53, %v2744_v53  ;;  %v9119_v9 = vunpack.i.h.bf16 %v9117_v52  ;;  %v9118_v42 = vunpack.i.l.bf16 %v9117_v52  ;;  %v3448_v11 = vrot.slane %v13463_v46, %v16695_v2  ;;  %v16765_v46 = vld [vmem:[#allocation104_spill] sm:$0xff] }
 0x26d   : > { %v13497_v59 = vcombine.low %v2737_v44, %v2745_v10  ;;  %v4019_v26 = vpack.c.bf16 %v3422_v41, %v3405_v29  ;;  %v9114_v40 = vunpack.i.h.bf16 %v9112_v4  ;;  %v9113_v48 = vunpack.i.l.bf16 %v9112_v4  ;;  %v9122_v8 = vpop.permute.xlu0 %9121  ;;  %v16767_v10 = vld [vmem:[#allocation161_spill] sm:$0xff] }
 0x26e   : > { %v13501_v61 = vcombine.low %v2744_v53, %v2746_v27  ;;  %v2292_v16 = vsel %vm2275_vm8, %v12999_v63, %v9118_v42  ;;  %v2400_v49 = vsel %vm2385_vm10, %v2345_v54, %v9109_v19  ;;  %v2401_v38 = vsel %vm2385_vm10, %v2346_v3, %v9108_v5  ;;  %v16769_v54 = vld [vmem:[#allocation172_spill] sm:$0xff] }
 0x26f   : > { %9406 = vrot.lane.b32.xlu1 %v16763_v13, %s10453_s16  ;;  %v16766_v37 = vpack.i.bf16 %v16764_v47, %v16765_v46  ;;  %8147 = vmatmul.mubr.msk.bf16.gmra.mrb[12].mxu0 %vm4064_vm12, %v4019_v26  ;;  %v2455_v29 = vsel %vm2440_vm11, %v2400_v49, %v9114_v40  ;;  %v2456_v7 = vsel %vm2440_vm11, %v2401_v38, %v9113_v48  ;;  %v9128_v55 = vunpack.i.l.bf16 %v9127_v17 }
 0x270   : > { %v3438_v44 = vrot.slane %v3424_v62, %v16695_v2  ;;  %v3455_v63 = vrot.slane %v13465_v15, %v16695_v2  ;;  %v2294_v50 = vsel %vm2275_vm8, %v13053_v24, %v9119_v9  ;;  %v2753_v19 = vrot.slane %v2455_v29, %v16695_v2  ;;  %8150 = vmatprep.mubr.msk.bf16.mxu0 %vm10456_vm5, %v16726_v14  ;;  %v9137_v9 = vpop.permute.xlu1 %9136  ;;  %v16772_v29 = vld [vmem:[#allocation107_spill] sm:$0xff] }
 0x271   : > { %9401 = vrot.lane.b32.xlu0 %v16766_v37, %s10454_s21  ;;  %v2754_v35 = vcombine.high %v2456_v7, %v2456_v7  ;;  %v2761_v12 = vrot.slane %v2456_v7, %v16695_v2  ;;  %v9124_v18 = vunpack.i.h.bf16 %v9122_v8  ;;  %v9123_v53 = vunpack.i.l.bf16 %v9122_v8  ;;  %v9132_v40 = vpop.permute.xlu0 %9131  ;;  %v16771_v37 = vld [vmem:[#allocation114_spill] sm:$0xff] }
 0x272   : > { %v16768_v62 = vpack.i.bf16 %v16767_v10, %v16761_v20  ;;  %v3439_v15 = vcombine.low %v3431_v58, %v3438_v44  ;;  %v9129_v25 = vunpack.i.h.bf16 %v9127_v17  ;;  %v3456_v3 = vcombine.low %v3448_v11, %v3455_v63  ;;  %v16770_v11 = vld [vmem:[#allocation123_spill] sm:$0xff]  ;;  %v16774_v10 = vld [vmem:[#allocation122_spill] sm:$0xff] }
 0x273   : > { %v2768_v24 = vrot.slane %v2754_v35, %v16695_v2  ;;  %v2769_v5 = vcombine.high %v2761_v12, %v2761_v12  ;;  %v3474_v41 = vcombine.low %v2753_v19, %v2761_v12  ;;  %v2347_v52 = vsel %vm2330_vm9, %v2292_v16, %v9123_v53 }
 0x274   : > { %9416 = vrot.lane.b32.xlu1 %v16768_v62, %s10451_s12  ;;  %v2349_v27 = vsel %vm2330_vm9, %v2294_v50, %v9124_v18  ;;  %v3465_v42 = vrot.slane %v13497_v59, %v16695_v2  ;;  %v4020_v4 = vpack.c.bf16 %v3456_v3, %v3439_v15  ;;  %v9139_v58 = vunpack.i.h.bf16 %v9137_v9  ;;  %v9147_v44 = vpop.permute.xlu1 %9146  ;;  %v16775_v62 = vld [vmem:[#allocation117_spill] sm:$0xff]  ;;  %v16777_v3 = vld [vmem:[#allocation171_spill] sm:$0xff] }
 0x275   : > { %9411 = vrot.lane.b32.xlu0 %v16769_v54, %s10455_s19  ;;  %v3475_v20 = vcombine.low %v2769_v5, %v2768_v24  ;;  %v9138_v26 = vunpack.i.l.bf16 %v9137_v9  ;;  %v9134_v48 = vunpack.i.h.bf16 %v9132_v40  ;;  %v9133_v13 = vunpack.i.l.bf16 %v9132_v40  ;;  %v9142_v12 = vpop.permute.xlu0 %9141 }
 0x276   : > { %v2402_v49 = vsel %vm2385_vm10, %v2347_v52, %v9128_v55  ;;  %v3472_v16 = vrot.slane %v13501_v61, %v16695_v2  ;;  %v2295_v59 = vsel %vm2275_vm8, %v13057_v57, %v9139_v58  ;;  %v2404_v47 = vsel %vm2385_vm10, %v2349_v27, %v9129_v25 }
 0x277   : > { %v2293_v38 = vsel %vm2275_vm8, %v13003_v22, %v9138_v26  ;;  %v2770_v46 = vcombine.high %v2768_v24, %v2768_v24  ;;  %v16773_v7 = vpack.i.bf16 %v16771_v37, %v16772_v29  ;;  %8151 = vmatmul.mubr.msk.bf16.gmra.mrb[16].mxu0 %vm4064_vm12, %v4020_v4  ;;  %v2457_v17 = vsel %vm2440_vm11, %v2402_v49, %v9133_v13  ;;  %v16779_v29 = vld [vmem:[#allocation180_spill] sm:$0xff] }
 0x278   : > { %9426 = vrot.lane.b32.xlu1 %v16770_v11, %s10453_s16  ;;  %v2459_v61 = vsel %vm2440_vm11, %v2404_v47, %v9134_v48  ;;  %v3482_v22 = vrot.slane %v3474_v41, %v16695_v2  ;;  %v3489_v63 = vrot.slane %v3475_v20, %v16695_v2  ;;  %v2771_v57 = vcombine.high %v2457_v17, %v2457_v17  ;;  %v16778_v41 = vld [vmem:[#allocation35_spill] sm:$0xff]  ;;  %v9157_v20 = vpop.permute.xlu1 %9156 }
 0x279   : > { %9421 = vrot.lane.b32.xlu0 %v16773_v7, %s10454_s21  ;;  %v2778_v50 = vrot.slane %v2457_v17, %v16695_v2  ;;  %v2795_v19 = vcombine.high %v2459_v61, %v2459_v61  ;;  %v2802_v35 = vrot.slane %v2459_v61, %v16695_v2  ;;  %8154 = vmatprep.mubr.msk.bf16.mxu0 %vm10456_vm5, %v16726_v14  ;;  %v9149_v8 = vunpack.i.h.bf16 %v9147_v44  ;;  %v9152_v48 = vpop.permute.xlu0 %9151  ;;  %v16780_v7 = vld [vmem:[#allocation177_spill] sm:$0xff] }
 0x27a   : > { %v9148_v55 = vunpack.i.l.bf16 %v9147_v44  ;;  %v9144_v18 = vunpack.i.h.bf16 %v9142_v12  ;;  %v9143_v53 = vunpack.i.l.bf16 %v9142_v12  ;;  %v16776_v15 = vpack.i.bf16 %v16774_v10, %v16775_v62  ;;  %v16783_v44 = vld [vmem:[#allocation170_spill] sm:$0xff] }
 0x27b   : > { %v2785_v24 = vrot.slane %v2771_v57, %v16695_v2  ;;  %v2786_v5 = vcombine.high %v2778_v50, %v2778_v50  ;;  %v2809_v25 = vrot.slane %v2795_v19, %v16695_v2  ;;  %v2810_v54 = vcombine.high %v2802_v35, %v2802_v35 }
 0x27c   : > { %9436 = vrot.lane.b32.xlu1 %v16776_v15, %s10450_s22  ;;  %v13569_v52 = vsel %vm2220_vm7, %v16778_v41, %v8943_v30  ;;  %v2348_v27 = vsel %vm2330_vm9, %v2293_v38, %v9143_v53  ;;  %v2350_v9 = vsel %vm2330_vm9, %v2295_v59, %v9144_v18  ;;  %v3490_v4 = vcombine.low %v3482_v22, %v3489_v63 }
 0x27d   : > { %9431 = vrot.lane.b32.xlu0 %v16777_v3, %s10455_s19  ;;  %v2811_v58 = vcombine.high %v2809_v25, %v2809_v25  ;;  %v3491_v26 = vcombine.low %v2770_v46, %v2778_v50  ;;  %v9159_v40 = vunpack.i.h.bf16 %v9157_v20  ;;  %v3473_v13 = vcombine.low %v3465_v42, %v3472_v16  ;;  %v16782_v46 = vld [vmem:[#allocation169_spill] sm:$0xff]  ;;  %v9167_v50 = vpop.permute.xlu1 %9166 }
 0x27e   : > { %v3492_v49 = vcombine.low %v2786_v5, %v2785_v24  ;;  %v9158_v11 = vunpack.i.l.bf16 %v9157_v20  ;;  %v9154_v47 = vunpack.i.h.bf16 %v9152_v48  ;;  %v9153_v37 = vunpack.i.l.bf16 %v9152_v48 }
 0x27f   : > { %v16781_v30 = vpack.i.bf16 %v16779_v29, %v16780_v7  ;;  %v3509_v17 = vcombine.low %v2802_v35, %v2810_v54  ;;  %v13577_v38 = vcombine.low %v2809_v25, %v2811_v58  ;;  %v2403_v59 = vsel %vm2385_vm10, %v2348_v27, %v9148_v55  ;;  %v9162_v55 = vpop.permute.xlu0 %9161 }
 0x280   : > { %v2405_v61 = vsel %vm2385_vm10, %v2350_v9, %v9149_v8  ;;  %v16784_v42 = vpack.i.bf16 %v16782_v46, %v16783_v44  ;;  %v2297_v16 = vsel %vm2275_vm8, %v13044_v60, %v9159_v40  ;;  %v2458_v22 = vsel %vm2440_vm11, %v2403_v59, %v9153_v37 }
 0x281   : > { %9446 = vrot.lane.b32.xlu1 %v16781_v30, %s10454_s21  ;;  %v2460_v63 = vsel %vm2440_vm11, %v2405_v61, %v9154_v47  ;;  %v4021_v57 = vpack.c.bf16 %v3490_v4, %v3473_v13  ;;  %v2787_v19 = vcombine.high %v2785_v24, %v2785_v24  ;;  %v2794_v35 = vrot.slane %v2458_v22, %v16695_v2  ;;  %v9177_v3 = vpop.permute.xlu1 %9176 }
 0x282   : > { %9441 = vrot.lane.b32.xlu0 %v16784_v42, %s10451_s12  ;;  %v2812_v12 = vcombine.high %v2460_v63, %v2460_v63  ;;  %v2819_v8 = vrot.slane %v2460_v63, %v16695_v2  ;;  %v2296_v18 = vsel %vm2275_vm8, %v13035_v56, %v9158_v11  ;;  %v9168_v53 = vunpack.i.l.bf16 %v9167_v50 }
 0x283   : > { %8155 = vmatmul.mubr.msk.bf16.gmra.mrb[20].mxu0 %vm4064_vm12, %v4021_v57  ;;  %v9164_v60 = vunpack.i.h.bf16 %v9162_v55  ;;  %v9163_v10 = vunpack.i.l.bf16 %v9162_v55  ;;  %v9169_v24 = vunpack.i.h.bf16 %v9167_v50  ;;  %v3499_v56 = vrot.slane %v3491_v26, %v16695_v2  ;;  %v9172_v4 = vpop.permute.xlu0 %9171  ;;  %v16789_v55 = vld [vmem:[#allocation40_spill] sm:$0xff] }
 0x284   : > { %v2826_v62 = vrot.slane %v2812_v12, %v16695_v2  ;;  %v2827_v15 = vcombine.high %v2819_v8, %v2819_v8  ;;  %8158 = vmatprep.mubr.msk.bf16.mxu0 %vm10456_vm5, %v16726_v14  ;;  %v3508_v5 = vcombine.low %v2787_v19, %v2794_v35  ;;  %v3506_v41 = vrot.slane %v3492_v49, %v16695_v2  ;;  %v16786_v19 = vld [vmem:[#allocation191_spill] sm:$0xff] }
 0x285   : > { %9456 = vrot.lane.b32.xlu1 %v12988_v45, %s10455_s19  ;;  %v2351_v25 = vsel %vm2330_vm9, %v2296_v18, %v9163_v10  ;;  %v2352_v54 = vsel %vm2330_vm9, %v2297_v16, %v9164_v60  ;;  %v9179_v9 = vunpack.i.h.bf16 %v9177_v3  ;;  %v9178_v20 = vunpack.i.l.bf16 %v9177_v3  ;;  %v9187_v30 = vpop.permute.xlu1 %9186  ;;  %v16787_v35 = vld [vmem:[#allocation67_spill] sm:$0xff] }
 0x286   : > { %9451 = vrot.lane.b32.xlu0 %v12995_v1, %s10453_s16  ;;  %v2828_v27 = vcombine.high %v2826_v62, %v2826_v62  ;;  %v3523_v58 = vrot.slane %v3509_v17, %v16695_v2  ;;  %v3526_v40 = vcombine.low %v2819_v8, %v2827_v15  ;;  %v9174_v48 = vunpack.i.h.bf16 %v9172_v4 }
 0x287   : > { %v9173_v13 = vunpack.i.l.bf16 %v9172_v4  ;;  %v2406_v11 = vsel %vm2385_vm10, %v2351_v25, %v9168_v53  ;;  %v2298_v47 = vsel %vm2275_vm8, %v13074_v28, %v9178_v20  ;;  %v2299_v49 = vsel %vm2275_vm8, %v13081_v6, %v9179_v9  ;;  %v9182_v6 = vpop.permute.xlu0 %9181  ;;  %v16793_v4 = vld [vmem:[#allocation179_spill] sm:$0xff] }
 0x288   : > { %v3542_v26 = vcombine.low %v2826_v62, %v2828_v27  ;;  %v2407_v37 = vsel %vm2385_vm10, %v2352_v54, %v9169_v24  ;;  %v3507_v17 = vcombine.low %v3499_v56, %v3506_v41  ;;  %v9189_v46 = vunpack.i.h.bf16 %v9187_v30  ;;  %v16791_v27 = vld [vmem:[#allocation120_spill] sm:$0xff] }
 0x289   : > { %9466 = vrot.lane.b32.xlu1 %v12988_v45, %s10451_s12  ;;  %v2461_v29 = vsel %vm2440_vm11, %v2406_v11, %v9173_v13  ;;  %v2462_v7 = vsel %vm2440_vm11, %v2407_v37, %v9174_v48  ;;  %v3516_v45 = vrot.slane %v3508_v5, %v16695_v2  ;;  %v9188_v44 = vunpack.i.l.bf16 %v9187_v30  ;;  %v9197_v60 = vpop.permute.xlu1 %9196 }
 0x28a   : > { %9461 = vrot.lane.b32.xlu0 %v12995_v1, %s10450_s22  ;;  %v2835_v59 = vrot.slane %v2461_v29, %v16695_v2  ;;  %v2836_v61 = vcombine.high %v2462_v7, %v2462_v7  ;;  %v2843_v28 = vrot.slane %v2462_v7, %v16695_v2  ;;  %v9184_v42 = vunpack.i.h.bf16 %v9182_v6 }
 0x28b   : > { %v9183_v16 = vunpack.i.l.bf16 %v9182_v6  ;;  %v16785_v1 = vpack.i.bf16 %v13027_v36, %v13017_v51  ;;  %v3524_v22 = vcombine.low %v3516_v45, %v3523_v58  ;;  %v16788_v12 = vpack.i.bf16 %v16786_v19, %v16787_v35  ;;  %v9192_v15 = vpop.permute.xlu0 %9191 }
 0x28c   : > { %v2850_v63 = vrot.slane %v2836_v61, %v16695_v2  ;;  %v2851_v57 = vcombine.high %v2843_v28, %v2843_v28  ;;  %v3543_v50 = vcombine.low %v2835_v59, %v2843_v28  ;;  %v3540_v8 = vrot.slane %v3526_v40, %v16695_v2  ;;  %v16794_v40 = vld [vmem:[#allocation132_spill] sm:$0xff] }
 0x28d   : > { %9476 = vrot.lane.b32.xlu1 %v16785_v1, %s10453_s16  ;;  %v13635_v18 = vsel %vm2220_vm7, %v16789_v55, %v8944_v0  ;;  %v2353_v51 = vsel %vm2330_vm9, %v2298_v47, %v9183_v16  ;;  %v2354_v36 = vsel %vm2330_vm9, %v2299_v49, %v9184_v42  ;;  %v4022_v53 = vpack.c.bf16 %v3524_v22, %v3507_v17  ;;  %v9207_v48 = vpop.permute.xlu1 %9206  ;;  %v16795_v17 = vld [vmem:[#allocation181_spill] sm:$0xff] }
 0x28e   : > { %9471 = vrot.lane.b32.xlu0 %v16788_v12, %s10454_s21  ;;  %v9199_v10 = vunpack.i.h.bf16 %v9197_v60  ;;  %v9198_v62 = vunpack.i.l.bf16 %v9197_v60  ;;  %v3533_v24 = vrot.slane %v13577_v38, %v16695_v2  ;;  %v3550_v56 = vrot.slane %v3542_v26, %v16695_v2  ;;  %v16800_v60 = vld [vmem:[#allocation182_spill] sm:$0xff] }
 0x28f   : > { %v13642_v5 = vcombine.low %v2851_v57, %v2850_v63  ;;  %8159 = vmatmul.mubr.msk.bf16.gmra.mrb[24].mxu0 %vm4064_vm12, %v4022_v53  ;;  %v9194_v33 = vunpack.i.h.bf16 %v9192_v15  ;;  %v9193_v0 = vunpack.i.l.bf16 %v9192_v15  ;;  %v2408_v25 = vsel %vm2385_vm10, %v2353_v51, %v9188_v44  ;;  %v9202_v49 = vpop.permute.xlu0 %9201  ;;  %v16799_v51 = vld [vmem:[#allocation21_spill] sm:$0xff] }
 0x290   : > { %v16790_v54 = vpack.i.bf16 %v13099_v21, %v13096_v34  ;;  %v8954_v3 = vunpack.i.h.bf16 %v13119_v31  ;;  %v2409_v41 = vsel %vm2385_vm10, %v2354_v36, %v9189_v46  ;;  %v2852_v38 = vcombine.high %v2850_v63, %v2850_v63  ;;  %8162 = vmatprep.mubr.msk.bf16.mxu0 %vm10456_vm5, %v16726_v14  ;;  %v16797_v46 = vld [vmem:[#allocation167_spill] sm:$0xff] }
 0x291   : > { %v16792_v9 = vpack.i.bf16 %v12926_v43, %v16791_v27  ;;  %v3541_v20 = vcombine.low %v3533_v24, %v3540_v8  ;;  %v2300_v58 = vsel %vm2275_vm8, %v16793_v4, %v9198_v62  ;;  %v2301_v34 = vsel %vm2275_vm8, %v16794_v40, %v9199_v10  ;;  %v9217_v22 = vpop.permute.xlu1 %9216  ;;  %v16801_v62 = vld [vmem:[#allocation130_spill] sm:$0xff]  ;;  %v16802_v24 = vld [vmem:[#allocation52_spill] sm:$0xff] }
 0x292   : > { %9486 = vrot.lane.b32.xlu1 %v16790_v54, %s10455_s19  ;;  %v2463_v21 = vsel %vm2440_vm11, %v2408_v25, %v9193_v0  ;;  %v3557_v13 = vrot.slane %v3543_v50, %v16695_v2  ;;  %v2464_v11 = vsel %vm2440_vm11, %v2409_v41, %v9194_v33  ;;  %v9209_v47 = vunpack.i.h.bf16 %v9207_v48 }
 0x293   : > { %9481 = vrot.lane.b32.xlu0 %v16792_v9, %s10450_s22  ;;  %v2853_v26 = vcombine.high %v2463_v21, %v2463_v21  ;;  %v2860_v43 = vrot.slane %v2463_v21, %v16695_v2  ;;  %v9208_v37 = vunpack.i.l.bf16 %v9207_v48  ;;  %v9204_v29 = vunpack.i.h.bf16 %v9202_v49  ;;  %v9212_v35 = vpop.permute.xlu0 %9211 }
 0x294   : > { %v9203_v7 = vunpack.i.l.bf16 %v9202_v49  ;;  %v3558_v30 = vcombine.low %v3550_v56, %v3557_v13  ;;  %v16796_v45 = vpack.i.bf16 %v12945_v39, %v16795_v17  ;;  %v16798_v6 = vpack.i.bf16 %v12916_v23, %v16797_v46 }
 0x295   : > { %v2867_v59 = vrot.slane %v2853_v26, %v16695_v2  ;;  %v2868_v61 = vcombine.high %v2860_v43, %v2860_v43  ;;  %v3560_v28 = vcombine.low %v2852_v38, %v2860_v43  ;;  %v3567_v44 = vrot.slane %v13642_v5, %v16695_v2  ;;  %v9227_v33 = vpop.permute.xlu1 %9226 }
 0x296   : > { %9496 = vrot.lane.b32.xlu1 %v16796_v45, %s10454_s21  ;;  %v2876_v42 = vrot.slane %v2464_v11, %v16695_v2  ;;  %v2355_v16 = vsel %vm2330_vm9, %v2300_v58, %v9203_v7  ;;  %v2356_v1 = vsel %vm2330_vm9, %v2301_v34, %v9204_v29  ;;  %v4023_v39 = vpack.c.bf16 %v3558_v30, %v3541_v20 }
 0x297   : > { %9491 = vrot.lane.b32.xlu0 %v16798_v6, %s10451_s12  ;;  %v2869_v63 = vcombine.high %v2867_v59, %v2867_v59  ;;  %v13680_v57 = vcombine.low %v2868_v61, %v2867_v59  ;;  %v9219_v50 = vunpack.i.h.bf16 %v9217_v22  ;;  %v9218_v19 = vunpack.i.l.bf16 %v9217_v22  ;;  %v9222_v9 = vpop.permute.xlu0 %9221 }
 0x298   : > { %8163 = vmatmul.mubr.msk.bf16.gmra.mrb[28].mxu0 %vm4064_vm12, %v4023_v39  ;;  %v9214_v23 = vunpack.i.h.bf16 %v9212_v35  ;;  %v9213_v12 = vunpack.i.l.bf16 %v9212_v35  ;;  %v2410_v8 = vsel %vm2385_vm10, %v2355_v16, %v9208_v37  ;;  %v2411_v55 = vsel %vm2385_vm10, %v2356_v1, %v9209_v47  ;;  %v16803_v1 = vld [vmem:[#allocation190_spill] sm:$0xff]  ;;  %v16804_v39 = vld [vmem:[#allocation49_spill] sm:$0xff] }
 0x299   : > { %v8953_v36 = vunpack.i.l.bf16 %v13119_v31  ;;  %v3577_v53 = vcombine.low %v2869_v63, %v2876_v42  ;;  %v2303_v10 = vsel %vm2275_vm8, %v16800_v60, %v9218_v19  ;;  %v2304_v15 = vsel %vm2275_vm8, %v16801_v62, %v9219_v50  ;;  %8166 = vmatprep.mubr.msk.bf16.mxu0 %vm10456_vm5, %v16726_v14  ;;  %v9237_v43 = vpop.permute.xlu1 %9236 }
 0x29a   : > { %9506 = vrot.lane.b32.xlu1 %v16799_v51, %s10455_s19  ;;  %v2465_v56 = vsel %vm2440_vm11, %v2410_v8, %v9213_v12  ;;  %v2466_v5 = vsel %vm2440_vm11, %v2411_v55, %v9214_v23  ;;  %v3574_v0 = vrot.slane %v3560_v28, %v16695_v2  ;;  %v3584_v25 = vrot.slane %v13680_v57, %v16695_v2 }
 0x29b   : > { %9501 = vrot.lane.b32.xlu0 %v16802_v24, %s10453_s16  ;;  %v2877_v54 = vcombine.high %v2465_v56, %v2465_v56  ;;  %v2884_v41 = vrot.slane %v2465_v56, %v16695_v2  ;;  %v2894_v38 = vcombine.high %v2466_v5, %v2466_v5  ;;  %v2901_v27 = vrot.slane %v2466_v5, %v16695_v2  ;;  %v9232_v17 = vpop.permute.xlu0 %9231  ;;  %s15536_s16 = scalar_lea.hbm %s15594_s7, %s8016_s8 }
 0x29c   : > { %v9229_v20 = vunpack.i.h.bf16 %v9227_v33  ;;  %v9228_v4 = vunpack.i.l.bf16 %v9227_v33  ;;  %v9224_v58 = vunpack.i.h.bf16 %v9222_v9  ;;  %v9223_v40 = vunpack.i.l.bf16 %v9222_v9 }
 0x29d   : > { %v2891_v34 = vrot.slane %v2877_v54, %v16695_v2  ;;  %v2892_v21 = vcombine.high %v2884_v41, %v2884_v41  ;;  %v2908_v48 = vrot.slane %v2894_v38, %v16695_v2  ;;  %v2909_v13 = vcombine.high %v2901_v27, %v2901_v27  ;;  %v9247_v50 = vpop.permute.xlu1 %9246 }
 0x29e   : > { %v2358_v11 = vsel %vm2330_vm9, %v2303_v10, %v9223_v40  ;;  %v2359_v26 = vsel %vm2330_vm9, %v2304_v15, %v9224_v58  ;;  %v3575_v47 = vcombine.low %v3567_v44, %v3574_v0  ;;  %v3591_v49 = vrot.slane %v3577_v53, %v16695_v2 }
 0x29f   : > { %v2893_v37 = vcombine.high %v2891_v34, %v2891_v34  ;;  %v2910_v29 = vcombine.high %v2908_v48, %v2908_v48  ;;  %v3593_v7 = vcombine.low %v2884_v41, %v2892_v21  ;;  %v13708_v30 = vcombine.low %v2901_v27, %v2909_v13  ;;  %v9242_v8 = vpop.permute.xlu0 %9241  ;;  %v16805_v21 = vld [vmem:[#allocation138_spill] sm:$0xff] }
 0x2a0   : > { %v9239_v45 = vunpack.i.h.bf16 %v9237_v43  ;;  %v9238_v59 = vunpack.i.l.bf16 %v9237_v43  ;;  %v9234_v61 = vunpack.i.h.bf16 %v9232_v17  ;;  %v9233_v28 = vunpack.i.l.bf16 %v9232_v17 }
 0x2a1   : > { %v3594_v46 = vcombine.low %v2891_v34, %v2893_v37  ;;  %v3611_v6 = vcombine.low %v2908_v48, %v2910_v29  ;;  %v2413_v42 = vsel %vm2385_vm10, %v2358_v11, %v9228_v4  ;;  %v2414_v16 = vsel %vm2385_vm10, %v2359_v26, %v9229_v20  ;;  %v9257_v0 = vpop.permute.xlu1 %9256  ;;  %v16806_v26 = vld [vmem:[#allocation183_spill] sm:$0xff] }
 0x2a2   : > { %v2302_v44 = vsel %vm2275_vm8, %v16803_v1, %v9238_v59  ;;  %v2306_v22 = vsel %vm2275_vm8, %v16804_v39, %v9239_v45  ;;  %v2468_v63 = vsel %vm2440_vm11, %v2413_v42, %v9233_v28  ;;  %v2469_v57 = vsel %vm2440_vm11, %v2414_v16, %v9234_v61 }
 0x2a3   : > { %v2918_v19 = vcombine.high %v2468_v63, %v2468_v63  ;;  %v2925_v35 = vrot.slane %v2468_v63, %v16695_v2  ;;  %v2935_v23 = vcombine.high %v2469_v57, %v2469_v57  ;;  %v2942_v12 = vrot.slane %v2469_v57, %v16695_v2  ;;  %v9252_v9 = vpop.permute.xlu0 %9251 }
 0x2a4   : > { %v3592_v55 = vcombine.low %v3584_v25, %v3591_v49  ;;  %v9249_v51 = vunpack.i.h.bf16 %v9247_v50  ;;  %v9248_v53 = vunpack.i.l.bf16 %v9247_v50  ;;  %v9244_v60 = vunpack.i.h.bf16 %v9242_v8 }
 0x2a5   : > { %v2932_v10 = vrot.slane %v2918_v19, %v16695_v2  ;;  %v2933_v62 = vcombine.high %v2925_v35, %v2925_v35  ;;  %v13722_v15 = vrot.slane %v2935_v23, %v16695_v2  ;;  %v2950_v24 = vcombine.high %v2942_v12, %v2942_v12  ;;  %v9267_v29 = vpop.permute.xlu1 %9266 }
 0x2a6   : > { %v4024_v56 = vpack.c.bf16 %v3592_v55, %v3575_v47  ;;  %v9243_v5 = vunpack.i.l.bf16 %v9242_v8  ;;  %v2361_v33 = vsel %vm2330_vm9, %v2306_v22, %v9244_v60  ;;  %v3601_v54 = vrot.slane %v3593_v7, %v16695_v2 }
 0x2a7   : > { %v2934_v41 = vcombine.high %v2932_v10, %v2932_v10  ;;  %v13726_v38 = vcombine.low %v2933_v62, %v2932_v10  ;;  %v13729_v25 = vcombine.low %v2950_v24, %v13722_v15  ;;  %v9259_v27 = vunpack.i.h.bf16 %v9257_v0  ;;  %v9262_v61 = vpop.permute.xlu0 %9261  ;;  %v16807_v62 = vld [vmem:[#allocation31_spill] sm:$0xff] }
 0x2a8   : > { %8167 = vmatmul.mubr.msk.bf16.gmra.mrb[32].mxu0 %vm4064_vm12, %v4024_v56  ;;  %v2357_v20 = vsel %vm2330_vm9, %v2302_v44, %v9243_v5  ;;  %v9258_v4 = vunpack.i.l.bf16 %v9257_v0  ;;  %v9254_v58 = vunpack.i.h.bf16 %v9252_v9  ;;  %v9253_v40 = vunpack.i.l.bf16 %v9252_v9  ;;  %v16808_v5 = vld [vmem:[#allocation20_spill] sm:$0xff] }
 0x2a9   : > { %v13733_v34 = vcombine.low %v2934_v41, %v2942_v12  ;;  %v2305_v48 = vsel %vm2275_vm8, %v16805_v21, %v9259_v27  ;;  %v2412_v13 = vsel %vm2385_vm10, %v2357_v20, %v9248_v53  ;;  %v2416_v11 = vsel %vm2385_vm10, %v2361_v33, %v9249_v51  ;;  %8170 = vmatprep.mubr.msk.bf16.mxu0 %vm10456_vm5, %v16726_v14  ;;  %v9277_v50 = vpop.permute.xlu1 %9276 }
 0x2aa   : > { %v2307_v43 = vsel %vm2275_vm8, %v16806_v26, %v9258_v4  ;;  %v2467_v47 = vsel %vm2440_vm11, %v2412_v13, %v9253_v40  ;;  %v2471_v49 = vsel %vm2440_vm11, %v2416_v11, %v9254_v58  ;;  %v3608_v37 = vrot.slane %v3594_v46, %v16695_v2 }
 0x2ab   : > { %v2917_v7 = vrot.slane %v2467_v47, %v16695_v2  ;;  %v2959_v17 = vcombine.high %v2471_v49, %v2471_v49  ;;  %v2966_v45 = vrot.slane %v2471_v49, %v16695_v2  ;;  %v3618_v59 = vrot.slane %v13708_v30, %v16695_v2  ;;  %v9272_v55 = vpop.permute.xlu0 %9271 }
 0x2ac   : > { %v3609_v28 = vcombine.low %v3601_v54, %v3608_v37  ;;  %v3625_v42 = vrot.slane %v3611_v6, %v16695_v2  ;;  %v9269_v16 = vunpack.i.h.bf16 %v9267_v29  ;;  %v9268_v1 = vunpack.i.l.bf16 %v9267_v29 }
 0x2ad   : > { %v2973_v44 = vrot.slane %v2959_v17, %v16695_v2  ;;  %v2974_v39 = vcombine.high %v2966_v45, %v2966_v45  ;;  %v3627_v22 = vcombine.low %v2917_v7, %v2925_v35  ;;  %v9264_v46 = vunpack.i.h.bf16 %v9262_v61  ;;  %v9287_v41 = vpop.permute.xlu1 %9286 }
 0x2ae   : > { %v3626_v63 = vcombine.low %v3618_v59, %v3625_v42  ;;  %v9263_v57 = vunpack.i.l.bf16 %v9262_v61  ;;  %v2951_v19 = vcombine.high %v13722_v15, %v13722_v15  ;;  %v3642_v30 = vrot.slane %v13726_v38, %v16695_v2 }
 0x2af   : > { %v2975_v23 = vcombine.high %v2973_v44, %v2973_v44  ;;  %v13756_v12 = vcombine.low %v2966_v45, %v2974_v39  ;;  %v2360_v6 = vsel %vm2330_vm9, %v2305_v48, %v9264_v46  ;;  %v9279_v8 = vunpack.i.h.bf16 %v9277_v50  ;;  %v9282_v58 = vpop.permute.xlu0 %9281  ;;  %v16810_v46 = vld [vmem:[#allocation39_spill] sm:$0xff] }
 0x2b0   : > { %v4025_v51 = vpack.c.bf16 %v3626_v63, %v3609_v28  ;;  %v2362_v35 = vsel %vm2330_vm9, %v2307_v43, %v9263_v57  ;;  %v9278_v53 = vunpack.i.l.bf16 %v9277_v50  ;;  %v9274_v60 = vunpack.i.h.bf16 %v9272_v55 }
 0x2b1   : > { %v13760_v10 = vcombine.low %v2973_v44, %v2975_v23  ;;  %v2308_v15 = vsel %vm2275_vm8, %v16807_v62, %v9279_v8  ;;  %v9273_v24 = vunpack.i.l.bf16 %v9272_v55  ;;  %v2415_v56 = vsel %vm2385_vm10, %v2360_v6, %v9269_v16  ;;  %v9297_v17 = vpop.permute.xlu1 %9296 }
 0x2b2   : > { %8171 = vmatmul.mubr.msk.bf16.gmra.mrb[36].mxu0 %vm4064_vm12, %v4025_v51  ;;  %v2309_v33 = vsel %vm2275_vm8, %v16808_v5, %v9278_v53  ;;  %v2417_v0 = vsel %vm2385_vm10, %v2362_v35, %v9268_v1  ;;  %v2470_v54 = vsel %vm2440_vm11, %v2415_v56, %v9274_v60  ;;  %v3635_v38 = vrot.slane %v3627_v22, %v16695_v2 }
 0x2b3   : > { %v2472_v27 = vsel %vm2440_vm11, %v2417_v0, %v9273_v24  ;;  %v2958_v9 = vrot.slane %v2470_v54, %v16695_v2  ;;  %v9289_v20 = vunpack.i.h.bf16 %v9287_v41  ;;  %v9288_v4 = vunpack.i.l.bf16 %v9287_v41  ;;  %8174 = vmatprep.mubr.msk.bf16.mxu0 %vm10456_vm5, %v16726_v14  ;;  %v9292_v28 = vpop.permute.xlu0 %9291 }
 0x2b4   : > { %v2976_v40 = vcombine.high %v2472_v27, %v2472_v27  ;;  %v2983_v21 = vrot.slane %v2472_v27, %v16695_v2  ;;  %v9284_v48 = vunpack.i.h.bf16 %v9282_v58  ;;  %v9283_v13 = vunpack.i.l.bf16 %v9282_v58 }
 0x2b5   : > { %v3661_v11 = vcombine.low %v2951_v19, %v2958_v9  ;;  %v3643_v26 = vcombine.low %v3635_v38, %v3642_v30  ;;  %v3652_v43 = vrot.slane %v13733_v34, %v16695_v2  ;;  %v3659_v47 = vrot.slane %v13729_v25, %v16695_v2  ;;  %v16809_v25 = vld [vmem:[#allocation175_spill] sm:$0xff]  ;;  %v9307_v23 = vpop.permute.xlu1 %9306 }
 0x2b6   : > { %v2990_v49 = vrot.slane %v2976_v40, %v16695_v2  ;;  %v2991_v37 = vcombine.high %v2983_v21, %v2983_v21  ;;  %v2363_v29 = vsel %vm2330_vm9, %v2308_v15, %v9284_v48  ;;  %v2364_v7 = vsel %vm2330_vm9, %v2309_v33, %v9283_v13 }
 0x2b7   : > { %v3660_v45 = vcombine.low %v3652_v43, %v3659_v47  ;;  %v9299_v59 = vunpack.i.h.bf16 %v9297_v17  ;;  %v9298_v61 = vunpack.i.l.bf16 %v9297_v17  ;;  %v2418_v42 = vsel %vm2385_vm10, %v2363_v29, %v9289_v20  ;;  %v9302_v53 = vpop.permute.xlu0 %9301  ;;  %v16812_v43 = vld [vmem:[#allocation44_spill] sm:$0xff] }
 0x2b8   : > { %v2992_v16 = vcombine.high %v2990_v49, %v2990_v49  ;;  %v3679_v1 = vcombine.low %v2983_v21, %v2991_v37  ;;  %v9294_v34 = vunpack.i.h.bf16 %v9292_v28  ;;  %v9293_v44 = vunpack.i.l.bf16 %v9292_v28 }
 0x2b9   : > { %v4026_v39 = vpack.c.bf16 %v3660_v45, %v3643_v26  ;;  %v2310_v22 = vsel %vm2275_vm8, %v16809_v25, %v9298_v61  ;;  %v2312_v63 = vsel %vm2275_vm8, %v16810_v46, %v9299_v59  ;;  %v2419_v57 = vsel %vm2385_vm10, %v2364_v7, %v9288_v4  ;;  %v9317_v38 = vpop.permute.xlu1 %9316 }
 0x2ba   : > { %v3695_v50 = vcombine.low %v2990_v49, %v2992_v16  ;;  %v2473_v19 = vsel %vm2440_vm11, %v2418_v42, %v9294_v34  ;;  %v2474_v30 = vsel %vm2440_vm11, %v2419_v57, %v9293_v44  ;;  %v3669_v6 = vrot.slane %v3661_v11, %v16695_v2  ;;  %v16811_v11 = vld [vmem:[#allocation185_spill] sm:$0xff] }
 0x2bb   : > { %8175 = vmatmul.mubr.msk.bf16.gmra.mrb[40].mxu0 %vm4064_vm12, %v4026_v39  ;;  %v2999_v8 = vrot.slane %v2473_v19, %v16695_v2  ;;  %v3000_v55 = vcombine.high %v2474_v30, %v2474_v30  ;;  %v3007_v51 = vrot.slane %v2474_v30, %v16695_v2  ;;  %v9309_v35 = vunpack.i.h.bf16 %v9307_v23 }
 0x2bc   : > { %v9308_v60 = vunpack.i.l.bf16 %v9307_v23  ;;  %v9304_v62 = vunpack.i.h.bf16 %v9302_v53  ;;  %v9303_v15 = vunpack.i.l.bf16 %v9302_v53  ;;  %8178 = vmatprep.mubr.msk.bf16.mxu0 %vm10456_vm5, %v16726_v14  ;;  %v3676_v24 = vrot.slane %v13756_v12, %v16695_v2  ;;  %v9312_v12 = vpop.permute.xlu0 %9311 }
 0x2bd   : > { %v3014_v56 = vrot.slane %v3000_v55, %v16695_v2  ;;  %v3015_v5 = vcombine.high %v3007_v51, %v3007_v51  ;;  %v3696_v33 = vcombine.low %v2999_v8, %v3007_v51  ;;  %v3686_v0 = vrot.slane %v13760_v10, %v16695_v2  ;;  %v9327_v17 = vpop.permute.xlu1 %9326 }
 0x2be   : > { %v2365_v54 = vsel %vm2330_vm9, %v2310_v22, %v9303_v15  ;;  %v2367_v41 = vsel %vm2330_vm9, %v2312_v63, %v9304_v62  ;;  %v3677_v27 = vcombine.low %v3669_v6, %v3676_v24  ;;  %v3693_v9 = vrot.slane %v3679_v1, %v16695_v2 }
 0x2bf   : > { %v13805_v20 = vcombine.low %v3015_v5, %v3014_v56  ;;  %v9319_v4 = vunpack.i.h.bf16 %v9317_v38  ;;  %v9318_v58 = vunpack.i.l.bf16 %v9317_v38  ;;  %v2420_v40 = vsel %vm2385_vm10, %v2365_v54, %v9308_v60  ;;  %v16813_v5 = vld [vmem:[#allocation116_spill] sm:$0xff] }
 0x2c0   : > { %v9314_v21 = vunpack.i.h.bf16 %v9312_v12  ;;  %v9313_v48 = vunpack.i.l.bf16 %v9312_v12  ;;  %v2422_v13 = vsel %vm2385_vm10, %v2367_v41, %v9309_v35  ;;  %v3016_v10 = vcombine.high %v3014_v56, %v3014_v56  ;;  %v9322_v1 = vpop.permute.xlu0 %9321  ;;  %v16814_v41 = vld [vmem:[#allocation139_spill] sm:$0xff] }
 0x2c1   : > { %v2311_v26 = vsel %vm2275_vm8, %v16811_v11, %v9318_v58  ;;  %v2313_v47 = vsel %vm2275_vm8, %v16812_v43, %v9319_v4  ;;  %v3694_v49 = vcombine.low %v3686_v0, %v3693_v9  ;;  %v3703_v37 = vrot.slane %v3695_v50, %v16695_v2 }
 0x2c2   : > { %v2475_v29 = vsel %vm2440_vm11, %v2420_v40, %v9313_v48  ;;  %v2477_v7 = vsel %vm2440_vm11, %v2422_v13, %v9314_v21  ;;  %v3710_v45 = vrot.slane %v3696_v33, %v16695_v2  ;;  %v3720_v59 = vrot.slane %v13805_v20, %v16695_v2  ;;  %v9337_v23 = vpop.permute.xlu1 %9336 }
 0x2c3   : > { %v3017_v61 = vcombine.high %v2475_v29, %v2475_v29  ;;  %v3024_v28 = vrot.slane %v2475_v29, %v16695_v2  ;;  %v3041_v42 = vcombine.high %v2477_v7, %v2477_v7  ;;  %v3048_v16 = vrot.slane %v2477_v7, %v16695_v2 }
 0x2c4   : > { %v4027_v34 = vpack.c.bf16 %v3694_v49, %v3677_v27  ;;  %v9329_v44 = vunpack.i.h.bf16 %v9327_v17  ;;  %v9328_v39 = vunpack.i.l.bf16 %v9327_v17  ;;  %v9324_v25 = vunpack.i.h.bf16 %v9322_v1  ;;  %v9332_v53 = vpop.permute.xlu0 %9331 }
 0x2c5   : > { %v3031_v22 = vrot.slane %v3017_v61, %v16695_v2  ;;  %v3032_v46 = vcombine.high %v3024_v28, %v3024_v28  ;;  %v3055_v63 = vrot.slane %v3041_v42, %v16695_v2  ;;  %v3056_v57 = vcombine.high %v3048_v16, %v3048_v16 }
 0x2c6   : > { %v3713_v50 = vcombine.low %v3016_v10, %v3024_v28  ;;  %8179 = vmatmul.mubr.msk.bf16.gmra.mrb[44].mxu0 %vm4064_vm12, %v4027_v34  ;;  %v9323_v19 = vunpack.i.l.bf16 %v9322_v1  ;;  %v2368_v30 = vsel %vm2330_vm9, %v2313_v47, %v9324_v25  ;;  %v3711_v6 = vcombine.low %v3703_v37, %v3710_v45 }
 0x2c7   : > { %v3057_v8 = vcombine.high %v3055_v63, %v3055_v63  ;;  %v13825_v55 = vcombine.low %v3032_v46, %v3031_v22  ;;  %v13827_v51 = vcombine.low %v3048_v16, %v3056_v57  ;;  %v9339_v35 = vunpack.i.h.bf16 %v9337_v23  ;;  %8182 = vmatprep.mubr.msk.bf16.mxu0 %vm10456_vm5, %v16726_v14  ;;  %v9347_v4 = vpop.permute.xlu1 %9346 }
 0x2c8   : > { %v2366_v60 = vsel %vm2330_vm9, %v2311_v26, %v9323_v19  ;;  %v9338_v62 = vunpack.i.l.bf16 %v9337_v23  ;;  %v9334_v15 = vunpack.i.h.bf16 %v9332_v53  ;;  %v9333_v24 = vunpack.i.l.bf16 %v9332_v53  ;;  %v9342_v48 = vpop.permute.xlu0 %9341 }
 0x2c9   : > { %v3747_v56 = vcombine.low %v3055_v63, %v3057_v8  ;;  %v2314_v33 = vsel %vm2275_vm8, %v16813_v5, %v9339_v35  ;;  %v2421_v0 = vsel %vm2385_vm10, %v2366_v60, %v9328_v39  ;;  %v2423_v54 = vsel %vm2385_vm10, %v2368_v30, %v9329_v44  ;;  %v16815_v63 = vld [vmem:[#allocation194_spill] sm:$0xff] }
 0x2ca   : > { %v2315_v38 = vsel %vm2275_vm8, %v16814_v41, %v9338_v62  ;;  %v2476_v27 = vsel %vm2440_vm11, %v2421_v0, %v9333_v24  ;;  %v2478_v9 = vsel %vm2440_vm11, %v2423_v54, %v9334_v15  ;;  %v3033_v20 = vcombine.high %v3031_v22, %v3031_v22 }
 0x2cb   : > { %v3040_v58 = vrot.slane %v2476_v27, %v16695_v2  ;;  %v3058_v12 = vcombine.high %v2478_v9, %v2478_v9  ;;  %v3065_v40 = vrot.slane %v2478_v9, %v16695_v2  ;;  %v9349_v21 = vunpack.i.h.bf16 %v9347_v4  ;;  %v9357_v45 = vpop.permute.xlu1 %9356 }
 0x2cc   : > { %v9348_v13 = vunpack.i.l.bf16 %v9347_v4  ;;  %v9344_v10 = vunpack.i.h.bf16 %v9342_v48  ;;  %v9343_v11 = vunpack.i.l.bf16 %v9342_v48  ;;  %v3727_v26 = vrot.slane %v3713_v50, %v16695_v2  ;;  %v9352_v34 = vpop.permute.xlu0 %9351 }
 0x2cd   : > { %v3072_v43 = vrot.slane %v3058_v12, %v16695_v2  ;;  %v3073_v47 = vcombine.high %v3065_v40, %v3065_v40  ;;  %v3730_v49 = vcombine.low %v3033_v20, %v3040_v58  ;;  %v3737_v37 = vrot.slane %v13825_v55, %v16695_v2 }
 0x2ce   : > { %v2369_v29 = vsel %vm2330_vm9, %v2314_v33, %v9344_v10  ;;  %v2370_v7 = vsel %vm2330_vm9, %v2315_v38, %v9343_v11  ;;  %v3728_v17 = vcombine.low %v3720_v59, %v3727_v26  ;;  %v3754_v61 = vrot.slane %v13827_v51, %v16695_v2  ;;  %v16817_v11 = vld [vmem:[#allocation127_spill] sm:$0xff] }
 0x2cf   : > { %v3074_v28 = vcombine.high %v3072_v43, %v3072_v43  ;;  %v13850_v42 = vcombine.low %v3065_v40, %v3073_v47  ;;  %v9359_v16 = vunpack.i.h.bf16 %v9357_v45  ;;  %v9358_v1 = vunpack.i.l.bf16 %v9357_v45 }
 0x2d0   : > { %v4028_v44 = vpack.c.bf16 %v3728_v17, %v3711_v6  ;;  %v9354_v39 = vunpack.i.h.bf16 %v9352_v34  ;;  %v9353_v25 = vunpack.i.l.bf16 %v9352_v34  ;;  %v2424_v22 = vsel %vm2385_vm10, %v2369_v29, %v9349_v21  ;;  %v9367_v23 = vpop.permute.xlu1 %9366 }
 0x2d1   : > { %v13853_v46 = vcombine.low %v3072_v43, %v3074_v28  ;;  %v2316_v59 = vsel %vm2275_vm8, %v16815_v63, %v9358_v1  ;;  %v2318_v57 = vsel %vm2275_vm8, %v13569_v52, %v9359_v16  ;;  %v2425_v50 = vsel %vm2385_vm10, %v2370_v7, %v9348_v13  ;;  %v9362_v52 = vpop.permute.xlu0 %9361 }
 0x2d2   : > { %8183 = vmatmul.mubr.msk.bf16.gmra.mrb[48].mxu0 %vm4064_vm12, %v4028_v44  ;;  %v2479_v19 = vsel %vm2440_vm11, %v2424_v22, %v9354_v39  ;;  %v2480_v30 = vsel %vm2440_vm11, %v2425_v50, %v9353_v25  ;;  %v3744_v6 = vrot.slane %v3730_v49, %v16695_v2  ;;  %v3761_v8 = vrot.slane %v3747_v56, %v16695_v2  ;;  %v16816_v56 = vld [vmem:[#allocation133_spill] sm:$0xff] }
 0x2d3   : > { %v3081_v55 = vrot.slane %v2479_v19, %v16695_v2  ;;  %v3082_v51 = vcombine.high %v2480_v30, %v2480_v30  ;;  %v3089_v35 = vrot.slane %v2480_v30, %v16695_v2  ;;  %v9369_v53 = vunpack.i.h.bf16 %v9367_v23  ;;  %8186 = vmatprep.mubr.msk.bf16.mxu0 %vm10456_vm5, %v16726_v14 }
 0x2d4   : > { %v9368_v60 = vunpack.i.l.bf16 %v9367_v23  ;;  %v9364_v62 = vunpack.i.h.bf16 %v9362_v52  ;;  %v9363_v15 = vunpack.i.l.bf16 %v9362_v52  ;;  %v3745_v24 = vcombine.low %v3737_v37, %v3744_v6  ;;  %v9377_v9 = vpop.permute.xlu1 %9376 }
 0x2d5   : > { %v3096_v5 = vrot.slane %v3082_v51, %v16695_v2  ;;  %v3097_v33 = vcombine.high %v3089_v35, %v3089_v35  ;;  %v3780_v0 = vcombine.low %v3081_v55, %v3089_v35  ;;  %v3762_v54 = vcombine.low %v3754_v61, %v3761_v8  ;;  %v9372_v21 = vpop.permute.xlu0 %9371 }
 0x2d6   : > { %v13874_v41 = vsel %vm2220_vm7, %v16816_v56, %v8953_v36  ;;  %v2371_v38 = vsel %vm2330_vm9, %v2316_v59, %v9363_v15  ;;  %v2373_v27 = vsel %vm2330_vm9, %v2318_v57, %v9364_v62  ;;  %v3771_v20 = vrot.slane %v13850_v42, %v16695_v2 }
 0x2d7   : > { %v3781_v4 = vcombine.low %v3097_v33, %v3096_v5  ;;  %v4029_v58 = vpack.c.bf16 %v3762_v54, %v3745_v24  ;;  %v9379_v12 = vunpack.i.h.bf16 %v9377_v9  ;;  %v9378_v40 = vunpack.i.l.bf16 %v9377_v9 }
 0x2d8   : > { %v9374_v48 = vunpack.i.h.bf16 %v9372_v21  ;;  %v9373_v13 = vunpack.i.l.bf16 %v9372_v21  ;;  %v2426_v10 = vsel %vm2385_vm10, %v2371_v38, %v9368_v60  ;;  %v3778_v36 = vrot.slane %v13853_v46, %v16695_v2 }
 0x2d9   : > { %v2317_v26 = vsel %vm2275_vm8, %v16817_v11, %v9378_v40  ;;  %v2319_v43 = vsel %vm2275_vm8, %v13635_v18, %v9379_v12  ;;  %v2428_v47 = vsel %vm2385_vm10, %v2373_v27, %v9369_v53  ;;  %v3098_v49 = vcombine.high %v3096_v5, %v3096_v5  ;;  %v9387_v7 = vpop.permute.xlu1 %9386  ;;  %v16818_v27 = vld [vmem:[#allocation174_spill] sm:$0xff] }
 0x2da   : > { %8187 = vmatmul.mubr.msk.bf16.gmra.mrb[52].mxu0 %vm4064_vm12, %v4029_v58  ;;  %v2481_v37 = vsel %vm2440_vm11, %v2426_v10, %v9373_v13  ;;  %v2483_v29 = vsel %vm2440_vm11, %v2428_v47, %v9374_v48  ;;  %v3788_v17 = vrot.slane %v3780_v0, %v16695_v2  ;;  %v3795_v45 = vrot.slane %v3781_v4, %v16695_v2  ;;  %v9382_v16 = vpop.permute.xlu0 %9381 }
 0x2db   : > { %v3099_v61 = vcombine.high %v2481_v37, %v2481_v37  ;;  %v3106_v28 = vrot.slane %v2481_v37, %v16695_v2  ;;  %v3123_v42 = vcombine.high %v2483_v29, %v2483_v29  ;;  %v3130_v18 = vrot.slane %v2483_v29, %v16695_v2  ;;  %8190 = vmatprep.mubr.msk.bf16.mxu0 %vm10456_vm5, %v16726_v14 }
 0x2dc   : > { %v9389_v1 = vunpack.i.h.bf16 %v9387_v7  ;;  %v9388_v34 = vunpack.i.l.bf16 %v9387_v7  ;;  %v9384_v44 = vunpack.i.h.bf16 %v9382_v16  ;;  %v9383_v39 = vunpack.i.l.bf16 %v9382_v16 }
 0x2dd   : > { %v3113_v25 = vrot.slane %v3099_v61, %v16695_v2  ;;  %v3114_v22 = vcombine.high %v3106_v28, %v3106_v28  ;;  %v3137_v46 = vrot.slane %v3123_v42, %v16695_v2  ;;  %v3138_v63 = vcombine.high %v3130_v18, %v3130_v18  ;;  %v9397_v19 = vpop.permute.xlu1 %9396 }
 0x2de   : > { %v3797_v59 = vcombine.low %v3098_v49, %v3106_v28  ;;  %v2372_v57 = vsel %vm2330_vm9, %v2317_v26, %v9383_v39  ;;  %v2374_v50 = vsel %vm2330_vm9, %v2319_v43, %v9384_v44  ;;  %v3796_v30 = vcombine.low %v3788_v17, %v3795_v45  ;;  %v9392_v55 = vpop.permute.xlu0 %9391  ;;  %v16819_v26 = vld [vmem:[#allocation83_spill] sm:$0xff] }
 0x2df   : > { %v3139_v23 = vcombine.high %v3137_v46, %v3137_v46  ;;  %v3798_v6 = vcombine.low %v3114_v22, %v3113_v25  ;;  %v9399_v8 = vunpack.i.h.bf16 %v9397_v19  ;;  %v3779_v51 = vcombine.low %v3771_v20, %v3778_v36 }
 0x2e0   : > { %v3815_v35 = vcombine.low %v3130_v18, %v3138_v63  ;;  %v9398_v53 = vunpack.i.l.bf16 %v9397_v19  ;;  %v9394_v52 = vunpack.i.h.bf16 %v9392_v55  ;;  %v9393_v60 = vunpack.i.l.bf16 %v9392_v55 }
 0x2e1   : > { %v3831_v62 = vcombine.low %v3137_v46, %v3139_v23  ;;  %v2321_v15 = vsel %vm2275_vm8, %v13253_v32, %v9399_v8  ;;  %v2427_v24 = vsel %vm2385_vm10, %v2372_v57, %v9388_v34  ;;  %v2429_v5 = vsel %vm2385_vm10, %v2374_v50, %v9389_v1  ;;  %v9407_v38 = vpop.permute.xlu1 %9406 }
 0x2e2   : > { %v2482_v33 = vsel %vm2440_vm11, %v2427_v24, %v9393_v60  ;;  %v2484_v0 = vsel %vm2440_vm11, %v2429_v5, %v9394_v52  ;;  %v3115_v54 = vcombine.high %v3113_v25, %v3113_v25  ;;  %v4030_v56 = vpack.c.bf16 %v3796_v30, %v3779_v51 }
 0x2e3   : > { %v2320_v9 = vsel %vm2275_vm8, %v16818_v27, %v9398_v53  ;;  %v3122_v20 = vrot.slane %v2482_v33, %v16695_v2  ;;  %v3140_v4 = vcombine.high %v2484_v0, %v2484_v0  ;;  %v3147_v58 = vrot.slane %v2484_v0, %v16695_v2  ;;  %v9402_v32 = vpop.permute.xlu0 %9401 }
 0x2e4   : > { %8191 = vmatmul.mubr.msk.bf16.gmra.mrb[56].mxu0 %vm4064_vm12, %v4030_v56  ;;  %v9409_v12 = vunpack.i.h.bf16 %v9407_v38  ;;  %v9408_v40 = vunpack.i.l.bf16 %v9407_v38  ;;  %v9404_v21 = vunpack.i.h.bf16 %v9402_v32  ;;  %v9403_v48 = vunpack.i.l.bf16 %v9402_v32 }
 0x2e5   : > { %v3154_v13 = vrot.slane %v3140_v4, %v16695_v2  ;;  %v3155_v10 = vcombine.high %v3147_v58, %v3147_v58  ;;  %v3814_v36 = vcombine.low %v3115_v54, %v3122_v20  ;;  %8194 = vmatprep.mubr.msk.bf16.mxu0 %vm10456_vm5, %v16726_v14  ;;  %v3812_v11 = vrot.slane %v3798_v6, %v16695_v2 }
 0x2e6   : > { %v2268_v43 = vsel %vm2220_vm7, %v16819_v26, %v8954_v3  ;;  %v2375_v47 = vsel %vm2330_vm9, %v2320_v9, %v9403_v48  ;;  %v2376_v49 = vsel %vm2330_vm9, %v2321_v15, %v9404_v21  ;;  %v9417_v37 = vpop.permute.xlu1 %9416  ;;  %v3805_v29 = vrot.slane %v3797_v59, %v16695_v2 }
 0x2e7   : > { %v3156_v7 = vcombine.high %v3154_v13, %v3154_v13  ;;  %v3832_v17 = vcombine.low %v3147_v58, %v3155_v10  ;;  %v9418_v45 = vunpack.i.l.bf16 %v9417_v37  ;;  %v9412_v61 = vpop.permute.xlu0 %9411  ;;  %v3829_v28 = vrot.slane %v3815_v35, %v16695_v2  ;;  %v16820_v58 = vld [vmem:[#allocation25_spill] sm:$0xff] }
 0x2e8   : > { %v9419_v42 = vunpack.i.h.bf16 %v9417_v37  ;;  %v9414_v18 = vunpack.i.h.bf16 %v9412_v61  ;;  %v9413_v16 = vunpack.i.l.bf16 %v9412_v61  ;;  %v3839_v31 = vrot.slane %v3831_v62, %v16695_v2 }
 0x2e9   : > { %v3848_v1 = vcombine.low %v3154_v13, %v3156_v7  ;;  %v2430_v3 = vsel %vm2385_vm10, %v2375_v47, %v9408_v40  ;;  %v2431_v34 = vsel %vm2385_vm10, %v2376_v49, %v9409_v12  ;;  %v3813_v44 = vcombine.low %v3805_v29, %v3812_v11  ;;  %v16821_v13 = vld [vmem:[#allocation46_spill] sm:$0xff] }
 0x2ea   : > { %v2485_v39 = vsel %vm2440_vm11, %v2430_v3, %v9413_v16  ;;  %v2486_v25 = vsel %vm2440_vm11, %v2431_v34, %v9414_v18  ;;  %v9427_v22 = vpop.permute.xlu1 %9426  ;;  %v3822_v46 = vrot.slane %v3814_v36, %v16695_v2  ;;  %v3846_v63 = vrot.slane %v3832_v17, %v16695_v2 }
 0x2eb   : > { %v2322_v59 = vsel %vm2275_vm8, %v13874_v41, %v9418_v45  ;;  %v3163_v57 = vrot.slane %v2485_v39, %v16695_v2  ;;  %v3164_v50 = vcombine.high %v2486_v25, %v2486_v25  ;;  %v3171_v19 = vrot.slane %v2486_v25, %v16695_v2  ;;  %v9422_v30 = vpop.permute.xlu0 %9421 }
 0x2ec   : > { %v9428_v23 = vunpack.i.l.bf16 %v9427_v22  ;;  %v9424_v6 = vunpack.i.h.bf16 %v9422_v30  ;;  %v9423_v8 = vunpack.i.l.bf16 %v9422_v30  ;;  %v3830_v55 = vcombine.low %v3822_v46, %v3829_v28 }
 0x2ed   : > { %v3178_v51 = vrot.slane %v3164_v50, %v16695_v2  ;;  %v3179_v35 = vcombine.high %v3171_v19, %v3171_v19  ;;  %v3849_v53 = vcombine.low %v3163_v57, %v3171_v19  ;;  %v3847_v52 = vcombine.low %v3839_v31, %v3846_v63 }
 0x2ee   : > { %v2323_v60 = vsel %vm2275_vm8, %v2268_v43, %v9419_v42  ;;  %v9429_v62 = vunpack.i.h.bf16 %v9427_v22  ;;  %v2377_v41 = vsel %vm2330_vm9, %v2322_v59, %v9423_v8  ;;  %v4031_v15 = vpack.c.bf16 %v3830_v55, %v3813_v44  ;;  %v9437_v24 = vpop.permute.xlu1 %9436 }
 0x2ef   : > { %v2378_v5 = vsel %vm2330_vm9, %v2323_v60, %v9424_v6  ;;  %v9439_v33 = vunpack.i.h.bf16 %v9437_v24  ;;  %v9438_v0 = vunpack.i.l.bf16 %v9437_v24  ;;  %v9432_v54 = vpop.permute.xlu0 %9431  ;;  %v3865_v27 = vcombine.low %v3179_v35, %v3178_v51 }
 0x2f0   : > { %8195 = vmatmul.mubr.msk.bf16.gmra.mrb[60].mxu0 %vm4064_vm12, %v4031_v15  ;;  %v9434_v56 = vunpack.i.h.bf16 %v9432_v54  ;;  %v9433_v38 = vunpack.i.l.bf16 %v9432_v54  ;;  %v2432_v9 = vsel %vm2385_vm10, %v2377_v41, %v9428_v23  ;;  %v3856_v20 = vrot.slane %v3848_v1, %v16695_v2 }
 0x2f1   : > { %8198 = vmatprep.mubr.msk.bf16.mxu0 %vm10456_vm5, %v16726_v14  ;;  %v3863_v4 = vrot.slane %v3849_v53, %v16695_v2  ;;  %v2269_v32 = vsel %vm2220_vm7, %v16820_v58, %v9438_v0  ;;  %v2433_v12 = vsel %vm2385_vm10, %v2378_v5, %v9429_v62  ;;  %v3180_v21 = vcombine.high %v3178_v51, %v3178_v51  ;;  %v16824_v58 = vld [vmem:[#allocation56_spill] sm:$0xff] }
 0x2f2   : > { %v2487_v40 = vsel %vm2440_vm11, %v2432_v9, %v9433_v38  ;;  %v2270_v10 = vsel %vm2220_vm7, %v16821_v13, %v9439_v33  ;;  %v2488_v36 = vsel %vm2440_vm11, %v2433_v12, %v9434_v56  ;;  %v6030_v31 = vrot.slane %v16726_v14, 1 }
 0x2f3   : > { %v9447_v48 = vpop.permute.xlu1 %9446  ;;  %v3181_v11 = vcombine.high %v2487_v40, %v2487_v40  ;;  %v3188_v26 = vrot.slane %v2487_v40, %v16695_v2  ;;  %v3864_v29 = vcombine.low %v3856_v20, %v3863_v4  ;;  %v3204_v3 = vrot.slane %v2488_v36, %v16695_v2  ;;  %v16823_v20 = vld [vmem:[#allocation63_spill] sm:$0xff] }
 0x2f4   : > { %v9442_v43 = vpop.permute.xlu0 %9441  ;;  %v9448_v47 = vunpack.i.l.bf16 %v9447_v48  ;;  %v9449_v61 = vunpack.i.h.bf16 %v9447_v48  ;;  %v13964_v50 = vpack.i.bf16 %v6030_v31, %v6030_v31  ;;  %v3873_v8 = vrot.slane %v3865_v27, %v16695_v2 }
 0x2f5   : > { %v9444_v49 = vunpack.i.h.bf16 %v9442_v43  ;;  %v9443_v37 = vunpack.i.l.bf16 %v9442_v43  ;;  %v3195_v7 = vrot.slane %v3181_v11, %v16695_v2  ;;  %v3196_v17 = vcombine.high %v3188_v26, %v3188_v26 }
 0x2f6   : > { %v3866_v45 = vcombine.low %v3180_v21, %v3188_v26  ;;  %v4032_v18 = vpack.c.bf16 %v3864_v29, %v3847_v52  ;;  %16822 = vst [vmem:[#allocation192_spill] sm:$0xff] %v13964_v50  ;;  %9511 = vrot.lane.b32.xlu0 %v13964_v50, %s10448_s18  ;;  %v13984_v21 = vrot.slane %v16726_v14, 2 }
 0x2f7   : > { %v2324_v28 = vsel %vm2275_vm8, %v2269_v32, %v9443_v37  ;;  %v2325_v42 = vsel %vm2275_vm8, %v2270_v10, %v9444_v49  ;;  %v9457_v16 = vpop.permute.xlu1 %9456  ;;  %v3197_v1 = vcombine.high %v3195_v7, %v3195_v7  ;;  %v3882_v19 = vcombine.low %v3196_v17, %v3195_v7 }
 0x2f8   : > { %v9459_v34 = vunpack.i.h.bf16 %v9457_v16  ;;  %v9458_v44 = vunpack.i.l.bf16 %v9457_v16  ;;  %v9452_v39 = vpop.permute.xlu0 %9451  ;;  %8199 = vmatmul.mubr.msk.bf16.gmra.mrb[64].mxu0 %vm4064_vm12, %v4032_v18  ;;  %v2379_v46 = vsel %vm2330_vm9, %v2324_v28, %v9448_v47  ;;  %v2380_v59 = vsel %vm2330_vm9, %v2325_v42, %v9449_v61 }
 0x2f9   : > { %v9454_v25 = vunpack.i.h.bf16 %v9452_v39  ;;  %v9453_v22 = vunpack.i.l.bf16 %v9452_v39  ;;  %v3883_v63 = vcombine.low %v3197_v1, %v3204_v3  ;;  %8202 = vmatprep.mubr.msk.bf16.mxu0 %vm10456_vm5, %v16726_v14  ;;  %v3880_v57 = vrot.slane %v3866_v45, %v16695_v2 }
 0x2fa   : > { %v3890_v40 = vrot.slane %v3882_v19, %v16695_v2 }
 0x2fb   : > { %v2434_v30 = vsel %vm2385_vm10, %v2379_v46, %v9453_v22  ;;  %v2435_v23 = vsel %vm2385_vm10, %v2380_v59, %v9454_v25  ;;  %v9467_v6 = vpop.permute.xlu1 %9466  ;;  %v3881_v33 = vcombine.low %v3873_v8, %v3880_v57  ;;  %v3897_v0 = vrot.slane %v3883_v63, %v16695_v2 }
 0x2fc   : > { %v2489_v55 = vsel %vm2440_vm11, %v2434_v30, %v9458_v44  ;;  %v2490_v51 = vsel %vm2440_vm11, %v2435_v23, %v9459_v34  ;;  %v9469_v35 = vunpack.i.h.bf16 %v9467_v6  ;;  %v9468_v53 = vunpack.i.l.bf16 %v9467_v6  ;;  %v9462_v52 = vpop.permute.xlu0 %9461  ;;  %v16825_v30 = vld [vmem:[#allocation33_spill] sm:$0xff]  ;;  %v16826_v6 = vld [vmem:[#allocation66_spill] sm:$0xff] }
 0x2fd   : > { %v3205_v60 = vcombine.high %v2489_v55, %v2489_v55  ;;  %v3212_v62 = vrot.slane %v2489_v55, %v16695_v2  ;;  %v3222_v41 = vcombine.high %v2490_v51, %v2490_v51  ;;  %v3229_v15 = vrot.slane %v2490_v51, %v16695_v2 }
 0x2fe   : > { %v9464_v24 = vunpack.i.h.bf16 %v9462_v52  ;;  %v9463_v5 = vunpack.i.l.bf16 %v9462_v52  ;;  %v3898_v29 = vcombine.low %v3890_v40, %v3897_v0 }
 0x2ff   : > { %v3219_v54 = vrot.slane %v3205_v60, %v16695_v2  ;;  %v3220_v56 = vcombine.high %v3212_v62, %v3212_v62  ;;  %v3236_v38 = vrot.slane %v3222_v41, %v16695_v2  ;;  %v3237_v27 = vcombine.high %v3229_v15, %v3229_v15  ;;  %v9477_v9 = vpop.permute.xlu1 %9476 }
 0x300   : > { %v2272_v4 = vsel %vm2220_vm7, %v16823_v20, %v9463_v5  ;;  %v2273_v32 = vsel %vm2220_vm7, %v16824_v58, %v9464_v24  ;;  %v9472_v12 = vpop.permute.xlu0 %9471  ;;  %v9479_v10 = vunpack.i.h.bf16 %v9477_v9  ;;  %v9478_v36 = vunpack.i.l.bf16 %v9477_v9 }
 0x301   : > { %v3221_v48 = vcombine.high %v3219_v54, %v3219_v54  ;;  %v3238_v13 = vcombine.high %v3236_v38, %v3236_v38  ;;  %v3899_v11 = vcombine.low %v3212_v62, %v3220_v56  ;;  %v3916_v26 = vcombine.low %v3229_v15, %v3237_v27 }
 0x302   : > { %v9474_v43 = vunpack.i.h.bf16 %v9472_v12  ;;  %v9473_v47 = vunpack.i.l.bf16 %v9472_v12  ;;  %v2327_v49 = vsel %vm2275_vm8, %v2272_v4, %v9468_v53  ;;  %v2328_v37 = vsel %vm2275_vm8, %v2273_v32, %v9469_v35 }
 0x303   : > { %v3900_v17 = vcombine.low %v3219_v54, %v3221_v48  ;;  %v4033_v16 = vpack.c.bf16 %v3898_v29, %v3881_v33  ;;  %v3917_v57 = vcombine.low %v3236_v38, %v3238_v13  ;;  %v3907_v51 = vrot.slane %v3899_v11, %v16695_v2 }
 0x304   : > { %v9487_v7 = vpop.permute.xlu1 %9486  ;;  %v2382_v45 = vsel %vm2330_vm9, %v2327_v49, %v9473_v47  ;;  %v2383_v61 = vsel %vm2330_vm9, %v2328_v37, %v9474_v43  ;;  %v3924_v0 = vrot.slane %v3916_v26, %v16695_v2  ;;  %v14017_v43 = vpack.i.bf16 %v13984_v21, %v13984_v21 }
 0x305   : > { %v9489_v28 = vunpack.i.h.bf16 %v9487_v7  ;;  %v9488_v42 = vunpack.i.l.bf16 %v9487_v7  ;;  %v9482_v18 = vpop.permute.xlu0 %9481  ;;  %v2437_v31 = vsel %vm2385_vm10, %v2382_v45, %v9478_v36  ;;  %v2438_v1 = vsel %vm2385_vm10, %v2383_v61, %v9479_v10  ;;  %8203 = vmatmul.mubr.msk.bf16.gmra.mrb[68].mxu0 %vm4064_vm12, %v4033_v16 }
 0x306   : > { %v9484_v3 = vunpack.i.h.bf16 %v9482_v18  ;;  %v9483_v39 = vunpack.i.l.bf16 %v9482_v18  ;;  %v3914_v25 = vrot.slane %v3900_v17, %v16695_v2  ;;  %8206 = vmatprep.mubr.msk.bf16.mxu0 %vm10456_vm5, %v16726_v14  ;;  %v3931_v54 = vrot.slane %v3917_v57, %v16695_v2  ;;  %16827 = vst [vmem:[#allocation47_spill] sm:$0xff] %v14017_v43  ;;  %9521 = vrot.lane.b32.xlu0 %v14017_v43, %s10450_s22 }
 0x307   : > { %v2492_v34 = vsel %vm2440_vm11, %v2437_v31, %v9488_v42  ;;  %v2493_v44 = vsel %vm2440_vm11, %v2438_v1, %v9489_v28 }
 0x308   : > { %v3246_v22 = vcombine.high %v2492_v34, %v2492_v34  ;;  %v3263_v46 = vcombine.high %v2493_v44, %v2493_v44  ;;  %v3270_v63 = vrot.slane %v2493_v44, %v16695_v2  ;;  %v9497_v59 = vpop.permute.xlu1 %9496  ;;  %v3253_v19 = vrot.slane %v2492_v34, %v16695_v2 }
 0x309   : > { %v2271_v23 = vsel %vm2220_vm7, %v16825_v30, %v9483_v39  ;;  %v2274_v8 = vsel %vm2220_vm7, %v16826_v6, %v9484_v3  ;;  %v9492_v55 = vpop.permute.xlu0 %9491  ;;  %v9499_v60 = vunpack.i.h.bf16 %v9497_v59  ;;  %v9498_v15 = vunpack.i.l.bf16 %v9497_v59 }
 0x30a   : > { %v3260_v35 = vrot.slane %v3246_v22, %v16695_v2  ;;  %v3277_v53 = vrot.slane %v3263_v46, %v16695_v2  ;;  %v3278_v52 = vcombine.high %v3270_v63, %v3270_v63  ;;  %v9494_v62 = vunpack.i.h.bf16 %v9492_v55  ;;  %v14035_v46 = vld [vmem:[#allocation7] ss:$0 sm:$0xff] }
 0x30b   : > { %v9493_v41 = vunpack.i.l.bf16 %v9492_v55  ;;  %v3915_v24 = vcombine.low %v3907_v51, %v3914_v25  ;;  %v3261_v38 = vcombine.high %v3253_v19, %v3253_v19  ;;  %v3932_v58 = vcombine.low %v3924_v0, %v3931_v54 }
 0x30c   : > { %v3262_v5 = vcombine.high %v3260_v35, %v3260_v35  ;;  %v3951_v33 = vcombine.low %v3278_v52, %v3277_v53  ;;  %v9507_v56 = vpop.permute.xlu1 %9506  ;;  %v2329_v9 = vsel %vm2275_vm8, %v2274_v8, %v9494_v62  ;;  %v3279_v61 = vcombine.high %v3277_v53, %v3277_v53 }
 0x30d   : > { %v2326_v27 = vsel %vm2275_vm8, %v2271_v23, %v9493_v41  ;;  %v9502_v20 = vpop.permute.xlu0 %9501  ;;  %v9509_v32 = vunpack.i.h.bf16 %v9507_v56  ;;  %v9508_v12 = vunpack.i.l.bf16 %v9507_v56  ;;  %v2384_v48 = vsel %vm2330_vm9, %v2329_v9, %v9499_v60 }
 0x30e   : > { %v3950_v4 = vcombine.low %v3262_v5, %v3270_v63  ;;  %v2381_v40 = vsel %vm2330_vm9, %v2326_v27, %v9498_v15  ;;  %v9504_v13 = vunpack.i.h.bf16 %v9502_v20  ;;  %v9503_v10 = vunpack.i.l.bf16 %v9502_v20 }
 0x30f   : > { %v4034_v36 = vpack.c.bf16 %v3932_v58, %v3915_v24  ;;  %v3965_v26 = vrot.slane %v3951_v33, %v16695_v2  ;;  %v3934_v17 = vcombine.low %v3261_v38, %v3260_v35  ;;  %vm7303_vm8 = vcmask 588800  }
 0x310   : > { %v3958_v11 = vrot.slane %v3950_v4, %v16695_v2  ;;  %v2436_v47 = vsel %vm2385_vm10, %v2381_v40, %v9503_v10  ;;  %v2439_v49 = vsel %vm2385_vm10, %v2384_v48, %v9504_v13 }
 0x311   : > { %8207 = vmatmul.mubr.msk.bf16.gmra.mrb[72].mxu0 %vm4064_vm12, %v4034_v36  ;;  %v2491_v37 = vsel %vm2440_vm11, %v2436_v47, %v9508_v12  ;;  %v2494_v29 = vsel %vm2440_vm11, %v2439_v49, %v9509_v32  ;;  %v3948_v16 = vrot.slane %v3934_v17, %v16695_v2  ;;  %v16828_v12 = vld [vmem:[#allocation176_spill] sm:$0xff] }
 0x312   : > { %v3966_v7 = vcombine.low %v3958_v11, %v3965_v26  ;;  %v3245_v45 = vrot.slane %v2491_v37, %v16695_v2  ;;  %v3286_v21 = vrot.slane %v2494_v29, %v16695_v2  ;;  %v14048_v40 = vadd.s32 16, %v16828_v12 }
 0x313   : > { %vm5106_vm13 = vcmp.ge.s32.totalorder %v16828_v12, 1 }
 0x314   : > { %v3933_v28 = vcombine.low %v3245_v45, %v3253_v19  ;;  %v3967_v42 = vcombine.low %v3279_v61, %v3286_v21  ;;  %vm5117_vm14 = vcmp.le.s32.totalorder %v14048_v40, 16 }
 0x316   : > { %v3941_v18 = vrot.slane %v3933_v28, %v16695_v2  ;;  %v3974_v3 = vrot.slane %v3967_v42, %v16695_v2 }
 0x318   : > { %v3949_v31 = vcombine.low %v3941_v18, %v3948_v16  ;;  %v4036_v34 = vpack.c.bf16 %v3974_v3, %v3974_v3 }
 0x31a   : > { %v4035_v1 = vpack.c.bf16 %v3966_v7, %v3949_v31 }
 0x31c   : > { %8211 = vmatmul.mubr.msk.bf16.vlgmr.msra.gmra.mrb[0].mxu1 %vm4064_vm12, %v4035_v1 }
 0x31d   : > { %8214 = vmatprep.mubr.msk.bf16.mxu1 %vm10456_vm5, %v16726_v14  ;;  %v4166_v44 = vpop.f32.mrb[0].mxu0  ;;  %vm7178_vm5 = vcmask 457728  }
 0x31e   : > { %v8136_v39 = vpop.f32.mrb[1].mxu0 }
 0x31f   : > { %v4169_v25 = vpop.f32.mrb[2].mxu0 }
 0x320   : > { %v8137_v22 = vpop.f32.mrb[3].mxu0 }
 0x324   : > { %8215 = vmatmul.mubr.msk.bf16.gmra.mrb[4].mxu1 %vm4064_vm12, %v4036_v34 }
 0x329   : > { %v4174_v63 = vpop.f32.mrb[4].mxu0 }
 0x32a   : > { %v4175_v59 = vadd.f32 %v14035_v46, %v4174_v63  ;;  %v8140_v57 = vpop.f32.mrb[5].mxu0 }
 0x32b   : > { %v4177_v19 = vpop.f32.mrb[6].mxu0 }
 0x32c   : > { %v4334_v30 = vmax.f32 %v4175_v59, 0.0  ;;  %v4178_v23 = vadd.f32 %v14035_v46, %v4177_v19  ;;  %v8141_v6 = vpop.f32.mrb[7].mxu0 }
 0x32e   : > { %v4448_v8 = vcombine.high %v4334_v30, %v4334_v30  ;;  %v4455_v55 = vrot.slane %v4334_v30, %v16695_v2  ;;  %v4335_v51 = vmax.f32 %v4178_v23, 0.0 }
 0x330   : > { %v4462_v35 = vrot.slane %v4448_v8, %v16695_v2  ;;  %v4463_v53 = vcombine.high %v4455_v55, %v4455_v55  ;;  %v4465_v52 = vcombine.high %v4335_v51, %v4335_v51  ;;  %v4472_v60 = vrot.slane %v4335_v51, %v16695_v2 }
 0x332   : > { %v5177_v62 = vcombine.low %v4463_v53, %v4462_v35  ;;  %v4464_v41 = vcombine.high %v4462_v35, %v4462_v35  ;;  %v4479_v15 = vrot.slane %v4465_v52, %v16695_v2  ;;  %v4480_v24 = vcombine.high %v4472_v60, %v4472_v60 }
 0x334   : > { %v4182_v5 = vpop.f32.mrb[8].mxu0  ;;  %v5178_v33 = vcombine.low %v4464_v41, %v4472_v60  ;;  %v5185_v38 = vrot.slane %v5177_v62, %v16695_v2  ;;  %v5194_v58 = vcombine.low %v4480_v24, %v4479_v15  ;;  %v4481_v32 = vcombine.high %v4479_v15, %v4479_v15 }
 0x335   : > { %v4183_v0 = vadd.f32 %v14035_v46, %v4182_v5  ;;  %v8144_v54 = vpop.f32.mrb[9].mxu0 }
 0x336   : > { %v4185_v56 = vpop.f32.mrb[10].mxu0  ;;  %v5192_v27 = vrot.slane %v5178_v33, %v16695_v2  ;;  %v5202_v49 = vrot.slane %v5194_v58, %v16695_v2 }
 0x337   : > { %v4336_v9 = vmax.f32 %v4183_v0, 0.0  ;;  %v4186_v20 = vadd.f32 %v14035_v46, %v4185_v56  ;;  %v8145_v4 = vpop.f32.mrb[11].mxu0 }
 0x338   : > { %v5193_v48 = vcombine.low %v5185_v38, %v5192_v27 }
 0x339   : > { %v4482_v13 = vcombine.high %v4336_v9, %v4336_v9  ;;  %v4489_v10 = vrot.slane %v4336_v9, %v16695_v2  ;;  %v4337_v36 = vmax.f32 %v4186_v20, 0.0 }
 0x33a   : > { %v14058_v7 = vsel %vm5106_vm13, %v5193_v48, 0.0 }
 0x33b   : > { %v4496_v11 = vrot.slane %v4482_v13, %v16695_v2  ;;  %v4497_v26 = vcombine.high %v4489_v10, %v4489_v10  ;;  %v5195_v47 = vcombine.low %v4481_v32, %v4489_v10  ;;  %v4499_v37 = vcombine.high %v4337_v36, %v4337_v36 }
 0x33c   : > { %v4506_v29 = vrot.slane %v4337_v36, %v16695_v2  ;;  %v6035_v34 = vrot.slane %v14058_v7, 1  ;;  %v6211_v44 = vrot.slane %v14058_v7, 2 }
 0x33d   : > { %v4498_v17 = vcombine.high %v4496_v11, %v4496_v11  ;;  %v5209_v45 = vrot.slane %v5195_v47, %v16695_v2  ;;  %v5217_v21 = vrot.slane %v4497_v26, %v16695_v2  ;;  %v4513_v61 = vrot.slane %v4499_v37, %v16695_v2 }
 0x33e   : > { %v4514_v28 = vcombine.high %v4506_v29, %v4506_v29 }
 0x33f   : > { %v14063_v42 = vcombine.low %v5202_v49, %v5209_v45  ;;  %v5218_v18 = vcombine.low %v4496_v11, %v4498_v17  ;;  %v5933_v16 = vsel %vm5117_vm14, %v5217_v21, 0.0  ;;  %v4515_v19 = vcombine.high %v4513_v61, %v4513_v61 }
 0x340   : > { %v6038_v31 = vrot.slane %v5933_v16, 1  ;;  %v5219_v1 = vcombine.low %v4506_v29, %v4514_v28  ;;  %v6214_v57 = vrot.slane %v5933_v16, 2 }
 0x341   : > { %v5226_v39 = vrot.slane %v5218_v18, %v16695_v2  ;;  %v9530_v22 = vpack.i.bf16 %v14063_v42, %v14058_v7  ;;  %v6036_v59 = vrot.slane %v14063_v42, 1  ;;  %v6212_v6 = vrot.slane %v14063_v42, 2 }
 0x342   : > { %v4190_v3 = vpop.f32.mrb[12].mxu0  ;;  %v5233_v30 = vrot.slane %v5219_v1, %v16695_v2  ;;  %v5235_v5 = vcombine.low %v4513_v61, %v4515_v19 }
 0x343   : > { %v4191_v25 = vadd.f32 %v14035_v46, %v4190_v3  ;;  %v8148_v63 = vpop.f32.mrb[13].mxu0  ;;  %9531 = vrot.lane.b32.xlu0 %v9530_v22, %s10454_s21  ;;  %v6037_v35 = vsel %vm551_vm0, %v6035_v34, %v6036_v59  ;;  %v6039_v53 = vsel %vm551_vm0, %v6036_v59, %v6038_v31  ;;  %v6213_v24 = vsel %vm804_vm1, %v6211_v44, %v6212_v6 }
 0x344   : > { %v4193_v23 = vpop.f32.mrb[14].mxu0  ;;  %v5234_v52 = vcombine.low %v5226_v39, %v5233_v30  ;;  %v9515_v60 = vpack.i.bf16 %v6039_v53, %v6037_v35  ;;  %v6215_v33 = vsel %vm804_vm1, %v6212_v6, %v6214_v57  ;;  %v5243_v26 = vrot.slane %v5235_v5, %v16695_v2  ;;  %v10153_v57 = vld [vmem:[#allocation8] sm:$0xff]  }
 0x345   : > { %v4338_v8 = vmax.f32 %v4191_v25, 0.0  ;;  %v4194_v55 = vadd.f32 %v14035_v46, %v4193_v23  ;;  %v8149_v51 = vpop.f32.mrb[15].mxu0  ;;  %v9525_v9 = vpack.i.bf16 %v6215_v33, %v6213_v24  ;;  %8218 = vmatprep.subr.bf16.mxu1 %v10153_v57 }
 0x346   : > { %9516 = vrot.lane.b32.xlu1 %v9515_v60, %s10448_s18  ;;  %v14089_v27 = vsel %vm5106_vm13, %v5234_v52, 0.0  ;;  %8219 = vmatpush3.bf16.msra.mxu1 %v10153_v57 }
 0x347   : > { %v4516_v62 = vcombine.high %v4338_v8, %v4338_v8  ;;  %v4523_v41 = vrot.slane %v4338_v8, %v16695_v2  ;;  %v4339_v15 = vmax.f32 %v4194_v55, 0.0  ;;  %9541 = vrot.lane.b32.xlu0 %v9515_v60, %s10455_s19  ;;  %v6040_v45 = vrot.slane %v14089_v27, 1 }
 0x348   : > { %v6216_v23 = vrot.slane %v14089_v27, 2 }
 0x349   : > { %v4530_v0 = vrot.slane %v4516_v62, %v16695_v2  ;;  %v4531_v54 = vcombine.high %v4523_v41, %v4523_v41  ;;  %v4533_v56 = vcombine.high %v4339_v15, %v4339_v15  ;;  %v4540_v38 = vrot.slane %v4339_v15, %v16695_v2 }
 0x34a   : > { %v4198_v20 = vpop.f32.mrb[16].mxu0  ;;  %9526 = vrot.lane.b32.xlu1 %v9525_v9, %s10450_s22 }
 0x34b   : > { %v5236_v4 = vcombine.low %v4523_v41, %v4531_v54  ;;  %v5258_v58 = vrot.slane %v4530_v0, %v16695_v2  ;;  %v4532_v32 = vcombine.high %v4530_v0, %v4530_v0  ;;  %v4547_v48 = vrot.slane %v4533_v56, %v16695_v2  ;;  %v8152_v13 = vpop.f32.mrb[17].mxu0  ;;  %9551 = vrot.lane.b32.xlu0 %v9525_v9, %s10458_s1 }
 0x34c   : > { %v4548_v10 = vcombine.high %v4540_v38, %v4540_v38  ;;  %v4199_v36 = vadd.f32 %v14035_v46, %v4198_v20  ;;  %v4201_v11 = vpop.f32.mrb[18].mxu0 }
 0x34d   : > { %v5250_v47 = vrot.slane %v5236_v4, %v16695_v2  ;;  %v5259_v49 = vcombine.low %v4532_v32, %v4540_v38  ;;  %v8153_v37 = vpop.f32.mrb[19].mxu0  ;;  %v5936_v61 = vsel %vm5117_vm14, %v5258_v58, 0.0  ;;  %v4202_v18 = vadd.f32 %v14035_v46, %v4201_v11 }
 0x34e   : > { %v5260_v29 = vcombine.low %v4548_v10, %v4547_v48  ;;  %v4340_v17 = vmax.f32 %v4199_v36, 0.0  ;;  %v4549_v31 = vcombine.high %v4547_v48, %v4547_v48  ;;  %v6043_v19 = vrot.slane %v5936_v61, 1 }
 0x34f   : > { %v14099_v21 = vcombine.low %v5243_v26, %v5250_v47  ;;  %v5267_v28 = vrot.slane %v5259_v49, %v16695_v2  ;;  %v4341_v34 = vmax.f32 %v4202_v18, 0.0  ;;  %v6219_v6 = vrot.slane %v5936_v61, 2  ;;  %v10154_v26 = vld [vmem:[#allocation8 + $0x8] sm:$0xff]   ;;  %v10155_v61 = vld [vmem:[#allocation8 + $0x10] sm:$0xff]  }
 0x350   : > { %v5274_v16 = vrot.slane %v5260_v29, %v16695_v2  ;;  %v4550_v1 = vcombine.high %v4340_v17, %v4340_v17  ;;  %v4557_v3 = vrot.slane %v4340_v17, %v16695_v2  ;;  %8220 = vmatprep.subr.bf16.mxu1 %v10154_v26 }
 0x351   : > { %v9560_v44 = vpack.i.bf16 %v14099_v21, %v14089_v27  ;;  %v6041_v39 = vrot.slane %v14099_v21, 1  ;;  %v6217_v35 = vrot.slane %v14099_v21, 2  ;;  %v4567_v52 = vcombine.high %v4341_v34, %v4341_v34  ;;  %8221 = vmatpush3.bf16.msra.mxu1 %v10154_v26 }
 0x352   : > { %v5275_v25 = vcombine.low %v5267_v28, %v5274_v16  ;;  %v4564_v22 = vrot.slane %v4550_v1, %v16695_v2  ;;  %v4565_v63 = vcombine.high %v4557_v3, %v4557_v3  ;;  %v5276_v59 = vcombine.low %v4549_v31, %v4557_v3  ;;  %8222 = vmatprep.subr.bf16.mxu1 %v10155_v61 }
 0x353   : > { %9561 = vrot.lane.b32.xlu0 %v9560_v44, %s10459_s23  ;;  %9536 = vrot.lane.b32.xlu1 %v9560_v44, %s10454_s21  ;;  %v6042_v30 = vsel %vm551_vm0, %v6040_v45, %v6041_v39  ;;  %v6044_v41 = vsel %vm551_vm0, %v6041_v39, %v6043_v19  ;;  %v4574_v0 = vrot.slane %v4341_v34, %v16695_v2  ;;  %v10156_v44 = vld [vmem:[#allocation8 + $0x18] sm:$0xff]  }
 0x354   : > { %v4566_v8 = vcombine.high %v4564_v22, %v4564_v22  ;;  %v5277_v55 = vcombine.low %v4565_v63, %v4564_v22  ;;  %v5284_v53 = vrot.slane %v5276_v59, %v16695_v2  ;;  %v14121_v33 = vpack.i.bf16 %v6044_v41, %v6042_v30 }
 0x355   : > { %v6218_v4 = vsel %vm804_vm1, %v6216_v23, %v6217_v35  ;;  %v6220_v58 = vsel %vm804_vm1, %v6217_v35, %v6219_v6  ;;  %v14137_v32 = vsel %vm5106_vm13, %v5275_v25, 0.0  ;;  %v4581_v48 = vrot.slane %v4567_v52, %v16695_v2  ;;  %8223 = vmatpush3.bf16.msra.mxu1 %v10155_v61 }
 0x356   : > { %v4206_v51 = vpop.f32.mrb[20].mxu0  ;;  %v5291_v15 = vrot.slane %v5277_v55, %v16695_v2  ;;  %v5299_v24 = vrot.slane %v4566_v8, %v16695_v2  ;;  %v9580_v36 = vpack.i.bf16 %v6220_v58, %v6218_v4  ;;  %v4582_v47 = vcombine.high %v4574_v0, %v4574_v0  ;;  %8224 = vmatprep.subr.bf16.mxu1 %v10156_v44 }
 0x357   : > { %v4207_v60 = vadd.f32 %v14035_v46, %v4206_v51  ;;  %v8156_v62 = vpop.f32.mrb[21].mxu0  ;;  %9571 = vrot.lane.b32.xlu0 %v14121_v33, %s10460_s28  ;;  %9546 = vrot.lane.b32.xlu1 %v14121_v33, %s10455_s19  ;;  %v6221_v17 = vrot.slane %v14137_v32, 2  ;;  %v4583_v28 = vcombine.high %v4581_v48, %v4581_v48  ;;  %v6045_v19 = vrot.slane %v14137_v32, 1 }
 0x358   : > { %v4209_v5 = vpop.f32.mrb[22].mxu0  ;;  %v14125_v9 = vcombine.low %v5284_v53, %v5291_v15  ;;  %v5939_v20 = vsel %vm5117_vm14, %v5299_v24, 0.0  ;;  %v5300_v39 = vcombine.low %v4574_v0, %v4582_v47 }
 0x359   : > { %v4342_v54 = vmax.f32 %v4207_v60, 0.0  ;;  %v4210_v56 = vadd.f32 %v14035_v46, %v4209_v5  ;;  %v8157_v38 = vpop.f32.mrb[23].mxu0  ;;  %v6224_v11 = vrot.slane %v5939_v20, 2  ;;  %v6048_v31 = vrot.slane %v5939_v20, 1  ;;  %8225 = vmatpush3.bf16.msra.mxu1 %v10156_v44 }
 0x35a   : > { %v6222_v45 = vrot.slane %v14125_v9, 2  ;;  %v9565_v1 = vpack.i.bf16 %v14125_v9, %v14137_v32  ;;  %v6046_v30 = vrot.slane %v14125_v9, 1  ;;  %v5301_v6 = vcombine.low %v4581_v48, %v4583_v28 }
 0x35b   : > { %v4584_v13 = vcombine.high %v4342_v54, %v4342_v54  ;;  %v4343_v10 = vmax.f32 %v4210_v56, 0.0  ;;  %9581 = vrot.lane.b32.xlu0 %v9580_v36, %s10461_s9  ;;  %9556 = vrot.lane.b32.xlu1 %v9580_v36, %s10458_s1  ;;  %v4591_v18 = vrot.slane %v4342_v54, %v16695_v2  ;;  %v5308_v41 = vrot.slane %v5300_v39, %v16695_v2 }
 0x35c   : > { %v6223_v3 = vsel %vm804_vm1, %v6221_v17, %v6222_v45  ;;  %v6225_v34 = vsel %vm804_vm1, %v6222_v45, %v6224_v11  ;;  %v6047_v53 = vsel %vm551_vm0, %v6045_v19, %v6046_v30  ;;  %v6049_v52 = vsel %vm551_vm0, %v6046_v30, %v6048_v31 }
 0x35d   : > { %v4598_v49 = vrot.slane %v4584_v13, %v16695_v2  ;;  %v4601_v37 = vcombine.high %v4343_v10, %v4343_v10  ;;  %v14142_v29 = vrot.slane %v4343_v10, %v16695_v2  ;;  %v14156_v63 = vpack.i.bf16 %v6225_v34, %v6223_v3 }
 0x35e   : > { %v4599_v8 = vcombine.high %v4591_v18, %v4591_v18  ;;  %v9575_v24 = vpack.i.bf16 %v6049_v52, %v6047_v53  ;;  %v5315_v38 = vrot.slane %v5301_v6, %v16695_v2 }
 0x35f   : > { %v4600_v16 = vcombine.high %v4598_v49, %v4598_v49  ;;  %v4615_v25 = vrot.slane %v4601_v37, %v16695_v2  ;;  %v4616_v22 = vcombine.high %v14142_v29, %v14142_v29  ;;  %9566 = vrot.lane.b32.xlu1 %v9565_v1, %s10459_s23  ;;  %9591 = vrot.lane.b32.xlu0 %v14156_v63, %s10461_s9 }
 0x360   : > { %v5317_v20 = vcombine.low %v4591_v18, %v4599_v8  ;;  %v5316_v61 = vcombine.low %v5308_v41, %v5315_v38  ;;  %v5340_v28 = vrot.slane %v14142_v29, %v16695_v2 }
 0x361   : > { %v5318_v55 = vcombine.low %v4598_v49, %v4600_v16  ;;  %v5341_v15 = vcombine.low %v4616_v22, %v4615_v25  ;;  %v4617_v5 = vcombine.high %v4615_v25, %v4615_v25 }
 0x362   : > { %v4214_v59 = vpop.f32.mrb[24].mxu0  ;;  %v5325_v31 = vrot.slane %v5317_v20, %v16695_v2 }
 0x363   : > { %v4215_v57 = vadd.f32 %v14035_v46, %v4214_v59  ;;  %v8160_v23 = vpop.f32.mrb[25].mxu0  ;;  %v5332_v4 = vrot.slane %v5318_v55, %v16695_v2  ;;  %9601 = vrot.lane.b32.xlu0 %v9580_v36, %s10450_s22  ;;  %9576 = vrot.lane.b32.xlu1 %v9575_v24, %s10460_s28  ;;  %v5349_v11 = vrot.slane %v5341_v15, %v16695_v2 }
 0x364   : > { %v4217_v51 = vpop.f32.mrb[26].mxu0  ;;  %v5942_v23 = vsel %vm5117_vm14, %v5340_v28, 0.0 }
 0x365   : > { %v4344_v35 = vmax.f32 %v4215_v57, 0.0  ;;  %v4218_v60 = vadd.f32 %v14035_v46, %v4217_v51  ;;  %v8161_v62 = vpop.f32.mrb[27].mxu0  ;;  %v14186_v59 = vcombine.low %v5325_v31, %v5332_v4 }
 0x367   : > { %v4618_v0 = vcombine.high %v4344_v35, %v4344_v35  ;;  %v4625_v54 = vrot.slane %v4344_v35, %v16695_v2  ;;  %v4345_v56 = vmax.f32 %v4218_v60, 0.0  ;;  %9611 = vrot.lane.b32.xlu0 %v9565_v1, %s10454_s21  ;;  %9586 = vrot.lane.b32.xlu1 %v14121_v33, %s10448_s18  ;;  %v14192_v33 = vsel %vm5106_vm13, %v5316_v61, 0.0 }
 0x368   : > { %v6051_v52 = vrot.slane %v14186_v59, 1  ;;  %v6053_v60 = vrot.slane %v5942_v23, 1 }
 0x369   : > { %v4632_v58 = vrot.slane %v4618_v0, %v16695_v2  ;;  %v4633_v48 = vcombine.high %v4625_v54, %v4625_v54  ;;  %v5342_v13 = vcombine.low %v4617_v5, %v4625_v54  ;;  %v4635_v10 = vcombine.high %v4345_v56, %v4345_v56 }
 0x36a   : > { %v4642_v26 = vrot.slane %v4345_v56, %v16695_v2  ;;  %v9640_v0 = vpack.i.bf16 %v14186_v59, %v14192_v33  ;;  %v6050_v54 = vrot.slane %v14192_v33, 1 }
 0x36b   : > { %v4222_v47 = vpop.f32.mrb[28].mxu0  ;;  %v5356_v49 = vrot.slane %v5342_v13, %v16695_v2  ;;  %v5358_v37 = vcombine.low %v4633_v48, %v4632_v58  ;;  %v4634_v17 = vcombine.high %v4632_v58, %v4632_v58  ;;  %v4649_v45 = vrot.slane %v4635_v10, %v16695_v2  ;;  %9621 = vrot.lane.b32.xlu0 %v9575_v24, %s10455_s19 }
 0x36c   : > { %v8164_v36 = vpop.f32.mrb[29].mxu0  ;;  %v4223_v18 = vadd.f32 %v14035_v46, %v4222_v47  ;;  %9596 = vrot.lane.b32.xlu1 %v9575_v24, %s10448_s18  ;;  %v4650_v6 = vcombine.high %v4642_v26, %v4642_v26  ;;  %v6052_v58 = vsel %vm551_vm0, %v6050_v54, %v6051_v52  ;;  %v6054_v48 = vsel %vm551_vm0, %v6051_v52, %v6053_v60 }
 0x36d   : > { %v4225_v16 = vpop.f32.mrb[30].mxu0  ;;  %v5357_v3 = vcombine.low %v5349_v11, %v5356_v49  ;;  %v5359_v34 = vcombine.low %v4634_v17, %v4642_v26  ;;  %v4651_v39 = vcombine.high %v4649_v45, %v4649_v45  ;;  %v5366_v29 = vrot.slane %v5358_v37, %v16695_v2 }
 0x36e   : > { %v8165_v44 = vpop.f32.mrb[31].mxu0  ;;  %v4346_v25 = vmax.f32 %v4223_v18, 0.0  ;;  %v4226_v22 = vadd.f32 %v14035_v46, %v4225_v16  ;;  %v5381_v24 = vrot.slane %v4650_v6, %v16695_v2  ;;  %v6227_v13 = vrot.slane %v14186_v59, 2 }
 0x36f   : > { %v5373_v1 = vrot.slane %v5359_v34, %v16695_v2  ;;  %v5382_v55 = vcombine.low %v4649_v45, %v4651_v39  ;;  %9631 = vrot.lane.b32.xlu0 %v14156_v63, %s10458_s1  ;;  %v6229_v26 = vrot.slane %v5942_v23, 2  ;;  %v14222_v47 = vsel %vm5106_vm13, %v5357_v3, 0.0 }
 0x370   : > { %v4652_v57 = vcombine.high %v4346_v25, %v4346_v25  ;;  %v4659_v19 = vrot.slane %v4346_v25, %v16695_v2  ;;  %v4347_v30 = vmax.f32 %v4226_v22, 0.0  ;;  %9606 = vrot.lane.b32.xlu1 %v14156_v63, %s10450_s22  ;;  %v6226_v37 = vrot.slane %v14192_v33, 2 }
 0x371   : > { %v14199_v8 = vcombine.low %v5366_v29, %v5373_v1  ;;  %v5390_v56 = vrot.slane %v5382_v55, %v16695_v2  ;;  %v5945_v17 = vsel %vm5117_vm14, %v5381_v24, 0.0  ;;  %v14231_v61 = vpack.i.bf16 %v6054_v48, %v6052_v58 }
 0x372   : > { %v4666_v51 = vrot.slane %v4652_v57, %v16695_v2  ;;  %v4667_v35 = vcombine.high %v4659_v19, %v4659_v19  ;;  %v4676_v53 = vrot.slane %v4347_v30, %v16695_v2  ;;  %v4669_v5 = vcombine.high %v4347_v30, %v4347_v30 }
 0x373   : > { %9641 = vrot.lane.b32.xlu0 %v9640_v0, %s10459_s23  ;;  %v6232_v28 = vrot.slane %v14199_v8, 2  ;;  %v6228_v31 = vsel %vm804_vm1, %v6226_v37, %v6227_v13  ;;  %v6230_v3 = vsel %vm804_vm1, %v6227_v13, %v6229_v26  ;;  %v6231_v44 = vrot.slane %v14222_v47, 2 }
 0x374   : > { %v4668_v62 = vcombine.high %v4666_v51, %v4666_v51  ;;  %v5383_v41 = vcombine.low %v4659_v19, %v4667_v35  ;;  %v4684_v15 = vcombine.high %v4676_v53, %v4676_v53  ;;  %v4683_v49 = vrot.slane %v4669_v5, %v16695_v2  ;;  %9616 = vrot.lane.b32.xlu1 %v9640_v0, %s10454_s21 }
 0x375   : > { %v6234_v39 = vrot.slane %v5945_v17, 2  ;;  %v9660_v57 = vpack.i.bf16 %v6230_v3, %v6228_v31  ;;  %v6233_v19 = vsel %vm804_vm1, %v6231_v44, %v6232_v28  ;;  %v6056_v30 = vrot.slane %v14199_v8, 1 }
 0x376   : > { %v5397_v38 = vrot.slane %v5383_v41, %v16695_v2  ;;  %v5399_v20 = vcombine.low %v4666_v51, %v4668_v62  ;;  %v5400_v4 = vcombine.low %v4676_v53, %v4684_v15  ;;  %v4685_v22 = vcombine.high %v4683_v49, %v4683_v49 }
 0x377   : > { %9651 = vrot.lane.b32.xlu0 %v14231_v61, %s10460_s28  ;;  %v6235_v51 = vsel %vm804_vm1, %v6232_v28, %v6234_v39  ;;  %v6058_v35 = vrot.slane %v5945_v17, 1  ;;  %v9645_v53 = vpack.i.bf16 %v14199_v8, %v14222_v47  ;;  %v6055_v52 = vrot.slane %v14222_v47, 1 }
 0x378   : > { %v5398_v10 = vcombine.low %v5390_v56, %v5397_v38  ;;  %v5407_v63 = vrot.slane %v5399_v20, %v16695_v2  ;;  %v5414_v11 = vrot.slane %v5400_v4, %v16695_v2  ;;  %9626 = vrot.lane.b32.xlu1 %v14231_v61, %s10455_s19  ;;  %v5422_v24 = vrot.slane %v4683_v49, %v16695_v2 }
 0x379   : > { %v14255_v0 = vpack.i.bf16 %v6235_v51, %v6233_v19  ;;  %v6057_v54 = vsel %vm551_vm0, %v6055_v52, %v6056_v30  ;;  %v6059_v4 = vsel %vm551_vm0, %v6056_v30, %v6058_v35  ;;  %v14285_v35 = vpop.permute.xlu0 %9511 }
 0x37a   : > { %v14229_v45 = vcombine.low %v5407_v63, %v5414_v11  ;;  %v14262_v58 = vsel %vm5106_vm13, %v5398_v10, 0.0  ;;  %v5948_v17 = vsel %vm5117_vm14, %v5422_v24, 0.0  ;;  %v9655_v28 = vpack.i.bf16 %v6059_v4, %v6057_v54 }
 0x37b   : > { %v4230_v36 = vpop.f32.mrb[32].mxu0  ;;  %9661 = vrot.lane.b32.xlu0 %v9660_v57, %s10461_s9 }
 0x37c   : > { %v4231_v18 = vadd.f32 %v14035_v46, %v4230_v36  ;;  %v8168_v16 = vpop.f32.mrb[33].mxu0  ;;  %9636 = vrot.lane.b32.xlu1 %v9660_v57, %s10458_s1  ;;  %v9720_v51 = vpack.i.bf16 %v14229_v45, %v14262_v58 }
 0x37d   : > { %v4233_v34 = vpop.f32.mrb[34].mxu0 }
 0x37e   : > { %v4348_v25 = vmax.f32 %v4231_v18, 0.0  ;;  %v4234_v29 = vadd.f32 %v14035_v46, %v4233_v34  ;;  %v8169_v1 = vpop.f32.mrb[35].mxu0  ;;  %v6060_v34 = vrot.slane %v14262_v58, 1 }
 0x37f   : > { %9671 = vrot.lane.b32.xlu0 %v14255_v0, %s10461_s9  ;;  %v6239_v1 = vrot.slane %v5948_v17, 2 }
 0x380   : > { %v4686_v23 = vcombine.high %v4348_v25, %v4348_v25  ;;  %v4693_v6 = vrot.slane %v4348_v25, %v16695_v2  ;;  %v4349_v55 = vmax.f32 %v4234_v29, 0.0  ;;  %9646 = vrot.lane.b32.xlu1 %v9645_v53, %s10459_s23  ;;  %v6063_v29 = vrot.slane %v5948_v17, 1 }
 0x382   : > { %v4700_v60 = vrot.slane %v4686_v23, %v16695_v2  ;;  %v4701_v62 = vcombine.high %v4693_v6, %v4693_v6  ;;  %v5423_v41 = vcombine.low %v4685_v22, %v4693_v6  ;;  %v4703_v15 = vcombine.high %v4349_v55, %v4349_v55 }
 0x383   : > { %v4710_v5 = vrot.slane %v4349_v55, %v16695_v2  ;;  %9681 = vrot.lane.b32.xlu0 %v9660_v57, %s10450_s22  ;;  %v6061_v22 = vrot.slane %v14229_v45, 1  ;;  %v6236_v23 = vrot.slane %v14262_v58, 2  ;;  %v6237_v6 = vrot.slane %v14229_v45, 2 }
 0x384   : > { %v5424_v56 = vcombine.low %v4701_v62, %v4700_v60  ;;  %v4702_v38 = vcombine.high %v4700_v60, %v4700_v60  ;;  %v4717_v20 = vrot.slane %v4703_v15, %v16695_v2  ;;  %v5431_v63 = vrot.slane %v5423_v41, %v16695_v2  ;;  %9656 = vrot.lane.b32.xlu1 %v9655_v28, %s10460_s28 }
 0x385   : > { %v4718_v48 = vcombine.high %v4710_v5, %v4710_v5  ;;  %v4238_v13 = vpop.f32.mrb[36].mxu0  ;;  %v6062_v52 = vsel %vm551_vm0, %v6060_v34, %v6061_v22  ;;  %v6064_v60 = vsel %vm551_vm0, %v6061_v22, %v6063_v29  ;;  %v9514_v62 = vunpack.i.h.bf16 %v14285_v35 }
 0x386   : > { %v5438_v11 = vrot.slane %v5424_v56, %v16695_v2  ;;  %v5440_v26 = vcombine.low %v4702_v38, %v4710_v5  ;;  %v4239_v49 = vadd.f32 %v14035_v46, %v4238_v13  ;;  %v8172_v37 = vpop.f32.mrb[37].mxu0  ;;  %v4719_v44 = vcombine.high %v4717_v20, %v4717_v20 }
 0x387   : > { %v5441_v10 = vcombine.low %v4718_v48, %v4717_v20  ;;  %v4241_v36 = vpop.f32.mrb[38].mxu0  ;;  %9691 = vrot.lane.b32.xlu0 %v9645_v53, %s10454_s21  ;;  %v6238_v56 = vsel %vm804_vm1, %v6236_v23, %v6237_v6  ;;  %v6240_v53 = vsel %vm804_vm1, %v6237_v6, %v6239_v1  ;;  %v14299_v4 = vpack.i.bf16 %v6064_v60, %v6062_v52 }
 0x388   : > { %v5439_v18 = vcombine.low %v5431_v63, %v5438_v11  ;;  %v5448_v16 = vrot.slane %v5440_v26, %v16695_v2  ;;  %v4350_v31 = vmax.f32 %v4239_v49, 0.0  ;;  %v8173_v3 = vpop.f32.mrb[39].mxu0  ;;  %v4242_v25 = vadd.f32 %v14035_v46, %v4241_v36  ;;  %9666 = vrot.lane.b32.xlu1 %v14231_v61, %s10448_s18 }
 0x389   : > { %v5455_v39 = vrot.slane %v5441_v10, %v16695_v2  ;;  %v5463_v57 = vrot.slane %v4719_v44, %v16695_v2  ;;  %v14308_v11 = vsel %vm2110_vm4, 0.0, %v9514_v62  ;;  %v14315_v37 = vpack.i.bf16 %v6240_v53, %v6238_v56 }
 0x38a   : > { %v4351_v30 = vmax.f32 %v4242_v25, 0.0  ;;  %v4720_v55 = vcombine.high %v4350_v31, %v4350_v31  ;;  %v4727_v41 = vrot.slane %v4350_v31, %v16695_v2  ;;  %v14312_v26 = vsel %vm5106_vm13, %v5439_v18, 0.0 }
 0x38b   : > { %v14279_v19 = vcombine.low %v5448_v16, %v5455_v39  ;;  %v14303_v48 = vsel %vm5117_vm14, %v5463_v57, 0.0  ;;  %9701 = vrot.lane.b32.xlu0 %v9655_v28, %s10455_s19  ;;  %v6065_v39 = vrot.slane %v14312_v26, 1  ;;  %v14335_v57 = vpop.permute.xlu0 %9521  ;;  %v9513_v62 = vunpack.i.l.bf16 %v14285_v35 }
 0x38c   : > { %v4737_v24 = vcombine.high %v4351_v30, %v4351_v30  ;;  %v4734_v38 = vrot.slane %v4720_v55, %v16695_v2  ;;  %v4735_v49 = vcombine.high %v4727_v41, %v4727_v41  ;;  %9676 = vrot.lane.b32.xlu1 %v9655_v28, %s10448_s18  ;;  %v6244_v16 = vrot.slane %v14303_v48, 2 }
 0x38d   : > { %v4744_v3 = vrot.slane %v4351_v30, %v16695_v2  ;;  %v6241_v28 = vrot.slane %v14312_v26, 2  ;;  %v6242_v1 = vrot.slane %v14279_v19, 2  ;;  %v6066_v55 = vrot.slane %v14279_v19, 1 }
 0x38e   : > { %v4246_v15 = vpop.f32.mrb[40].mxu0  ;;  %v4751_v17 = vrot.slane %v4737_v24, %v16695_v2  ;;  %v4736_v31 = vcombine.high %v4734_v38, %v4734_v38  ;;  %v5464_v25 = vcombine.low %v4727_v41, %v4735_v49  ;;  %v9524_v41 = vunpack.i.h.bf16 %v14335_v57 }
 0x38f   : > { %v4247_v5 = vadd.f32 %v14035_v46, %v4246_v15  ;;  %v8176_v54 = vpop.f32.mrb[41].mxu0  ;;  %9711 = vrot.lane.b32.xlu0 %v14255_v0, %s10458_s1  ;;  %v4752_v60 = vcombine.high %v4744_v3, %v4744_v3  ;;  %v6068_v15 = vrot.slane %v14303_v48, 1  ;;  %v6243_v35 = vsel %vm804_vm1, %v6241_v28, %v6242_v1 }
 0x390   : > { %v4249_v20 = vpop.f32.mrb[42].mxu0  ;;  %9686 = vrot.lane.b32.xlu1 %v14255_v0, %s10450_s22  ;;  %v4753_v30 = vcombine.high %v4751_v17, %v4751_v17  ;;  %v5465_v52 = vcombine.low %v4734_v38, %v4736_v31  ;;  %v5472_v56 = vrot.slane %v5464_v25, %v16695_v2  ;;  %v6067_v49 = vsel %vm551_vm0, %v6065_v39, %v6066_v55 }
 0x391   : > { %v4352_v13 = vmax.f32 %v4247_v5, 0.0  ;;  %v4250_v61 = vadd.f32 %v14035_v46, %v4249_v20  ;;  %v8177_v63 = vpop.f32.mrb[43].mxu0  ;;  %v6245_v20 = vsel %vm804_vm1, %v6242_v1, %v6244_v16  ;;  %v5481_v31 = vcombine.low %v4744_v3, %v4752_v60 }
 0x392   : > { %v6069_v16 = vsel %vm551_vm0, %v6066_v55, %v6068_v15  ;;  %v14365_v1 = vpack.i.bf16 %v6245_v20, %v6243_v35 }
 0x393   : > { %v4754_v10 = vcombine.high %v4352_v13, %v4352_v13  ;;  %v14319_v36 = vrot.slane %v4352_v13, %v16695_v2  ;;  %v4353_v34 = vmax.f32 %v4250_v61, 0.0  ;;  %9721 = vrot.lane.b32.xlu0 %v9720_v51, %s10459_s23  ;;  %v5482_v13 = vcombine.low %v4751_v17, %v4753_v30 }
 0x394   : > { %9696 = vrot.lane.b32.xlu1 %v9720_v51, %s10454_s21  ;;  %v14372_v15 = vpack.i.bf16 %v6069_v16, %v6067_v49 }
 0x395   : > { %v4768_v18 = vrot.slane %v4754_v10, %v16695_v2  ;;  %v4769_v44 = vcombine.high %v14319_v36, %v14319_v36  ;;  %v4771_v22 = vcombine.high %v4353_v34, %v4353_v34  ;;  %v4778_v29 = vrot.slane %v4353_v34, %v16695_v2 }
 0x396   : > { %v5479_v10 = vrot.slane %v5465_v52, %v16695_v2  ;;  %v5489_v52 = vrot.slane %v5481_v31, %v16695_v2 }
 0x397   : > { %v5505_v23 = vcombine.low %v4769_v44, %v4768_v18  ;;  %v4770_v6 = vcombine.high %v4768_v18, %v4768_v18  ;;  %v4785_v24 = vrot.slane %v4771_v22, %v16695_v2  ;;  %v4786_v0 = vcombine.high %v4778_v29, %v4778_v29  ;;  %9731 = vrot.lane.b32.xlu0 %v14299_v4, %s10460_s28 }
 0x398   : > { %v5504_v44 = vrot.slane %v14319_v36, %v16695_v2  ;;  %9706 = vrot.lane.b32.xlu1 %v14299_v4, %s10455_s19  ;;  %v9725_v36 = vpack.i.bf16 %v14279_v19, %v14312_v26  ;;  %v5480_v30 = vcombine.low %v5472_v56, %v5479_v10 }
 0x399   : > { %v5506_v5 = vcombine.low %v4770_v6, %v4778_v29  ;;  %v4254_v54 = vpop.f32.mrb[44].mxu0  ;;  %v5513_v48 = vrot.slane %v5505_v23, %v16695_v2  ;;  %v5522_v17 = vcombine.low %v4786_v0, %v4785_v24  ;;  %v4787_v25 = vcombine.high %v4785_v24, %v4785_v24 }
 0x39a   : > { %v4255_v53 = vadd.f32 %v14035_v46, %v4254_v54  ;;  %v8180_v38 = vpop.f32.mrb[45].mxu0  ;;  %v5496_v29 = vrot.slane %v5482_v13, %v16695_v2  ;;  %v6984_v24 = vsel %vm2110_vm4, 0.0, %v9513_v62  ;;  %v14377_v0 = vsel %vm5117_vm14, %v5504_v44, 0.0 }
 0x39b   : > { %v5520_v61 = vrot.slane %v5506_v5, %v16695_v2  ;;  %v4257_v63 = vpop.f32.mrb[46].mxu0  ;;  %9741 = vrot.lane.b32.xlu0 %v14315_v37, %s10461_s9  ;;  %v5530_v5 = vrot.slane %v5522_v17, %v16695_v2  ;;  %v14388_v62 = vsel %vm5106_vm13, %v5480_v30, 0.0  ;;  %v9523_v30 = vunpack.i.l.bf16 %v14335_v57 }
 0x39c   : > { %v4354_v34 = vmax.f32 %v4255_v53, 0.0  ;;  %v4258_v51 = vadd.f32 %v14035_v46, %v4257_v63  ;;  %v8181_v18 = vpop.f32.mrb[47].mxu0  ;;  %9716 = vrot.lane.b32.xlu1 %v14315_v37, %s10458_s1  ;;  %v14383_v53 = vcombine.low %v5489_v52, %v5496_v29  ;;  %16829 = vst [vmem:[#allocation58_spill] sm:$0xff] %v14388_v62  ;;  %v6070_v16 = vrot.slane %v14388_v62, 1 }
 0x39d   : > { %v14354_v28 = vcombine.low %v5513_v48, %v5520_v61  ;;  %v6073_v48 = vrot.slane %v14377_v0, 1  ;;  %v6249_v61 = vrot.slane %v14377_v0, 2 }
 0x39e   : > { %v4788_v39 = vcombine.high %v4354_v34, %v4354_v34  ;;  %v4795_v22 = vrot.slane %v4354_v34, %v16695_v2  ;;  %v4355_v3 = vmax.f32 %v4258_v51, 0.0 }
 0x39f   : > { %9751 = vrot.lane.b32.xlu0 %v14365_v1, %s10461_s9 }
 0x3a0   : > { %v4802_v23 = vrot.slane %v4788_v39, %v16695_v2  ;;  %v5523_v6 = vcombine.low %v4787_v25, %v4795_v22  ;;  %v4805_v55 = vcombine.high %v4355_v3, %v4355_v3  ;;  %v4812_v60 = vrot.slane %v4355_v3, %v16695_v2  ;;  %9726 = vrot.lane.b32.xlu1 %v9725_v36, %s10459_s23  ;;  %v14402_v3 = vld [vmem:[#allocation7] ss:$0 sm:$0xff] }
 0x3a1   : > { %v4803_v10 = vcombine.high %v4795_v22, %v4795_v22  ;;  %v6071_v25 = vrot.slane %v14383_v53, 1 }
 0x3a2   : > { %v4804_v54 = vcombine.high %v4802_v23, %v4802_v23  ;;  %v5537_v56 = vrot.slane %v5523_v6, %v16695_v2  ;;  %v4819_v38 = vrot.slane %v4805_v55, %v16695_v2  ;;  %v4820_v35 = vcombine.high %v4812_v60, %v4812_v60 }
 0x3a3   : > { %9761 = vrot.lane.b32.xlu0 %v14315_v37, %s10450_s22  ;;  %v14418_v6 = vpack.i.bf16 %v14383_v53, %v14388_v62  ;;  %v6074_v55 = vsel %vm551_vm0, %v6071_v25, %v6073_v48  ;;  %v5545_v52 = vrot.slane %v4803_v10, %v16695_v2  ;;  %v6072_v0 = vsel %vm551_vm0, %v6070_v16, %v6071_v25 }
 0x3a4   : > { %v14390_v20 = vcombine.low %v5530_v5, %v5537_v56  ;;  %v5546_v13 = vcombine.low %v4802_v23, %v4804_v54  ;;  %v5547_v63 = vcombine.low %v4812_v60, %v4820_v35  ;;  %v4821_v18 = vcombine.high %v4819_v38, %v4819_v38  ;;  %9736 = vrot.lane.b32.xlu1 %v14372_v15, %s10460_s28 }
 0x3a5   : > { %v4262_v49 = vpop.f32.mrb[48].mxu0  ;;  %v6246_v37 = vrot.slane %v14388_v62, 2  ;;  %v6247_v5 = vrot.slane %v14383_v53, 2  ;;  %v14435_v48 = vsel %vm5106_vm13, %v14354_v28, 0.0  ;;  %v5957_v10 = vsel %vm5117_vm14, %v5545_v52, 0.0 }
 0x3a6   : > { %16830 = vst [vmem:[#allocation41_spill] sm:$0xff] %v14390_v20  ;;  %v5554_v31 = vrot.slane %v5546_v13, %v16695_v2  ;;  %v4263_v34 = vadd.f32 %v14035_v46, %v4262_v49  ;;  %v8184_v51 = vpop.f32.mrb[49].mxu0  ;;  %v5561_v44 = vrot.slane %v5547_v63, %v16695_v2  ;;  %v14410_v46 = vsel %vm2220_vm7, %v14308_v11, %v9524_v41 }
 0x3a7   : > { %v4265_v17 = vpop.f32.mrb[50].mxu0  ;;  %v5563_v41 = vcombine.low %v4819_v38, %v4821_v18  ;;  %16831 = vst [vmem:[#allocation50_spill] sm:$0xff] %v14435_v48  ;;  %9771 = vrot.lane.b32.xlu0 %v9725_v36, %s10454_s21  ;;  %v14439_v63 = vsel %vm2220_vm7, %v6984_v24, %v9523_v30  ;;  %v14441_v49 = vpack.i.bf16 %v6074_v55, %v6072_v0  ;;  %v6254_v30 = vrot.slane %v5957_v10, 2 }
 0x3a8   : > { %v4356_v39 = vmax.f32 %v4263_v34, 0.0  ;;  %v4266_v22 = vadd.f32 %v14402_v3, %v4265_v17  ;;  %v8185_v29 = vpop.f32.mrb[51].mxu0  ;;  %v14412_v23 = vcombine.low %v5554_v31, %v5561_v44  ;;  %9746 = vrot.lane.b32.xlu1 %v14299_v4, %s10448_s18  ;;  %v6248_v44 = vsel %vm804_vm1, %v6246_v37, %v6247_v5 }
 0x3a9   : > { %v6250_v17 = vsel %vm804_vm1, %v6247_v5, %v6249_v61  ;;  %v5571_v16 = vrot.slane %v5563_v41, %v16695_v2  ;;  %v6251_v29 = vrot.slane %v14435_v48, 2  ;;  %v6252_v52 = vrot.slane %v14390_v20, 2 }
 0x3aa   : > { %v4822_v60 = vcombine.high %v4356_v39, %v4356_v39  ;;  %v4829_v57 = vrot.slane %v4356_v39, %v16695_v2  ;;  %v4357_v11 = vmax.f32 %v4266_v22, 0.0 }
 0x3ab   : > { %9781 = vrot.lane.b32.xlu0 %v14372_v15, %s10455_s19 }
 0x3ac   : > { %v14429_v54 = vrot.slane %v4822_v60, %v16695_v2  ;;  %v4837_v56 = vcombine.high %v4829_v57, %v4829_v57  ;;  %v4839_v35 = vcombine.high %v4357_v11, %v4357_v11  ;;  %v4846_v13 = vrot.slane %v4357_v11, %v16695_v2  ;;  %9756 = vrot.lane.b32.xlu1 %v14372_v15, %s10448_s18 }
 0x3ad   : > { %v4270_v38 = vpop.f32.mrb[52].mxu0  ;;  %v6076_v11 = vrot.slane %v14390_v20, 1 }
 0x3ae   : > { %v5564_v31 = vcombine.low %v4829_v57, %v4837_v56  ;;  %v4838_v34 = vcombine.high %v14429_v54, %v14429_v54  ;;  %v4853_v51 = vrot.slane %v4839_v35, %v16695_v2  ;;  %v8188_v28 = vpop.f32.mrb[53].mxu0  ;;  %v4854_v36 = vcombine.high %v4846_v13, %v4846_v13  ;;  %v10157_v56 = vld [vmem:[#allocation8 + $0x20] ss:$0 sps:$4 sm:$0xff]  }
 0x3af   : > { %v4271_v18 = vadd.f32 %v14402_v3, %v4270_v38  ;;  %v4273_v24 = vpop.f32.mrb[54].mxu0  ;;  %v6078_v35 = vrot.slane %v5957_v10, 1  ;;  %v14468_v38 = vpack.i.bf16 %v6250_v17, %v6248_v44  ;;  %9791 = vrot.lane.b32.xlu0 %v14365_v1, %s10458_s1  ;;  %v14480_v10 = vpack.i.bf16 %v14390_v20, %v14435_v48  ;;  %8300 = vmatprep.subr.msk.bf16.mxu1 %vm7352_vm15, %v10157_v56 }
 0x3b0   : > { %v5578_v25 = vrot.slane %v5564_v31, %v16695_v2  ;;  %v5587_v39 = vcombine.low %v4838_v34, %v4846_v13  ;;  %v8189_v22 = vpop.f32.mrb[55].mxu0  ;;  %v5588_v55 = vcombine.low %v4854_v36, %v4853_v51  ;;  %v4274_v57 = vadd.f32 %v14402_v3, %v4273_v24  ;;  %9766 = vrot.lane.b32.xlu1 %v14365_v1, %s10450_s22 }
 0x3b1   : > { %v4358_v4 = vmax.f32 %v4271_v18, 0.0  ;;  %v4855_v0 = vcombine.high %v4853_v51, %v4853_v51  ;;  %v6075_v31 = vrot.slane %v14435_v48, 1  ;;  %v6253_v44 = vsel %vm804_vm1, %v6251_v29, %v6252_v52 }
 0x3b2   : > { %v14459_v60 = vcombine.low %v5571_v16, %v5578_v25  ;;  %v5595_v61 = vrot.slane %v5587_v39, %v16695_v2  ;;  %v5602_v41 = vrot.slane %v5588_v55, %v16695_v2  ;;  %v4359_v13 = vmax.f32 %v4274_v57, 0.0 }
 0x3b3   : > { %v4856_v37 = vcombine.high %v4358_v4, %v4358_v4  ;;  %v4863_v5 = vrot.slane %v4358_v4, %v16695_v2  ;;  %v6255_v17 = vsel %vm804_vm1, %v6252_v52, %v6254_v30  ;;  %v6077_v16 = vsel %vm551_vm0, %v6075_v31, %v6076_v11  ;;  %9801 = vrot.lane.b32.xlu0 %v14418_v6, %s10459_s23 }
 0x3b4   : > { %v14471_v34 = vcombine.low %v5595_v61, %v5602_v41  ;;  %v4873_v51 = vcombine.high %v4359_v13, %v4359_v13  ;;  %v5586_v25 = vrot.slane %v14429_v54, %v16695_v2  ;;  %v4880_v1 = vrot.slane %v4359_v13, %v16695_v2  ;;  %9776 = vrot.lane.b32.xlu1 %v14418_v6, %s10454_s21 }
 0x3b5   : > { %v4870_v15 = vrot.slane %v4856_v37, %v16695_v2  ;;  %v4871_v28 = vcombine.high %v4863_v5, %v4863_v5  ;;  %v5604_v36 = vcombine.low %v4855_v0, %v4863_v5  ;;  %v6079_v52 = vsel %vm551_vm0, %v6076_v11, %v6078_v35  ;;  %v9532_v41 = vpop.permute.xlu0 %9531 }
 0x3b6   : > { %v4887_v39 = vrot.slane %v4873_v51, %v16695_v2  ;;  %v7354_v61 = vsel %vm7352_vm15, %v10157_v56, 0  ;;  %v14505_v31 = vsel %vm5106_vm13, %v14412_v23, 0.0  ;;  %v14509_v11 = vsel %vm5117_vm14, %v5586_v25, 0.0 }
 0x3b7   : > { %v5605_v18 = vcombine.low %v4871_v28, %v4870_v15  ;;  %v4278_v24 = vpop.f32.mrb[56].mxu0  ;;  %v5612_v4 = vrot.slane %v5604_v36, %v16695_v2  ;;  %v4872_v54 = vcombine.high %v4870_v15, %v4870_v15  ;;  %8227 = vmatpush3.bf16.msra.mxu1 %v7354_v61  ;;  %v4888_v56 = vcombine.high %v4880_v1, %v4880_v1 }
 0x3b8   : > { %v4279_v22 = vadd.f32 %v14402_v3, %v4278_v24  ;;  %v8192_v55 = vpop.f32.mrb[57].mxu0  ;;  %v4889_v57 = vcombine.high %v4887_v39, %v4887_v39  ;;  %v14511_v35 = vpack.i.bf16 %v6255_v17, %v6253_v44  ;;  %9811 = vrot.lane.b32.xlu0 %v14441_v49, %s10460_s28  ;;  %v14515_v6 = vpop.permute.xlu1 %9516  ;;  %v14517_v15 = vpack.i.bf16 %v6079_v52, %v6077_v16 }
 0x3b9   : > { %v5619_v29 = vrot.slane %v5605_v18, %v16695_v2  ;;  %v4281_v30 = vpop.f32.mrb[58].mxu0  ;;  %v5627_v28 = vrot.slane %v4872_v54, %v16695_v2  ;;  %9786 = vrot.lane.b32.xlu1 %v14441_v49, %s10455_s19  ;;  %v14522_v23 = vpop.permute.xlu0 %9541  ;;  %v6083_v18 = vrot.slane %v14509_v11, 1  ;;  %v6081_v17 = vrot.slane %v14459_v60, 1 }
 0x3ba   : > { %v4282_v0 = vadd.f32 %v14402_v3, %v4281_v30  ;;  %v8193_v37 = vpop.f32.mrb[59].mxu0  ;;  %v4360_v13 = vmax.f32 %v4279_v22, 0.0  ;;  %v5629_v36 = vcombine.low %v4887_v39, %v4889_v57  ;;  %v5628_v25 = vcombine.low %v4880_v1, %v4888_v56 }
 0x3bb   : > { %v14500_v5 = vcombine.low %v5612_v4, %v5619_v29  ;;  %v9534_v55 = vunpack.i.h.bf16 %v9532_v41  ;;  %v9533_v4 = vunpack.i.l.bf16 %v9532_v41  ;;  %v6080_v29 = vrot.slane %v14505_v31, 1 }
 0x3bc   : > { %v4361_v51 = vmax.f32 %v4282_v0, 0.0  ;;  %v4890_v44 = vcombine.high %v4360_v13, %v4360_v13  ;;  %v4897_v39 = vrot.slane %v4360_v13, %v16695_v2  ;;  %9821 = vrot.lane.b32.xlu0 %v14468_v38, %s10461_s9  ;;  %v14536_v30 = vsel %vm5117_vm14, %v5627_v28, 0.0  ;;  %v9527_v41 = vpop.permute.xlu1 %9526 }
 0x3bd   : > { %v5643_v1 = vrot.slane %v5629_v36, %v16695_v2  ;;  %9796 = vrot.lane.b32.xlu1 %v14468_v38, %s10458_s1  ;;  %v14543_v52 = vpack.i.bf16 %v14459_v60, %v14505_v31  ;;  %v14548_v61 = vsel %vm5106_vm13, %v14471_v34, 0.0  ;;  %v9519_v57 = vunpack.i.h.bf16 %v14515_v6  ;;  %v9552_v36 = vpop.permute.xlu0 %9551 }
 0x3be   : > { %v4907_v22 = vcombine.high %v4361_v51, %v4361_v51  ;;  %v14528_v16 = vrot.slane %v4361_v51, %v16695_v2  ;;  %16832 = vst [vmem:[#allocation189_spill] sm:$0xff] %v14548_v61  ;;  %v14551_v54 = vrot.slane %v4890_v44, %v16695_v2  ;;  %v14555_v37 = vsel %vm551_vm0, %v6080_v29, %v6081_v17 }
 0x3bf   : > { %v5636_v13 = vrot.slane %v5628_v25, %v16695_v2  ;;  %v6084_v51 = vsel %vm551_vm0, %v6081_v17, %v6083_v18  ;;  %v4905_v24 = vcombine.high %v4897_v39, %v4897_v39  ;;  %v7049_v48 = vsel %vm2330_vm9, %v14410_v46, %v9534_v55 }
 0x3c0   : > { %v4921_v56 = vrot.slane %v4907_v22, %v16695_v2  ;;  %v4922_v28 = vcombine.high %v14528_v16, %v14528_v16  ;;  %v7048_v29 = vsel %vm2330_vm9, %v14439_v63, %v9533_v4  ;;  %9831 = vrot.lane.b32.xlu0 %v14511_v35, %s10461_s9  ;;  %v9518_v20 = vunpack.i.l.bf16 %v14515_v6 }
 0x3c1   : > { %v14569_v22 = vcombine.low %v5636_v13, %v5643_v1  ;;  %v9543_v18 = vunpack.i.l.bf16 %v14522_v23  ;;  %9806 = vrot.lane.b32.xlu1 %v14480_v10, %s10459_s23  ;;  %v6987_v63 = vsel %vm2110_vm4, %v14063_v42, %v9519_v57  ;;  %v9529_v1 = vunpack.i.h.bf16 %v9527_v41 }
 0x3c2   : > { %v5669_v6 = vcombine.low %v4922_v28, %v4921_v56  ;;  %v9528_v13 = vunpack.i.l.bf16 %v9527_v41  ;;  %v9554_v44 = vunpack.i.h.bf16 %v9552_v36  ;;  %v9553_v50 = vunpack.i.l.bf16 %v9552_v36 }
 0x3c3   : > { %v4286_v0 = vpop.f32.mrb[60].mxu0  ;;  %v7080_v28 = vsel %vm2440_vm11, %v7048_v29, %v9543_v18 }
 0x3c4   : > { %v8196_v34 = vpop.f32.mrb[61].mxu0  ;;  %v4287_v55 = vadd.f32 %v14402_v3, %v4286_v0  ;;  %9841 = vrot.lane.b32.xlu0 %v14468_v38, %s10450_s22  ;;  %v6986_v0 = vsel %vm2110_vm4, %v14058_v7, %v9518_v20  ;;  %v7019_v7 = vsel %vm2220_vm7, %v6987_v63, %v9529_v1  ;;  %v7113_v29 = vsel %vm7112_vm2, %v7080_v28, %v9553_v50 }
 0x3c5   : > { %v4289_v25 = vpop.f32.mrb[62].mxu0  ;;  %v9544_v34 = vunpack.i.h.bf16 %v14522_v23  ;;  %v14582_v23 = vpop.permute.xlu0 %9561  ;;  %9816 = vrot.lane.b32.xlu1 %v14517_v15, %s10460_s28  ;;  %v14619_v1 = vpack.i.bf16 %v6084_v51, %v14555_v37 }
 0x3c6   : > { %v8197_v17 = vpop.f32.mrb[63].mxu0  ;;  %v4290_v4 = vadd.f32 %v14402_v3, %v4289_v25  ;;  %v14584_v43 = vpop.permute.xlu1 %9536  ;;  %v4362_v46 = vmax.f32 %v4287_v55, 0.0  ;;  %v5677_v55 = vrot.slane %v5669_v6, %v16695_v2  ;;  %v9564_v63 = vunpack.i.h.bf16 %v14582_v23 }
 0x3c7   : > { %v14586_v17 = vcombine.low %v4897_v39, %v4905_v24  ;;  %v7081_v41 = vsel %vm2440_vm11, %v7049_v48, %v9544_v34  ;;  %v4923_v24 = vcombine.high %v4921_v56, %v4921_v56 }
 0x3c8   : > { %v4363_v42 = vmax.f32 %v4290_v4, 0.0  ;;  %v4924_v39 = vcombine.high %v4362_v46, %v4362_v46  ;;  %v4931_v36 = vrot.slane %v4362_v46, %v16695_v2  ;;  %v14601_v4 = vsel %vm2220_vm7, %v6986_v0, %v9528_v13  ;;  %9851 = vrot.lane.b32.xlu0 %v14480_v10, %s10454_s21 }
 0x3c9   : > { %v7114_v20 = vsel %vm7112_vm2, %v7081_v41, %v9554_v44  ;;  %v9572_v46 = vpop.permute.xlu0 %9571  ;;  %v9563_v44 = vunpack.i.l.bf16 %v14582_v23  ;;  %9826 = vrot.lane.b32.xlu1 %v14441_v49, %s10448_s18 }
 0x3ca   : > { %v4941_v38 = vcombine.high %v4363_v42, %v4363_v42  ;;  %v4938_v56 = vrot.slane %v4924_v39, %v16695_v2  ;;  %v4939_v34 = vcombine.high %v4931_v36, %v4931_v36  ;;  %v5670_v18 = vcombine.low %v4923_v24, %v4931_v36  ;;  %v14609_v6 = vpop.permute.xlu1 %9546 }
 0x3cb   : > { %v4294_v25 = vpop.f32.mrb[64].mxu0  ;;  %v14612_v13 = vrot.slane %v4363_v42, %v16695_v2  ;;  %v9539_v42 = vunpack.i.h.bf16 %v14584_v43  ;;  %v9538_v39 = vunpack.i.l.bf16 %v14584_v43 }
 0x3cc   : > { %v8200_v48 = vpop.f32.mrb[65].mxu0  ;;  %v5684_v0 = vrot.slane %v5670_v18, %v16695_v2  ;;  %v5686_v10 = vcombine.low %v4939_v34, %v4938_v56  ;;  %v4940_v41 = vcombine.high %v4938_v56, %v4938_v56  ;;  %v4955_v28 = vrot.slane %v4941_v38, %v16695_v2  ;;  %9861 = vrot.lane.b32.xlu0 %v14517_v15, %s10455_s19 }
 0x3cd   : > { %v4297_v50 = vpop.f32.mrb[66].mxu0  ;;  %v9574_v48 = vunpack.i.h.bf16 %v9572_v46  ;;  %v9582_v37 = vpop.permute.xlu0 %9581  ;;  %v7147_v38 = vsel %vm7145_vm3, %v7114_v20, %v9564_v63  ;;  %v9573_v56 = vunpack.i.l.bf16 %v9572_v46  ;;  %v4295_v34 = vadd.f32 %v14402_v3, %v4294_v25  ;;  %9836 = vrot.lane.b32.xlu1 %v14517_v15, %s10448_s18 }
 0x3ce   : > { %v8201_v24 = vpop.f32.mrb[67].mxu0  ;;  %v14626_v36 = vcombine.low %v5677_v55, %v5684_v0  ;;  %v5687_v49 = vcombine.low %v4940_v41, %v14612_v13  ;;  %v4298_v43 = vadd.f32 %v14402_v3, %v4297_v50  ;;  %v9557_v55 = vpop.permute.xlu1 %9556  ;;  %v5694_v18 = vrot.slane %v5686_v10, %v16695_v2 }
 0x3cf   : > { %v4957_v0 = vcombine.high %v4955_v28, %v4955_v28  ;;  %v7146_v24 = vsel %vm7145_vm3, %v7113_v29, %v9563_v44  ;;  %v7051_v57 = vsel %vm2330_vm9, %v7019_v7, %v9539_v42  ;;  %v9549_v20 = vunpack.i.h.bf16 %v14609_v6 }
 0x3d0   : > { %v5701_v41 = vrot.slane %v5687_v49, %v16695_v2  ;;  %v4364_v46 = vmax.f32 %v4295_v34, 0.0  ;;  %v4365_v25 = vmax.f32 %v4298_v43, 0.0  ;;  %v7180_v15 = vsel %vm7178_vm5, %v7147_v38, %v9574_v48  ;;  %9871 = vrot.lane.b32.xlu0 %v14511_v35, %s10458_s1 }
 0x3d1   : > { %v9584_v50 = vunpack.i.h.bf16 %v9582_v37  ;;  %v9583_v23 = vunpack.i.l.bf16 %v9582_v37  ;;  %v7179_v10 = vsel %vm7178_vm5, %v7146_v24, %v9573_v56  ;;  %9846 = vrot.lane.b32.xlu1 %v14511_v35, %s10450_s22  ;;  %v5710_v42 = vcombine.low %v4955_v28, %v4957_v0  ;;  %v9592_v38 = vpop.permute.xlu0 %9591 }
 0x3d2   : > { %v14642_v63 = vcombine.low %v5694_v18, %v5701_v41  ;;  %v4958_v49 = vcombine.high %v4364_v46, %v4364_v46  ;;  %v4965_v29 = vrot.slane %v4364_v46, %v16695_v2  ;;  %v4982_v7 = vrot.slane %v4365_v25, %v16695_v2  ;;  %v9567_v44 = vpop.permute.xlu1 %9566 }
 0x3d3   : > { %v9548_v34 = vunpack.i.l.bf16 %v14609_v6  ;;  %v7212_v48 = vsel %vm7211_vm6, %v7179_v10, %v9583_v23  ;;  %v9559_v37 = vunpack.i.h.bf16 %v9557_v55  ;;  %v7213_v41 = vsel %vm7211_vm6, %v7180_v15, %v9584_v50 }
 0x3d4   : > { %v4972_v43 = vrot.slane %v4958_v49, %v16695_v2  ;;  %v4973_v18 = vcombine.high %v4965_v29, %v4965_v29  ;;  %v4990_v56 = vcombine.high %v4982_v7, %v4982_v7  ;;  %v7050_v24 = vsel %vm2330_vm9, %v14601_v4, %v9538_v39  ;;  %9881 = vrot.lane.b32.xlu0 %v14543_v52, %s10459_s23 }
 0x3d5   : > { %v4975_v46 = vcombine.high %v4365_v25, %v4365_v25  ;;  %v9558_v51 = vunpack.i.l.bf16 %v9557_v55  ;;  %v9569_v35 = vunpack.i.h.bf16 %v9567_v44  ;;  %v7083_v28 = vsel %vm2440_vm11, %v7051_v57, %v9549_v20  ;;  %9856 = vrot.lane.b32.xlu1 %v14543_v52, %s10454_s21  ;;  %v14665_v25 = vpop.permute.xlu0 %9601 }
 0x3d6   : > { %v4974_v23 = vcombine.high %v4972_v43, %v4972_v43  ;;  %v5711_v0 = vcombine.low %v4965_v29, %v4973_v18  ;;  %v5728_v10 = vcombine.low %v4982_v7, %v4990_v56  ;;  %v5718_v15 = vrot.slane %v5710_v42, %v16695_v2  ;;  %v9577_v50 = vpop.permute.xlu1 %9576 }
 0x3d7   : > { %v7082_v4 = vsel %vm2440_vm11, %v7050_v24, %v9548_v34  ;;  %v9568_v39 = vunpack.i.l.bf16 %v9567_v44  ;;  %v7244_v55 = vpack.c.bf16 %v7213_v41, %v7212_v48  ;;  %v7116_v20 = vsel %vm7112_vm2, %v7083_v28, %v9559_v37 }
 0x3d8   : > { %v4302_v6 = vpop.f32.mrb[68].mxu0  ;;  %v5725_v14 = vrot.slane %v5711_v0, %v16695_v2  ;;  %v5727_v62 = vcombine.low %v4972_v43, %v4974_v23  ;;  %v5742_v57 = vrot.slane %v5728_v10, %v16695_v2  ;;  %v14671_v52 = vrot.slane %v4975_v46, %v16695_v2  ;;  %9891 = vrot.lane.b32.xlu0 %v14619_v1, %s10460_s28 }
 0x3d9   : > { %v8204_v49 = vpop.f32.mrb[69].mxu0  ;;  %v7115_v7 = vsel %vm7112_vm2, %v7082_v4, %v9558_v51  ;;  %v7149_v42 = vsel %vm7145_vm3, %v7116_v20, %v9569_v35  ;;  %v9594_v44 = vunpack.i.h.bf16 %v9592_v38  ;;  %8228 = vmatprep.mubr.msk.bf16.mxu1 %vm7303_vm8, %v7244_v55  ;;  %v9579_v37 = vunpack.i.h.bf16 %v9577_v50  ;;  %9866 = vrot.lane.b32.xlu1 %v14619_v1, %s10455_s19  ;;  %v14686_v46 = vpop.permute.xlu0 %9611 }
 0x3da   : > { %v4305_v29 = vpop.f32.mrb[70].mxu0  ;;  %v14678_v48 = vcombine.low %v5718_v15, %v5725_v14  ;;  %v5735_v43 = vrot.slane %v5727_v62, %v16695_v2  ;;  %v9578_v18 = vunpack.i.l.bf16 %v9577_v50  ;;  %v7148_v51 = vsel %vm7145_vm3, %v7115_v7, %v9568_v39  ;;  %v14688_v35 = vpop.permute.xlu1 %9586 }
 0x3db   : > { %v8205_v34 = vpop.f32.mrb[71].mxu0  ;;  %v9593_v56 = vunpack.i.l.bf16 %v9592_v38  ;;  %v4303_v41 = vadd.f32 %v14402_v3, %v4302_v6  ;;  %v4306_v24 = vadd.f32 %v14402_v3, %v4305_v29  ;;  %v4956_v14 = vcombine.high %v14612_v13, %v14612_v13 }
 0x3dc   : > { %v14692_v62 = vcombine.low %v5735_v43, %v5742_v57  ;;  %v7182_v28 = vsel %vm7178_vm5, %v7149_v42, %v9579_v37  ;;  %v7181_v23 = vsel %vm7178_vm5, %v7148_v51, %v9578_v18  ;;  %v16833_v49 = vcombine.high %v14551_v54, %v14551_v54 }
 0x3dd   : > { %v7215_v0 = vsel %vm7211_vm6, %v7182_v28, %v9594_v44  ;;  %v7214_v38 = vsel %vm7211_vm6, %v7181_v23, %v9593_v56  ;;  %v4366_v6 = vmax.f32 %v4303_v41, 0.0  ;;  %v4367_v10 = vmax.f32 %v4306_v24, 0.0  ;;  %v14711_v42 = vpop.permute.xlu0 %9621 }
 0x3de   : > { %v5646_v15 = vcombine.low %v14551_v54, %v16833_v49  ;;  %v7245_v4 = vpack.c.bf16 %v7215_v0, %v7214_v38  ;;  %v4991_v13 = vcombine.high %v14671_v52, %v14671_v52  ;;  %v16834_v39 = vrot.slane %v14459_v60, 2  ;;  %v14713_v44 = vpop.permute.xlu1 %9596 }
 0x3df   : > { %v16835_v55 = vrot.slane %v14505_v31, 2  ;;  %v4992_v57 = vcombine.high %v4366_v6, %v4366_v6  ;;  %v4999_v20 = vrot.slane %v4366_v6, %v16695_v2  ;;  %v5009_v29 = vcombine.high %v4367_v10, %v4367_v10 }
 0x3e0   : > { %v5016_v7 = vrot.slane %v4367_v10, %v16695_v2  ;;  %v6264_v54 = vrot.slane %v14536_v30, 2  ;;  %v14719_v34 = vsel %vm5106_vm13, %v14569_v22, 0.0  ;;  %v5709_v43 = vrot.slane %v4956_v14, %v16695_v2  ;;  %8229 = vmatmul.mubr.msk.bf16.vlgmr.msra.gmra.mrb[8].mxu1 %vm7303_vm8, %v7245_v4 }
 0x3e1   : > { %v6258_v50 = vsel %vm804_vm1, %v16835_v55, %v16834_v39  ;;  %v16836_v37 = vrot.slane %v14509_v11, 2  ;;  %v16837_v18 = vmov %v16834_v39  ;;  %v5006_v41 = vrot.slane %v4992_v57, %v16695_v2 }
 0x3e2   : > { %v5007_v24 = vcombine.high %v4999_v20, %v4999_v20  ;;  %v5751_v28 = vcombine.low %v4991_v13, %v4999_v20  ;;  %v14730_v23 = vrot.slane %v5009_v29, %v16695_v2  ;;  %v5653_v14 = vrot.slane %v14586_v17, %v16695_v2  ;;  %v14748_v17 = vpop.permute.xlu0 %9631  ;;  %v14758_v57 = vpop.permute.xlu1 %9606 }
 0x3e3   : > { %v6260_v51 = vsel %vm804_vm1, %v16837_v18, %v16836_v37  ;;  %v5660_v11 = vrot.slane %v5646_v15, %v16695_v2  ;;  %v5024_v0 = vcombine.high %v5016_v7, %v5016_v7  ;;  %v16838_v10 = vrot.slane %v14528_v16, %v16695_v2 }
 0x3e4   : > { %v4310_v56 = vpop.f32.mrb[72].mxu0  ;;  %v14735_v38 = vpack.i.bf16 %v6260_v51, %v6258_v50  ;;  %v5750_v4 = vrot.slane %v14671_v52, %v16695_v2  ;;  %v5752_v13 = vcombine.low %v5007_v24, %v5006_v41  ;;  %v5008_v39 = vcombine.high %v5006_v41, %v5006_v41 }
 0x3e5   : > { %v8208_v22 = vpop.f32.mrb[73].mxu0  ;;  %v14744_v49 = vsel %vm5117_vm14, %v16838_v10, 0.0  ;;  %v14752_v55 = vsel %vm5117_vm14, %v5709_v43, 0.0  ;;  %v5769_v50 = vcombine.low %v5024_v0, %v14730_v23  ;;  %v9588_v16 = vunpack.i.l.bf16 %v14688_v35 }
 0x3e6   : > { %v14737_v6 = vpop.f32.mrb[74].mxu0  ;;  %9901 = vrot.lane.b32.xlu0 %v14735_v38, %s10461_s9  ;;  %v5759_v52 = vrot.slane %v5751_v28, %v16695_v2  ;;  %v5766_v20 = vrot.slane %v5752_v13, %v16695_v2  ;;  %v5768_v29 = vcombine.low %v5008_v39, %v5016_v7  ;;  %v9589_v37 = vunpack.i.h.bf16 %v14688_v35  ;;  %9876 = vrot.lane.b32.xlu1 %v14735_v38, %s10458_s1  ;;  %v14781_v22 = vpop.permute.xlu0 %9641 }
 0x3e7   : > { %v8209_v15 = vpop.f32.mrb[75].mxu0  ;;  %v14763_v18 = vcombine.low %v5653_v14, %v5660_v11  ;;  %v5783_v41 = vrot.slane %v5769_v50, %v16695_v2  ;;  %v14772_v24 = vsel %vm5117_vm14, %v5750_v4, 0.0  ;;  %v14779_v35 = vpack.i.bf16 %v14500_v5, %v14548_v61  ;;  %v14792_v4 = vpop.permute.xlu1 %9616 }
 0x3e8   : > { %v14774_v28 = vcombine.low %v5759_v52, %v5766_v20  ;;  %v5776_v7 = vrot.slane %v5768_v29, %v16695_v2  ;;  %v14786_v14 = vsel %vm5106_vm13, %v14626_v36, 0.0  ;;  %v9603_v0 = vunpack.i.l.bf16 %v14665_v25 }
 0x3e9   : > { %v6988_v10 = vsel %vm2110_vm4, %v14089_v27, %v9588_v16  ;;  %v6989_v39 = vsel %vm2110_vm4, %v14099_v21, %v9589_v37  ;;  %v6261_v15 = vrot.slane %v14548_v61, 2  ;;  %v6262_v50 = vrot.slane %v14500_v5, 2 }
 0x3ea   : > { %v14794_v13 = vcombine.low %v5776_v7, %v5783_v41  ;;  %v9604_v20 = vunpack.i.h.bf16 %v14665_v25  ;;  %9886 = vrot.lane.b32.xlu1 %v14779_v35, %s10459_s23  ;;  %v4311_v27 = vadd.f32 %v14402_v3, %v4310_v56  ;;  %v7020_v21 = vsel %vm2220_vm7, %v6988_v10, %v9603_v0  ;;  %v14812_v7 = vpop.permute.xlu0 %9651 }
 0x3eb   : > { %v6263_v37 = vsel %vm804_vm1, %v6261_v15, %v6262_v50  ;;  %v6265_v41 = vsel %vm804_vm1, %v6262_v50, %v6264_v54  ;;  %v9613_v25 = vunpack.i.l.bf16 %v14686_v46  ;;  %v14818_v51 = vpop.permute.xlu1 %9626  ;;  %v14823_v0 = vsel %vm5106_vm13, %v14678_v48, 0.0 }
 0x3ec   : > { %v7021_v11 = vsel %vm2220_vm7, %v6989_v39, %v9604_v20  ;;  %v14816_v36 = vpack.i.bf16 %v6265_v41, %v6263_v37  ;;  %v4368_v56 = vmax.f32 %v4311_v27, 0.0  ;;  %v5025_v54 = vcombine.high %v14730_v23, %v14730_v23 }
 0x3ed   : > { %v9614_v10 = vunpack.i.h.bf16 %v14686_v46  ;;  %v9624_v15 = vunpack.i.h.bf16 %v14711_v42  ;;  %v9623_v39 = vunpack.i.l.bf16 %v14711_v42  ;;  %v6086_v48 = vrot.slane %v14500_v5, 1 }
 0x3ee   : > { %9911 = vrot.lane.b32.xlu0 %v14816_v36, %s10461_s9  ;;  %v9599_v23 = vunpack.i.h.bf16 %v14713_v44  ;;  %v4314_v46 = vadd.f32 %v14402_v3, %v14737_v6  ;;  %v9662_v27 = vpop.permute.xlu0 %9661  ;;  %v5026_v37 = vcombine.high %v4368_v56, %v4368_v56  ;;  %v5033_v42 = vrot.slane %v4368_v56, %v16695_v2 }
 0x3ef   : > { %v14806_v16 = vpop.f32.mrb[0].mxu1  ;;  %v7053_v20 = vsel %vm2330_vm9, %v7021_v11, %v9614_v10  ;;  %v16839_v41 = vrot.slane %v14536_v30, 1  ;;  %v9598_v29 = vunpack.i.l.bf16 %v14713_v44  ;;  %v9634_v11 = vunpack.i.h.bf16 %v14748_v17 }
 0x3f0   : > { %v8212_v52 = vpop.f32.mrb[1].mxu1  ;;  %v9633_v10 = vunpack.i.l.bf16 %v14748_v17  ;;  %v5791_v3 = vrot.slane %v5025_v54, %v16695_v2  ;;  %v9609_v56 = vunpack.i.h.bf16 %v14758_v57  ;;  %v6991_v44 = vsel %vm2110_vm4, %v14125_v9, %v9599_v23 }
 0x3f1   : > { %v4321_v43 = vpop.f32.mrb[2].mxu1  ;;  %v7052_v52 = vsel %vm2330_vm9, %v7020_v21, %v9613_v25  ;;  %v6089_v25 = vsel %vm551_vm0, %v6086_v48, %v16839_v41  ;;  %v4369_v41 = vmax.f32 %v4314_v46, 0.0  ;;  %v9644_v17 = vunpack.i.h.bf16 %v14781_v22 }
 0x3f2   : > { %v8213_v50 = vpop.f32.mrb[3].mxu1  ;;  %v6085_v43 = vrot.slane %v14548_v61, 1  ;;  %v7084_v6 = vsel %vm2440_vm11, %v7052_v52, %v9623_v39  ;;  %9921 = vrot.lane.b32.xlu0 %v14735_v38, %s10450_s22  ;;  %v14860_v54 = vpop.permute.xlu0 %9671  ;;  %v14863_v52 = vrot.slane %v5026_v37, %v16695_v2  ;;  %v9643_v38 = vunpack.i.l.bf16 %v14781_v22 }
 0x3f3   : > { %v14844_v50 = vpop.permute.xlu1 %9636  ;;  %v7117_v9 = vsel %vm7112_vm2, %v7084_v6, %v9633_v10  ;;  %v9654_v37 = vunpack.i.h.bf16 %v14812_v7  ;;  %v9653_v22 = vunpack.i.l.bf16 %v14812_v7  ;;  %v16845_v40 = vrot.slane %v14772_v24, 2 }
 0x3f4   : > { %v6087_v21 = vsel %vm551_vm0, %v6085_v43, %v6086_v48  ;;  %v9608_v43 = vunpack.i.l.bf16 %v14758_v57  ;;  %v7085_v48 = vsel %vm2440_vm11, %v7053_v20, %v9624_v15  ;;  %v5041_v57 = vcombine.high %v5033_v42, %v5033_v42 }
 0x3f5   : > { %v9895_v61 = vpack.i.bf16 %v6089_v25, %v6087_v21  ;;  %v6990_v15 = vsel %vm2110_vm4, %v14137_v32, %v9598_v29  ;;  %v7118_v20 = vsel %vm7112_vm2, %v7085_v48, %v9634_v11  ;;  %v9619_v29 = vunpack.i.h.bf16 %v14792_v4 }
 0x3f6   : > { %v7022_v46 = vsel %vm2220_vm7, %v6990_v15, %v9608_v43  ;;  %9931 = vrot.lane.b32.xlu0 %v14779_v35, %s10454_s21  ;;  %v7151_v32 = vsel %vm7145_vm3, %v7118_v20, %v9644_v17  ;;  %v14883_v11 = vpop.permute.xlu0 %9681  ;;  %v5042_v35 = vcombine.high %v14863_v52, %v14863_v52  ;;  %v14887_v10 = vcombine.low %v5033_v42, %v5041_v57 }
 0x3f7   : > { %v4326_v30 = vpop.f32.mrb[4].mxu1  ;;  %9896 = vrot.lane.b32.xlu1 %v9895_v61, %s10460_s28  ;;  %v9647_v21 = vpop.permute.xlu1 %9646  ;;  %v7150_v7 = vsel %vm7145_vm3, %v7117_v9, %v9643_v38  ;;  %v9664_v43 = vunpack.i.h.bf16 %v9662_v27  ;;  %v9663_v48 = vunpack.i.l.bf16 %v9662_v27  ;;  %v9628_v17 = vunpack.i.l.bf16 %v14818_v51 }
 0x3f8   : > { %v8216_v39 = vpop.f32.mrb[5].mxu1  ;;  %v7023_v30 = vsel %vm2220_vm7, %v6991_v44, %v9609_v56  ;;  %v9618_v56 = vunpack.i.l.bf16 %v14792_v4  ;;  %v7184_v44 = vsel %vm7178_vm5, %v7151_v32, %v9654_v37  ;;  %v9639_v4 = vunpack.i.h.bf16 %v14844_v50 }
 0x3f9   : > { %v4329_v25 = vpop.f32.mrb[6].mxu1  ;;  %v5043_v39 = vcombine.high %v4369_v41, %v4369_v41  ;;  %v7217_v57 = vsel %vm7211_vm6, %v7184_v44, %v9664_v43  ;;  %v9638_v27 = vunpack.i.l.bf16 %v14844_v50  ;;  %v7055_v9 = vsel %vm2330_vm9, %v7023_v30, %v9619_v29 }
 0x3fa   : > { %v8217_v23 = vpop.f32.mrb[7].mxu1  ;;  %v14877_v25 = vrot.slane %v4369_v41, %v16695_v2  ;;  %v7183_v41 = vsel %vm7178_vm5, %v7150_v7, %v9653_v22  ;;  %9941 = vrot.lane.b32.xlu0 %v9895_v61, %s10455_s19  ;;  %v14901_v38 = vpop.permute.xlu0 %9691  ;;  %v9648_v37 = vunpack.i.l.bf16 %v9647_v21  ;;  %v14910_v22 = vsel %vm5117_vm14, %v5791_v3, 0.0 }
 0x3fb   : > { %9906 = vrot.lane.b32.xlu1 %v14619_v1, %s10448_s18  ;;  %v9657_v6 = vpop.permute.xlu1 %9656  ;;  %v9629_v1 = vunpack.i.h.bf16 %v14818_v51  ;;  %v7216_v42 = vsel %vm7211_vm6, %v7183_v41, %v9663_v48  ;;  %v14904_v15 = vrot.slane %v5043_v39, %v16695_v2  ;;  %v7054_v23 = vsel %vm2330_vm9, %v7022_v46, %v9618_v56 }
 0x3fc   : > { %v7246_v51 = vpack.c.bf16 %v7217_v57, %v7216_v42  ;;  %v5058_v50 = vcombine.high %v14877_v25, %v14877_v25  ;;  %v7086_v39 = vsel %vm2440_vm11, %v7054_v23, %v9628_v17  ;;  %v9674_v3 = vunpack.i.h.bf16 %v14860_v54 }
 0x3fd   : > { %v7087_v32 = vsel %vm2440_vm11, %v7055_v9, %v9629_v1  ;;  %v7119_v46 = vsel %vm7112_vm2, %v7086_v39, %v9638_v27  ;;  %v9659_v30 = vunpack.i.h.bf16 %v9657_v6  ;;  %v9960_v7 = vpack.i.bf16 %v14763_v18, %v14719_v34 }
 0x3fe   : > { %9951 = vrot.lane.b32.xlu0 %v14816_v36, %s10458_s1  ;;  %8232 = vmatprep.mubr.msk.bf16.mxu1 %vm7303_vm8, %v7246_v51  ;;  %v14924_v29 = vpop.permute.xlu0 %9701  ;;  %v9658_v56 = vunpack.i.l.bf16 %v9657_v6  ;;  %v6090_v43 = vrot.slane %v14719_v34, 1  ;;  %v6091_v48 = vrot.slane %v14763_v18, 1  ;;  %v7152_v1 = vsel %vm7145_vm3, %v7119_v46, %v9648_v37 }
 0x3ff   : > { %9916 = vrot.lane.b32.xlu1 %v9895_v61, %s10448_s18  ;;  %v9667_v20 = vpop.permute.xlu1 %9666  ;;  %v9649_v61 = vunpack.i.h.bf16 %v9647_v21  ;;  %v7120_v21 = vsel %vm7112_vm2, %v7087_v32, %v9639_v4  ;;  %v16840_v6 = vrot.slane %v14744_v49, 1  ;;  %v9673_v27 = vunpack.i.l.bf16 %v14860_v54 }
 0x400   : > { %v7185_v42 = vsel %vm7178_vm5, %v7152_v1, %v9658_v56  ;;  %v6092_v57 = vsel %vm551_vm0, %v6090_v43, %v6091_v48  ;;  %v9684_v9 = vunpack.i.h.bf16 %v14883_v11  ;;  %v9683_v51 = vunpack.i.l.bf16 %v14883_v11 }
 0x401   : > { %v7153_v41 = vsel %vm7145_vm3, %v7120_v21, %v9649_v61  ;;  %v6094_v4 = vsel %vm551_vm0, %v6091_v48, %v16840_v6  ;;  %v9668_v32 = vunpack.i.l.bf16 %v9667_v20  ;;  %v6266_v39 = vrot.slane %v14719_v34, 2 }
 0x402   : > { %9961 = vrot.lane.b32.xlu0 %v9960_v7, %s10459_s23  ;;  %v7186_v17 = vsel %vm7178_vm5, %v7153_v41, %v9659_v30  ;;  %v14945_v23 = vpack.i.bf16 %v6094_v4, %v6092_v57  ;;  %v14947_v61 = vpop.permute.xlu0 %9711  ;;  %v6267_v46 = vrot.slane %v14763_v18, 2  ;;  %v7218_v30 = vsel %vm7211_vm6, %v7185_v42, %v9673_v27 }
 0x403   : > { %9926 = vrot.lane.b32.xlu1 %v14816_v36, %s10450_s22  ;;  %v14930_v44 = vpop.permute.xlu1 %9676  ;;  %v9669_v36 = vunpack.i.h.bf16 %v9667_v20  ;;  %v7219_v11 = vsel %vm7211_vm6, %v7186_v17, %v9674_v3  ;;  %v16841_v20 = vrot.slane %v14744_v49, 2  ;;  %v14970_v48 = vcombine.low %v14863_v52, %v5042_v35 }
 0x404   : > { %v7247_v43 = vpack.c.bf16 %v7219_v11, %v7218_v30  ;;  %v9694_v3 = vunpack.i.h.bf16 %v14901_v38  ;;  %v6108_v49 = vrot.slane %v14910_v22, 1  ;;  %v9704_v17 = vunpack.i.h.bf16 %v14924_v29 }
 0x405   : > { %v6993_v37 = vsel %vm2110_vm4, %v14186_v59, %v9669_v36  ;;  %v6268_v59 = vsel %vm804_vm1, %v6266_v39, %v6267_v46  ;;  %v6270_v56 = vsel %vm804_vm1, %v6267_v46, %v16841_v20  ;;  %v9703_v52 = vunpack.i.l.bf16 %v14924_v29 }
 0x406   : > { %v7025_v54 = vsel %vm2220_vm7, %v6993_v37, %v9684_v9  ;;  %9971 = vrot.lane.b32.xlu0 %v14945_v23, %s10460_s28  ;;  %v9722_v1 = vpop.permute.xlu0 %9721  ;;  %v9980_v36 = vpack.i.bf16 %v6270_v56, %v6268_v59  ;;  %8233 = vmatmul.mubr.msk.bf16.gmra.mrb[12].mxu1 %vm7303_vm8, %v7247_v43  ;;  %v5800_v42 = vrot.slane %v14887_v10, %v16695_v2  ;;  %v9679_v6 = vunpack.i.h.bf16 %v14930_v44 }
 0x407   : > { %9936 = vrot.lane.b32.xlu1 %v9960_v7, %s10454_s21  ;;  %v14953_v21 = vpop.permute.xlu1 %9686  ;;  %v6992_v7 = vsel %vm2110_vm4, %v14192_v33, %v9668_v32  ;;  %v9693_v33 = vunpack.i.l.bf16 %v14901_v38  ;;  %v7057_v38 = vsel %vm2330_vm9, %v7025_v54, %v9694_v3  ;;  %v9678_v4 = vunpack.i.l.bf16 %v14930_v44  ;;  %v10159_v32 = vld [vmem:[#allocation7] ss:$0 sm:$0xff] }
 0x408   : > { %v7024_v41 = vsel %vm2220_vm7, %v6992_v7, %v9683_v51  ;;  %v6271_v27 = vrot.slane %v14786_v14, 2  ;;  %v6272_v9 = vrot.slane %v14642_v63, 2  ;;  %v5807_v29 = vrot.slane %v14970_v48, %v16695_v2 }
 0x409   : > { %v7056_v57 = vsel %vm2330_vm9, %v7024_v41, %v9693_v33  ;;  %v5059_v51 = vcombine.high %v14904_v15, %v14904_v15  ;;  %v15000_v37 = vcombine.low %v14877_v25, %v5058_v50  ;;  %v15003_v39 = vadd.f32 %v10159_v32, %v14806_v16 }
 0x40a   : > { %9981 = vrot.lane.b32.xlu0 %v9980_v36, %s10461_s9  ;;  %v9732_v44 = vpop.permute.xlu0 %9731  ;;  %v7088_v46 = vsel %vm2440_vm11, %v7056_v57, %v9703_v52  ;;  %v7089_v54 = vsel %vm2440_vm11, %v7057_v38, %v9704_v17  ;;  %v6273_v30 = vsel %vm804_vm1, %v6271_v27, %v6272_v9  ;;  %v16842_v11 = vrot.slane %v14752_v55, 2 }
 0x40b   : > { %9946 = vrot.lane.b32.xlu1 %v14945_v23, %s10455_s19  ;;  %v14981_v35 = vpop.permute.xlu1 %9696  ;;  %v9965_v25 = vpack.i.bf16 %v14642_v63, %v14786_v14  ;;  %v9714_v16 = vunpack.i.h.bf16 %v14947_v61  ;;  %v9713_v20 = vunpack.i.l.bf16 %v14947_v61  ;;  %v6995_v56 = vsel %vm2110_vm4, %v14199_v8, %v9679_v6 }
 0x40c   : > { %v6275_v7 = vsel %vm804_vm1, %v6272_v9, %v16842_v11  ;;  %v6994_v43 = vsel %vm2110_vm4, %v14222_v47, %v9678_v4  ;;  %v6095_v3 = vrot.slane %v14786_v14, 1  ;;  %v6096_v33 = vrot.slane %v14642_v63, 1 }
 0x40d   : > { %v15014_v50 = vpack.i.bf16 %v6275_v7, %v6273_v30  ;;  %v9689_v41 = vunpack.i.h.bf16 %v14953_v21  ;;  %v9688_v17 = vunpack.i.l.bf16 %v14953_v21  ;;  %v9724_v61 = vunpack.i.h.bf16 %v9722_v1 }
 0x40e   : > { %v9723_v52 = vunpack.i.l.bf16 %v9722_v1  ;;  %v9742_v57 = vpop.permute.xlu0 %9741  ;;  %v6097_v8 = vsel %vm551_vm0, %v6095_v3, %v6096_v33  ;;  %v16843_v47 = vrot.slane %v14752_v55, 1  ;;  %v9734_v6 = vunpack.i.h.bf16 %v9732_v44 }
 0x40f   : > { %9956 = vrot.lane.b32.xlu1 %v9980_v36, %s10458_s1  ;;  %v9707_v59 = vpop.permute.xlu1 %9706  ;;  %9991 = vrot.lane.b32.xlu0 %v15014_v50, %s10461_s9  ;;  %v7121_v27 = vsel %vm7112_vm2, %v7088_v46, %v9713_v20  ;;  %v7122_v9 = vsel %vm7112_vm2, %v7089_v54, %v9714_v16  ;;  %v9699_v30 = vunpack.i.h.bf16 %v14981_v35  ;;  %v9698_v21 = vunpack.i.l.bf16 %v14981_v35 }
 0x410   : > { %v6099_v38 = vsel %vm551_vm0, %v6096_v33, %v16843_v47  ;;  %v9733_v11 = vunpack.i.l.bf16 %v9732_v44  ;;  %v7155_v55 = vsel %vm7145_vm3, %v7122_v9, %v9724_v61  ;;  %v7154_v1 = vsel %vm7145_vm3, %v7121_v27, %v9723_v52 }
 0x411   : > { %v9975_v32 = vpack.i.bf16 %v6099_v38, %v6097_v8  ;;  %v9744_v7 = vunpack.i.h.bf16 %v9742_v57  ;;  %v9743_v3 = vunpack.i.l.bf16 %v9742_v57  ;;  %v7188_v46 = vsel %vm7178_vm5, %v7155_v55, %v9734_v6 }
 0x412   : > { %v9752_v33 = vpop.permute.xlu0 %9751  ;;  %v7187_v54 = vsel %vm7178_vm5, %v7154_v1, %v9733_v11  ;;  %v9709_v16 = vunpack.i.h.bf16 %v9707_v59  ;;  %v9708_v20 = vunpack.i.l.bf16 %v9707_v59  ;;  %v7026_v61 = vsel %vm2220_vm7, %v6994_v43, %v9688_v17 }
 0x413   : > { %9966 = vrot.lane.b32.xlu1 %v9965_v25, %s10459_s23  ;;  %v9717_v4 = vpop.permute.xlu1 %9716  ;;  %10001 = vrot.lane.b32.xlu0 %v9980_v36, %s10450_s22  ;;  %v7220_v35 = vsel %vm7211_vm6, %v7187_v54, %v9743_v3  ;;  %v7221_v36 = vsel %vm7211_vm6, %v7188_v46, %v9744_v7  ;;  %v7027_v52 = vsel %vm2220_vm7, %v6995_v56, %v9689_v41  ;;  %v4370_v27 = vmax.f32 %v15003_v39, 0.0 }
 0x414   : > { %v9719_v44 = vunpack.i.h.bf16 %v9717_v4  ;;  %v9718_v47 = vunpack.i.l.bf16 %v9717_v4  ;;  %v7248_v38 = vpack.c.bf16 %v7221_v36, %v7220_v35  ;;  %v7059_v6 = vsel %vm2330_vm9, %v7027_v52, %v9699_v30 }
 0x415   : > { %v7058_v9 = vsel %vm2330_vm9, %v7026_v61, %v9698_v21  ;;  %v7091_v4 = vsel %vm2440_vm11, %v7059_v6, %v9709_v16  ;;  %v15069_v1 = vsel %vm5106_vm13, %v14774_v28, 0.0  ;;  %v5067_v7 = vrot.slane %v4370_v27, %v16695_v2 }
 0x416   : > { %v9762_v11 = vpop.permute.xlu0 %9761  ;;  %v7090_v43 = vsel %vm2440_vm11, %v7058_v9, %v9708_v20  ;;  %8236 = vmatprep.mubr.msk.bf16.mxu1 %vm7303_vm8, %v7248_v38  ;;  %v7124_v41 = vsel %vm7112_vm2, %v7091_v4, %v9719_v44  ;;  %v9754_v3 = vunpack.i.h.bf16 %v9752_v33  ;;  %v9753_v46 = vunpack.i.l.bf16 %v9752_v33 }
 0x417   : > { %9976 = vrot.lane.b32.xlu1 %v9975_v32, %s10460_s28  ;;  %v9727_v8 = vpop.permute.xlu1 %9726  ;;  %10011 = vrot.lane.b32.xlu0 %v9965_v25, %s10454_s21  ;;  %v7123_v39 = vsel %vm7112_vm2, %v7090_v43, %v9718_v47  ;;  %v5817_v25 = vrot.slane %v15000_v37, %v16695_v2  ;;  %v6100_v16 = vrot.slane %v14823_v0, 1  ;;  %v6101_v20 = vrot.slane %v14692_v62, 1 }
 0x418   : > { %v9729_v57 = vunpack.i.h.bf16 %v9727_v8  ;;  %v9728_v59 = vunpack.i.l.bf16 %v9727_v8  ;;  %v5832_v44 = vrot.slane %v5067_v7, %v16695_v2  ;;  %v10040_v48 = vpack.i.bf16 %v14692_v62, %v14823_v0 }
 0x419   : > { %v9764_v47 = vunpack.i.h.bf16 %v9762_v11  ;;  %v6102_v38 = vsel %vm551_vm0, %v6100_v16, %v6101_v20  ;;  %v6276_v27 = vrot.slane %v14823_v0, 2  ;;  %v6277_v6 = vrot.slane %v14692_v62, 2 }
 0x41a   : > { %v7157_v21 = vsel %vm7145_vm3, %v7124_v41, %v9729_v57  ;;  %v7156_v55 = vsel %vm7145_vm3, %v7123_v39, %v9728_v59  ;;  %v9772_v37 = vpop.permute.xlu0 %9771  ;;  %v16844_v57 = vrot.slane %v14772_v24, 1  ;;  %v6284_v9 = vrot.slane %v14910_v22, 2 }
 0x41b   : > { %9986 = vrot.lane.b32.xlu1 %v14945_v23, %s10448_s18  ;;  %v9737_v56 = vpop.permute.xlu1 %9736  ;;  %v5810_v23 = vcombine.low %v14904_v15, %v5059_v51  ;;  %10021 = vrot.lane.b32.xlu0 %v9975_v32, %s10455_s19  ;;  %v6282_v59 = vrot.slane %v14794_v13, 2  ;;  %v15118_v4 = vsel %vm5117_vm14, %v5832_v44, 0.0  ;;  %v9774_v41 = vunpack.i.h.bf16 %v9772_v37 }
 0x41c   : > { %v9739_v17 = vunpack.i.h.bf16 %v9737_v56  ;;  %v9738_v30 = vunpack.i.l.bf16 %v9737_v56  ;;  %v6105_v24 = vrot.slane %v15069_v1, 1 }
 0x41d   : > { %v5824_v35 = vrot.slane %v5810_v23, %v16695_v2  ;;  %v6278_v23 = vsel %vm804_vm1, %v6276_v27, %v6277_v6 }
 0x41e   : > { %v7190_v15 = vsel %vm7178_vm5, %v7157_v21, %v9739_v17  ;;  %v7189_v51 = vsel %vm7178_vm5, %v7156_v55, %v9738_v30  ;;  %v9782_v10 = vpop.permute.xlu0 %9781  ;;  %v9773_v17 = vunpack.i.l.bf16 %v9772_v37  ;;  %v6484_v37 = vrot.slane %v15118_v4, 1 }
 0x41f   : > { %9996 = vrot.lane.b32.xlu1 %v9975_v32, %s10448_s18  ;;  %v9747_v54 = vpop.permute.xlu1 %9746  ;;  %v5808_v32 = vcombine.low %v5800_v42, %v5807_v29  ;;  %v7222_v36 = vsel %vm7211_vm6, %v7189_v51, %v9753_v46  ;;  %v7223_v33 = vsel %vm7211_vm6, %v7190_v15, %v9754_v3  ;;  %10031 = vrot.lane.b32.xlu0 %v15014_v50, %s10458_s1  ;;  %v9763_v42 = vunpack.i.l.bf16 %v9762_v11 }
 0x420   : > { %v9749_v28 = vunpack.i.h.bf16 %v9747_v54  ;;  %v9748_v8 = vunpack.i.l.bf16 %v9747_v54  ;;  %v7249_v52 = vpack.c.bf16 %v7223_v33, %v7222_v36  ;;  %v15114_v11 = vcombine.low %v5817_v25, %v5824_v35 }
 0x421   : > { %v6280_v25 = vsel %vm804_vm1, %v6277_v6, %v16845_v40  ;;  %v9784_v21 = vunpack.i.h.bf16 %v9782_v10  ;;  %v9783_v55 = vunpack.i.l.bf16 %v9782_v10  ;;  %v6285_v3 = vsel %vm804_vm1, %v6282_v59, %v6284_v9 }
 0x422   : > { %v6997_v29 = vsel %vm2110_vm4, %v14229_v45, %v9749_v28  ;;  %v6996_v61 = vsel %vm2110_vm4, %v14262_v58, %v9748_v8  ;;  %v15109_v45 = vsel %vm5106_vm13, %v5808_v32, 0.0  ;;  %8237 = vmatmul.mubr.msk.bf16.gmra.mrb[16].mxu1 %vm7303_vm8, %v7249_v52  ;;  %v6281_v58 = vrot.slane %v15069_v1, 2  ;;  %v9792_v56 = vpop.permute.xlu0 %9791 }
 0x423   : > { %10006 = vrot.lane.b32.xlu1 %v15014_v50, %s10450_s22  ;;  %v15098_v2 = vpop.permute.xlu1 %9756  ;;  %v6104_v50 = vsel %vm551_vm0, %v6101_v20, %v16844_v57  ;;  %10041 = vrot.lane.b32.xlu0 %v10040_v48, %s10459_s23  ;;  %v7029_v12 = vsel %vm2220_vm7, %v6997_v29, %v9764_v47  ;;  %v7028_v43 = vsel %vm2220_vm7, %v6996_v61, %v9763_v42  ;;  %v6585_v46 = vrot.slane %v15118_v4, 2 }
 0x424   : > { %v15124_v39 = vpack.i.bf16 %v6104_v50, %v6102_v38  ;;  %v7060_v7 = vsel %vm2330_vm9, %v7028_v43, %v9773_v17  ;;  %v7061_v15 = vsel %vm2330_vm9, %v7029_v12, %v9774_v41  ;;  %v6283_v51 = vsel %vm804_vm1, %v6281_v58, %v6282_v59 }
 0x425   : > { %v6106_v54 = vrot.slane %v14794_v13, 1  ;;  %v10060_v20 = vpack.i.bf16 %v6280_v25, %v6278_v23  ;;  %v9759_v28 = vunpack.i.h.bf16 %v15098_v2  ;;  %v15147_v8 = vpack.i.bf16 %v14794_v13, %v15069_v1 }
 0x426   : > { %v9802_v16 = vpop.permute.xlu0 %9801  ;;  %v7092_v35 = vsel %vm2440_vm11, %v7060_v7, %v9783_v55  ;;  %v7093_v36 = vsel %vm2440_vm11, %v7061_v15, %v9784_v21  ;;  %v15153_v33 = vpack.i.bf16 %v6285_v3, %v6283_v51  ;;  %v6481_v44 = vrot.slane %v15109_v45, 1 }
 0x427   : > { %10016 = vrot.lane.b32.xlu1 %v10040_v48, %s10454_s21  ;;  %v15126_v30 = vpop.permute.xlu1 %9766  ;;  %10051 = vrot.lane.b32.xlu0 %v15124_v39, %s10460_s28  ;;  %v9794_v48 = vunpack.i.h.bf16 %v9792_v56  ;;  %v9793_v47 = vunpack.i.l.bf16 %v9792_v56  ;;  %v15158_v10 = vpack.i.bf16 %v15114_v11, %v15109_v45  ;;  %v6107_v42 = vsel %vm551_vm0, %v6105_v24, %v6106_v54 }
 0x428   : > { %v9804_v29 = vunpack.i.h.bf16 %v9802_v16  ;;  %v6482_v52 = vrot.slane %v15114_v11, 1  ;;  %v6109_v38 = vsel %vm551_vm0, %v6106_v54, %v6108_v49  ;;  %v9803_v57 = vunpack.i.l.bf16 %v9802_v16 }
 0x429   : > { %v6582_v27 = vrot.slane %v15109_v45, 2  ;;  %v6583_v6 = vrot.slane %v15114_v11, 2  ;;  %v7125_v12 = vsel %vm7112_vm2, %v7092_v35, %v9793_v47  ;;  %v7126_v43 = vsel %vm7112_vm2, %v7093_v36, %v9794_v48 }
 0x42a   : > { %v9812_v61 = vpop.permute.xlu0 %9811  ;;  %v6483_v59 = vsel %vm551_vm0, %v6481_v44, %v6482_v52  ;;  %v6485_v4 = vsel %vm551_vm0, %v6482_v52, %v6484_v37  ;;  %v9758_v22 = vunpack.i.l.bf16 %v15098_v2  ;;  %v10055_v49 = vpack.i.bf16 %v6109_v38, %v6107_v42 }
 0x42b   : > { %10026 = vrot.lane.b32.xlu1 %v15124_v39, %s10455_s19  ;;  %v15149_v32 = vpop.permute.xlu1 %9776  ;;  %10061 = vrot.lane.b32.xlu0 %v10060_v20, %s10461_s9  ;;  %v9814_v9 = vunpack.i.h.bf16 %v9812_v61  ;;  %v9813_v58 = vunpack.i.l.bf16 %v9812_v61  ;;  %v15173_v56 = vpack.i.bf16 %v6485_v4, %v6483_v59  ;;  %v7159_v45 = vsel %vm7145_vm3, %v7126_v43, %v9804_v29 }
 0x42c   : > { %v6584_v41 = vsel %vm804_vm1, %v6582_v27, %v6583_v6  ;;  %v7158_v17 = vsel %vm7145_vm3, %v7125_v12, %v9803_v57  ;;  %v6586_v21 = vsel %vm804_vm1, %v6583_v6, %v6585_v46  ;;  %v9769_v15 = vunpack.i.h.bf16 %v15126_v30 }
 0x42d   : > { %v7192_v2 = vsel %vm7178_vm5, %v7159_v45, %v9814_v9  ;;  %v7191_v55 = vsel %vm7178_vm5, %v7158_v17, %v9813_v58  ;;  %v10140_v7 = vpack.i.bf16 %v6586_v21, %v6584_v41  ;;  %v9768_v51 = vunpack.i.l.bf16 %v15126_v30 }
 0x42e   : > { %v9822_v11 = vpop.permute.xlu0 %9821  ;;  %v9779_v24 = vunpack.i.h.bf16 %v15149_v32  ;;  %v9778_v46 = vunpack.i.l.bf16 %v15149_v32  ;;  %v6999_v35 = vsel %vm2110_vm4, %v14279_v19, %v9759_v28  ;;  %v6998_v30 = vsel %vm2110_vm4, %v14312_v26, %v9758_v22 }
 0x42f   : > { %10036 = vrot.lane.b32.xlu1 %v10060_v20, %s10458_s1  ;;  %v9787_v50 = vpop.permute.xlu1 %9786  ;;  %10071 = vrot.lane.b32.xlu0 %v15153_v33, %s10461_s9  ;;  %v9824_v23 = vunpack.i.h.bf16 %v9822_v11  ;;  %v9823_v40 = vunpack.i.l.bf16 %v9822_v11  ;;  %v7031_v29 = vsel %vm2220_vm7, %v6999_v35, %v9769_v15 }
 0x430   : > { %v9789_v36 = vunpack.i.h.bf16 %v9787_v50  ;;  %v9788_v44 = vunpack.i.l.bf16 %v9787_v50  ;;  %v7063_v52 = vsel %vm2330_vm9, %v7031_v29, %v9779_v24  ;;  %v16847_v24 = vmov 0.0  }
 0x431   : > { %v7224_v3 = vsel %vm7211_vm6, %v7191_v55, %v9823_v40  ;;  %v7225_v37 = vsel %vm7211_vm6, %v7192_v2, %v9824_v23 }
 0x432   : > { %v7250_v54 = vpack.c.bf16 %v7225_v37, %v7224_v3  ;;  %v9832_v16 = vpop.permute.xlu0 %9831  ;;  %v7095_v28 = vsel %vm2440_vm11, %v7063_v52, %v9789_v36 }
 0x433   : > { %10046 = vrot.lane.b32.xlu1 %v15147_v8, %s10459_s23  ;;  %v9797_v25 = vpop.permute.xlu1 %9796  ;;  %10081 = vrot.lane.b32.xlu0 %v10060_v20, %s10450_s22  ;;  %v7030_v20 = vsel %vm2220_vm7, %v6998_v30, %v9768_v51  ;;  %v9833_v4 = vunpack.i.l.bf16 %v9832_v16 }
 0x434   : > { %v9799_v47 = vunpack.i.h.bf16 %v9797_v25  ;;  %v9798_v42 = vunpack.i.l.bf16 %v9797_v25  ;;  %8240 = vmatprep.mubr.msk.bf16.mxu1 %vm7303_vm8, %v7250_v54  ;;  %v7062_v19 = vsel %vm2330_vm9, %v7030_v20, %v9778_v46 }
 0x435   : > { %v7094_v38 = vsel %vm2440_vm11, %v7062_v19, %v9788_v44 }
 0x436   : > { %v9842_v26 = vpop.permute.xlu0 %9841  ;;  %v7127_v50 = vsel %vm7112_vm2, %v7094_v38, %v9798_v42  ;;  %v7128_v27 = vsel %vm7112_vm2, %v7095_v28, %v9799_v47  ;;  %v16848_v42 = vld [vmem:[#allocation192_spill] sm:$0xff] }
 0x437   : > { %10056 = vrot.lane.b32.xlu1 %v10055_v49, %s10460_s28  ;;  %v9807_v48 = vpop.permute.xlu1 %9806  ;;  %10091 = vrot.lane.b32.xlu0 %v15147_v8, %s10454_s21  ;;  %v9834_v8 = vunpack.i.h.bf16 %v9832_v16  ;;  %v9844_v15 = vunpack.i.h.bf16 %v9842_v26  ;;  %v9843_v51 = vunpack.i.l.bf16 %v9842_v26 }
 0x438   : > { %v9809_v32 = vunpack.i.h.bf16 %v9807_v48  ;;  %v9808_v61 = vunpack.i.l.bf16 %v9807_v48 }
 0x43a   : > { %v7161_v58 = vsel %vm7145_vm3, %v7128_v27, %v9809_v32  ;;  %v7160_v59 = vsel %vm7145_vm3, %v7127_v50, %v9808_v61  ;;  %v9852_v43 = vpop.permute.xlu0 %9851 }
 0x43b   : > { %10066 = vrot.lane.b32.xlu1 %v15124_v39, %s10448_s18  ;;  %v9817_v57 = vpop.permute.xlu1 %9816  ;;  %10101 = vrot.lane.b32.xlu0 %v10055_v49, %s10455_s19  ;;  %v9854_v46 = vunpack.i.h.bf16 %v9852_v43  ;;  %v9853_v54 = vunpack.i.l.bf16 %v9852_v43 }
 0x43c   : > { %v9819_v6 = vunpack.i.h.bf16 %v9817_v57  ;;  %v9818_v9 = vunpack.i.l.bf16 %v9817_v57 }
 0x43e   : > { %v7194_v39 = vsel %vm7178_vm5, %v7161_v58, %v9819_v6  ;;  %v7193_v12 = vsel %vm7178_vm5, %v7160_v59, %v9818_v9  ;;  %v9862_v17 = vpop.permute.xlu0 %9861  ;;  %v16849_v6 = vld [vmem:[#allocation47_spill] sm:$0xff] }
 0x43f   : > { %10076 = vrot.lane.b32.xlu1 %v10055_v49, %s10448_s18  ;;  %v9827_v22 = vpop.permute.xlu1 %9826  ;;  %v7226_v45 = vsel %vm7211_vm6, %v7193_v12, %v9833_v4  ;;  %v7227_v11 = vsel %vm7211_vm6, %v7194_v39, %v9834_v8  ;;  %10111 = vrot.lane.b32.xlu0 %v15153_v33, %s10458_s1  ;;  %v9864_v35 = vunpack.i.h.bf16 %v9862_v17  ;;  %v9863_v30 = vunpack.i.l.bf16 %v9862_v17 }
 0x440   : > { %v7251_v41 = vpack.c.bf16 %v7227_v11, %v7226_v45  ;;  %v9828_v25 = vunpack.i.l.bf16 %v9827_v22 }
 0x442   : > { %8241 = vmatmul.mubr.msk.bf16.gmra.mrb[20].mxu1 %vm7303_vm8, %v7251_v41  ;;  %v9872_v23 = vpop.permute.xlu0 %9871 }
 0x443   : > { %10086 = vrot.lane.b32.xlu1 %v15153_v33, %s10450_s22  ;;  %v15224_v49 = vpop.permute.xlu1 %9836  ;;  %10121 = vrot.lane.b32.xlu0 %v15158_v10, %s10459_s23  ;;  %v9829_v33 = vunpack.i.h.bf16 %v9827_v22  ;;  %v9874_v48 = vunpack.i.h.bf16 %v9872_v23  ;;  %v9873_v47 = vunpack.i.l.bf16 %v9872_v23 }
 0x444   : > { %v9839_v22 = vunpack.i.h.bf16 %v15224_v49  ;;  %v9838_v45 = vunpack.i.l.bf16 %v15224_v49 }
 0x445   : > { %v7001_v2 = vsel %vm2110_vm4, %v14383_v53, %v9829_v33 }
 0x446   : > { %v9882_v21 = vpop.permute.xlu0 %9881 }
 0x447   : > { %10096 = vrot.lane.b32.xlu1 %v15158_v10, %s10454_s21  ;;  %10131 = vrot.lane.b32.xlu0 %v15173_v56, %s10460_s28  ;;  %v15234_v40 = vpop.permute.xlu1 %9846  ;;  %v16846_v10 = vld [vmem:[#allocation58_spill] sm:$0xff]  ;;  %v9884_v20 = vunpack.i.h.bf16 %v9882_v21  ;;  %v9883_v29 = vunpack.i.l.bf16 %v9882_v21  ;;  %s10358_s21 = scalar_lea.vmem %s15540_s14, 4096 }
 0x448   : > { %v7000_v55 = vsel %vm2110_vm4, %v16846_v10, %v9828_v25  ;;  %v9849_v11 = vunpack.i.h.bf16 %v15234_v40  ;;  %v9848_v41 = vunpack.i.l.bf16 %v15234_v40  ;;  %v16850_v10 = vld [vmem:[#allocation41_spill] sm:$0xff]  ;;  %p10359_p5 = scmp.ne.s32.totalorder %s15540_s14, %s10358_s21 }
 0x449   : > { %v7032_v37 = vsel %vm2220_vm7, %v7000_v55, %v9843_v51  ;;  %v7003_v55 = vsel %vm2110_vm4, %v16850_v10, %v9839_v22 }
 0x44a   : > { %v9892_v16 = vpop.permute.xlu0 %9891  ;;  %v7064_v36 = vsel %vm2330_vm9, %v7032_v37, %v9853_v54  ;;  %p10360_p12 = pnand %p10359_p5, %p16853_p9 }
 0x44b   : > { %10106 = vrot.lane.b32.xlu1 %v15173_v56, %s10455_s19  ;;  %10141 = vrot.lane.b32.xlu0 %v10140_v7, %s10461_s9  ;;  %v9857_v3 = vpop.permute.xlu1 %9856  ;;  %v7033_v56 = vsel %vm2220_vm7, %v7001_v2, %v9844_v15  ;;  %v9894_v61 = vunpack.i.h.bf16 %v9892_v16  ;;  %v9893_v52 = vunpack.i.l.bf16 %v9892_v16  ;;  %v7096_v19 = vsel %vm2440_vm11, %v7064_v36, %v9863_v30  ;;  %v16851_v15 = vld [vmem:[#allocation50_spill] sm:$0xff]  ;;  %s10462_s19 = smov [#allocation14]  }
 0x44c   : > { %v7065_v44 = vsel %vm2330_vm9, %v7033_v56, %v9854_v46  ;;  %v7129_v28 = vsel %vm7112_vm2, %v7096_v19, %v9873_v47  ;;  %v9859_v23 = vunpack.i.h.bf16 %v9857_v3  ;;  %v9858_v33 = vunpack.i.l.bf16 %v9857_v3  ;;  %p10361_p13 = pneg %p10360_p12 }
 0x44d   : > { %v7097_v26 = vsel %vm2440_vm11, %v7065_v44, %v9864_v35  ;;  %v7162_v27 = vsel %vm7145_vm3, %v7129_v28, %v9883_v29  ;;  %v7002_v51 = vsel %vm2110_vm4, %v16851_v15, %v9838_v45 }
 0x44e   : > { %v7130_v38 = vsel %vm7112_vm2, %v7097_v26, %v9874_v48  ;;  %v7195_v8 = vsel %vm7178_vm5, %v7162_v27, %v9893_v52  ;;  %v7034_v49 = vsel %vm2220_vm7, %v7002_v51, %v9848_v41 }
 0x44f   : > { %10116 = vrot.lane.b32.xlu1 %v10140_v7, %s10458_s1  ;;  %v7533_v7 = vld [vmem:[#allocation11] sm:$0xf]  ;;  %v9867_v32 = vpop.permute.xlu1 %9866  ;;  %v7163_v50 = vsel %vm7145_vm3, %v7130_v38, %v9884_v20  ;;  %v7066_v3 = vsel %vm2330_vm9, %v7034_v49, %v9858_v33  ;;  %s10362_s1 = sshll.u32 %s10462_s19, 4  ;;  %s10363_s1 = int_to_ptr.vmem [resolvable:$false] %s10362_s1 }
 0x450   : > { %8301 = vmatprep.subr.msk.bf16.mxu1 %vm7352_vm15, %v7533_v7  ;;  %v7590_v53 = vsel %vm7352_vm15, %v7533_v7, 0  ;;  %v7196_v59 = vsel %vm7178_vm5, %v7163_v50, %v9894_v61  ;;  %v9869_v21 = vunpack.i.h.bf16 %v9867_v32  ;;  %v9868_v2 = vunpack.i.l.bf16 %v9867_v32  ;;  %p10365_p1 = scmp.lt.s32.totalorder %s15540_s14, %s10363_s1 }
 0x451   : > { %8261 = vmatpush3.bf16.msra.mxu1 %v7590_v53 }
 0x452   : > { %v7098_v35 = vsel %vm2440_vm11, %v7066_v3, %v9868_v2 }
 0x453   : > { %10126 = vrot.lane.b32.xlu1 %v16847_v24, %s10459_s23  ;;  %v7035_v24 = vsel %vm2220_vm7, %v7003_v55, %v9849_v11  ;;  %s10364_s23 = scalar_lea.vmem %s10363_s1, 8192 }
 0x454   : > { %v7067_v54 = vsel %vm2330_vm9, %v7035_v24, %v9859_v23  ;;  %p10366_p3 = scmp.lt.s32.totalorder %s10364_s23, %s10358_s21 }
 0x455   : > { %v7099_v7 = vsel %vm2440_vm11, %v7067_v54, %v9869_v21 }
 0x456   : > { %p10367_p2 = por %p10366_p3, %p10365_p1 }
 0x457   : > { %10136 = vrot.lane.b32.xlu1 %v16848_v42, %s10460_s28 }
 0x458   : > { %v9902_v57 = vpop.permute.xlu0 %9901  ;;  %v9877_v12 = vpop.permute.xlu1 %9876  ;;  %p10368_p8 = pnand %p10367_p2, %p10361_p13 }
 0x459   : > { %v9904_v9 = vunpack.i.h.bf16 %v9902_v57  ;;  %v9903_v58 = vunpack.i.l.bf16 %v9902_v57  ;;  %v9879_v56 = vunpack.i.h.bf16 %v9877_v12  ;;  %v9878_v37 = vunpack.i.l.bf16 %v9877_v12 }
 0x45b   : > { %10146 = vrot.lane.b32.xlu1 %v16849_v6, %s10461_s9  ;;  %v7228_v4 = vsel %vm7211_vm6, %v7195_v8, %v9903_v58  ;;  %v7229_v39 = vsel %vm7211_vm6, %v7196_v59, %v9904_v9  ;;  %v7131_v53 = vsel %vm7112_vm2, %v7098_v35, %v9878_v37  ;;  %v7132_v36 = vsel %vm7112_vm2, %v7099_v7, %v9879_v56 }
 0x45c   : > { %v7252_v43 = vpack.c.bf16 %v7229_v39, %v7228_v4  ;;  %v9887_v17 = vpop.permute.xlu1 %9886 }
 0x45d   : > { %v9889_v46 = vunpack.i.h.bf16 %v9887_v17  ;;  %v9888_v40 = vunpack.i.l.bf16 %v9887_v17 }
 0x45e   : > { %8244 = vmatprep.mubr.msk.bf16.mxu1 %vm7303_vm8, %v7252_v43 }
 0x45f   : > { %v7165_v47 = vsel %vm7145_vm3, %v7132_v36, %v9889_v46  ;;  %v7164_v42 = vsel %vm7145_vm3, %v7131_v53, %v9888_v40 }
 0x460   : > { %v9912_v25 = vpop.permute.xlu0 %9911 }
 0x461   : > { %v9914_v20 = vunpack.i.h.bf16 %v9912_v25  ;;  %v9913_v29 = vunpack.i.l.bf16 %v9912_v25 }
 0x464   : > { %v9922_v16 = vpop.permute.xlu0 %9921 }
 0x465   : > { %v9924_v4 = vunpack.i.h.bf16 %v9922_v16  ;;  %v9923_v39 = vunpack.i.l.bf16 %v9922_v16 }
 0x468   : > { %v9932_v52 = vpop.permute.xlu0 %9931 }
 0x469   : > { %v9897_v30 = vpop.permute.xlu1 %9896  ;;  %v9934_v11 = vunpack.i.h.bf16 %v9932_v52  ;;  %v9933_v41 = vunpack.i.l.bf16 %v9932_v52 }
 0x46a   : > { %v9899_v44 = vunpack.i.h.bf16 %v9897_v30  ;;  %v9898_v48 = vunpack.i.l.bf16 %v9897_v30 }
 0x46c   : > { %v7198_v32 = vsel %vm7178_vm5, %v7165_v47, %v9899_v44  ;;  %v7197_v61 = vsel %vm7178_vm5, %v7164_v42, %v9898_v48  ;;  %v9942_v57 = vpop.permute.xlu0 %9941 }
 0x46d   : > { %v9907_v19 = vpop.permute.xlu1 %9906  ;;  %v7230_v26 = vsel %vm7211_vm6, %v7197_v61, %v9913_v29  ;;  %v7231_v28 = vsel %vm7211_vm6, %v7198_v32, %v9914_v20  ;;  %v9944_v17 = vunpack.i.h.bf16 %v9942_v57  ;;  %v9943_v23 = vunpack.i.l.bf16 %v9942_v57 }
 0x46e   : > { %v7253_v38 = vpack.c.bf16 %v7231_v28, %v7230_v26  ;;  %v9909_v27 = vunpack.i.h.bf16 %v9907_v19  ;;  %v9908_v6 = vunpack.i.l.bf16 %v9907_v19 }
 0x470   : > { %8245 = vmatmul.mubr.msk.bf16.gmra.mrb[24].mxu1 %vm7303_vm8, %v7253_v38  ;;  %v9952_v9 = vpop.permute.xlu0 %9951  ;;  %v7005_v59 = vsel %vm2110_vm4, %v14459_v60, %v9909_v27  ;;  %v7004_v8 = vsel %vm2110_vm4, %v14505_v31, %v9908_v6  ;;  %v16852_v38 = vld [vmem:[#allocation189_spill] sm:$0xff] }
 0x471   : > { %v9917_v50 = vpop.permute.xlu1 %9916  ;;  %v7037_v43 = vsel %vm2220_vm7, %v7005_v59, %v9924_v4  ;;  %v7036_v22 = vsel %vm2220_vm7, %v7004_v8, %v9923_v39  ;;  %v9954_v60 = vunpack.i.h.bf16 %v9952_v9  ;;  %v9953_v21 = vunpack.i.l.bf16 %v9952_v9 }
 0x472   : > { %v7068_v33 = vsel %vm2330_vm9, %v7036_v22, %v9933_v41  ;;  %v7069_v25 = vsel %vm2330_vm9, %v7037_v43, %v9934_v11  ;;  %v9919_v35 = vunpack.i.h.bf16 %v9917_v50  ;;  %v9918_v30 = vunpack.i.l.bf16 %v9917_v50 }
 0x473   : > { %v7100_v56 = vsel %vm2440_vm11, %v7068_v33, %v9943_v23  ;;  %v7101_v37 = vsel %vm2440_vm11, %v7069_v25, %v9944_v17 }
 0x474   : > { %v9962_v12 = vpop.permute.xlu0 %9961  ;;  %v7133_v49 = vsel %vm7112_vm2, %v7100_v56, %v9953_v21  ;;  %v7134_v24 = vsel %vm7112_vm2, %v7101_v37, %v9954_v60  ;;  %v7007_v28 = vsel %vm2110_vm4, %v14500_v5, %v9919_v35  ;;  %v7006_v57 = vsel %vm2110_vm4, %v16852_v38, %v9918_v30 }
 0x475   : > { %v9927_v58 = vpop.permute.xlu1 %9926  ;;  %v9964_v31 = vunpack.i.h.bf16 %v9962_v12  ;;  %v9963_v10 = vunpack.i.l.bf16 %v9962_v12 }
 0x476   : > { %v9929_v44 = vunpack.i.h.bf16 %v9927_v58  ;;  %v9928_v48 = vunpack.i.l.bf16 %v9927_v58 }
 0x477   : > { %v7167_v40 = vsel %vm7145_vm3, %v7134_v24, %v9964_v31  ;;  %v7166_v54 = vsel %vm7145_vm3, %v7133_v49, %v9963_v10 }
 0x478   : > { %v9972_v2 = vpop.permute.xlu0 %9971  ;;  %v7038_v6 = vsel %vm2220_vm7, %v7006_v57, %v9928_v48  ;;  %v7039_v9 = vsel %vm2220_vm7, %v7007_v28, %v9929_v44 }
 0x479   : > { %v9937_v45 = vpop.permute.xlu1 %9936  ;;  %v9974_v15 = vunpack.i.h.bf16 %v9972_v2  ;;  %v9973_v51 = vunpack.i.l.bf16 %v9972_v2 }
 0x47a   : > { %v9939_v20 = vunpack.i.h.bf16 %v9937_v45  ;;  %v9938_v29 = vunpack.i.l.bf16 %v9937_v45 }
 0x47b   : > { %v7200_v53 = vsel %vm7178_vm5, %v7167_v40, %v9974_v15  ;;  %v7199_v36 = vsel %vm7178_vm5, %v7166_v54, %v9973_v51 }
 0x47c   : > { %v9982_v46 = vpop.permute.xlu0 %9981  ;;  %v7071_v8 = vsel %vm2330_vm9, %v7039_v9, %v9939_v20  ;;  %v7070_v4 = vsel %vm2330_vm9, %v7038_v6, %v9938_v29 }
 0x47d   : > { %v9947_v55 = vpop.permute.xlu1 %9946  ;;  %v9984_v3 = vunpack.i.h.bf16 %v9982_v46  ;;  %v9983_v16 = vunpack.i.l.bf16 %v9982_v46 }
 0x47e   : > { %v9949_v61 = vunpack.i.h.bf16 %v9947_v55  ;;  %v9948_v52 = vunpack.i.l.bf16 %v9947_v55 }
 0x47f   : > { %v7232_v47 = vsel %vm7211_vm6, %v7199_v36, %v9983_v16  ;;  %v7233_v42 = vsel %vm7211_vm6, %v7200_v53, %v9984_v3 }
 0x480   : > { %v7254_v32 = vpack.c.bf16 %v7233_v42, %v7232_v47  ;;  %v7103_v39 = vsel %vm2440_vm11, %v7071_v8, %v9949_v61  ;;  %v7102_v5 = vsel %vm2440_vm11, %v7070_v4, %v9948_v52 }
 0x481   : > { %v9957_v7 = vpop.permute.xlu1 %9956  ;;  %v9992_v26 = vpop.permute.xlu0 %9991 }
 0x482   : > { %v9959_v50 = vunpack.i.h.bf16 %v9957_v7  ;;  %v9958_v27 = vunpack.i.l.bf16 %v9957_v7  ;;  %8248 = vmatprep.mubr.msk.bf16.mxu1 %vm7303_vm8, %v7254_v32  ;;  %v9994_v33 = vunpack.i.h.bf16 %v9992_v26  ;;  %v9993_v25 = vunpack.i.l.bf16 %v9992_v26 }
 0x484   : > { %v7135_v22 = vsel %vm7112_vm2, %v7102_v5, %v9958_v27  ;;  %v7136_v45 = vsel %vm7112_vm2, %v7103_v39, %v9959_v50 }
 0x485   : > { %v9967_v19 = vpop.permute.xlu1 %9966  ;;  %v10002_v12 = vpop.permute.xlu0 %10001 }
 0x486   : > { %v9969_v58 = vunpack.i.h.bf16 %v9967_v19  ;;  %v9968_v59 = vunpack.i.l.bf16 %v9967_v19  ;;  %v10004_v3 = vunpack.i.h.bf16 %v10002_v12  ;;  %v10003_v16 = vunpack.i.l.bf16 %v10002_v12 }
 0x488   : > { %v7169_v17 = vsel %vm7145_vm3, %v7136_v45, %v9969_v58  ;;  %v7168_v23 = vsel %vm7145_vm3, %v7135_v22, %v9968_v59 }
 0x489   : > { %v9977_v43 = vpop.permute.xlu1 %9976  ;;  %v10012_v2 = vpop.permute.xlu0 %10011 }
 0x48a   : > { %v9979_v11 = vunpack.i.h.bf16 %v9977_v43  ;;  %v9978_v41 = vunpack.i.l.bf16 %v9977_v43  ;;  %v10014_v36 = vunpack.i.h.bf16 %v10012_v2  ;;  %v10013_v44 = vunpack.i.l.bf16 %v10012_v2 }
 0x48c   : > { %v7202_v60 = vsel %vm7178_vm5, %v7169_v17, %v9979_v11  ;;  %v7201_v21 = vsel %vm7178_vm5, %v7168_v23, %v9978_v41 }
 0x48d   : > { %v9987_v31 = vpop.permute.xlu1 %9986  ;;  %v7234_v10 = vsel %vm7211_vm6, %v7201_v21, %v9993_v25  ;;  %v7235_v55 = vsel %vm7211_vm6, %v7202_v60, %v9994_v33  ;;  %v10022_v51 = vpop.permute.xlu0 %10021 }
 0x48e   : > { %v7255_v15 = vpack.c.bf16 %v7235_v55, %v7234_v10  ;;  %v9989_v37 = vunpack.i.h.bf16 %v9987_v31  ;;  %v9988_v49 = vunpack.i.l.bf16 %v9987_v31  ;;  %v10024_v48 = vunpack.i.h.bf16 %v10022_v51 }
 0x48f   : > { %v10023_v47 = vunpack.i.l.bf16 %v10022_v51 }
 0x490   : > { %8249 = vmatmul.mubr.msk.bf16.gmra.mrb[28].mxu1 %vm7303_vm8, %v7255_v15  ;;  %v7009_v40 = vsel %vm2110_vm4, %v14763_v18, %v9989_v37  ;;  %v7008_v54 = vsel %vm2110_vm4, %v14719_v34, %v9988_v49 }
 0x491   : > { %v9997_v56 = vpop.permute.xlu1 %9996  ;;  %v10032_v24 = vpop.permute.xlu0 %10031  ;;  %v7041_v30 = vsel %vm2220_vm7, %v7009_v40, %v10004_v3  ;;  %v7040_v53 = vsel %vm2220_vm7, %v7008_v54, %v10003_v16 }
 0x492   : > { %v7072_v42 = vsel %vm2330_vm9, %v7040_v53, %v10013_v44  ;;  %v7073_v20 = vsel %vm2330_vm9, %v7041_v30, %v10014_v36  ;;  %v10034_v18 = vunpack.i.h.bf16 %v10032_v24  ;;  %v10033_v29 = vunpack.i.l.bf16 %v10032_v24 }
 0x493   : > { %v7104_v28 = vsel %vm2440_vm11, %v7072_v42, %v10023_v47  ;;  %v7105_v38 = vsel %vm2440_vm11, %v7073_v20, %v10024_v48  ;;  %v9999_v57 = vunpack.i.h.bf16 %v9997_v56  ;;  %v9998_v50 = vunpack.i.l.bf16 %v9997_v56 }
 0x494   : > { %v7137_v27 = vsel %vm7112_vm2, %v7104_v28, %v10033_v29  ;;  %v7138_v6 = vsel %vm7112_vm2, %v7105_v38, %v10034_v18 }
 0x495   : > { %v10007_v46 = vpop.permute.xlu1 %10006  ;;  %v10042_v7 = vpop.permute.xlu0 %10041  ;;  %v7011_v2 = vsel %vm2110_vm4, %v14642_v63, %v9999_v57  ;;  %v7010_v31 = vsel %vm2110_vm4, %v14786_v14, %v9998_v50 }
 0x496   : > { %v10044_v61 = vunpack.i.h.bf16 %v10042_v7  ;;  %v10043_v52 = vunpack.i.l.bf16 %v10042_v7  ;;  %v10009_v5 = vunpack.i.h.bf16 %v10007_v46  ;;  %v10008_v12 = vunpack.i.l.bf16 %v10007_v46 }
 0x498   : > { %v7171_v59 = vsel %vm7145_vm3, %v7138_v6, %v10044_v61  ;;  %v7170_v8 = vsel %vm7145_vm3, %v7137_v27, %v10043_v52  ;;  %v7042_v15 = vsel %vm2220_vm7, %v7010_v31, %v10008_v12  ;;  %v7043_v51 = vsel %vm2220_vm7, %v7011_v2, %v10009_v5  ;;  %v15372_v6 = vld [vmem:[#allocation10] ss:$0 sm:$0xff] }
 0x499   : > { %v10017_v35 = vpop.permute.xlu1 %10016  ;;  %v10052_v32 = vpop.permute.xlu0 %10051 }
 0x49a   : > { %v10054_v19 = vunpack.i.h.bf16 %v10052_v32  ;;  %v10053_v26 = vunpack.i.l.bf16 %v10052_v32  ;;  %v10019_v45 = vunpack.i.h.bf16 %v10017_v35  ;;  %v10018_v11 = vunpack.i.l.bf16 %v10017_v35 }
 0x49c   : > { %v7204_v43 = vsel %vm7178_vm5, %v7171_v59, %v10054_v19  ;;  %v7203_v22 = vsel %vm7178_vm5, %v7170_v8, %v10053_v26  ;;  %v7075_v49 = vsel %vm2330_vm9, %v7043_v51, %v10019_v45  ;;  %v7074_v24 = vsel %vm2330_vm9, %v7042_v15, %v10018_v11 }
 0x49d   : > { %v10027_v34 = vpop.permute.xlu1 %10026  ;;  %v10062_v9 = vpop.permute.xlu0 %10061 }
 0x49e   : > { %v10064_v4 = vunpack.i.h.bf16 %v10062_v9  ;;  %v10063_v39 = vunpack.i.l.bf16 %v10062_v9  ;;  %v10029_v23 = vunpack.i.h.bf16 %v10027_v34  ;;  %v10028_v33 = vunpack.i.l.bf16 %v10027_v34 }
 0x4a0   : > { %v7236_v41 = vsel %vm7211_vm6, %v7203_v22, %v10063_v39  ;;  %v7237_v17 = vsel %vm7211_vm6, %v7204_v43, %v10064_v4  ;;  %v7107_v46 = vsel %vm2440_vm11, %v7075_v49, %v10029_v23  ;;  %v7106_v63 = vsel %vm2440_vm11, %v7074_v24, %v10028_v33 }
 0x4a1   : > { %v10037_v58 = vpop.permute.xlu1 %10036  ;;  %v7256_v25 = vpack.c.bf16 %v7237_v17, %v7236_v41  ;;  %v10072_v21 = vpop.permute.xlu0 %10071 }
 0x4a2   : > { %v10039_v10 = vunpack.i.h.bf16 %v10037_v58  ;;  %v10038_v55 = vunpack.i.l.bf16 %v10037_v58  ;;  %v10074_v53 = vunpack.i.h.bf16 %v10072_v21  ;;  %v10073_v36 = vunpack.i.l.bf16 %v10072_v21 }
 0x4a3   : > { %8252 = vmatprep.mubr.msk.bf16.mxu1 %vm7303_vm8, %v7256_v25 }
 0x4a4   : > { %v7139_v54 = vsel %vm7112_vm2, %v7106_v63, %v10038_v55  ;;  %v7140_v3 = vsel %vm7112_vm2, %v7107_v46, %v10039_v10 }
 0x4a5   : > { %v10047_v60 = vpop.permute.xlu1 %10046  ;;  %v10082_v40 = vpop.permute.xlu0 %10081 }
 0x4a6   : > { %v10049_v56 = vunpack.i.h.bf16 %v10047_v60  ;;  %v10048_v37 = vunpack.i.l.bf16 %v10047_v60  ;;  %v10084_v57 = vunpack.i.h.bf16 %v10082_v40  ;;  %v10083_v50 = vunpack.i.l.bf16 %v10082_v40 }
 0x4a8   : > { %v7173_v35 = vsel %vm7145_vm3, %v7140_v3, %v10049_v56  ;;  %v7172_v30 = vsel %vm7145_vm3, %v7139_v54, %v10048_v37 }
 0x4a9   : > { %v10057_v14 = vpop.permute.xlu1 %10056  ;;  %v10092_v47 = vpop.permute.xlu0 %10091 }
 0x4aa   : > { %v10059_v16 = vunpack.i.h.bf16 %v10057_v14  ;;  %v10058_v7 = vunpack.i.l.bf16 %v10057_v14  ;;  %v10094_v39 = vunpack.i.h.bf16 %v10092_v47  ;;  %v10093_v5 = vunpack.i.l.bf16 %v10092_v47 }
 0x4ac   : > { %v7206_v44 = vsel %vm7178_vm5, %v7173_v35, %v10059_v16  ;;  %v7205_v48 = vsel %vm7178_vm5, %v7172_v30, %v10058_v7 }
 0x4ad   : > { %v10067_v42 = vpop.permute.xlu1 %10066  ;;  %v7238_v20 = vsel %vm7211_vm6, %v7205_v48, %v10073_v36  ;;  %v7239_v18 = vsel %vm7211_vm6, %v7206_v44, %v10074_v53  ;;  %v10102_v32 = vpop.permute.xlu0 %10101 }
 0x4ae   : > { %v7257_v29 = vpack.c.bf16 %v7239_v18, %v7238_v20  ;;  %v10069_v61 = vunpack.i.h.bf16 %v10067_v42  ;;  %v10068_v52 = vunpack.i.l.bf16 %v10067_v42  ;;  %v10104_v43 = vunpack.i.h.bf16 %v10102_v32 }
 0x4af   : > { %v10103_v45 = vunpack.i.l.bf16 %v10102_v32 }
 0x4b0   : > { %8253 = vmatmul.mubr.msk.bf16.gmra.mrb[32].mxu1 %vm7303_vm8, %v7257_v29  ;;  %v7013_v28 = vsel %vm2110_vm4, %v14692_v62, %v10069_v61  ;;  %v7012_v38 = vsel %vm2110_vm4, %v14823_v0, %v10068_v52 }
 0x4b1   : > { %v15364_v34 = vpop.permute.xlu1 %10076  ;;  %v10112_v19 = vpop.permute.xlu0 %10111  ;;  %v7045_v58 = vsel %vm2220_vm7, %v7013_v28, %v10084_v57  ;;  %v7044_v59 = vsel %vm2220_vm7, %v7012_v38, %v10083_v50 }
 0x4b2   : > { %v7076_v11 = vsel %vm2330_vm9, %v7044_v59, %v10093_v5  ;;  %v7077_v41 = vsel %vm2330_vm9, %v7045_v58, %v10094_v39  ;;  %v10114_v17 = vunpack.i.h.bf16 %v10112_v19  ;;  %v10113_v23 = vunpack.i.l.bf16 %v10112_v19 }
 0x4b3   : > { %v8230_v27 = vpop.f32.mrb[8].mxu1  ;;  %v7108_v56 = vsel %vm2440_vm11, %v7076_v11, %v10103_v45  ;;  %v7109_v37 = vsel %vm2440_vm11, %v7077_v41, %v10104_v43  ;;  %v10079_v53 = vunpack.i.h.bf16 %v15364_v34  ;;  %v10078_v36 = vunpack.i.l.bf16 %v15364_v34 }
 0x4b4   : > { %v7390_v9 = vpop.f32.mrb[9].mxu1  ;;  %v15377_v62 = vadd.f32 %v8230_v27, %v15372_v6  ;;  %v7141_v49 = vsel %vm7112_vm2, %v7108_v56, %v10113_v23  ;;  %v7142_v24 = vsel %vm7112_vm2, %v7109_v37, %v10114_v17 }
 0x4b5   : > { %v15366_v26 = vpop.permute.xlu1 %10086  ;;  %v10122_v8 = vpop.permute.xlu0 %10121  ;;  %v7391_v60 = vadd.f32 %v15372_v6, %v7390_v9  ;;  %v7015_v61 = vsel %vm2110_vm4, %v14794_v13, %v10079_v53  ;;  %v7014_v52 = vsel %vm2110_vm4, %v15069_v1, %v10078_v36 }
 0x4b6   : > { %v8231_v12 = vpop.f32.mrb[10].mxu1  ;;  %v10124_v31 = vunpack.i.h.bf16 %v10122_v8  ;;  %v10123_v10 = vunpack.i.l.bf16 %v10122_v8  ;;  %v10089_v47 = vunpack.i.h.bf16 %v15366_v26  ;;  %v10088_v42 = vunpack.i.l.bf16 %v15366_v26 }
 0x4b7   : > { %v15380_v0 = vadd.f32 %v8231_v12, %v15372_v6  ;;  %v7393_v22 = vpop.f32.mrb[11].mxu1 }
 0x4b8   : > { %v7394_v2 = vadd.f32 %v15372_v6, %v7393_v22  ;;  %v7175_v40 = vsel %vm7145_vm3, %v7142_v24, %v10124_v31  ;;  %v7174_v14 = vsel %vm7145_vm3, %v7141_v49, %v10123_v10  ;;  %v7046_v38 = vsel %vm2220_vm7, %v7014_v52, %v10088_v42 }
 0x4b9   : > { %v10097_v4 = vpop.permute.xlu1 %10096  ;;  %v10132_v33 = vpop.permute.xlu0 %10131  ;;  %v7518_v21 = vpack.c.bf16 %v15380_v0, %v15377_v62  ;;  %v7047_v57 = vsel %vm2220_vm7, %v7015_v61, %v10089_v47 }
 0x4ba   : > { %v10134_v55 = vunpack.i.h.bf16 %v10132_v33  ;;  %v10133_v15 = vunpack.i.l.bf16 %v10132_v33  ;;  %v7517_v51 = vpack.c.bf16 %v7394_v2, %v7391_v60  ;;  %v10099_v20 = vunpack.i.h.bf16 %v10097_v4 }
 0x4bb   : > { %v10098_v18 = vunpack.i.l.bf16 %v10097_v4 }
 0x4bc   : > { %v7208_v16 = vsel %vm7178_vm5, %v7175_v40, %v10134_v55  ;;  %v7207_v7 = vsel %vm7178_vm5, %v7174_v14, %v10133_v15  ;;  %v7079_v27 = vsel %vm2330_vm9, %v7047_v57, %v10099_v20 }
 0x4bd   : > { %v10107_v25 = vpop.permute.xlu1 %10106  ;;  %v10142_v46 = vpop.permute.xlu0 %10141  ;;  %v7078_v9 = vsel %vm2330_vm9, %v7046_v38, %v10098_v18 }
 0x4be   : > { %v10144_v54 = vunpack.i.h.bf16 %v10142_v46  ;;  %v10143_v3 = vunpack.i.l.bf16 %v10142_v46  ;;  %v10109_v29 = vunpack.i.h.bf16 %v10107_v25  ;;  %v10108_v32 = vunpack.i.l.bf16 %v10107_v25 }
 0x4c0   : > { %v7240_v35 = vsel %vm7211_vm6, %v7207_v7, %v10143_v3  ;;  %v7241_v30 = vsel %vm7211_vm6, %v7208_v16, %v10144_v54  ;;  %v7111_v13 = vsel %vm2440_vm11, %v7079_v27, %v10109_v29  ;;  %v7110_v8 = vsel %vm2440_vm11, %v7078_v9, %v10108_v32 }
 0x4c1   : > { %v10117_v63 = vpop.permute.xlu1 %10116  ;;  %v7258_v44 = vpack.c.bf16 %v7241_v30, %v7240_v35 }
 0x4c2   : > { %v10119_v19 = vunpack.i.h.bf16 %v10117_v63  ;;  %v10118_v34 = vunpack.i.l.bf16 %v10117_v63 }
 0x4c3   : > { %8256 = vmatprep.mubr.msk.bf16.mxu1 %vm7303_vm8, %v7258_v44 }
 0x4c4   : > { %v7143_v1 = vsel %vm7112_vm2, %v7110_v8, %v10118_v34  ;;  %v7144_v4 = vsel %vm7112_vm2, %v7111_v13, %v10119_v19 }
 0x4c5   : > { %v10127_v48 = vpop.permute.xlu1 %10126 }
 0x4c6   : > { %v10129_v26 = vunpack.i.h.bf16 %v10127_v48  ;;  %v10128_v50 = vunpack.i.l.bf16 %v10127_v48 }
 0x4c8   : > { %v7176_v5 = vsel %vm7145_vm3, %v7143_v1, %v10128_v50  ;;  %v7177_v12 = vsel %vm7145_vm3, %v7144_v4, %v10129_v26 }
 0x4c9   : > { %v10137_v28 = vpop.permute.xlu1 %10136 }
 0x4ca   : > { %v10139_v58 = vunpack.i.h.bf16 %v10137_v28  ;;  %v10138_v59 = vunpack.i.l.bf16 %v10137_v28 }
 0x4cc   : > { %v7209_v0 = vsel %vm7178_vm5, %v7176_v5, %v10138_v59  ;;  %v7210_v22 = vsel %vm7178_vm5, %v7177_v12, %v10139_v58 }
 0x4cd   : > { %v10147_v39 = vpop.permute.xlu1 %10146 }
 0x4ce   : > { %v10149_v43 = vunpack.i.h.bf16 %v10147_v39  ;;  %v10148_v62 = vunpack.i.l.bf16 %v10147_v39 }
 0x4d0   : > { %v7242_v45 = vsel %vm7211_vm6, %v7209_v0, %v10148_v62  ;;  %v7243_v11 = vsel %vm7211_vm6, %v7210_v22, %v10149_v43 }
 0x4d1   : > { %v7259_v41 = vpack.c.bf16 %v7243_v11, %v7242_v45 }
 0x4d3   : > { %8257 = vmatmul.mubr.msk.bf16.gmra.mrb[36].mxu1 %vm7303_vm8, %v7259_v41 }
 0x4d4   : > { %8262 = vmatprep.mubr.msk.bf16.mxu1 %vm2110_vm4, %v7517_v51 }
 0x4d9   : > { %v8234_v17 = vpop.f32.mrb[12].mxu1 }
 0x4da   : > { %v7406_v23 = vpop.f32.mrb[13].mxu1  ;;  %v7415_v25 = vadd.f32 %v8234_v17, %v15372_v6 }
 0x4db   : > { %8263 = vmatmul.mubr.msk.bf16.vlgmr.msra.gmra.mrb[40].mxu1 %vm2110_vm4, %v7518_v21  ;;  %v8235_v33 = vpop.f32.mrb[14].mxu1  ;;  %v7407_v31 = vadd.f32 %v15372_v6, %v7406_v23 }
 0x4dc   : > { %v7418_v60 = vadd.f32 %v8235_v33, %v15372_v6  ;;  %v7409_v2 = vpop.f32.mrb[15].mxu1 }
 0x4dd   : > { %v7410_v10 = vadd.f32 %v15372_v6, %v7409_v2 }
 0x4de   : > { %v7520_v55 = vpack.c.bf16 %v7418_v60, %v7415_v25 }
 0x4df   : > { %v7519_v15 = vpack.c.bf16 %v7410_v10, %v7407_v31  ;;  %v15465_v10 = vld [vmem:[#allocation13] ss:$0 sm:$0xff] }
 0x4e1   : > { %8266 = vmatprep.mubr.msk.bf16.mxu1 %vm2110_vm4, %v7519_v15 }
 0x4e3   : > { %8267 = vmatmul.mubr.msk.bf16.gmra.mrb[44].mxu1 %vm2110_vm4, %v7520_v55 }
 0x4f5   : > { %v8238_v51 = vpop.f32.mrb[16].mxu1 }
 0x4f6   : > { %v7422_v21 = vpop.f32.mrb[17].mxu1  ;;  %v7431_v37 = vadd.f32 %v8238_v51, %v15372_v6 }
 0x4f7   : > { %v8239_v56 = vpop.f32.mrb[18].mxu1  ;;  %v7423_v46 = vadd.f32 %v15372_v6, %v7422_v21 }
 0x4f8   : > { %v7434_v49 = vadd.f32 %v8239_v56, %v15372_v6  ;;  %v7425_v24 = vpop.f32.mrb[19].mxu1 }
 0x4f9   : > { %v7426_v63 = vadd.f32 %v15372_v6, %v7425_v24 }
 0x4fa   : > { %v7522_v40 = vpack.c.bf16 %v7434_v49, %v7431_v37 }
 0x4fb   : > { %v7521_v14 = vpack.c.bf16 %v7426_v63, %v7423_v46 }
 0x4fd   : > { %8270 = vmatprep.mubr.msk.bf16.mxu1 %vm2110_vm4, %v7521_v14 }
 0x4fe   : > { %8271 = vmatmul.mubr.msk.bf16.gmra.mrb[48].mxu1 %vm2110_vm4, %v7522_v40 }
 0x515   : > { %v8242_v54 = vpop.f32.mrb[20].mxu1 }
 0x516   : > { %v7438_v3 = vpop.f32.mrb[21].mxu1  ;;  %v7447_v7 = vadd.f32 %v8242_v54, %v15372_v6 }
 0x517   : > { %v8243_v16 = vpop.f32.mrb[22].mxu1  ;;  %v7439_v53 = vadd.f32 %v15372_v6, %v7438_v3 }
 0x518   : > { %v7450_v35 = vadd.f32 %v8243_v16, %v15372_v6  ;;  %v7441_v30 = vpop.f32.mrb[23].mxu1 }
 0x519   : > { %v7442_v36 = vadd.f32 %v15372_v6, %v7441_v30 }
 0x51a   : > { %v7524_v44 = vpack.c.bf16 %v7450_v35, %v7447_v7 }
 0x51b   : > { %v7523_v48 = vpack.c.bf16 %v7442_v36, %v7439_v53 }
 0x51d   : > { %8274 = vmatprep.mubr.msk.bf16.mxu1 %vm2110_vm4, %v7523_v48 }
 0x51e   : > { %8275 = vmatmul.mubr.msk.bf16.gmra.mrb[52].mxu1 %vm2110_vm4, %v7524_v44 }
 0x543   : > { %v8246_v47 = vpop.f32.mrb[24].mxu1 }
 0x544   : > { %v7454_v42 = vpop.f32.mrb[25].mxu1  ;;  %v7463_v18 = vadd.f32 %v8246_v47, %v15372_v6 }
 0x545   : > { %v8247_v20 = vpop.f32.mrb[26].mxu1  ;;  %v7455_v61 = vadd.f32 %v15372_v6, %v7454_v42 }
 0x546   : > { %v7466_v29 = vadd.f32 %v8247_v20, %v15372_v6  ;;  %v7457_v32 = vpop.f32.mrb[27].mxu1 }
 0x547   : > { %v7458_v52 = vadd.f32 %v15372_v6, %v7457_v32 }
 0x548   : > { %v7526_v19 = vpack.c.bf16 %v7466_v29, %v7463_v18 }
 0x549   : > { %v7525_v34 = vpack.c.bf16 %v7458_v52, %v7455_v61 }
 0x54b   : > { %8278 = vmatprep.mubr.msk.bf16.mxu1 %vm2110_vm4, %v7525_v34 }
 0x54c   : > { %8279 = vmatmul.mubr.msk.bf16.gmra.mrb[56].mxu1 %vm2110_vm4, %v7526_v19 }
 0x563   : > { %v8250_v28 = vpop.f32.mrb[28].mxu1 }
 0x564   : > { %v7470_v38 = vpop.f32.mrb[29].mxu1  ;;  %v7479_v26 = vadd.f32 %v8250_v28, %v15372_v6 }
 0x565   : > { %v8251_v57 = vpop.f32.mrb[30].mxu1  ;;  %v7471_v9 = vadd.f32 %v15372_v6, %v7470_v38 }
 0x566   : > { %v7482_v50 = vadd.f32 %v8251_v57, %v15372_v6  ;;  %v7473_v27 = vpop.f32.mrb[31].mxu1 }
 0x567   : > { %v7474_v58 = vadd.f32 %v15372_v6, %v7473_v27 }
 0x568   : > { %v7528_v59 = vpack.c.bf16 %v7482_v50, %v7479_v26 }
 0x569   : > { %v7527_v13 = vpack.c.bf16 %v7474_v58, %v7471_v9 }
 0x56b   : > { %8282 = vmatprep.mubr.msk.bf16.mxu1 %vm2110_vm4, %v7527_v13 }
 0x56c   : > { %8283 = vmatmul.mubr.msk.bf16.gmra.mrb[60].mxu1 %vm2110_vm4, %v7528_v59 }
 0x583   : > { %v8254_v8 = vpop.f32.mrb[32].mxu1 }
 0x584   : > { %v7486_v1 = vpop.f32.mrb[33].mxu1  ;;  %v7495_v39 = vadd.f32 %v8254_v8, %v15372_v6 }
 0x585   : > { %v8255_v4 = vpop.f32.mrb[34].mxu1  ;;  %v7487_v43 = vadd.f32 %v15372_v6, %v7486_v1 }
 0x586   : > { %v7498_v5 = vadd.f32 %v8255_v4, %v15372_v6  ;;  %v7489_v12 = vpop.f32.mrb[35].mxu1 }
 0x587   : > { %v7490_v62 = vadd.f32 %v15372_v6, %v7489_v12 }
 0x588   : > { %v7530_v0 = vpack.c.bf16 %v7498_v5, %v7495_v39 }
 0x589   : > { %v7529_v22 = vpack.c.bf16 %v7490_v62, %v7487_v43 }
 0x58b   : > { %8286 = vmatprep.mubr.msk.bf16.mxu1 %vm2110_vm4, %v7529_v22 }
 0x58c   : > { %8287 = vmatmul.mubr.msk.bf16.gmra.mrb[64].mxu1 %vm2110_vm4, %v7530_v0 }
 0x5a6   : > { %v8258_v45 = vpop.f32.mrb[36].mxu1 }
 0x5a7   : > { %v7502_v11 = vpop.f32.mrb[37].mxu1  ;;  %v7511_v17 = vadd.f32 %v8258_v45, %v15372_v6 }
 0x5a8   : > { %v8259_v41 = vpop.f32.mrb[38].mxu1  ;;  %v7503_v25 = vadd.f32 %v15372_v6, %v7502_v11 }
 0x5a9   : > { %v7514_v23 = vadd.f32 %v8259_v41, %v15372_v6  ;;  %v7505_v33 = vpop.f32.mrb[39].mxu1 }
 0x5aa   : > { %v7506_v60 = vadd.f32 %v15372_v6, %v7505_v33 }
 0x5ab   : > { %v7532_v2 = vpack.c.bf16 %v7514_v23, %v7511_v17 }
 0x5ac   : > { %v7531_v31 = vpack.c.bf16 %v7506_v60, %v7503_v25 }
 0x5ae   : > { %v8264_v55 = vpop.f32.mrb[40].mxu1  ;;  %8290 = vmatprep.mubr.msk.bf16.mxu1 %vm2110_vm4, %v7531_v31 }
 0x5af   : > { %v7635_v15 = vadd.f32 %v8264_v55, %v15465_v10  ;;  %v7626_v51 = vpop.f32.mrb[41].mxu1  ;;  %8291 = vmatmul.mubr.msk.bf16.gmra.mrb[68].mxu1 %vm2110_vm4, %v7532_v2 }
 0x5b0   : > { %v7627_v21 = vadd.f32 %v15465_v10, %v7626_v51  ;;  %v8265_v56 = vpop.f32.mrb[42].mxu1 }
 0x5b1   : > { %7755 = vst [vmem:[%s15471_s15 + $0x10] sm:$0xff] %v7635_v15  ;;  %v7638_v6 = vadd.f32 %v8265_v56, %v15465_v10  ;;  %v7629_v37 = vpop.f32.mrb[43].mxu1 }
 0x5b2   : > { %7753 = vst [vmem:[%s15471_s15] sm:$0xff] %v7627_v21  ;;  %v7630_v49 = vadd.f32 %v15465_v10, %v7629_v37 }
 0x5b3   : > { %7756 = vst [vmem:[%s15471_s15 + $0x18] sm:$0xff] %v7638_v6 }
 0x5b4   : > { %7754 = vst [vmem:[%s15471_s15 + $0x8] sm:$0xff] %v7630_v49 }
 0x5b6   : > { %v8268_v24 = vpop.f32.mrb[44].mxu1 }
 0x5b7   : > { %v7651_v46 = vadd.f32 %v8268_v24, %v15465_v10  ;;  %v7642_v63 = vpop.f32.mrb[45].mxu1 }
 0x5b8   : > { %v7643_v40 = vadd.f32 %v15465_v10, %v7642_v63  ;;  %v8269_v14 = vpop.f32.mrb[46].mxu1 }
 0x5b9   : > { %7759 = vst [vmem:[%s15471_s15 + $0x30] sm:$0xff] %v7651_v46  ;;  %v7654_v54 = vadd.f32 %v8269_v14, %v15465_v10  ;;  %v7645_v3 = vpop.f32.mrb[47].mxu1 }
 0x5ba   : > { %7757 = vst [vmem:[%s15471_s15 + $0x20] sm:$0xff] %v7643_v40  ;;  %v7646_v16 = vadd.f32 %v15465_v10, %v7645_v3 }
 0x5bb   : > { %7760 = vst [vmem:[%s15471_s15 + $0x38] sm:$0xff] %v7654_v54 }
 0x5bc   : > { %7758 = vst [vmem:[%s15471_s15 + $0x28] sm:$0xff] %v7646_v16 }
 0x5d1   : > { %v8272_v7 = vpop.f32.mrb[48].mxu1 }
 0x5d2   : > { %v7667_v35 = vadd.f32 %v8272_v7, %v15465_v10  ;;  %v7658_v30 = vpop.f32.mrb[49].mxu1 }
 0x5d3   : > { %v7659_v53 = vadd.f32 %v15465_v10, %v7658_v30  ;;  %v8273_v36 = vpop.f32.mrb[50].mxu1 }
 0x5d4   : > { %7763 = vst [vmem:[%s15471_s15 + $0x50] sm:$0xff] %v7667_v35  ;;  %v7670_v44 = vadd.f32 %v8273_v36, %v15465_v10  ;;  %v7661_v48 = vpop.f32.mrb[51].mxu1 }
 0x5d5   : > { %7761 = vst [vmem:[%s15471_s15 + $0x40] sm:$0xff] %v7659_v53  ;;  %v7662_v47 = vadd.f32 %v15465_v10, %v7661_v48 }
 0x5d6   : > { %7764 = vst [vmem:[%s15471_s15 + $0x58] sm:$0xff] %v7670_v44 }
 0x5d7   : > { %7762 = vst [vmem:[%s15471_s15 + $0x48] sm:$0xff] %v7662_v47 }
 0x5f1   : > { %v8276_v42 = vpop.f32.mrb[52].mxu1 }
 0x5f2   : > { %v7683_v20 = vadd.f32 %v8276_v42, %v15465_v10  ;;  %v7674_v18 = vpop.f32.mrb[53].mxu1 }
 0x5f3   : > { %v7675_v29 = vadd.f32 %v15465_v10, %v7674_v18  ;;  %v8277_v32 = vpop.f32.mrb[54].mxu1 }
 0x5f4   : > { %7767 = vst [vmem:[%s15471_s15 + $0x70] sm:$0xff] %v7683_v20  ;;  %v7686_v61 = vadd.f32 %v8277_v32, %v15465_v10  ;;  %v7677_v52 = vpop.f32.mrb[55].mxu1 }
 0x5f5   : > { %7765 = vst [vmem:[%s15471_s15 + $0x60] sm:$0xff] %v7675_v29  ;;  %v7678_v19 = vadd.f32 %v15465_v10, %v7677_v52 }
 0x5f6   : > { %7768 = vst [vmem:[%s15471_s15 + $0x78] sm:$0xff] %v7686_v61 }
 0x5f7   : > { %7766 = vst [vmem:[%s15471_s15 + $0x68] sm:$0xff] %v7678_v19 }
 0x61f   : > { %v8280_v34 = vpop.f32.mrb[56].mxu1 }
 0x620   : > { %v7699_v28 = vadd.f32 %v8280_v34, %v15465_v10  ;;  %v7690_v38 = vpop.f32.mrb[57].mxu1 }
 0x621   : > { %v7691_v57 = vadd.f32 %v15465_v10, %v7690_v38  ;;  %v8281_v26 = vpop.f32.mrb[58].mxu1 }
 0x622   : > { %7771 = vst [vmem:[%s15471_s15 + $0x90] sm:$0xff] %v7699_v28  ;;  %v7702_v50 = vadd.f32 %v8281_v26, %v15465_v10  ;;  %v7693_v27 = vpop.f32.mrb[59].mxu1 }
 0x623   : > { %7769 = vst [vmem:[%s15471_s15 + $0x80] sm:$0xff] %v7691_v57  ;;  %v7694_v9 = vadd.f32 %v15465_v10, %v7693_v27 }
 0x624   : > { %7772 = vst [vmem:[%s15471_s15 + $0x98] sm:$0xff] %v7702_v50 }
 0x625   : > { %7770 = vst [vmem:[%s15471_s15 + $0x88] sm:$0xff] %v7694_v9 }
 0x63f   : > { %v8284_v58 = vpop.f32.mrb[60].mxu1 }
 0x640   : > { %v7715_v59 = vadd.f32 %v8284_v58, %v15465_v10  ;;  %v7706_v13 = vpop.f32.mrb[61].mxu1 }
 0x641   : > { %v7707_v8 = vadd.f32 %v15465_v10, %v7706_v13  ;;  %v8285_v1 = vpop.f32.mrb[62].mxu1 }
 0x642   : > { %7775 = vst [vmem:[%s15471_s15 + $0xb0] sm:$0xff] %v7715_v59  ;;  %v7718_v4 = vadd.f32 %v8285_v1, %v15465_v10  ;;  %v7709_v39 = vpop.f32.mrb[63].mxu1 }
 0x643   : > { %7773 = vst [vmem:[%s15471_s15 + $0xa0] sm:$0xff] %v7707_v8  ;;  %v7710_v5 = vadd.f32 %v15465_v10, %v7709_v39 }
 0x644   : > { %7776 = vst [vmem:[%s15471_s15 + $0xb8] sm:$0xff] %v7718_v4 }
 0x645   : > { %7774 = vst [vmem:[%s15471_s15 + $0xa8] sm:$0xff] %v7710_v5 }
 0x65f   : > { %v8288_v12 = vpop.f32.mrb[64].mxu1 }
 0x660   : > { %v7731_v43 = vadd.f32 %v8288_v12, %v15465_v10  ;;  %v7722_v62 = vpop.f32.mrb[65].mxu1 }
 0x661   : > { %v7723_v0 = vadd.f32 %v15465_v10, %v7722_v62  ;;  %v8289_v22 = vpop.f32.mrb[66].mxu1 }
 0x662   : > { %7779 = vst [vmem:[%s15471_s15 + $0xd0] sm:$0xff] %v7731_v43  ;;  %v7734_v45 = vadd.f32 %v8289_v22, %v15465_v10  ;;  %v7725_v11 = vpop.f32.mrb[67].mxu1 }
 0x663   : > { %7777 = vst [vmem:[%s15471_s15 + $0xc0] sm:$0xff] %v7723_v0  ;;  %v7726_v41 = vadd.f32 %v15465_v10, %v7725_v11 }
 0x664   : > { %7780 = vst [vmem:[%s15471_s15 + $0xd8] sm:$0xff] %v7734_v45 }
 0x665   : > { %7778 = vst [vmem:[%s15471_s15 + $0xc8] sm:$0xff] %v7726_v41 }
 0x682   : > { %v8292_v17 = vpop.f32.mrb[68].mxu1 }
 0x683   : > { %v7747_v23 = vadd.f32 %v8292_v17, %v15465_v10  ;;  %v7738_v33 = vpop.f32.mrb[69].mxu1 }
 0x684   : > { %v7739_v25 = vadd.f32 %v15465_v10, %v7738_v33  ;;  %v8293_v60 = vpop.f32.mrb[70].mxu1 }
 0x685   : > { %7783 = vst [vmem:[%s15471_s15 + $0xf0] sm:$0xff] %v7747_v23  ;;  %v7750_v2 = vadd.f32 %v8293_v60, %v15465_v10  ;;  %v7741_v31 = vpop.f32.mrb[71].mxu1 }
 0x686   : > { %7781 = vst [vmem:[%s15471_s15 + $0xe0] sm:$0xff] %v7739_v25  ;;  %v7742_v55 = vadd.f32 %v15465_v10, %v7741_v31 }
 0x687   : > { %7784 = vst [vmem:[%s15471_s15 + $0xf8] sm:$0xff] %v7750_v2 }
 0x688   : > { %7782 = vst [vmem:[%s15471_s15 + $0xe8] sm:$0xff] %v7742_v55 }
 0x689   : > { %10371 = shalt.err (!%p10368_p8)
}
 0x68a   : > { %s10372_s28 = scalar_lea.hbm %s15536_s16, 4096  ;;  %s10376_s15 = scalar_lea.hbm %s15594_s7, 8192 }
 0x68b   : > { %p10373_p4 = scmp.ne.s32.totalorder %s15536_s16, %s10372_s28  ;;  %p10377_p0 = scmp.lt.u32.totalorder %s15536_s16, %s15594_s7 }
 0x68c   : > { %p10378_p6 = scmp.lt.u32.totalorder %s10376_s15, %s10372_s28  ;;  %p10380_p5 = scmp.lt.u32.totalorder %s10372_s28, %s15536_s16 }
 0x68d   : > { %p10374_p10 = pnand %p10373_p4, %p16853_p9 }
 0x68e   : > { %p10379_p7 = por %p10378_p6, %p10377_p0 }
 0x68f   : > { %p10375_p11 = pneg %p10374_p10 }
 0x690   : > { %p10381_p12 = por %p10380_p5, %p10379_p7 }
 0x692   : > { %p10382_p13 = pnand %p10381_p12, %p10375_p11 }
 0x694   : > { %10385 = shalt.err (!%p10382_p13)
}
 0x695   : > { %s10463_s12 = smov 128  }
 0x696   : > { %8331 = dma.vmem_to_hbm [thread:$0]  (%p16853_p9), %s15540_s14, 4096, %s15536_s16, %s7786_s30, %s10463_s12, %s10463_s12, %s10448_s18  }
 0x697 PF: > { %s7814_s21 = sand.u32 1, %s10424_s24   ;;  %p16854_p1 = scmp.ne.s32.totalorder %s15999_s10, 0 }
 0x698   : > { %p16855_p3 = scmp.ge.s32.totalorder %s10436_s27, 2  ;;  %s7815_s19 = scalar_lea.sflag [#allocation4], %s7814_s21 }
 0x69a   : > { %p8357_p2 = pnand %p16855_p3, %p16854_p1 }
 0x69c   : > { %10419 = dma.done.wait (!%p8357_p2), %s7815_s19, 4096  }
 0x69d   : > { %10421 = vsyncadd (!%p8357_p2), %s7815_s19, 4294963200  ;;  %p23_p8 = scmp.ge.s32.totalorder %s10686_s11, 4   ;;  %s16856_s24 = smov %s10428_s25 }
 0x69e   : > { %s16857_s25 = smov %s10432_s26  ;;  %s16858_s26 = smov %s10697_s17 }
 0x69f   : > { %s16859_s27 = smov %s10686_s11  ;;  %25 = sbr.rel (!%p23_p8) target bundleno = 10 (0xa), region = 117 }
 0x6a6   :  { %7820 = vsyncpa [#allocation3], 1 }
 0x6a7   :  { %7822 = vsyncpa [#allocation3 + $0x1], 1 }
 0x6a8   :  { %7823 = vsyncpa [#allocation6], 1 }
 0x6a9   :  { %7824 = vsyncpa [#allocation9], 1 }
 0x6aa   :  { %7825 = vsyncpa [#allocation12], 1 }
 0x6ab   :  { %7826 = vsyncpa [#allocation4], 1 }
 0x6ac   :  { %7828 = vsyncpa [#allocation4 + $0x1], 1 }

</bundles_post_ra>
